<compile_context>
chip_gen: v7x
topology: tpu7x:2x2x1
jax: 0.10.0
libtpu: 0.0.40
codegen_flags: <defaults>
</compile_context>

<pallas_src>
import math
import jax
import jax.numpy as jnp
from jax import lax
from jax.experimental import pallas as pl
from jax.experimental.pallas import tpu as pltpu

# ---- model hyper-parameters (from the PyTorch module defaults / globals) ----
O1, O2, O3, O4 = 8, 32, 32, 64
K1, K2, K3, K4 = 2, 1, 4, 2
KP1, KP2, KP3, KP4 = 4, 4, 1, 1
N_CLASSES = 20
HIDDEN = 128
SEGMENT_LEN = 100
N_LAYERS = 2

# per-layer spatial sizes implied by the module
L1C = SEGMENT_LEN - K1 + 1        # 99
LP1 = L1C // KP1                  # 24
L2C = LP1 - K2 + 1                # 24
LP2 = L2C // KP2                  # 6
L3C = LP2 - K3 + 1                # 3
LP3 = L3C // KP3                  # 3
L4C = LP3 - K4 + 1                # 2
LP4 = L4C // KP4                  # 2
CONV_LINEAR_OUT = LP4 * O4        # 128 (== the module's conv_linear_out)

# structural facts the fused kernel relies on (all hold for the module defaults)
assert K2 == 1 and LP1 == KP2 * LP2
assert KP3 == 1 and KP4 == 1 and LP3 == L3C and LP4 == L4C
assert LP4 == 2 and CONV_LINEAR_OUT == 128
assert KP1 * KP2 * K1 == 32 and KP1 * KP2 * O1 == 128 and KP2 * O2 == 128


def _full_spec(shape):
    n = len(shape)
    return pl.BlockSpec(shape, lambda i, n=n: (0,) * n)


# ------------------------------ fused kernel ---------------------------------

def fused_forward_kernel(a1_ref,
                         w1b_ref, b1b_ref, w2b_ref, b2b_ref,
                         w3c_ref, b3_ref, w4c_ref, b4_ref,
                         wih0c_ref, bih0f_ref, whhc_ref, bhhn_ref,
                         wih1_ref, bih1f_ref,
                         wf_ref, bf_ref,
                         o_ref,
                         gi0_ref, hcol_ref):
    """Whole CNN forward in one kernel invocation (grid=(1,)).

    a1_ref : (LP2*N, 32) conv1 patch rows, row = lp2*N + n, lane = (j1*4+j2)*2 + k
    o_ref  : (N, n_classes) output (N = padded batch, multiple of 8)
    gi0_ref: (N, 3H) scratch holding the hoisted GRU layer-0 input projection
    hcol_ref: (N, H) scratch collecting the top-layer GRU states
    """
    f32 = jnp.float32
    N = o_ref.shape[0]
    H = HIDDEN
    BP1 = KP2 * O1            # 32  : pool-1 lane-block width
    BP2 = O2                  # 32  : pool-2 lane-block width

    def sig(v):
        # sigmoid as 0.5*(1 + tanh(v/2)): one EUP op, no f32 divide on the
        # serial critical path (replaces exp + precise reciprocal).
        return 0.5 + 0.5 * jnp.tanh(0.5 * v)

    # LeakyReLU after each conv block is applied to ReLU/maxpool outputs (>= 0),
    # so it is an exact identity and is omitted.

    # ---- conv1 + ReLU as one matmul against a per-(j1,j2) block weight; pool1
    #      is the max over KP1 aligned 32-lane blocks (cols ordered (j1, j2, o1)).
    y1 = jnp.maximum(jnp.dot(a1_ref[...], w1b_ref[...], preferred_element_type=f32)
                     + b1b_ref[...], 0.0)                                # (6N, 128)
    p1 = y1[:, 0:BP1]
    for j in range(1, KP1):
        p1 = jnp.maximum(p1, y1[:, j * BP1:(j + 1) * BP1])               # (6N, 32) cols (j2, o1)

    # ---- conv2 (1x1) + ReLU with a block-diagonal weight; pool2 is the max over
    #      KP2 aligned 32-lane blocks (cols ordered (j2, o2)).
    y2 = jnp.maximum(jnp.dot(p1, w2b_ref[...], preferred_element_type=f32)
                     + b2b_ref[...], 0.0)                                # (6N, 128)
    a2 = y2[:, 0:BP2]
    for j in range(1, KP2):
        a2 = jnp.maximum(a2, y2[:, j * BP2:(j + 1) * BP2])               # (6N, 32) rows (lp2, n)

    # ---- conv3: lane-concatenate the K3 shifted row windows (all slices start at
    #      multiples of N, N % 8 == 0 -> sublane-aligned) and contract 128-deep once.
    r3 = L3C * N
    a3 = jnp.concatenate([a2[k * N:k * N + r3] for k in range(K3)], axis=1)   # (3N, 128)
    y3 = jnp.maximum(jnp.dot(a3, w3c_ref[...], preferred_element_type=f32)
                     + b3_ref[...], 0.0)                                 # (3N, 32) rows (lp3, n)

    # ---- conv4: same trick, 64-deep contraction.
    r4 = L4C * N
    a4 = jnp.concatenate([y3[k * N:k * N + r4] for k in range(K4)], axis=1)   # (2N, 64)
    y4 = jnp.maximum(jnp.dot(a4, w4c_ref[...], preferred_element_type=f32)
                     + b4_ref[...], 0.0)                                 # (2N, 64) rows (lp4, n)

    # ---- GRU layer-0 input projection for all timesteps at once. The PyTorch
    #      channel-major .view(N, -1) flatten is absorbed into the reordered
    #      wih0 rows; r/z-gate biases (bih0 + bhh0) are pre-folded at pack time.
    gcat = jnp.concatenate([y4[0:N], y4[N:2 * N]], axis=1)               # (N, 128)
    gi0_ref[...] = (jnp.dot(gcat, wih0c_ref[...], preferred_element_type=f32)
                    + bih0f_ref[...])                                    # (N, 3H), row t == step t

    # ---- recurrence. Loop-invariant bias rows hoisted; the big weights stay as
    #      per-use VMEM reads (they would only spill if pinned in vregs).
    bhhn = bhhn_ref[...]                                                 # (1, 6H): [0,0,bhh0_n | 0,0,bhh1_n]
    bih1f = bih1f_ref[...]                                               # (1, 3H): bih1 + [bhh1_r, bhh1_z, 0]

    def gru_step(h0, h1, gi0_row):
        # both layers' recurrent projections in ONE block-diagonal matmul
        gh = jnp.dot(jnp.concatenate([h0, h1], axis=1), whhc_ref[...],
                     preferred_element_type=f32) + bhhn                  # (1, 6H)
        r0 = sig(gi0_row[:, 0:H] + gh[:, 0:H])
        z0 = sig(gi0_row[:, H:2 * H] + gh[:, H:2 * H])
        n0 = jnp.tanh(gi0_row[:, 2 * H:3 * H] + r0 * gh[:, 2 * H:3 * H])
        h0 = (1.0 - z0) * n0 + z0 * h0
        # TODO(synk): nn.GRU inter-layer dropout is train-only/stochastic; eval (identity) here.
        gi1 = jnp.dot(h0, wih1_ref[...], preferred_element_type=f32) + bih1f
        r1 = sig(gi1[:, 0:H] + gh[:, 3 * H:4 * H])
        z1 = sig(gi1[:, H:2 * H] + gh[:, 4 * H:5 * H])
        n1 = jnp.tanh(gi1[:, 2 * H:3 * H] + r1 * gh[:, 5 * H:6 * H])
        h1 = (1.0 - z1) * n1 + z1 * h1
        return h0, h1

    def block_body(blk, carry):
        h0, h1 = carry
        base = blk * 8
        if not isinstance(base, int):
            base = pl.multiple_of(base, 8)
        gi_blk = gi0_ref[pl.ds(base, 8), :]                              # aligned (8, 3H) read
        rows = []
        for i in range(8):
            h0, h1 = gru_step(h0, h1, gi_blk[i:i + 1, :])
            rows.append(h1)
        # batched, aligned (8, H) writeback instead of 8 masked single-row stores
        hcol_ref[pl.ds(base, 8), :] = jnp.concatenate(rows, axis=0)
        return h0, h1

    carry = (jnp.zeros((1, H), f32), jnp.zeros((1, H), f32))
    nblk = N // 8
    if nblk <= 8:
        # small N (demo): fully unrolled, hidden state carried in vregs
        for blk in range(nblk):
            carry = block_body(blk, carry)
    else:
        # large N: rolled loop bounds live ranges / compile time
        carry = lax.fori_loop(0, nblk, block_body, carry)

    # ---- logsigmoid + fc2 as one matmul and one store.
    hs = hcol_ref[...]                                                   # (N, H)
    ls = jnp.minimum(hs, 0.0) - jnp.log(1.0 + jnp.exp(-jnp.abs(hs)))
    o_ref[...] = jnp.dot(ls, wf_ref[...], preferred_element_type=f32) + bf_ref[...]


# ------------------------------- wrappers -------------------------------------

def build_conv1_rows(x, n_pad):
    """Layer-1 im2col (C_in == 1), row-oriented and lane-dense.

    Output (LP2*n_pad, KP1*KP2*K1) = (6N, 32):
      row  = lp2 * N + n            (pool-2 position major, batch minor)
      lane = (j1*KP2 + j2)*K1 + k   (pool-1 tap, pool-2 tap, conv tap)
      value = x[n, lp2*16 + j2*4 + j1 + k]
    Contiguous 128-byte rows in HBM; ~16x less VMEM than a (96N, 2) patch matrix.
    """
    n0 = x.shape[0]
    xs = x[:, 0, :].astype(jnp.float32)                       # (n0, L)
    if n_pad > n0:
        xs = jnp.concatenate(
            [xs, jnp.zeros((n_pad - n0, xs.shape[1]), jnp.float32)], axis=0)
    j1 = jnp.arange(KP1)
    j2 = jnp.arange(KP2)
    kk = jnp.arange(K1)
    lp = jnp.arange(LP2)
    pos = (lp[:, None, None, None] * (KP1 * KP2)
           + j2[None, None, :, None] * KP1
           + j1[None, :, None, None]
           + kk[None, None, None, :])                         # (LP2, KP1, KP2, K1)
    g = xs[:, pos]                                            # (N, LP2, KP1, KP2, K1)
    g = jnp.transpose(g, (1, 0, 2, 3, 4))                     # (LP2, N, KP1, KP2, K1)
    return g.reshape(LP2 * n_pad, KP1 * KP2 * K1)


def pack_params(p):
    """One-time repack of PyTorch-layout params into the fused kernel's layouts."""
    (w1, b1), (w2, b2), (w3, b3), (w4, b4) = p['conv']
    g0, g1 = p['gru']
    H = HIDDEN

    # conv1 block weight: rows s=(j1*4+j2)*2+k, cols c=(j1*4+j2)*8+o1
    w1ko = w1[:, 0, :].T                                       # (K1, O1)
    w1b = jnp.zeros((KP1 * KP2 * K1, KP1 * KP2 * O1), jnp.float32)
    for j in range(KP1 * KP2):
        w1b = w1b.at[j * K1:(j + 1) * K1, j * O1:(j + 1) * O1].set(w1ko)
    b1b = jnp.tile(b1.reshape(1, O1), (1, KP1 * KP2))          # (1, 128)

    # conv2 (1x1) block-diagonal weight: rows j2*8+o1, cols j2*32+o2
    w2io = w2[:, :, 0].T                                       # (O1, O2)
    w2b = jnp.zeros((KP2 * O1, KP2 * O2), jnp.float32)
    for j in range(KP2):
        w2b = w2b.at[j * O1:(j + 1) * O1, j * O2:(j + 1) * O2].set(w2io)
    b2b = jnp.tile(b2.reshape(1, O2), (1, KP2))                # (1, 128)

    # conv3/conv4 lane-concatenated tap weights
    w3c = jnp.transpose(w3, (2, 1, 0)).reshape(K3 * O2, O3)    # (128, 32)
    w4c = jnp.transpose(w4, (2, 1, 0)).reshape(K4 * O3, O4)    # (64, 64)

    # GRU layer-0 input weight reordered to match the lane-concatenated flatten
    # ([pos-0 channels | pos-1 channels]); PyTorch flatten index f = o4*LP4 + lp4.
    wih0 = g0['wih']                                           # (128, 3H)
    wih0c = jnp.concatenate([wih0[j::LP4, :] for j in range(LP4)], axis=0)

    # bias folding: r/z gates see (bih + bhh) once; n gate keeps bhh separate.
    def fold_bih(bih, bhh):
        return bih + jnp.concatenate([bhh[:, :2 * H], jnp.zeros((1, H), jnp.float32)], axis=1)

    def fold_bhh(bhh):
        return jnp.concatenate([jnp.zeros((1, 2 * H), jnp.float32), bhh[:, 2 * H:]], axis=1)

    bih0f = fold_bih(g0['bih'], g0['bhh'])
    bih1f = fold_bih(g1['bih'], g1['bhh'])
    bhhn = jnp.concatenate([fold_bhh(g0['bhh']), fold_bhh(g1['bhh'])], axis=1)   # (1, 6H)

    # block-diagonal fused recurrent weight (2H, 6H)
    whhc = jnp.zeros((2 * H, 6 * H), jnp.float32)
    whhc = whhc.at[:H, :3 * H].set(g0['whh'])
    whhc = whhc.at[H:, 3 * H:].set(g1['whh'])

    return dict(w1b=w1b, b1b=b1b, w2b=w2b, b2b=b2b,
                w3c=w3c, b3=b3.reshape(1, -1), w4c=w4c, b4=b4.reshape(1, -1),
                wih0c=wih0c, bih0f=bih0f, whhc=whhc, bhhn=bhhn,
                wih1=g1['wih'], bih1f=bih1f,
                wf=p['fc2_w'], bf=p['fc2_b'])


def cnn_forward(x, kp):
    """x: (N, 1, SEGMENT_LEN) -> (N, n_classes); kp = pack_params(init_params(...))."""
    n0 = x.shape[0]
    n_pad = ((n0 + 7) // 8) * 8            # pad the batch/time axis to a multiple of 8
    a1 = build_conv1_rows(x, n_pad)
    args = [a1,
            kp['w1b'], kp['b1b'], kp['w2b'], kp['b2b'],
            kp['w3c'], kp['b3'], kp['w4c'], kp['b4'],
            kp['wih0c'], kp['bih0f'], kp['whhc'], kp['bhhn'],
            kp['wih1'], kp['bih1f'],
            kp['wf'], kp['bf']]
    out = pl.pallas_call(
        fused_forward_kernel,
        out_shape=jax.ShapeDtypeStruct((n_pad, N_CLASSES), jnp.float32),
        grid=(1,),
        in_specs=[_full_spec(a.shape) for a in args],
        out_specs=_full_spec((n_pad, N_CLASSES)),
        scratch_shapes=[pltpu.VMEM((n_pad, 3 * HIDDEN), jnp.float32),
                        pltpu.VMEM((n_pad, HIDDEN), jnp.float32)],
        compiler_params=pltpu.CompilerParams(
            dimension_semantics=("arbitrary",),
            vmem_limit_bytes=32 * 1024 * 1024),
    )(*args)
    return out[:n0]


# ---------------------------- parameter init ----------------------------------

def init_params(key):
    ks = iter(jax.random.split(key, 32))

    def kaiming(k, shape, fan_in):                      # kaiming_normal_, gain sqrt(2)
        return (jax.random.normal(k, shape) * jnp.sqrt(2.0 / fan_in)).astype(jnp.float32)

    def uniform(k, shape, bound):
        return jax.random.uniform(k, shape, minval=-bound, maxval=bound, dtype=jnp.float32)

    p = {'conv': []}
    for (o, c, k) in [(O1, 1, K1), (O2, O1, K2), (O3, O2, K3), (O4, O3, K4)]:
        w = kaiming(next(ks), (o, c, k), c * k)
        b = uniform(next(ks), (o,), 1.0 / math.sqrt(c * k))
        p['conv'].append((w, b))

    H = HIDDEN
    bound = 1.0 / math.sqrt(H)
    p['gru'] = []
    for l in range(N_LAYERS):
        in_dim = CONV_LINEAR_OUT if l == 0 else H
        p['gru'].append({
            'wih': uniform(next(ks), (3 * H, in_dim), bound).T,   # stored transposed (in, 3H)
            'whh': uniform(next(ks), (3 * H, H), bound).T,        # (H, 3H)
            'bih': uniform(next(ks), (1, 3 * H), bound),
            'bhh': uniform(next(ks), (1, 3 * H), bound),
        })

    p['fc2_w'] = kaiming(next(ks), (N_CLASSES, H), H).T           # (H, n_classes)
    p['fc2_b'] = uniform(next(ks), (1, N_CLASSES), 1.0 / math.sqrt(H))
    return p


# ---------------------------- pure-JAX reference ------------------------------

def ref_forward(x, p):
    def conv1d(x, W, b):
        N, C, L = x.shape
        O, _, K = W.shape
        Lo = L - K + 1
        cols = jnp.stack([x[:, :, k:k + Lo] for k in range(K)], axis=-1)
        return jnp.einsum('nclk,ock->nol', cols, W) + b[None, :, None]

    def pool(x, kp):
        N, C, L = x.shape
        Lp = L // kp
        return x[:, :, :Lp * kp].reshape(N, C, Lp, kp).max(axis=-1)

    def lrelu(v):
        return jnp.where(v >= 0, v, 0.01 * v)

    x = x.astype(jnp.float32)
    for (w, b), kp in zip(p['conv'], (KP1, KP2, KP3, KP4)):
        x = lrelu(pool(jnp.maximum(conv1d(x, w, b), 0.0), kp))
    x = x.reshape(x.shape[0], -1)

    H = HIDDEN
    sigmoid = lambda v: 1.0 / (1.0 + jnp.exp(-v))
    hs = [jnp.zeros((1, H), jnp.float32) for _ in range(N_LAYERS)]
    outs = []
    for t in range(x.shape[0]):
        inp = x[t:t + 1]
        for l in range(N_LAYERS):
            g = p['gru'][l]
            gi = inp @ g['wih'] + g['bih']
            gh = hs[l] @ g['whh'] + g['bhh']
            r = sigmoid(gi[:, :H] + gh[:, :H])
            z = sigmoid(gi[:, H:2 * H] + gh[:, H:2 * H])
            n = jnp.tanh(gi[:, 2 * H:] + r * gh[:, 2 * H:])
            hs[l] = (1 - z) * n + z * hs[l]
            inp = hs[l]
        ls = jnp.minimum(inp, 0.0) - jnp.log(1.0 + jnp.exp(-jnp.abs(inp)))
        outs.append(ls @ p['fc2_w'] + p['fc2_b'])
    return jnp.concatenate(outs, axis=0)


if __name__ == "__main__":
    key = jax.random.PRNGKey(0)
    pkey, xkey = jax.random.split(key)
    params = init_params(pkey)
    kp = pack_params(params)

    batch = 4
    x = jax.random.normal(xkey, (batch, 1, SEGMENT_LEN), dtype=jnp.float32)

    out = jax.jit(cnn_forward)(x, kp)
    out = jax.block_until_ready(out)

    ref = ref_forward(x, params)
    assert out.shape == (batch, N_CLASSES), out.shape
    err = float(jnp.max(jnp.abs(out - ref)))
    assert jnp.allclose(out, ref, atol=2e-3, rtol=2e-3), err
    print("KERNEL_OK")
</pallas_src>

<mosaic_0001>
module attributes {stable_mosaic.version = 11 : i64} {
  func.func @fused_forward_kernel(%arg0: i32, %arg1: memref<48x32xf32, #tpu.memory_space<vmem>>, %arg2: memref<32x128xf32, #tpu.memory_space<vmem>>, %arg3: memref<1x128xf32, #tpu.memory_space<vmem>>, %arg4: memref<32x128xf32, #tpu.memory_space<vmem>>, %arg5: memref<1x128xf32, #tpu.memory_space<vmem>>, %arg6: memref<128x32xf32, #tpu.memory_space<vmem>>, %arg7: memref<1x32xf32, #tpu.memory_space<vmem>>, %arg8: memref<64x64xf32, #tpu.memory_space<vmem>>, %arg9: memref<1x64xf32, #tpu.memory_space<vmem>>, %arg10: memref<128x384xf32, #tpu.memory_space<vmem>>, %arg11: memref<1x384xf32, #tpu.memory_space<vmem>>, %arg12: memref<256x768xf32, #tpu.memory_space<vmem>>, %arg13: memref<1x768xf32, #tpu.memory_space<vmem>>, %arg14: memref<128x384xf32, #tpu.memory_space<vmem>>, %arg15: memref<1x384xf32, #tpu.memory_space<vmem>>, %arg16: memref<128x20xf32, #tpu.memory_space<vmem>>, %arg17: memref<1x20xf32, #tpu.memory_space<vmem>>, %arg18: memref<8x20xf32, #tpu.memory_space<vmem>>, %arg19: memref<8x384xf32, #tpu.memory_space<vmem>>, %arg20: memref<8x128xf32, #tpu.memory_space<vmem>>) attributes {dimension_semantics = [#tpu.dimension_semantics<arbitrary>], iteration_bounds = array<i64: 1>, scalar_prefetch = 0 : i64, scratch_operands = 2 : i64, tpu.core_type = #tpu.core_type<tc>, window_params = [{pipeline_mode = #tpu.pipeline_mode<synchronous>, transform_indices = @transform_0, window_bounds = array<i64: 48, 32>}, {pipeline_mode = #tpu.pipeline_mode<synchronous>, transform_indices = @transform_1, window_bounds = array<i64: 32, 128>}, {pipeline_mode = #tpu.pipeline_mode<synchronous>, transform_indices = @transform_2, window_bounds = array<i64: 1, 128>}, {pipeline_mode = #tpu.pipeline_mode<synchronous>, transform_indices = @transform_3, window_bounds = array<i64: 32, 128>}, {pipeline_mode = #tpu.pipeline_mode<synchronous>, transform_indices = @transform_4, window_bounds = array<i64: 1, 128>}, {pipeline_mode = #tpu.pipeline_mode<synchronous>, transform_indices = @transform_5, window_bounds = array<i64: 128, 32>}, {pipeline_mode = #tpu.pipeline_mode<synchronous>, transform_indices = @transform_6, window_bounds = array<i64: 1, 32>}, {pipeline_mode = #tpu.pipeline_mode<synchronous>, transform_indices = @transform_7, window_bounds = array<i64: 64, 64>}, {pipeline_mode = #tpu.pipeline_mode<synchronous>, transform_indices = @transform_8, window_bounds = array<i64: 1, 64>}, {pipeline_mode = #tpu.pipeline_mode<synchronous>, transform_indices = @transform_9, window_bounds = array<i64: 128, 384>}, {pipeline_mode = #tpu.pipeline_mode<synchronous>, transform_indices = @transform_10, window_bounds = array<i64: 1, 384>}, {pipeline_mode = #tpu.pipeline_mode<synchronous>, transform_indices = @transform_11, window_bounds = array<i64: 256, 768>}, {pipeline_mode = #tpu.pipeline_mode<synchronous>, transform_indices = @transform_12, window_bounds = array<i64: 1, 768>}, {pipeline_mode = #tpu.pipeline_mode<synchronous>, transform_indices = @transform_13, window_bounds = array<i64: 128, 384>}, {pipeline_mode = #tpu.pipeline_mode<synchronous>, transform_indices = @transform_14, window_bounds = array<i64: 1, 384>}, {pipeline_mode = #tpu.pipeline_mode<synchronous>, transform_indices = @transform_15, window_bounds = array<i64: 128, 20>}, {pipeline_mode = #tpu.pipeline_mode<synchronous>, transform_indices = @transform_16, window_bounds = array<i64: 1, 20>}, {pipeline_mode = #tpu.pipeline_mode<synchronous>, transform_indices = @transform_17, window_bounds = array<i64: 8, 20>}]} {
    %c0 = arith.constant 0 : index
    %c0_0 = arith.constant 0 : index
    %0 = vector.load %arg1[%c0, %c0_0] : memref<48x32xf32, #tpu.memory_space<vmem>>, vector<48x32xf32>
    %c0_1 = arith.constant 0 : index
    %c0_2 = arith.constant 0 : index
    %1 = vector.load %arg2[%c0_1, %c0_2] : memref<32x128xf32, #tpu.memory_space<vmem>>, vector<32x128xf32>
    %cst = arith.constant dense<0.000000e+00> : vector<48x128xf32>
    %2 = tpu.matmul %0, %1, %cst {dimension_numbers = #tpu.dot_dimension_numbers<[1], [0], [0], [1], [0, 0, 1, 1], [], []>} : vector<48x32xf32>, vector<32x128xf32>, vector<48x128xf32> -> vector<48x128xf32>
    %c0_3 = arith.constant 0 : index
    %c0_4 = arith.constant 0 : index
    %3 = vector.load %arg3[%c0_3, %c0_4] : memref<1x128xf32, #tpu.memory_space<vmem>>, vector<1x128xf32>
    %4 = vector.broadcast %3 : vector<1x128xf32> to vector<48x128xf32>
    %5 = arith.addf %2, %4 : vector<48x128xf32>
    %cst_5 = arith.constant 0.000000e+00 : f32
    %6 = vector.broadcast %cst_5 : f32 to vector<48x128xf32>
    %7 = arith.maximumf %5, %6 : vector<48x128xf32>
    %8 = vector.extract_strided_slice %7 {offsets = [0, 0], sizes = [48, 32], strides = [1, 1]} : vector<48x128xf32> to vector<48x32xf32>
    %9 = vector.extract_strided_slice %7 {offsets = [0, 32], sizes = [48, 32], strides = [1, 1]} : vector<48x128xf32> to vector<48x32xf32>
    %10 = arith.maximumf %8, %9 : vector<48x32xf32>
    %11 = vector.extract_strided_slice %7 {offsets = [0, 64], sizes = [48, 32], strides = [1, 1]} : vector<48x128xf32> to vector<48x32xf32>
    %12 = arith.maximumf %10, %11 : vector<48x32xf32>
    %13 = vector.extract_strided_slice %7 {offsets = [0, 96], sizes = [48, 32], strides = [1, 1]} : vector<48x128xf32> to vector<48x32xf32>
    %14 = arith.maximumf %12, %13 : vector<48x32xf32>
    %c0_6 = arith.constant 0 : index
    %c0_7 = arith.constant 0 : index
    %15 = vector.load %arg4[%c0_6, %c0_7] : memref<32x128xf32, #tpu.memory_space<vmem>>, vector<32x128xf32>
    %cst_8 = arith.constant dense<0.000000e+00> : vector<48x128xf32>
    %16 = tpu.matmul %14, %15, %cst_8 {dimension_numbers = #tpu.dot_dimension_numbers<[1], [0], [0], [1], [0, 0, 1, 1], [], []>} : vector<48x32xf32>, vector<32x128xf32>, vector<48x128xf32> -> vector<48x128xf32>
    %c0_9 = arith.constant 0 : index
    %c0_10 = arith.constant 0 : index
    %17 = vector.load %arg5[%c0_9, %c0_10] : memref<1x128xf32, #tpu.memory_space<vmem>>, vector<1x128xf32>
    %18 = vector.broadcast %17 : vector<1x128xf32> to vector<48x128xf32>
    %19 = arith.addf %16, %18 : vector<48x128xf32>
    %cst_11 = arith.constant 0.000000e+00 : f32
    %20 = vector.broadcast %cst_11 : f32 to vector<48x128xf32>
    %21 = arith.maximumf %19, %20 : vector<48x128xf32>
    %22 = vector.extract_strided_slice %21 {offsets = [0, 0], sizes = [48, 32], strides = [1, 1]} : vector<48x128xf32> to vector<48x32xf32>
    %23 = vector.extract_strided_slice %21 {offsets = [0, 32], sizes = [48, 32], strides = [1, 1]} : vector<48x128xf32> to vector<48x32xf32>
    %24 = arith.maximumf %22, %23 : vector<48x32xf32>
    %25 = vector.extract_strided_slice %21 {offsets = [0, 64], sizes = [48, 32], strides = [1, 1]} : vector<48x128xf32> to vector<48x32xf32>
    %26 = arith.maximumf %24, %25 : vector<48x32xf32>
    %27 = vector.extract_strided_slice %21 {offsets = [0, 96], sizes = [48, 32], strides = [1, 1]} : vector<48x128xf32> to vector<48x32xf32>
    %28 = arith.maximumf %26, %27 : vector<48x32xf32>
    %29 = vector.extract_strided_slice %28 {offsets = [0, 0], sizes = [24, 32], strides = [1, 1]} : vector<48x32xf32> to vector<24x32xf32>
    %30 = vector.extract_strided_slice %28 {offsets = [8, 0], sizes = [24, 32], strides = [1, 1]} : vector<48x32xf32> to vector<24x32xf32>
    %31 = vector.extract_strided_slice %28 {offsets = [16, 0], sizes = [24, 32], strides = [1, 1]} : vector<48x32xf32> to vector<24x32xf32>
    %32 = vector.extract_strided_slice %28 {offsets = [24, 0], sizes = [24, 32], strides = [1, 1]} : vector<48x32xf32> to vector<24x32xf32>
    %33 = tpu.concatenate %29, %30, %31, %32 in 1 : vector<24x32xf32>, vector<24x32xf32>, vector<24x32xf32>, vector<24x32xf32> -> vector<24x128xf32>
    %c0_12 = arith.constant 0 : index
    %c0_13 = arith.constant 0 : index
    %34 = vector.load %arg6[%c0_12, %c0_13] : memref<128x32xf32, #tpu.memory_space<vmem>>, vector<128x32xf32>
    %cst_14 = arith.constant dense<0.000000e+00> : vector<24x32xf32>
    %35 = tpu.matmul %33, %34, %cst_14 {dimension_numbers = #tpu.dot_dimension_numbers<[1], [0], [0], [1], [0, 0, 1, 1], [], []>} : vector<24x128xf32>, vector<128x32xf32>, vector<24x32xf32> -> vector<24x32xf32>
    %c0_15 = arith.constant 0 : index
    %c0_16 = arith.constant 0 : index
    %36 = vector.load %arg7[%c0_15, %c0_16] : memref<1x32xf32, #tpu.memory_space<vmem>>, vector<1x32xf32>
    %37 = vector.broadcast %36 : vector<1x32xf32> to vector<24x32xf32>
    %38 = arith.addf %35, %37 : vector<24x32xf32>
    %cst_17 = arith.constant 0.000000e+00 : f32
    %39 = vector.broadcast %cst_17 : f32 to vector<24x32xf32>
    %40 = arith.maximumf %38, %39 : vector<24x32xf32>
    %41 = vector.extract_strided_slice %40 {offsets = [0, 0], sizes = [16, 32], strides = [1, 1]} : vector<24x32xf32> to vector<16x32xf32>
    %42 = vector.extract_strided_slice %40 {offsets = [8, 0], sizes = [16, 32], strides = [1, 1]} : vector<24x32xf32> to vector<16x32xf32>
    %43 = tpu.concatenate %41, %42 in 1 : vector<16x32xf32>, vector<16x32xf32> -> vector<16x64xf32>
    %c0_18 = arith.constant 0 : index
    %c0_19 = arith.constant 0 : index
    %44 = vector.load %arg8[%c0_18, %c0_19] : memref<64x64xf32, #tpu.memory_space<vmem>>, vector<64x64xf32>
    %cst_20 = arith.constant dense<0.000000e+00> : vector<16x64xf32>
    %45 = tpu.matmul %43, %44, %cst_20 {dimension_numbers = #tpu.dot_dimension_numbers<[1], [0], [0], [1], [0, 0, 1, 1], [], []>} : vector<16x64xf32>, vector<64x64xf32>, vector<16x64xf32> -> vector<16x64xf32>
    %c0_21 = arith.constant 0 : index
    %c0_22 = arith.constant 0 : index
    %46 = vector.load %arg9[%c0_21, %c0_22] : memref<1x64xf32, #tpu.memory_space<vmem>>, vector<1x64xf32>
    %47 = vector.broadcast %46 : vector<1x64xf32> to vector<16x64xf32>
    %48 = arith.addf %45, %47 : vector<16x64xf32>
    %cst_23 = arith.constant 0.000000e+00 : f32
    %49 = vector.broadcast %cst_23 : f32 to vector<16x64xf32>
    %50 = arith.maximumf %48, %49 : vector<16x64xf32>
    %51 = vector.extract_strided_slice %50 {offsets = [0, 0], sizes = [8, 64], strides = [1, 1]} : vector<16x64xf32> to vector<8x64xf32>
    %52 = vector.extract_strided_slice %50 {offsets = [8, 0], sizes = [8, 64], strides = [1, 1]} : vector<16x64xf32> to vector<8x64xf32>
    %53 = tpu.concatenate %51, %52 in 1 : vector<8x64xf32>, vector<8x64xf32> -> vector<8x128xf32>
    %c0_24 = arith.constant 0 : index
    %c0_25 = arith.constant 0 : index
    %54 = vector.load %arg10[%c0_24, %c0_25] : memref<128x384xf32, #tpu.memory_space<vmem>>, vector<128x384xf32>
    %cst_26 = arith.constant dense<0.000000e+00> : vector<8x384xf32>
    %55 = tpu.matmul %53, %54, %cst_26 {dimension_numbers = #tpu.dot_dimension_numbers<[1], [0], [0], [1], [0, 0, 1, 1], [], []>} : vector<8x128xf32>, vector<128x384xf32>, vector<8x384xf32> -> vector<8x384xf32>
    %c0_27 = arith.constant 0 : index
    %c0_28 = arith.constant 0 : index
    %56 = vector.load %arg11[%c0_27, %c0_28] : memref<1x384xf32, #tpu.memory_space<vmem>>, vector<1x384xf32>
    %57 = vector.broadcast %56 : vector<1x384xf32> to vector<8x384xf32>
    %58 = arith.addf %55, %57 : vector<8x384xf32>
    %c0_29 = arith.constant 0 : index
    %c0_30 = arith.constant 0 : index
    %59 = vector.load %arg19[%c0_29, %c0_30] : memref<8x384xf32, #tpu.memory_space<vmem>>, vector<8x384xf32>
    tpu.vector_store %arg19[%c0_29, %c0_30], %58 {strides = array<i32>} : memref<8x384xf32, #tpu.memory_space<vmem>>, vector<8x384xf32>,
    %c0_31 = arith.constant 0 : index
    %c0_32 = arith.constant 0 : index
    %60 = vector.load %arg13[%c0_31, %c0_32] : memref<1x768xf32, #tpu.memory_space<vmem>>, vector<1x768xf32>
    %c0_33 = arith.constant 0 : index
    %c0_34 = arith.constant 0 : index
    %61 = vector.load %arg15[%c0_33, %c0_34] : memref<1x384xf32, #tpu.memory_space<vmem>>, vector<1x384xf32>
    %cst_35 = arith.constant 0.000000e+00 : f32
    %62 = vector.broadcast %cst_35 : f32 to vector<1x128xf32>
    %cst_36 = arith.constant 0.000000e+00 : f32
    %63 = vector.broadcast %cst_36 : f32 to vector<1x128xf32>
    %c0_37 = arith.constant 0 : index
    %c0_38 = arith.constant 0 : index
    %64 = vector.load %arg19[%c0_37, %c0_38] : memref<8x384xf32, #tpu.memory_space<vmem>>, vector<8x384xf32>
    %65 = vector.extract_strided_slice %64 {offsets = [0, 0], sizes = [1, 384], strides = [1, 1]} : vector<8x384xf32> to vector<1x384xf32>
    %66 = tpu.concatenate %62, %63 in 1 : vector<1x128xf32>, vector<1x128xf32> -> vector<1x256xf32>
    %c0_39 = arith.constant 0 : index
    %c0_40 = arith.constant 0 : index
    %67 = vector.load %arg12[%c0_39, %c0_40] : memref<256x768xf32, #tpu.memory_space<vmem>>, vector<256x768xf32>
    %cst_41 = arith.constant dense<0.000000e+00> : vector<1x768xf32>
    %68 = tpu.matmul %66, %67, %cst_41 {dimension_numbers = #tpu.dot_dimension_numbers<[1], [0], [0], [1], [0, 0, 1, 1], [], []>} : vector<1x256xf32>, vector<256x768xf32>, vector<1x768xf32> -> vector<1x768xf32>
    %69 = arith.addf %68, %60 : vector<1x768xf32>
    %70 = vector.extract_strided_slice %65 {offsets = [0, 0], sizes = [1, 128], strides = [1, 1]} : vector<1x384xf32> to vector<1x128xf32>
    %71 = vector.extract_strided_slice %69 {offsets = [0, 0], sizes = [1, 128], strides = [1, 1]} : vector<1x768xf32> to vector<1x128xf32>
    %72 = arith.addf %70, %71 : vector<1x128xf32>
    %cst_42 = arith.constant 5.000000e-01 : f32
    %73 = vector.broadcast %cst_42 : f32 to vector<1x128xf32>
    %74 = arith.mulf %73, %72 : vector<1x128xf32>
    %75 = math.tanh %74 : vector<1x128xf32>
    %cst_43 = arith.constant 5.000000e-01 : f32
    %76 = vector.broadcast %cst_43 : f32 to vector<1x128xf32>
    %77 = arith.mulf %76, %75 : vector<1x128xf32>
    %cst_44 = arith.constant 5.000000e-01 : f32
    %78 = vector.broadcast %cst_44 : f32 to vector<1x128xf32>
    %79 = arith.addf %78, %77 : vector<1x128xf32>
    %80 = vector.extract_strided_slice %65 {offsets = [0, 128], sizes = [1, 128], strides = [1, 1]} : vector<1x384xf32> to vector<1x128xf32>
    %81 = vector.extract_strided_slice %69 {offsets = [0, 128], sizes = [1, 128], strides = [1, 1]} : vector<1x768xf32> to vector<1x128xf32>
    %82 = arith.addf %80, %81 : vector<1x128xf32>
    %cst_45 = arith.constant 5.000000e-01 : f32
    %83 = vector.broadcast %cst_45 : f32 to vector<1x128xf32>
    %84 = arith.mulf %83, %82 : vector<1x128xf32>
    %85 = math.tanh %84 : vector<1x128xf32>
    %cst_46 = arith.constant 5.000000e-01 : f32
    %86 = vector.broadcast %cst_46 : f32 to vector<1x128xf32>
    %87 = arith.mulf %86, %85 : vector<1x128xf32>
    %cst_47 = arith.constant 5.000000e-01 : f32
    %88 = vector.broadcast %cst_47 : f32 to vector<1x128xf32>
    %89 = arith.addf %88, %87 : vector<1x128xf32>
    %90 = vector.extract_strided_slice %65 {offsets = [0, 256], sizes = [1, 128], strides = [1, 1]} : vector<1x384xf32> to vector<1x128xf32>
    %91 = vector.extract_strided_slice %69 {offsets = [0, 256], sizes = [1, 128], strides = [1, 1]} : vector<1x768xf32> to vector<1x128xf32>
    %92 = arith.mulf %79, %91 : vector<1x128xf32>
    %93 = arith.addf %90, %92 : vector<1x128xf32>
    %94 = math.tanh %93 : vector<1x128xf32>
    %cst_48 = arith.constant 1.000000e+00 : f32
    %95 = vector.broadcast %cst_48 : f32 to vector<1x128xf32>
    %96 = arith.subf %95, %89 : vector<1x128xf32>
    %97 = arith.mulf %96, %94 : vector<1x128xf32>
    %98 = arith.mulf %89, %62 : vector<1x128xf32>
    %99 = arith.addf %97, %98 : vector<1x128xf32>
    %c0_49 = arith.constant 0 : index
    %c0_50 = arith.constant 0 : index
    %100 = vector.load %arg14[%c0_49, %c0_50] : memref<128x384xf32, #tpu.memory_space<vmem>>, vector<128x384xf32>
    %cst_51 = arith.constant dense<0.000000e+00> : vector<1x384xf32>
    %101 = tpu.matmul %99, %100, %cst_51 {dimension_numbers = #tpu.dot_dimension_numbers<[1], [0], [0], [1], [0, 0, 1, 1], [], []>} : vector<1x128xf32>, vector<128x384xf32>, vector<1x384xf32> -> vector<1x384xf32>
    %102 = arith.addf %101, %61 : vector<1x384xf32>
    %103 = vector.extract_strided_slice %102 {offsets = [0, 0], sizes = [1, 128], strides = [1, 1]} : vector<1x384xf32> to vector<1x128xf32>
    %104 = vector.extract_strided_slice %69 {offsets = [0, 384], sizes = [1, 128], strides = [1, 1]} : vector<1x768xf32> to vector<1x128xf32>
    %105 = arith.addf %103, %104 : vector<1x128xf32>
    %cst_52 = arith.constant 5.000000e-01 : f32
    %106 = vector.broadcast %cst_52 : f32 to vector<1x128xf32>
    %107 = arith.mulf %106, %105 : vector<1x128xf32>
    %108 = math.tanh %107 : vector<1x128xf32>
    %cst_53 = arith.constant 5.000000e-01 : f32
    %109 = vector.broadcast %cst_53 : f32 to vector<1x128xf32>
    %110 = arith.mulf %109, %108 : vector<1x128xf32>
    %cst_54 = arith.constant 5.000000e-01 : f32
    %111 = vector.broadcast %cst_54 : f32 to vector<1x128xf32>
    %112 = arith.addf %111, %110 : vector<1x128xf32>
    %113 = vector.extract_strided_slice %102 {offsets = [0, 128], sizes = [1, 128], strides = [1, 1]} : vector<1x384xf32> to vector<1x128xf32>
    %114 = vector.extract_strided_slice %69 {offsets = [0, 512], sizes = [1, 128], strides = [1, 1]} : vector<1x768xf32> to vector<1x128xf32>
    %115 = arith.addf %113, %114 : vector<1x128xf32>
    %cst_55 = arith.constant 5.000000e-01 : f32
    %116 = vector.broadcast %cst_55 : f32 to vector<1x128xf32>
    %117 = arith.mulf %116, %115 : vector<1x128xf32>
    %118 = math.tanh %117 : vector<1x128xf32>
    %cst_56 = arith.constant 5.000000e-01 : f32
    %119 = vector.broadcast %cst_56 : f32 to vector<1x128xf32>
    %120 = arith.mulf %119, %118 : vector<1x128xf32>
    %cst_57 = arith.constant 5.000000e-01 : f32
    %121 = vector.broadcast %cst_57 : f32 to vector<1x128xf32>
    %122 = arith.addf %121, %120 : vector<1x128xf32>
    %123 = vector.extract_strided_slice %102 {offsets = [0, 256], sizes = [1, 128], strides = [1, 1]} : vector<1x384xf32> to vector<1x128xf32>
    %124 = vector.extract_strided_slice %69 {offsets = [0, 640], sizes = [1, 128], strides = [1, 1]} : vector<1x768xf32> to vector<1x128xf32>
    %125 = arith.mulf %112, %124 : vector<1x128xf32>
    %126 = arith.addf %123, %125 : vector<1x128xf32>
    %127 = math.tanh %126 : vector<1x128xf32>
    %cst_58 = arith.constant 1.000000e+00 : f32
    %128 = vector.broadcast %cst_58 : f32 to vector<1x128xf32>
    %129 = arith.subf %128, %122 : vector<1x128xf32>
    %130 = arith.mulf %129, %127 : vector<1x128xf32>
    %131 = arith.mulf %122, %63 : vector<1x128xf32>
    %132 = arith.addf %130, %131 : vector<1x128xf32>
    %133 = vector.extract_strided_slice %64 {offsets = [1, 0], sizes = [1, 384], strides = [1, 1]} : vector<8x384xf32> to vector<1x384xf32>
    %134 = tpu.concatenate %99, %132 in 1 : vector<1x128xf32>, vector<1x128xf32> -> vector<1x256xf32>
    %c0_59 = arith.constant 0 : index
    %c0_60 = arith.constant 0 : index
    %135 = vector.load %arg12[%c0_59, %c0_60] : memref<256x768xf32, #tpu.memory_space<vmem>>, vector<256x768xf32>
    %cst_61 = arith.constant dense<0.000000e+00> : vector<1x768xf32>
    %136 = tpu.matmul %134, %135, %cst_61 {dimension_numbers = #tpu.dot_dimension_numbers<[1], [0], [0], [1], [0, 0, 1, 1], [], []>} : vector<1x256xf32>, vector<256x768xf32>, vector<1x768xf32> -> vector<1x768xf32>
    %137 = arith.addf %136, %60 : vector<1x768xf32>
    %138 = vector.extract_strided_slice %133 {offsets = [0, 0], sizes = [1, 128], strides = [1, 1]} : vector<1x384xf32> to vector<1x128xf32>
    %139 = vector.extract_strided_slice %137 {offsets = [0, 0], sizes = [1, 128], strides = [1, 1]} : vector<1x768xf32> to vector<1x128xf32>
    %140 = arith.addf %138, %139 : vector<1x128xf32>
    %cst_62 = arith.constant 5.000000e-01 : f32
    %141 = vector.broadcast %cst_62 : f32 to vector<1x128xf32>
    %142 = arith.mulf %141, %140 : vector<1x128xf32>
    %143 = math.tanh %142 : vector<1x128xf32>
    %cst_63 = arith.constant 5.000000e-01 : f32
    %144 = vector.broadcast %cst_63 : f32 to vector<1x128xf32>
    %145 = arith.mulf %144, %143 : vector<1x128xf32>
    %cst_64 = arith.constant 5.000000e-01 : f32
    %146 = vector.broadcast %cst_64 : f32 to vector<1x128xf32>
    %147 = arith.addf %146, %145 : vector<1x128xf32>
    %148 = vector.extract_strided_slice %133 {offsets = [0, 128], sizes = [1, 128], strides = [1, 1]} : vector<1x384xf32> to vector<1x128xf32>
    %149 = vector.extract_strided_slice %137 {offsets = [0, 128], sizes = [1, 128], strides = [1, 1]} : vector<1x768xf32> to vector<1x128xf32>
    %150 = arith.addf %148, %149 : vector<1x128xf32>
    %cst_65 = arith.constant 5.000000e-01 : f32
    %151 = vector.broadcast %cst_65 : f32 to vector<1x128xf32>
    %152 = arith.mulf %151, %150 : vector<1x128xf32>
    %153 = math.tanh %152 : vector<1x128xf32>
    %cst_66 = arith.constant 5.000000e-01 : f32
    %154 = vector.broadcast %cst_66 : f32 to vector<1x128xf32>
    %155 = arith.mulf %154, %153 : vector<1x128xf32>
    %cst_67 = arith.constant 5.000000e-01 : f32
    %156 = vector.broadcast %cst_67 : f32 to vector<1x128xf32>
    %157 = arith.addf %156, %155 : vector<1x128xf32>
    %158 = vector.extract_strided_slice %133 {offsets = [0, 256], sizes = [1, 128], strides = [1, 1]} : vector<1x384xf32> to vector<1x128xf32>
    %159 = vector.extract_strided_slice %137 {offsets = [0, 256], sizes = [1, 128], strides = [1, 1]} : vector<1x768xf32> to vector<1x128xf32>
    %160 = arith.mulf %147, %159 : vector<1x128xf32>
    %161 = arith.addf %158, %160 : vector<1x128xf32>
    %162 = math.tanh %161 : vector<1x128xf32>
    %cst_68 = arith.constant 1.000000e+00 : f32
    %163 = vector.broadcast %cst_68 : f32 to vector<1x128xf32>
    %164 = arith.subf %163, %157 : vector<1x128xf32>
    %165 = arith.mulf %164, %162 : vector<1x128xf32>
    %166 = arith.mulf %157, %99 : vector<1x128xf32>
    %167 = arith.addf %165, %166 : vector<1x128xf32>
    %c0_69 = arith.constant 0 : index
    %c0_70 = arith.constant 0 : index
    %168 = vector.load %arg14[%c0_69, %c0_70] : memref<128x384xf32, #tpu.memory_space<vmem>>, vector<128x384xf32>
    %cst_71 = arith.constant dense<0.000000e+00> : vector<1x384xf32>
    %169 = tpu.matmul %167, %168, %cst_71 {dimension_numbers = #tpu.dot_dimension_numbers<[1], [0], [0], [1], [0, 0, 1, 1], [], []>} : vector<1x128xf32>, vector<128x384xf32>, vector<1x384xf32> -> vector<1x384xf32>
    %170 = arith.addf %169, %61 : vector<1x384xf32>
    %171 = vector.extract_strided_slice %170 {offsets = [0, 0], sizes = [1, 128], strides = [1, 1]} : vector<1x384xf32> to vector<1x128xf32>
    %172 = vector.extract_strided_slice %137 {offsets = [0, 384], sizes = [1, 128], strides = [1, 1]} : vector<1x768xf32> to vector<1x128xf32>
    %173 = arith.addf %171, %172 : vector<1x128xf32>
    %cst_72 = arith.constant 5.000000e-01 : f32
    %174 = vector.broadcast %cst_72 : f32 to vector<1x128xf32>
    %175 = arith.mulf %174, %173 : vector<1x128xf32>
    %176 = math.tanh %175 : vector<1x128xf32>
    %cst_73 = arith.constant 5.000000e-01 : f32
    %177 = vector.broadcast %cst_73 : f32 to vector<1x128xf32>
    %178 = arith.mulf %177, %176 : vector<1x128xf32>
    %cst_74 = arith.constant 5.000000e-01 : f32
    %179 = vector.broadcast %cst_74 : f32 to vector<1x128xf32>
    %180 = arith.addf %179, %178 : vector<1x128xf32>
    %181 = vector.extract_strided_slice %170 {offsets = [0, 128], sizes = [1, 128], strides = [1, 1]} : vector<1x384xf32> to vector<1x128xf32>
    %182 = vector.extract_strided_slice %137 {offsets = [0, 512], sizes = [1, 128], strides = [1, 1]} : vector<1x768xf32> to vector<1x128xf32>
    %183 = arith.addf %181, %182 : vector<1x128xf32>
    %cst_75 = arith.constant 5.000000e-01 : f32
    %184 = vector.broadcast %cst_75 : f32 to vector<1x128xf32>
    %185 = arith.mulf %184, %183 : vector<1x128xf32>
    %186 = math.tanh %185 : vector<1x128xf32>
    %cst_76 = arith.constant 5.000000e-01 : f32
    %187 = vector.broadcast %cst_76 : f32 to vector<1x128xf32>
    %188 = arith.mulf %187, %186 : vector<1x128xf32>
    %cst_77 = arith.constant 5.000000e-01 : f32
    %189 = vector.broadcast %cst_77 : f32 to vector<1x128xf32>
    %190 = arith.addf %189, %188 : vector<1x128xf32>
    %191 = vector.extract_strided_slice %170 {offsets = [0, 256], sizes = [1, 128], strides = [1, 1]} : vector<1x384xf32> to vector<1x128xf32>
    %192 = vector.extract_strided_slice %137 {offsets = [0, 640], sizes = [1, 128], strides = [1, 1]} : vector<1x768xf32> to vector<1x128xf32>
    %193 = arith.mulf %180, %192 : vector<1x128xf32>
    %194 = arith.addf %191, %193 : vector<1x128xf32>
    %195 = math.tanh %194 : vector<1x128xf32>
    %cst_78 = arith.constant 1.000000e+00 : f32
    %196 = vector.broadcast %cst_78 : f32 to vector<1x128xf32>
    %197 = arith.subf %196, %190 : vector<1x128xf32>
    %198 = arith.mulf %197, %195 : vector<1x128xf32>
    %199 = arith.mulf %190, %132 : vector<1x128xf32>
    %200 = arith.addf %198, %199 : vector<1x128xf32>
    %201 = vector.extract_strided_slice %64 {offsets = [2, 0], sizes = [1, 384], strides = [1, 1]} : vector<8x384xf32> to vector<1x384xf32>
    %202 = tpu.concatenate %167, %200 in 1 : vector<1x128xf32>, vector<1x128xf32> -> vector<1x256xf32>
    %c0_79 = arith.constant 0 : index
    %c0_80 = arith.constant 0 : index
    %203 = vector.load %arg12[%c0_79, %c0_80] : memref<256x768xf32, #tpu.memory_space<vmem>>, vector<256x768xf32>
    %cst_81 = arith.constant dense<0.000000e+00> : vector<1x768xf32>
    %204 = tpu.matmul %202, %203, %cst_81 {dimension_numbers = #tpu.dot_dimension_numbers<[1], [0], [0], [1], [0, 0, 1, 1], [], []>} : vector<1x256xf32>, vector<256x768xf32>, vector<1x768xf32> -> vector<1x768xf32>
    %205 = arith.addf %204, %60 : vector<1x768xf32>
    %206 = vector.extract_strided_slice %201 {offsets = [0, 0], sizes = [1, 128], strides = [1, 1]} : vector<1x384xf32> to vector<1x128xf32>
    %207 = vector.extract_strided_slice %205 {offsets = [0, 0], sizes = [1, 128], strides = [1, 1]} : vector<1x768xf32> to vector<1x128xf32>
    %208 = arith.addf %206, %207 : vector<1x128xf32>
    %cst_82 = arith.constant 5.000000e-01 : f32
    %209 = vector.broadcast %cst_82 : f32 to vector<1x128xf32>
    %210 = arith.mulf %209, %208 : vector<1x128xf32>
    %211 = math.tanh %210 : vector<1x128xf32>
    %cst_83 = arith.constant 5.000000e-01 : f32
    %212 = vector.broadcast %cst_83 : f32 to vector<1x128xf32>
    %213 = arith.mulf %212, %211 : vector<1x128xf32>
    %cst_84 = arith.constant 5.000000e-01 : f32
    %214 = vector.broadcast %cst_84 : f32 to vector<1x128xf32>
    %215 = arith.addf %214, %213 : vector<1x128xf32>
    %216 = vector.extract_strided_slice %201 {offsets = [0, 128], sizes = [1, 128], strides = [1, 1]} : vector<1x384xf32> to vector<1x128xf32>
    %217 = vector.extract_strided_slice %205 {offsets = [0, 128], sizes = [1, 128], strides = [1, 1]} : vector<1x768xf32> to vector<1x128xf32>
    %218 = arith.addf %216, %217 : vector<1x128xf32>
    %cst_85 = arith.constant 5.000000e-01 : f32
    %219 = vector.broadcast %cst_85 : f32 to vector<1x128xf32>
    %220 = arith.mulf %219, %218 : vector<1x128xf32>
    %221 = math.tanh %220 : vector<1x128xf32>
    %cst_86 = arith.constant 5.000000e-01 : f32
    %222 = vector.broadcast %cst_86 : f32 to vector<1x128xf32>
    %223 = arith.mulf %222, %221 : vector<1x128xf32>
    %cst_87 = arith.constant 5.000000e-01 : f32
    %224 = vector.broadcast %cst_87 : f32 to vector<1x128xf32>
    %225 = arith.addf %224, %223 : vector<1x128xf32>
    %226 = vector.extract_strided_slice %201 {offsets = [0, 256], sizes = [1, 128], strides = [1, 1]} : vector<1x384xf32> to vector<1x128xf32>
    %227 = vector.extract_strided_slice %205 {offsets = [0, 256], sizes = [1, 128], strides = [1, 1]} : vector<1x768xf32> to vector<1x128xf32>
    %228 = arith.mulf %215, %227 : vector<1x128xf32>
    %229 = arith.addf %226, %228 : vector<1x128xf32>
    %230 = math.tanh %229 : vector<1x128xf32>
    %cst_88 = arith.constant 1.000000e+00 : f32
    %231 = vector.broadcast %cst_88 : f32 to vector<1x128xf32>
    %232 = arith.subf %231, %225 : vector<1x128xf32>
    %233 = arith.mulf %232, %230 : vector<1x128xf32>
    %234 = arith.mulf %225, %167 : vector<1x128xf32>
    %235 = arith.addf %233, %234 : vector<1x128xf32>
    %c0_89 = arith.constant 0 : index
    %c0_90 = arith.constant 0 : index
    %236 = vector.load %arg14[%c0_89, %c0_90] : memref<128x384xf32, #tpu.memory_space<vmem>>, vector<128x384xf32>
    %cst_91 = arith.constant dense<0.000000e+00> : vector<1x384xf32>
    %237 = tpu.matmul %235, %236, %cst_91 {dimension_numbers = #tpu.dot_dimension_numbers<[1], [0], [0], [1], [0, 0, 1, 1], [], []>} : vector<1x128xf32>, vector<128x384xf32>, vector<1x384xf32> -> vector<1x384xf32>
    %238 = arith.addf %237, %61 : vector<1x384xf32>
    %239 = vector.extract_strided_slice %238 {offsets = [0, 0], sizes = [1, 128], strides = [1, 1]} : vector<1x384xf32> to vector<1x128xf32>
    %240 = vector.extract_strided_slice %205 {offsets = [0, 384], sizes = [1, 128], strides = [1, 1]} : vector<1x768xf32> to vector<1x128xf32>
    %241 = arith.addf %239, %240 : vector<1x128xf32>
    %cst_92 = arith.constant 5.000000e-01 : f32
    %242 = vector.broadcast %cst_92 : f32 to vector<1x128xf32>
    %243 = arith.mulf %242, %241 : vector<1x128xf32>
    %244 = math.tanh %243 : vector<1x128xf32>
    %cst_93 = arith.constant 5.000000e-01 : f32
    %245 = vector.broadcast %cst_93 : f32 to vector<1x128xf32>
    %246 = arith.mulf %245, %244 : vector<1x128xf32>
    %cst_94 = arith.constant 5.000000e-01 : f32
    %247 = vector.broadcast %cst_94 : f32 to vector<1x128xf32>
    %248 = arith.addf %247, %246 : vector<1x128xf32>
    %249 = vector.extract_strided_slice %238 {offsets = [0, 128], sizes = [1, 128], strides = [1, 1]} : vector<1x384xf32> to vector<1x128xf32>
    %250 = vector.extract_strided_slice %205 {offsets = [0, 512], sizes = [1, 128], strides = [1, 1]} : vector<1x768xf32> to vector<1x128xf32>
    %251 = arith.addf %249, %250 : vector<1x128xf32>
    %cst_95 = arith.constant 5.000000e-01 : f32
    %252 = vector.broadcast %cst_95 : f32 to vector<1x128xf32>
    %253 = arith.mulf %252, %251 : vector<1x128xf32>
    %254 = math.tanh %253 : vector<1x128xf32>
    %cst_96 = arith.constant 5.000000e-01 : f32
    %255 = vector.broadcast %cst_96 : f32 to vector<1x128xf32>
    %256 = arith.mulf %255, %254 : vector<1x128xf32>
    %cst_97 = arith.constant 5.000000e-01 : f32
    %257 = vector.broadcast %cst_97 : f32 to vector<1x128xf32>
    %258 = arith.addf %257, %256 : vector<1x128xf32>
    %259 = vector.extract_strided_slice %238 {offsets = [0, 256], sizes = [1, 128], strides = [1, 1]} : vector<1x384xf32> to vector<1x128xf32>
    %260 = vector.extract_strided_slice %205 {offsets = [0, 640], sizes = [1, 128], strides = [1, 1]} : vector<1x768xf32> to vector<1x128xf32>
    %261 = arith.mulf %248, %260 : vector<1x128xf32>
    %262 = arith.addf %259, %261 : vector<1x128xf32>
    %263 = math.tanh %262 : vector<1x128xf32>
    %cst_98 = arith.constant 1.000000e+00 : f32
    %264 = vector.broadcast %cst_98 : f32 to vector<1x128xf32>
    %265 = arith.subf %264, %258 : vector<1x128xf32>
    %266 = arith.mulf %265, %263 : vector<1x128xf32>
    %267 = arith.mulf %258, %200 : vector<1x128xf32>
    %268 = arith.addf %266, %267 : vector<1x128xf32>
    %269 = vector.extract_strided_slice %64 {offsets = [3, 0], sizes = [1, 384], strides = [1, 1]} : vector<8x384xf32> to vector<1x384xf32>
    %270 = tpu.concatenate %235, %268 in 1 : vector<1x128xf32>, vector<1x128xf32> -> vector<1x256xf32>
    %c0_99 = arith.constant 0 : index
    %c0_100 = arith.constant 0 : index
    %271 = vector.load %arg12[%c0_99, %c0_100] : memref<256x768xf32, #tpu.memory_space<vmem>>, vector<256x768xf32>
    %cst_101 = arith.constant dense<0.000000e+00> : vector<1x768xf32>
    %272 = tpu.matmul %270, %271, %cst_101 {dimension_numbers = #tpu.dot_dimension_numbers<[1], [0], [0], [1], [0, 0, 1, 1], [], []>} : vector<1x256xf32>, vector<256x768xf32>, vector<1x768xf32> -> vector<1x768xf32>
    %273 = arith.addf %272, %60 : vector<1x768xf32>
    %274 = vector.extract_strided_slice %269 {offsets = [0, 0], sizes = [1, 128], strides = [1, 1]} : vector<1x384xf32> to vector<1x128xf32>
    %275 = vector.extract_strided_slice %273 {offsets = [0, 0], sizes = [1, 128], strides = [1, 1]} : vector<1x768xf32> to vector<1x128xf32>
    %276 = arith.addf %274, %275 : vector<1x128xf32>
    %cst_102 = arith.constant 5.000000e-01 : f32
    %277 = vector.broadcast %cst_102 : f32 to vector<1x128xf32>
    %278 = arith.mulf %277, %276 : vector<1x128xf32>
    %279 = math.tanh %278 : vector<1x128xf32>
    %cst_103 = arith.constant 5.000000e-01 : f32
    %280 = vector.broadcast %cst_103 : f32 to vector<1x128xf32>
    %281 = arith.mulf %280, %279 : vector<1x128xf32>
    %cst_104 = arith.constant 5.000000e-01 : f32
    %282 = vector.broadcast %cst_104 : f32 to vector<1x128xf32>
    %283 = arith.addf %282, %281 : vector<1x128xf32>
    %284 = vector.extract_strided_slice %269 {offsets = [0, 128], sizes = [1, 128], strides = [1, 1]} : vector<1x384xf32> to vector<1x128xf32>
    %285 = vector.extract_strided_slice %273 {offsets = [0, 128], sizes = [1, 128], strides = [1, 1]} : vector<1x768xf32> to vector<1x128xf32>
    %286 = arith.addf %284, %285 : vector<1x128xf32>
    %cst_105 = arith.constant 5.000000e-01 : f32
    %287 = vector.broadcast %cst_105 : f32 to vector<1x128xf32>
    %288 = arith.mulf %287, %286 : vector<1x128xf32>
    %289 = math.tanh %288 : vector<1x128xf32>
    %cst_106 = arith.constant 5.000000e-01 : f32
    %290 = vector.broadcast %cst_106 : f32 to vector<1x128xf32>
    %291 = arith.mulf %290, %289 : vector<1x128xf32>
    %cst_107 = arith.constant 5.000000e-01 : f32
    %292 = vector.broadcast %cst_107 : f32 to vector<1x128xf32>
    %293 = arith.addf %292, %291 : vector<1x128xf32>
    %294 = vector.extract_strided_slice %269 {offsets = [0, 256], sizes = [1, 128], strides = [1, 1]} : vector<1x384xf32> to vector<1x128xf32>
    %295 = vector.extract_strided_slice %273 {offsets = [0, 256], sizes = [1, 128], strides = [1, 1]} : vector<1x768xf32> to vector<1x128xf32>
    %296 = arith.mulf %283, %295 : vector<1x128xf32>
    %297 = arith.addf %294, %296 : vector<1x128xf32>
    %298 = math.tanh %297 : vector<1x128xf32>
    %cst_108 = arith.constant 1.000000e+00 : f32
    %299 = vector.broadcast %cst_108 : f32 to vector<1x128xf32>
    %300 = arith.subf %299, %293 : vector<1x128xf32>
    %301 = arith.mulf %300, %298 : vector<1x128xf32>
    %302 = arith.mulf %293, %235 : vector<1x128xf32>
    %303 = arith.addf %301, %302 : vector<1x128xf32>
    %c0_109 = arith.constant 0 : index
    %c0_110 = arith.constant 0 : index
    %304 = vector.load %arg14[%c0_109, %c0_110] : memref<128x384xf32, #tpu.memory_space<vmem>>, vector<128x384xf32>
    %cst_111 = arith.constant dense<0.000000e+00> : vector<1x384xf32>
    %305 = tpu.matmul %303, %304, %cst_111 {dimension_numbers = #tpu.dot_dimension_numbers<[1], [0], [0], [1], [0, 0, 1, 1], [], []>} : vector<1x128xf32>, vector<128x384xf32>, vector<1x384xf32> -> vector<1x384xf32>
    %306 = arith.addf %305, %61 : vector<1x384xf32>
    %307 = vector.extract_strided_slice %306 {offsets = [0, 0], sizes = [1, 128], strides = [1, 1]} : vector<1x384xf32> to vector<1x128xf32>
    %308 = vector.extract_strided_slice %273 {offsets = [0, 384], sizes = [1, 128], strides = [1, 1]} : vector<1x768xf32> to vector<1x128xf32>
    %309 = arith.addf %307, %308 : vector<1x128xf32>
    %cst_112 = arith.constant 5.000000e-01 : f32
    %310 = vector.broadcast %cst_112 : f32 to vector<1x128xf32>
    %311 = arith.mulf %310, %309 : vector<1x128xf32>
    %312 = math.tanh %311 : vector<1x128xf32>
    %cst_113 = arith.constant 5.000000e-01 : f32
    %313 = vector.broadcast %cst_113 : f32 to vector<1x128xf32>
    %314 = arith.mulf %313, %312 : vector<1x128xf32>
    %cst_114 = arith.constant 5.000000e-01 : f32
    %315 = vector.broadcast %cst_114 : f32 to vector<1x128xf32>
    %316 = arith.addf %315, %314 : vector<1x128xf32>
    %317 = vector.extract_strided_slice %306 {offsets = [0, 128], sizes = [1, 128], strides = [1, 1]} : vector<1x384xf32> to vector<1x128xf32>
    %318 = vector.extract_strided_slice %273 {offsets = [0, 512], sizes = [1, 128], strides = [1, 1]} : vector<1x768xf32> to vector<1x128xf32>
    %319 = arith.addf %317, %318 : vector<1x128xf32>
    %cst_115 = arith.constant 5.000000e-01 : f32
    %320 = vector.broadcast %cst_115 : f32 to vector<1x128xf32>
    %321 = arith.mulf %320, %319 : vector<1x128xf32>
    %322 = math.tanh %321 : vector<1x128xf32>
    %cst_116 = arith.constant 5.000000e-01 : f32
    %323 = vector.broadcast %cst_116 : f32 to vector<1x128xf32>
    %324 = arith.mulf %323, %322 : vector<1x128xf32>
    %cst_117 = arith.constant 5.000000e-01 : f32
    %325 = vector.broadcast %cst_117 : f32 to vector<1x128xf32>
    %326 = arith.addf %325, %324 : vector<1x128xf32>
    %327 = vector.extract_strided_slice %306 {offsets = [0, 256], sizes = [1, 128], strides = [1, 1]} : vector<1x384xf32> to vector<1x128xf32>
    %328 = vector.extract_strided_slice %273 {offsets = [0, 640], sizes = [1, 128], strides = [1, 1]} : vector<1x768xf32> to vector<1x128xf32>
    %329 = arith.mulf %316, %328 : vector<1x128xf32>
    %330 = arith.addf %327, %329 : vector<1x128xf32>
    %331 = math.tanh %330 : vector<1x128xf32>
    %cst_118 = arith.constant 1.000000e+00 : f32
    %332 = vector.broadcast %cst_118 : f32 to vector<1x128xf32>
    %333 = arith.subf %332, %326 : vector<1x128xf32>
    %334 = arith.mulf %333, %331 : vector<1x128xf32>
    %335 = arith.mulf %326, %268 : vector<1x128xf32>
    %336 = arith.addf %334, %335 : vector<1x128xf32>
    %337 = vector.extract_strided_slice %64 {offsets = [4, 0], sizes = [1, 384], strides = [1, 1]} : vector<8x384xf32> to vector<1x384xf32>
    %338 = tpu.concatenate %303, %336 in 1 : vector<1x128xf32>, vector<1x128xf32> -> vector<1x256xf32>
    %c0_119 = arith.constant 0 : index
    %c0_120 = arith.constant 0 : index
    %339 = vector.load %arg12[%c0_119, %c0_120] : memref<256x768xf32, #tpu.memory_space<vmem>>, vector<256x768xf32>
    %cst_121 = arith.constant dense<0.000000e+00> : vector<1x768xf32>
    %340 = tpu.matmul %338, %339, %cst_121 {dimension_numbers = #tpu.dot_dimension_numbers<[1], [0], [0], [1], [0, 0, 1, 1], [], []>} : vector<1x256xf32>, vector<256x768xf32>, vector<1x768xf32> -> vector<1x768xf32>
    %341 = arith.addf %340, %60 : vector<1x768xf32>
    %342 = vector.extract_strided_slice %337 {offsets = [0, 0], sizes = [1, 128], strides = [1, 1]} : vector<1x384xf32> to vector<1x128xf32>
    %343 = vector.extract_strided_slice %341 {offsets = [0, 0], sizes = [1, 128], strides = [1, 1]} : vector<1x768xf32> to vector<1x128xf32>
    %344 = arith.addf %342, %343 : vector<1x128xf32>
    %cst_122 = arith.constant 5.000000e-01 : f32
    %345 = vector.broadcast %cst_122 : f32 to vector<1x128xf32>
    %346 = arith.mulf %345, %344 : vector<1x128xf32>
    %347 = math.tanh %346 : vector<1x128xf32>
    %cst_123 = arith.constant 5.000000e-01 : f32
    %348 = vector.broadcast %cst_123 : f32 to vector<1x128xf32>
    %349 = arith.mulf %348, %347 : vector<1x128xf32>
    %cst_124 = arith.constant 5.000000e-01 : f32
    %350 = vector.broadcast %cst_124 : f32 to vector<1x128xf32>
    %351 = arith.addf %350, %349 : vector<1x128xf32>
    %352 = vector.extract_strided_slice %337 {offsets = [0, 128], sizes = [1, 128], strides = [1, 1]} : vector<1x384xf32> to vector<1x128xf32>
    %353 = vector.extract_strided_slice %341 {offsets = [0, 128], sizes = [1, 128], strides = [1, 1]} : vector<1x768xf32> to vector<1x128xf32>
    %354 = arith.addf %352, %353 : vector<1x128xf32>
    %cst_125 = arith.constant 5.000000e-01 : f32
    %355 = vector.broadcast %cst_125 : f32 to vector<1x128xf32>
    %356 = arith.mulf %355, %354 : vector<1x128xf32>
    %357 = math.tanh %356 : vector<1x128xf32>
    %cst_126 = arith.constant 5.000000e-01 : f32
    %358 = vector.broadcast %cst_126 : f32 to vector<1x128xf32>
    %359 = arith.mulf %358, %357 : vector<1x128xf32>
    %cst_127 = arith.constant 5.000000e-01 : f32
    %360 = vector.broadcast %cst_127 : f32 to vector<1x128xf32>
    %361 = arith.addf %360, %359 : vector<1x128xf32>
    %362 = vector.extract_strided_slice %337 {offsets = [0, 256], sizes = [1, 128], strides = [1, 1]} : vector<1x384xf32> to vector<1x128xf32>
    %363 = vector.extract_strided_slice %341 {offsets = [0, 256], sizes = [1, 128], strides = [1, 1]} : vector<1x768xf32> to vector<1x128xf32>
    %364 = arith.mulf %351, %363 : vector<1x128xf32>
    %365 = arith.addf %362, %364 : vector<1x128xf32>
    %366 = math.tanh %365 : vector<1x128xf32>
    %cst_128 = arith.constant 1.000000e+00 : f32
    %367 = vector.broadcast %cst_128 : f32 to vector<1x128xf32>
    %368 = arith.subf %367, %361 : vector<1x128xf32>
    %369 = arith.mulf %368, %366 : vector<1x128xf32>
    %370 = arith.mulf %361, %303 : vector<1x128xf32>
    %371 = arith.addf %369, %370 : vector<1x128xf32>
    %c0_129 = arith.constant 0 : index
    %c0_130 = arith.constant 0 : index
    %372 = vector.load %arg14[%c0_129, %c0_130] : memref<128x384xf32, #tpu.memory_space<vmem>>, vector<128x384xf32>
    %cst_131 = arith.constant dense<0.000000e+00> : vector<1x384xf32>
    %373 = tpu.matmul %371, %372, %cst_131 {dimension_numbers = #tpu.dot_dimension_numbers<[1], [0], [0], [1], [0, 0, 1, 1], [], []>} : vector<1x128xf32>, vector<128x384xf32>, vector<1x384xf32> -> vector<1x384xf32>
    %374 = arith.addf %373, %61 : vector<1x384xf32>
    %375 = vector.extract_strided_slice %374 {offsets = [0, 0], sizes = [1, 128], strides = [1, 1]} : vector<1x384xf32> to vector<1x128xf32>
    %376 = vector.extract_strided_slice %341 {offsets = [0, 384], sizes = [1, 128], strides = [1, 1]} : vector<1x768xf32> to vector<1x128xf32>
    %377 = arith.addf %375, %376 : vector<1x128xf32>
    %cst_132 = arith.constant 5.000000e-01 : f32
    %378 = vector.broadcast %cst_132 : f32 to vector<1x128xf32>
    %379 = arith.mulf %378, %377 : vector<1x128xf32>
    %380 = math.tanh %379 : vector<1x128xf32>
    %cst_133 = arith.constant 5.000000e-01 : f32
    %381 = vector.broadcast %cst_133 : f32 to vector<1x128xf32>
    %382 = arith.mulf %381, %380 : vector<1x128xf32>
    %cst_134 = arith.constant 5.000000e-01 : f32
    %383 = vector.broadcast %cst_134 : f32 to vector<1x128xf32>
    %384 = arith.addf %383, %382 : vector<1x128xf32>
    %385 = vector.extract_strided_slice %374 {offsets = [0, 128], sizes = [1, 128], strides = [1, 1]} : vector<1x384xf32> to vector<1x128xf32>
    %386 = vector.extract_strided_slice %341 {offsets = [0, 512], sizes = [1, 128], strides = [1, 1]} : vector<1x768xf32> to vector<1x128xf32>
    %387 = arith.addf %385, %386 : vector<1x128xf32>
    %cst_135 = arith.constant 5.000000e-01 : f32
    %388 = vector.broadcast %cst_135 : f32 to vector<1x128xf32>
    %389 = arith.mulf %388, %387 : vector<1x128xf32>
    %390 = math.tanh %389 : vector<1x128xf32>
    %cst_136 = arith.constant 5.000000e-01 : f32
    %391 = vector.broadcast %cst_136 : f32 to vector<1x128xf32>
    %392 = arith.mulf %391, %390 : vector<1x128xf32>
    %cst_137 = arith.constant 5.000000e-01 : f32
    %393 = vector.broadcast %cst_137 : f32 to vector<1x128xf32>
    %394 = arith.addf %393, %392 : vector<1x128xf32>
    %395 = vector.extract_strided_slice %374 {offsets = [0, 256], sizes = [1, 128], strides = [1, 1]} : vector<1x384xf32> to vector<1x128xf32>
    %396 = vector.extract_strided_slice %341 {offsets = [0, 640], sizes = [1, 128], strides = [1, 1]} : vector<1x768xf32> to vector<1x128xf32>
    %397 = arith.mulf %384, %396 : vector<1x128xf32>
    %398 = arith.addf %395, %397 : vector<1x128xf32>
    %399 = math.tanh %398 : vector<1x128xf32>
    %cst_138 = arith.constant 1.000000e+00 : f32
    %400 = vector.broadcast %cst_138 : f32 to vector<1x128xf32>
    %401 = arith.subf %400, %394 : vector<1x128xf32>
    %402 = arith.mulf %401, %399 : vector<1x128xf32>
    %403 = arith.mulf %394, %336 : vector<1x128xf32>
    %404 = arith.addf %402, %403 : vector<1x128xf32>
    %405 = vector.extract_strided_slice %64 {offsets = [5, 0], sizes = [1, 384], strides = [1, 1]} : vector<8x384xf32> to vector<1x384xf32>
    %406 = tpu.concatenate %371, %404 in 1 : vector<1x128xf32>, vector<1x128xf32> -> vector<1x256xf32>
    %c0_139 = arith.constant 0 : index
    %c0_140 = arith.constant 0 : index
    %407 = vector.load %arg12[%c0_139, %c0_140] : memref<256x768xf32, #tpu.memory_space<vmem>>, vector<256x768xf32>
    %cst_141 = arith.constant dense<0.000000e+00> : vector<1x768xf32>
    %408 = tpu.matmul %406, %407, %cst_141 {dimension_numbers = #tpu.dot_dimension_numbers<[1], [0], [0], [1], [0, 0, 1, 1], [], []>} : vector<1x256xf32>, vector<256x768xf32>, vector<1x768xf32> -> vector<1x768xf32>
    %409 = arith.addf %408, %60 : vector<1x768xf32>
    %410 = vector.extract_strided_slice %405 {offsets = [0, 0], sizes = [1, 128], strides = [1, 1]} : vector<1x384xf32> to vector<1x128xf32>
    %411 = vector.extract_strided_slice %409 {offsets = [0, 0], sizes = [1, 128], strides = [1, 1]} : vector<1x768xf32> to vector<1x128xf32>
    %412 = arith.addf %410, %411 : vector<1x128xf32>
    %cst_142 = arith.constant 5.000000e-01 : f32
    %413 = vector.broadcast %cst_142 : f32 to vector<1x128xf32>
    %414 = arith.mulf %413, %412 : vector<1x128xf32>
    %415 = math.tanh %414 : vector<1x128xf32>
    %cst_143 = arith.constant 5.000000e-01 : f32
    %416 = vector.broadcast %cst_143 : f32 to vector<1x128xf32>
    %417 = arith.mulf %416, %415 : vector<1x128xf32>
    %cst_144 = arith.constant 5.000000e-01 : f32
    %418 = vector.broadcast %cst_144 : f32 to vector<1x128xf32>
    %419 = arith.addf %418, %417 : vector<1x128xf32>
    %420 = vector.extract_strided_slice %405 {offsets = [0, 128], sizes = [1, 128], strides = [1, 1]} : vector<1x384xf32> to vector<1x128xf32>
    %421 = vector.extract_strided_slice %409 {offsets = [0, 128], sizes = [1, 128], strides = [1, 1]} : vector<1x768xf32> to vector<1x128xf32>
    %422 = arith.addf %420, %421 : vector<1x128xf32>
    %cst_145 = arith.constant 5.000000e-01 : f32
    %423 = vector.broadcast %cst_145 : f32 to vector<1x128xf32>
    %424 = arith.mulf %423, %422 : vector<1x128xf32>
    %425 = math.tanh %424 : vector<1x128xf32>
    %cst_146 = arith.constant 5.000000e-01 : f32
    %426 = vector.broadcast %cst_146 : f32 to vector<1x128xf32>
    %427 = arith.mulf %426, %425 : vector<1x128xf32>
    %cst_147 = arith.constant 5.000000e-01 : f32
    %428 = vector.broadcast %cst_147 : f32 to vector<1x128xf32>
    %429 = arith.addf %428, %427 : vector<1x128xf32>
    %430 = vector.extract_strided_slice %405 {offsets = [0, 256], sizes = [1, 128], strides = [1, 1]} : vector<1x384xf32> to vector<1x128xf32>
    %431 = vector.extract_strided_slice %409 {offsets = [0, 256], sizes = [1, 128], strides = [1, 1]} : vector<1x768xf32> to vector<1x128xf32>
    %432 = arith.mulf %419, %431 : vector<1x128xf32>
    %433 = arith.addf %430, %432 : vector<1x128xf32>
    %434 = math.tanh %433 : vector<1x128xf32>
    %cst_148 = arith.constant 1.000000e+00 : f32
    %435 = vector.broadcast %cst_148 : f32 to vector<1x128xf32>
    %436 = arith.subf %435, %429 : vector<1x128xf32>
    %437 = arith.mulf %436, %434 : vector<1x128xf32>
    %438 = arith.mulf %429, %371 : vector<1x128xf32>
    %439 = arith.addf %437, %438 : vector<1x128xf32>
    %c0_149 = arith.constant 0 : index
    %c0_150 = arith.constant 0 : index
    %440 = vector.load %arg14[%c0_149, %c0_150] : memref<128x384xf32, #tpu.memory_space<vmem>>, vector<128x384xf32>
    %cst_151 = arith.constant dense<0.000000e+00> : vector<1x384xf32>
    %441 = tpu.matmul %439, %440, %cst_151 {dimension_numbers = #tpu.dot_dimension_numbers<[1], [0], [0], [1], [0, 0, 1, 1], [], []>} : vector<1x128xf32>, vector<128x384xf32>, vector<1x384xf32> -> vector<1x384xf32>
    %442 = arith.addf %441, %61 : vector<1x384xf32>
    %443 = vector.extract_strided_slice %442 {offsets = [0, 0], sizes = [1, 128], strides = [1, 1]} : vector<1x384xf32> to vector<1x128xf32>
    %444 = vector.extract_strided_slice %409 {offsets = [0, 384], sizes = [1, 128], strides = [1, 1]} : vector<1x768xf32> to vector<1x128xf32>
    %445 = arith.addf %443, %444 : vector<1x128xf32>
    %cst_152 = arith.constant 5.000000e-01 : f32
    %446 = vector.broadcast %cst_152 : f32 to vector<1x128xf32>
    %447 = arith.mulf %446, %445 : vector<1x128xf32>
    %448 = math.tanh %447 : vector<1x128xf32>
    %cst_153 = arith.constant 5.000000e-01 : f32
    %449 = vector.broadcast %cst_153 : f32 to vector<1x128xf32>
    %450 = arith.mulf %449, %448 : vector<1x128xf32>
    %cst_154 = arith.constant 5.000000e-01 : f32
    %451 = vector.broadcast %cst_154 : f32 to vector<1x128xf32>
    %452 = arith.addf %451, %450 : vector<1x128xf32>
    %453 = vector.extract_strided_slice %442 {offsets = [0, 128], sizes = [1, 128], strides = [1, 1]} : vector<1x384xf32> to vector<1x128xf32>
    %454 = vector.extract_strided_slice %409 {offsets = [0, 512], sizes = [1, 128], strides = [1, 1]} : vector<1x768xf32> to vector<1x128xf32>
    %455 = arith.addf %453, %454 : vector<1x128xf32>
    %cst_155 = arith.constant 5.000000e-01 : f32
    %456 = vector.broadcast %cst_155 : f32 to vector<1x128xf32>
    %457 = arith.mulf %456, %455 : vector<1x128xf32>
    %458 = math.tanh %457 : vector<1x128xf32>
    %cst_156 = arith.constant 5.000000e-01 : f32
    %459 = vector.broadcast %cst_156 : f32 to vector<1x128xf32>
    %460 = arith.mulf %459, %458 : vector<1x128xf32>
    %cst_157 = arith.constant 5.000000e-01 : f32
    %461 = vector.broadcast %cst_157 : f32 to vector<1x128xf32>
    %462 = arith.addf %461, %460 : vector<1x128xf32>
    %463 = vector.extract_strided_slice %442 {offsets = [0, 256], sizes = [1, 128], strides = [1, 1]} : vector<1x384xf32> to vector<1x128xf32>
    %464 = vector.extract_strided_slice %409 {offsets = [0, 640], sizes = [1, 128], strides = [1, 1]} : vector<1x768xf32> to vector<1x128xf32>
    %465 = arith.mulf %452, %464 : vector<1x128xf32>
    %466 = arith.addf %463, %465 : vector<1x128xf32>
    %467 = math.tanh %466 : vector<1x128xf32>
    %cst_158 = arith.constant 1.000000e+00 : f32
    %468 = vector.broadcast %cst_158 : f32 to vector<1x128xf32>
    %469 = arith.subf %468, %462 : vector<1x128xf32>
    %470 = arith.mulf %469, %467 : vector<1x128xf32>
    %471 = arith.mulf %462, %404 : vector<1x128xf32>
    %472 = arith.addf %470, %471 : vector<1x128xf32>
    %473 = vector.extract_strided_slice %64 {offsets = [6, 0], sizes = [1, 384], strides = [1, 1]} : vector<8x384xf32> to vector<1x384xf32>
    %474 = tpu.concatenate %439, %472 in 1 : vector<1x128xf32>, vector<1x128xf32> -> vector<1x256xf32>
    %c0_159 = arith.constant 0 : index
    %c0_160 = arith.constant 0 : index
    %475 = vector.load %arg12[%c0_159, %c0_160] : memref<256x768xf32, #tpu.memory_space<vmem>>, vector<256x768xf32>
    %cst_161 = arith.constant dense<0.000000e+00> : vector<1x768xf32>
    %476 = tpu.matmul %474, %475, %cst_161 {dimension_numbers = #tpu.dot_dimension_numbers<[1], [0], [0], [1], [0, 0, 1, 1], [], []>} : vector<1x256xf32>, vector<256x768xf32>, vector<1x768xf32> -> vector<1x768xf32>
    %477 = arith.addf %476, %60 : vector<1x768xf32>
    %478 = vector.extract_strided_slice %473 {offsets = [0, 0], sizes = [1, 128], strides = [1, 1]} : vector<1x384xf32> to vector<1x128xf32>
    %479 = vector.extract_strided_slice %477 {offsets = [0, 0], sizes = [1, 128], strides = [1, 1]} : vector<1x768xf32> to vector<1x128xf32>
    %480 = arith.addf %478, %479 : vector<1x128xf32>
    %cst_162 = arith.constant 5.000000e-01 : f32
    %481 = vector.broadcast %cst_162 : f32 to vector<1x128xf32>
    %482 = arith.mulf %481, %480 : vector<1x128xf32>
    %483 = math.tanh %482 : vector<1x128xf32>
    %cst_163 = arith.constant 5.000000e-01 : f32
    %484 = vector.broadcast %cst_163 : f32 to vector<1x128xf32>
    %485 = arith.mulf %484, %483 : vector<1x128xf32>
    %cst_164 = arith.constant 5.000000e-01 : f32
    %486 = vector.broadcast %cst_164 : f32 to vector<1x128xf32>
    %487 = arith.addf %486, %485 : vector<1x128xf32>
    %488 = vector.extract_strided_slice %473 {offsets = [0, 128], sizes = [1, 128], strides = [1, 1]} : vector<1x384xf32> to vector<1x128xf32>
    %489 = vector.extract_strided_slice %477 {offsets = [0, 128], sizes = [1, 128], strides = [1, 1]} : vector<1x768xf32> to vector<1x128xf32>
    %490 = arith.addf %488, %489 : vector<1x128xf32>
    %cst_165 = arith.constant 5.000000e-01 : f32
    %491 = vector.broadcast %cst_165 : f32 to vector<1x128xf32>
    %492 = arith.mulf %491, %490 : vector<1x128xf32>
    %493 = math.tanh %492 : vector<1x128xf32>
    %cst_166 = arith.constant 5.000000e-01 : f32
    %494 = vector.broadcast %cst_166 : f32 to vector<1x128xf32>
    %495 = arith.mulf %494, %493 : vector<1x128xf32>
    %cst_167 = arith.constant 5.000000e-01 : f32
    %496 = vector.broadcast %cst_167 : f32 to vector<1x128xf32>
    %497 = arith.addf %496, %495 : vector<1x128xf32>
    %498 = vector.extract_strided_slice %473 {offsets = [0, 256], sizes = [1, 128], strides = [1, 1]} : vector<1x384xf32> to vector<1x128xf32>
    %499 = vector.extract_strided_slice %477 {offsets = [0, 256], sizes = [1, 128], strides = [1, 1]} : vector<1x768xf32> to vector<1x128xf32>
    %500 = arith.mulf %487, %499 : vector<1x128xf32>
    %501 = arith.addf %498, %500 : vector<1x128xf32>
    %502 = math.tanh %501 : vector<1x128xf32>
    %cst_168 = arith.constant 1.000000e+00 : f32
    %503 = vector.broadcast %cst_168 : f32 to vector<1x128xf32>
    %504 = arith.subf %503, %497 : vector<1x128xf32>
    %505 = arith.mulf %504, %502 : vector<1x128xf32>
    %506 = arith.mulf %497, %439 : vector<1x128xf32>
    %507 = arith.addf %505, %506 : vector<1x128xf32>
    %c0_169 = arith.constant 0 : index
    %c0_170 = arith.constant 0 : index
    %508 = vector.load %arg14[%c0_169, %c0_170] : memref<128x384xf32, #tpu.memory_space<vmem>>, vector<128x384xf32>
    %cst_171 = arith.constant dense<0.000000e+00> : vector<1x384xf32>
    %509 = tpu.matmul %507, %508, %cst_171 {dimension_numbers = #tpu.dot_dimension_numbers<[1], [0], [0], [1], [0, 0, 1, 1], [], []>} : vector<1x128xf32>, vector<128x384xf32>, vector<1x384xf32> -> vector<1x384xf32>
    %510 = arith.addf %509, %61 : vector<1x384xf32>
    %511 = vector.extract_strided_slice %510 {offsets = [0, 0], sizes = [1, 128], strides = [1, 1]} : vector<1x384xf32> to vector<1x128xf32>
    %512 = vector.extract_strided_slice %477 {offsets = [0, 384], sizes = [1, 128], strides = [1, 1]} : vector<1x768xf32> to vector<1x128xf32>
    %513 = arith.addf %511, %512 : vector<1x128xf32>
    %cst_172 = arith.constant 5.000000e-01 : f32
    %514 = vector.broadcast %cst_172 : f32 to vector<1x128xf32>
    %515 = arith.mulf %514, %513 : vector<1x128xf32>
    %516 = math.tanh %515 : vector<1x128xf32>
    %cst_173 = arith.constant 5.000000e-01 : f32
    %517 = vector.broadcast %cst_173 : f32 to vector<1x128xf32>
    %518 = arith.mulf %517, %516 : vector<1x128xf32>
    %cst_174 = arith.constant 5.000000e-01 : f32
    %519 = vector.broadcast %cst_174 : f32 to vector<1x128xf32>
    %520 = arith.addf %519, %518 : vector<1x128xf32>
    %521 = vector.extract_strided_slice %510 {offsets = [0, 128], sizes = [1, 128], strides = [1, 1]} : vector<1x384xf32> to vector<1x128xf32>
    %522 = vector.extract_strided_slice %477 {offsets = [0, 512], sizes = [1, 128], strides = [1, 1]} : vector<1x768xf32> to vector<1x128xf32>
    %523 = arith.addf %521, %522 : vector<1x128xf32>
    %cst_175 = arith.constant 5.000000e-01 : f32
    %524 = vector.broadcast %cst_175 : f32 to vector<1x128xf32>
    %525 = arith.mulf %524, %523 : vector<1x128xf32>
    %526 = math.tanh %525 : vector<1x128xf32>
    %cst_176 = arith.constant 5.000000e-01 : f32
    %527 = vector.broadcast %cst_176 : f32 to vector<1x128xf32>
    %528 = arith.mulf %527, %526 : vector<1x128xf32>
    %cst_177 = arith.constant 5.000000e-01 : f32
    %529 = vector.broadcast %cst_177 : f32 to vector<1x128xf32>
    %530 = arith.addf %529, %528 : vector<1x128xf32>
    %531 = vector.extract_strided_slice %510 {offsets = [0, 256], sizes = [1, 128], strides = [1, 1]} : vector<1x384xf32> to vector<1x128xf32>
    %532 = vector.extract_strided_slice %477 {offsets = [0, 640], sizes = [1, 128], strides = [1, 1]} : vector<1x768xf32> to vector<1x128xf32>
    %533 = arith.mulf %520, %532 : vector<1x128xf32>
    %534 = arith.addf %531, %533 : vector<1x128xf32>
    %535 = math.tanh %534 : vector<1x128xf32>
    %cst_178 = arith.constant 1.000000e+00 : f32
    %536 = vector.broadcast %cst_178 : f32 to vector<1x128xf32>
    %537 = arith.subf %536, %530 : vector<1x128xf32>
    %538 = arith.mulf %537, %535 : vector<1x128xf32>
    %539 = arith.mulf %530, %472 : vector<1x128xf32>
    %540 = arith.addf %538, %539 : vector<1x128xf32>
    %541 = vector.extract_strided_slice %64 {offsets = [7, 0], sizes = [1, 384], strides = [1, 1]} : vector<8x384xf32> to vector<1x384xf32>
    %542 = tpu.concatenate %507, %540 in 1 : vector<1x128xf32>, vector<1x128xf32> -> vector<1x256xf32>
    %c0_179 = arith.constant 0 : index
    %c0_180 = arith.constant 0 : index
    %543 = vector.load %arg12[%c0_179, %c0_180] : memref<256x768xf32, #tpu.memory_space<vmem>>, vector<256x768xf32>
    %cst_181 = arith.constant dense<0.000000e+00> : vector<1x768xf32>
    %544 = tpu.matmul %542, %543, %cst_181 {dimension_numbers = #tpu.dot_dimension_numbers<[1], [0], [0], [1], [0, 0, 1, 1], [], []>} : vector<1x256xf32>, vector<256x768xf32>, vector<1x768xf32> -> vector<1x768xf32>
    %545 = arith.addf %544, %60 : vector<1x768xf32>
    %546 = vector.extract_strided_slice %541 {offsets = [0, 0], sizes = [1, 128], strides = [1, 1]} : vector<1x384xf32> to vector<1x128xf32>
    %547 = vector.extract_strided_slice %545 {offsets = [0, 0], sizes = [1, 128], strides = [1, 1]} : vector<1x768xf32> to vector<1x128xf32>
    %548 = arith.addf %546, %547 : vector<1x128xf32>
    %cst_182 = arith.constant 5.000000e-01 : f32
    %549 = vector.broadcast %cst_182 : f32 to vector<1x128xf32>
    %550 = arith.mulf %549, %548 : vector<1x128xf32>
    %551 = math.tanh %550 : vector<1x128xf32>
    %cst_183 = arith.constant 5.000000e-01 : f32
    %552 = vector.broadcast %cst_183 : f32 to vector<1x128xf32>
    %553 = arith.mulf %552, %551 : vector<1x128xf32>
    %cst_184 = arith.constant 5.000000e-01 : f32
    %554 = vector.broadcast %cst_184 : f32 to vector<1x128xf32>
    %555 = arith.addf %554, %553 : vector<1x128xf32>
    %556 = vector.extract_strided_slice %541 {offsets = [0, 128], sizes = [1, 128], strides = [1, 1]} : vector<1x384xf32> to vector<1x128xf32>
    %557 = vector.extract_strided_slice %545 {offsets = [0, 128], sizes = [1, 128], strides = [1, 1]} : vector<1x768xf32> to vector<1x128xf32>
    %558 = arith.addf %556, %557 : vector<1x128xf32>
    %cst_185 = arith.constant 5.000000e-01 : f32
    %559 = vector.broadcast %cst_185 : f32 to vector<1x128xf32>
    %560 = arith.mulf %559, %558 : vector<1x128xf32>
    %561 = math.tanh %560 : vector<1x128xf32>
    %cst_186 = arith.constant 5.000000e-01 : f32
    %562 = vector.broadcast %cst_186 : f32 to vector<1x128xf32>
    %563 = arith.mulf %562, %561 : vector<1x128xf32>
    %cst_187 = arith.constant 5.000000e-01 : f32
    %564 = vector.broadcast %cst_187 : f32 to vector<1x128xf32>
    %565 = arith.addf %564, %563 : vector<1x128xf32>
    %566 = vector.extract_strided_slice %541 {offsets = [0, 256], sizes = [1, 128], strides = [1, 1]} : vector<1x384xf32> to vector<1x128xf32>
    %567 = vector.extract_strided_slice %545 {offsets = [0, 256], sizes = [1, 128], strides = [1, 1]} : vector<1x768xf32> to vector<1x128xf32>
    %568 = arith.mulf %555, %567 : vector<1x128xf32>
    %569 = arith.addf %566, %568 : vector<1x128xf32>
    %570 = math.tanh %569 : vector<1x128xf32>
    %cst_188 = arith.constant 1.000000e+00 : f32
    %571 = vector.broadcast %cst_188 : f32 to vector<1x128xf32>
    %572 = arith.subf %571, %565 : vector<1x128xf32>
    %573 = arith.mulf %572, %570 : vector<1x128xf32>
    %574 = arith.mulf %565, %507 : vector<1x128xf32>
    %575 = arith.addf %573, %574 : vector<1x128xf32>
    %c0_189 = arith.constant 0 : index
    %c0_190 = arith.constant 0 : index
    %576 = vector.load %arg14[%c0_189, %c0_190] : memref<128x384xf32, #tpu.memory_space<vmem>>, vector<128x384xf32>
    %cst_191 = arith.constant dense<0.000000e+00> : vector<1x384xf32>
    %577 = tpu.matmul %575, %576, %cst_191 {dimension_numbers = #tpu.dot_dimension_numbers<[1], [0], [0], [1], [0, 0, 1, 1], [], []>} : vector<1x128xf32>, vector<128x384xf32>, vector<1x384xf32> -> vector<1x384xf32>
    %578 = arith.addf %577, %61 : vector<1x384xf32>
    %579 = vector.extract_strided_slice %578 {offsets = [0, 0], sizes = [1, 128], strides = [1, 1]} : vector<1x384xf32> to vector<1x128xf32>
    %580 = vector.extract_strided_slice %545 {offsets = [0, 384], sizes = [1, 128], strides = [1, 1]} : vector<1x768xf32> to vector<1x128xf32>
    %581 = arith.addf %579, %580 : vector<1x128xf32>
    %cst_192 = arith.constant 5.000000e-01 : f32
    %582 = vector.broadcast %cst_192 : f32 to vector<1x128xf32>
    %583 = arith.mulf %582, %581 : vector<1x128xf32>
    %584 = math.tanh %583 : vector<1x128xf32>
    %cst_193 = arith.constant 5.000000e-01 : f32
    %585 = vector.broadcast %cst_193 : f32 to vector<1x128xf32>
    %586 = arith.mulf %585, %584 : vector<1x128xf32>
    %cst_194 = arith.constant 5.000000e-01 : f32
    %587 = vector.broadcast %cst_194 : f32 to vector<1x128xf32>
    %588 = arith.addf %587, %586 : vector<1x128xf32>
    %589 = vector.extract_strided_slice %578 {offsets = [0, 128], sizes = [1, 128], strides = [1, 1]} : vector<1x384xf32> to vector<1x128xf32>
    %590 = vector.extract_strided_slice %545 {offsets = [0, 512], sizes = [1, 128], strides = [1, 1]} : vector<1x768xf32> to vector<1x128xf32>
    %591 = arith.addf %589, %590 : vector<1x128xf32>
    %cst_195 = arith.constant 5.000000e-01 : f32
    %592 = vector.broadcast %cst_195 : f32 to vector<1x128xf32>
    %593 = arith.mulf %592, %591 : vector<1x128xf32>
    %594 = math.tanh %593 : vector<1x128xf32>
    %cst_196 = arith.constant 5.000000e-01 : f32
    %595 = vector.broadcast %cst_196 : f32 to vector<1x128xf32>
    %596 = arith.mulf %595, %594 : vector<1x128xf32>
    %cst_197 = arith.constant 5.000000e-01 : f32
    %597 = vector.broadcast %cst_197 : f32 to vector<1x128xf32>
    %598 = arith.addf %597, %596 : vector<1x128xf32>
    %599 = vector.extract_strided_slice %578 {offsets = [0, 256], sizes = [1, 128], strides = [1, 1]} : vector<1x384xf32> to vector<1x128xf32>
    %600 = vector.extract_strided_slice %545 {offsets = [0, 640], sizes = [1, 128], strides = [1, 1]} : vector<1x768xf32> to vector<1x128xf32>
    %601 = arith.mulf %588, %600 : vector<1x128xf32>
    %602 = arith.addf %599, %601 : vector<1x128xf32>
    %603 = math.tanh %602 : vector<1x128xf32>
    %cst_198 = arith.constant 1.000000e+00 : f32
    %604 = vector.broadcast %cst_198 : f32 to vector<1x128xf32>
    %605 = arith.subf %604, %598 : vector<1x128xf32>
    %606 = arith.mulf %605, %603 : vector<1x128xf32>
    %607 = arith.mulf %598, %540 : vector<1x128xf32>
    %608 = arith.addf %606, %607 : vector<1x128xf32>
    %609 = tpu.concatenate %132, %200, %268, %336, %404, %472, %540, %608 in 0 : vector<1x128xf32>, vector<1x128xf32>, vector<1x128xf32>, vector<1x128xf32>, vector<1x128xf32>, vector<1x128xf32>, vector<1x128xf32>, vector<1x128xf32> -> vector<8x128xf32>
    %c0_199 = arith.constant 0 : index
    %c0_200 = arith.constant 0 : index
    %610 = vector.load %arg20[%c0_199, %c0_200] : memref<8x128xf32, #tpu.memory_space<vmem>>, vector<8x128xf32>
    tpu.vector_store %arg20[%c0_199, %c0_200], %609 {strides = array<i32>} : memref<8x128xf32, #tpu.memory_space<vmem>>, vector<8x128xf32>,
    %c0_201 = arith.constant 0 : index
    %c0_202 = arith.constant 0 : index
    %611 = vector.load %arg20[%c0_201, %c0_202] : memref<8x128xf32, #tpu.memory_space<vmem>>, vector<8x128xf32>
    %cst_203 = arith.constant 0.000000e+00 : f32
    %612 = vector.broadcast %cst_203 : f32 to vector<8x128xf32>
    %613 = arith.minimumf %611, %612 : vector<8x128xf32>
    %614 = math.absf %611 : vector<8x128xf32>
    %cst_204 = arith.constant 0.000000e+00 : f32
    %615 = vector.broadcast %cst_204 : f32 to vector<8x128xf32>
    %616 = arith.subf %615, %614 : vector<8x128xf32>
    %617 = math.exp %616 : vector<8x128xf32>
    %cst_205 = arith.constant 1.000000e+00 : f32
    %618 = vector.broadcast %cst_205 : f32 to vector<8x128xf32>
    %619 = arith.addf %618, %617 : vector<8x128xf32>
    %620 = math.log %619 : vector<8x128xf32>
    %621 = arith.subf %613, %620 : vector<8x128xf32>
    %c0_206 = arith.constant 0 : index
    %c0_207 = arith.constant 0 : index
    %622 = vector.load %arg16[%c0_206, %c0_207] : memref<128x20xf32, #tpu.memory_space<vmem>>, vector<128x20xf32>
    %cst_208 = arith.constant dense<0.000000e+00> : vector<8x20xf32>
    %623 = tpu.matmul %621, %622, %cst_208 {dimension_numbers = #tpu.dot_dimension_numbers<[1], [0], [0], [1], [0, 0, 1, 1], [], []>} : vector<8x128xf32>, vector<128x20xf32>, vector<8x20xf32> -> vector<8x20xf32>
    %c0_209 = arith.constant 0 : index
    %c0_210 = arith.constant 0 : index
    %624 = vector.load %arg17[%c0_209, %c0_210] : memref<1x20xf32, #tpu.memory_space<vmem>>, vector<1x20xf32>
    %625 = vector.broadcast %624 : vector<1x20xf32> to vector<8x20xf32>
    %626 = arith.addf %623, %625 : vector<8x20xf32>
    %c0_211 = arith.constant 0 : index
    %c0_212 = arith.constant 0 : index
    %627 = vector.load %arg18[%c0_211, %c0_212] : memref<8x20xf32, #tpu.memory_space<vmem>>, vector<8x20xf32>
    tpu.vector_store %arg18[%c0_211, %c0_212], %626 {strides = array<i32>} : memref<8x20xf32, #tpu.memory_space<vmem>>, vector<8x20xf32>,
    return
  }
  func.func @transform_0(%arg0: i32) -> (i32, i32) {
    %c0_i32 = arith.constant 0 : i32
    %c0_i32_0 = arith.constant 0 : i32
    %c0_i32_1 = arith.constant 0 : i32
    return %c0_i32, %c0_i32_0 : i32, i32
  }
  func.func @transform_1(%arg0: i32) -> (i32, i32) {
    %c0_i32 = arith.constant 0 : i32
    %c0_i32_0 = arith.constant 0 : i32
    %c0_i32_1 = arith.constant 0 : i32
    return %c0_i32, %c0_i32_0 : i32, i32
  }
  func.func @transform_2(%arg0: i32) -> (i32, i32) {
    %c0_i32 = arith.constant 0 : i32
    %c0_i32_0 = arith.constant 0 : i32
    %c0_i32_1 = arith.constant 0 : i32
    return %c0_i32, %c0_i32_0 : i32, i32
  }
  func.func @transform_3(%arg0: i32) -> (i32, i32) {
    %c0_i32 = arith.constant 0 : i32
    %c0_i32_0 = arith.constant 0 : i32
    %c0_i32_1 = arith.constant 0 : i32
    return %c0_i32, %c0_i32_0 : i32, i32
  }
  func.func @transform_4(%arg0: i32) -> (i32, i32) {
    %c0_i32 = arith.constant 0 : i32
    %c0_i32_0 = arith.constant 0 : i32
    %c0_i32_1 = arith.constant 0 : i32
    return %c0_i32, %c0_i32_0 : i32, i32
  }
  func.func @transform_5(%arg0: i32) -> (i32, i32) {
    %c0_i32 = arith.constant 0 : i32
    %c0_i32_0 = arith.constant 0 : i32
    %c0_i32_1 = arith.constant 0 : i32
    return %c0_i32, %c0_i32_0 : i32, i32
  }
  func.func @transform_6(%arg0: i32) -> (i32, i32) {
    %c0_i32 = arith.constant 0 : i32
    %c0_i32_0 = arith.constant 0 : i32
    %c0_i32_1 = arith.constant 0 : i32
    return %c0_i32, %c0_i32_0 : i32, i32
  }
  func.func @transform_7(%arg0: i32) -> (i32, i32) {
    %c0_i32 = arith.constant 0 : i32
    %c0_i32_0 = arith.constant 0 : i32
    %c0_i32_1 = arith.constant 0 : i32
    return %c0_i32, %c0_i32_0 : i32, i32
  }
  func.func @transform_8(%arg0: i32) -> (i32, i32) {
    %c0_i32 = arith.constant 0 : i32
    %c0_i32_0 = arith.constant 0 : i32
    %c0_i32_1 = arith.constant 0 : i32
    return %c0_i32, %c0_i32_0 : i32, i32
  }
  func.func @transform_9(%arg0: i32) -> (i32, i32) {
    %c0_i32 = arith.constant 0 : i32
    %c0_i32_0 = arith.constant 0 : i32
    %c0_i32_1 = arith.constant 0 : i32
    return %c0_i32, %c0_i32_0 : i32, i32
  }
  func.func @transform_10(%arg0: i32) -> (i32, i32) {
    %c0_i32 = arith.constant 0 : i32
    %c0_i32_0 = arith.constant 0 : i32
    %c0_i32_1 = arith.constant 0 : i32
    return %c0_i32, %c0_i32_0 : i32, i32
  }
  func.func @transform_11(%arg0: i32) -> (i32, i32) {
    %c0_i32 = arith.constant 0 : i32
    %c0_i32_0 = arith.constant 0 : i32
    %c0_i32_1 = arith.constant 0 : i32
    return %c0_i32, %c0_i32_0 : i32, i32
  }
  func.func @transform_12(%arg0: i32) -> (i32, i32) {
    %c0_i32 = arith.constant 0 : i32
    %c0_i32_0 = arith.constant 0 : i32
    %c0_i32_1 = arith.constant 0 : i32
    return %c0_i32, %c0_i32_0 : i32, i32
  }
  func.func @transform_13(%arg0: i32) -> (i32, i32) {
    %c0_i32 = arith.constant 0 : i32
    %c0_i32_0 = arith.constant 0 : i32
    %c0_i32_1 = arith.constant 0 : i32
    return %c0_i32, %c0_i32_0 : i32, i32
  }
  func.func @transform_14(%arg0: i32) -> (i32, i32) {
    %c0_i32 = arith.constant 0 : i32
    %c0_i32_0 = arith.constant 0 : i32
    %c0_i32_1 = arith.constant 0 : i32
    return %c0_i32, %c0_i32_0 : i32, i32
  }
  func.func @transform_15(%arg0: i32) -> (i32, i32) {
    %c0_i32 = arith.constant 0 : i32
    %c0_i32_0 = arith.constant 0 : i32
    %c0_i32_1 = arith.constant 0 : i32
    return %c0_i32, %c0_i32_0 : i32, i32
  }
  func.func @transform_16(%arg0: i32) -> (i32, i32) {
    %c0_i32 = arith.constant 0 : i32
    %c0_i32_0 = arith.constant 0 : i32
    %c0_i32_1 = arith.constant 0 : i32
    return %c0_i32, %c0_i32_0 : i32, i32
  }
  func.func @transform_17(%arg0: i32) -> (i32, i32) {
    %c0_i32 = arith.constant 0 : i32
    %c0_i32_0 = arith.constant 0 : i32
    %c0_i32_1 = arith.constant 0 : i32
    return %c0_i32, %c0_i32_0 : i32, i32
  }
}

</mosaic_0001>

<bundles_post_ra>
// kernel: cnn_forward.1
= control target key start
LH: loop header
LB: loop body
LE: loop exit
PB: predicated region body
PF: predicated region fallthrough
CT: control target
= control target key end

     0   :  { %vm73_vm0 = vcmask 261120   ;;  %vm7544_vm1 = vmmov 0   ;;  %vm514_vm2 = vcmask 523264   ;;  %vm518_vm3 = vcmask 785408   ;;  %s10423_s1 = inlined_call_operand.vmem [shape: f32[32,128], index: 1, kind: input, shape index: {}]   ;;  %s10424_s0 = inlined_call_operand.vmem [shape: f32[48,32], index: 0, kind: input, shape index: {}]   ;;  %s10425_s2 = inlined_call_operand.vmem [shape: f32[1,128], index: 2, kind: input, shape index: {}]   ;;  %s10426_s3 = inlined_call_operand.vmem [shape: f32[32,128], index: 3, kind: input, shape index: {}]   ;;  %s10427_s4 = inlined_call_operand.vmem [shape: f32[1,128], index: 4, kind: input, shape index: {}]   ;;  %s10428_s5 = inlined_call_operand.vmem [shape: f32[128,32], index: 5, kind: input, shape index: {}]   ;;  %s10429_s7 = inlined_call_operand.vmem [shape: f32[64,64], index: 7, kind: input, shape index: {}]   ;;  %s10430_s6 = inlined_call_operand.vmem [shape: f32[1,32], index: 6, kind: input, shape index: {}]   ;;  %s10431_s9 = inlined_call_operand.vmem [shape: f32[128,384], index: 9, kind: input, shape index: {}]   ;;  %s10432_s11 = inlined_call_operand.vmem [shape: f32[256,768], index: 11, kind: input, shape index: {}]   ;;  %s10433_s8 = inlined_call_operand.vmem [shape: f32[1,64], index: 8, kind: input, shape index: {}]   ;;  %s10434_s13 = inlined_call_operand.vmem [shape: f32[128,384], index: 13, kind: input, shape index: {}]   ;;  %s10435_s10 = inlined_call_operand.vmem [shape: f32[1,384], index: 10, kind: input, shape index: {}]   ;;  %s10436_s12 = inlined_call_operand.vmem [shape: f32[1,768], index: 12, kind: input, shape index: {}]   ;;  %s10437_s14 = inlined_call_operand.vmem [shape: f32[1,384], index: 14, kind: input, shape index: {}]   ;;  %s10438_s15 = inlined_call_operand.vmem [shape: f32[128,20], index: 15, kind: input, shape index: {}]   ;;  %s10439_s16 = inlined_call_operand.vmem [shape: f32[1,20], index: 16, kind: input, shape index: {}]   ;;  %s10440_s17 = inlined_call_operand.vmem [shape: f32[8,20], index: 17, kind: output, shape index: {}]  }
   0x1   :  { %10697 = sst [smem:[#allocation126_spill]] %s10423_s1  ;;  %v271_v12 = vld [vmem:[%s10426_s3] sm:$0xff]  ;;  %v272_v13 = vld [vmem:[%s10426_s3 + $0x8] sm:$0xff]  ;;  %v273_v17 = vld [vmem:[%s10426_s3 + $0x10] sm:$0xff]  ;;  %vm4478_vm4 = vcmask 1040384   ;;  %vm4480_vm5 = vcmask 1041408  }
   0x2   :  { %10698 = sst [smem:[#allocation127_spill]] %s10424_s0  ;;  %s10699_s26 = sld [smem:[#allocation126_spill]]  ;;  %v5292_v14 = vpack.c.bf16 %v272_v13, %v271_v12  ;;  %v4602_v15 = vld [vmem:[%s10425_s2] ss:$0 sm:$0xff]  ;;  %v274_v18 = vld [vmem:[%s10426_s3 + $0x18] sm:$0xff]  ;;  %vm4482_vm6 = vcmask 1042432  }
   0x3   :  { %s10700_s20 = sld [smem:[#allocation127_spill]]  ;;  %v5296_v21 = vpack.c.bf16 %v274_v18, %v273_v17  ;;  %s7540_s2 = smov 64   ;;  %vm4484_vm7 = vcmask 1043456   ;;  %vm4486_vm8 = vcmask 1044480   ;;  %vm4488_vm9 = vcmask 1045504  }
   0x4   :  { %s7542_s3 = smov 32   ;;  %vm4490_vm10 = vcmask 1046528   ;;  %vm4596_vm11 = vcmask 162816  }
   0x8   :  { %v62_v0 = vld [vmem:[%s10699_s26] sm:$0xff]  ;;  %v63_v1 = vld [vmem:[%s10699_s26 + $0x8] sm:$0xff]  ;;  %v64_v2 = vld [vmem:[%s10699_s26 + $0x10] sm:$0xff] }
   0x9   :  { %v5284_v3 = vpack.c.bf16 %v63_v1, %v62_v0  ;;  %v65_v4 = vld [vmem:[%s10699_s26 + $0x18] sm:$0xff]  ;;  %v56_v5 = vld [vmem:[%s10700_s20] sm:$0xff]  ;;  %v57_v7 = vld [vmem:[%s10700_s20 + $0x8] sm:$0xff]  ;;  %s7541_s26 = smov 96  }
   0xa   :  { %v5288_v6 = vpack.c.bf16 %v65_v4, %v64_v2  ;;  %4848 = vmatprep.mubr.msk.f32.mxu0 %vm73_vm0, %v56_v5  ;;  %v58_v8 = vld [vmem:[%s10700_s20 + $0x10] sm:$0xff]  ;;  %v59_v9 = vld [vmem:[%s10700_s20 + $0x18] sm:$0xff]  ;;  %v60_v10 = vld [vmem:[%s10700_s20 + $0x20] sm:$0xff] }
   0xb   :  { %5285 = vmatprep.subr.bf16.mxu0 %v5284_v3  ;;  %v61_v11 = vld [vmem:[%s10700_s20 + $0x28] sm:$0xff] }
   0xc   :  { %5287 = vmatpush3.bf16.msra.mxu0 %v5284_v3 }
   0xd   :  { %5289 = vmatprep.subr.bf16.mxu0 %v5288_v6 }
  0x10   :  { %5291 = vmatpush3.bf16.msra.mxu0 %v5288_v6 }
  0x11   :  { %5293 = vmatprep.subr.bf16.mxu0 %v5292_v14 }
  0x13   :  { %4849 = vmatmul.mubr.msk.f32.vlgmr.msra.gmra.mrb[0].mxu0 %vm73_vm0, %v57_v7 }
  0x14   :  { %4851 = vmatprep.mubr.msk.f32.mxu0 %vm73_vm0, %v58_v8  ;;  %5295 = vmatpush3.bf16.msra.mxu0 %v5292_v14 }
  0x15   :  { %5297 = vmatprep.subr.bf16.mxu0 %v5296_v21 }
  0x17   :  { %4852 = vmatmul.mubr.msk.f32.gmra.mrb[2].mxu0 %vm73_vm0, %v59_v9 }
  0x18   :  { %4854 = vmatprep.mubr.msk.f32.mxu0 %vm73_vm0, %v60_v10  ;;  %5299 = vmatpush3.bf16.msra.mxu0 %v5296_v21 }
  0x1b   :  { %4855 = vmatmul.mubr.msk.f32.gmra.mrb[4].mxu0 %vm73_vm0, %v61_v11  ;;  %v4609_v11 = vld [vmem:[%s10427_s4] ss:$0 sm:$0xff] }
  0xe6   :  { %v4850_v16 = vpop.f32.mrb[0].mxu0 }
  0xe7   :  { %v164_v19 = vadd.f32 %v4850_v16, %v4602_v15  ;;  %v158_v20 = vpop.f32.mrb[1].mxu0 }
  0xe8   :  { %v159_v23 = vadd.f32 %v4602_v15, %v158_v20 }
  0xe9   :  { %v188_v22 = vmax.f32 %v164_v19, 0.0 }
  0xea   :  { %v4853_v24 = vpop.f32.mrb[2].mxu0  ;;  %v187_v27 = vmax.f32 %v159_v23, 0.0 }
  0xeb   :  { %225 = vrot.lane.b32.xlu1 %v188_v22, %s7540_s2  ;;  %201 = vrot.lane.b32.xlu0 %v188_v22, %s7541_s26  ;;  %v174_v25 = vadd.f32 %v4853_v24, %v4602_v15  ;;  %v168_v26 = vpop.f32.mrb[3].mxu0 }
  0xec   :  { %v169_v31 = vadd.f32 %v4602_v15, %v168_v26 }
  0xed   :  { %v190_v29 = vmax.f32 %v174_v25, 0.0 }
  0xee   :  { %v4856_v28 = vpop.f32.mrb[4].mxu0  ;;  %v189_v33 = vmax.f32 %v169_v31, 0.0  ;;  %v523_v31 = vld [vmem:[%s10428_s5 + $0x8] sm:$0xff] }
  0xef   :  { %249 = vrot.lane.b32.xlu1 %v188_v22, %s7542_s3  ;;  %199 = vrot.lane.b32.xlu0 %v187_v27, %s7541_s26  ;;  %v178_v30 = vpop.f32.mrb[5].mxu0  ;;  %v184_v32 = vadd.f32 %v4856_v28, %v4602_v15 }
  0xf0   :  { %v179_v35 = vadd.f32 %v4602_v15, %v178_v30  ;;  %v522_v30 = vld [vmem:[%s10428_s5] sm:$0xff] }
  0xf1   :  { %v192_v34 = vmax.f32 %v184_v32, 0.0  ;;  %v524_v32 = vld [vmem:[%s10428_s5 + $0x10] sm:$0xff] }
  0xf2   :  { %v191_v36 = vmax.f32 %v179_v35, 0.0 }
  0xf3   :  { %223 = vrot.lane.b32.xlu1 %v187_v27, %s7540_s2  ;;  %205 = vrot.lane.b32.xlu0 %v190_v29, %s7541_s26 }
  0xf7   :  { %247 = vrot.lane.b32.xlu1 %v187_v27, %s7542_s3  ;;  %253 = vrot.lane.b32.xlu0 %v190_v29, %s7542_s3 }
  0xfb   :  { %229 = vrot.lane.b32.xlu1 %v190_v29, %s7540_s2  ;;  %203 = vrot.lane.b32.xlu0 %v189_v33, %s7541_s26 }
  0xff   :  { %209 = vrot.lane.b32.xlu1 %v192_v34, %s7541_s26  ;;  %227 = vrot.lane.b32.xlu0 %v189_v33, %s7540_s2 }
 0x103   :  { %207 = vrot.lane.b32.xlu1 %v191_v36, %s7541_s26  ;;  %251 = vrot.lane.b32.xlu0 %v189_v33, %s7542_s3 }
 0x107   :  { %233 = vrot.lane.b32.xlu1 %v192_v34, %s7540_s2  ;;  %231 = vrot.lane.b32.xlu0 %v191_v36, %s7540_s2 }
 0x10b   :  { %257 = vrot.lane.b32.xlu1 %v192_v34, %s7542_s3  ;;  %255 = vrot.lane.b32.xlu0 %v191_v36, %s7542_s3 }
 0x15d   :  { %v226_v37 = vpop.permute.xlu1 %225  ;;  %v202_v38 = vpop.permute.xlu0 %201 }
 0x15e   :  { %v218_v41 = vmax.f32 %v188_v22, %v202_v38  ;;  %v527_v38 = vld [vmem:[%s10428_s5 + $0x28] sm:$0xff] }
 0x160   :  { %v242_v45 = vmax.f32 %v218_v41, %v226_v37  ;;  %v526_v37 = vld [vmem:[%s10428_s5 + $0x20] sm:$0xff]  ;;  %v529_v41 = vld [vmem:[%s10428_s5 + $0x38] sm:$0xff] }
 0x161   :  { %v250_v39 = vpop.permute.xlu1 %249  ;;  %v200_v40 = vpop.permute.xlu0 %199 }
 0x162   :  { %v217_v44 = vmax.f32 %v187_v27, %v200_v40  ;;  %v266_v50 = vmax.f32 %v242_v45, %v250_v39  ;;  %v5307_v39 = vpack.c.bf16 %v527_v38, %v526_v37  ;;  %v528_v40 = vld [vmem:[%s10428_s5 + $0x30] sm:$0xff] }
 0x165   :  { %v224_v42 = vpop.permute.xlu1 %223  ;;  %v206_v43 = vpop.permute.xlu0 %205 }
 0x166   :  { %v241_v46 = vmax.f32 %v217_v44, %v224_v42  ;;  %v220_v53 = vmax.f32 %v190_v29, %v206_v43  ;;  %v10443_v29 = vmov 0.0|0.0   ;;  %v5310_v42 = vpack.c.bf16 %v529_v41, %v528_v40  ;;  %v530_v43 = vld [vmem:[%s10428_s5 + $0x40] sm:$0xff]  ;;  %v531_v44 = vld [vmem:[%s10428_s5 + $0x48] sm:$0xff] }
 0x167   :  { %5300 = vmatprep.subr.bf16.mxu0 %v10443_v29  ;;  %v5313_v45 = vpack.c.bf16 %v531_v44, %v530_v43 }
 0x169   :  { %v248_v47 = vpop.permute.xlu1 %247  ;;  %v254_v48 = vpop.permute.xlu0 %253 }
 0x16a   :  { %v265_v49 = vmax.f32 %v241_v46, %v248_v47  ;;  %v532_v46 = vld [vmem:[%s10428_s5 + $0x50] sm:$0xff]  ;;  %v533_v47 = vld [vmem:[%s10428_s5 + $0x58] sm:$0xff] }
 0x16c   :  { %4865 = vmatprep.mubr.msk.f32.mxu0 %vm73_vm0, %v265_v49 }
 0x16d   :  { %v230_v51 = vpop.permute.xlu1 %229  ;;  %4866 = vmatmul.mubr.msk.f32.vlgmr.msra.gmra.mrb[6].mxu0 %vm73_vm0, %v266_v50  ;;  %v204_v52 = vpop.permute.xlu0 %203  ;;  %v534_v50 = vld [vmem:[%s10428_s5 + $0x60] sm:$0xff] }
 0x16e   :  { %v219_v56 = vmax.f32 %v189_v33, %v204_v52  ;;  %v244_v57 = vmax.f32 %v220_v53, %v230_v51  ;;  %v5301_v33 = vpack.c.bf16 %v523_v31, %v522_v30  ;;  %v535_v51 = vld [vmem:[%s10428_s5 + $0x68] sm:$0xff] }
 0x16f   :  { %v5319_v53 = vpack.c.bf16 %v535_v51, %v534_v50 }
 0x170   :  { %v268_v62 = vmax.f32 %v244_v57, %v254_v48  ;;  %5302 = vmatpush3.bf16.msra.mxu0 %v5301_v33  ;;  %v5316_v48 = vpack.c.bf16 %v533_v47, %v532_v46 }
 0x171   :  { %v210_v54 = vpop.permute.xlu1 %209  ;;  %v228_v55 = vpop.permute.xlu0 %227  ;;  %5303 = vmatprep.subr.bf16.mxu0 %v10443_v29 }
 0x172   :  { %v243_v58 = vmax.f32 %v219_v56, %v228_v55  ;;  %v222_v1 = vmax.f32 %v192_v34, %v210_v54  ;;  %v525_v34 = vld [vmem:[%s10428_s5 + $0x18] sm:$0xff] }
 0x173   :  { %v5304_v35 = vpack.c.bf16 %v525_v34, %v524_v32 }
 0x175   :  { %v208_v59 = vpop.permute.xlu1 %207  ;;  %v252_v60 = vpop.permute.xlu0 %251  ;;  %5305 = vmatpush3.bf16.msra.mxu0 %v5304_v35 }
 0x176   :  { %v267_v61 = vmax.f32 %v243_v58, %v252_v60  ;;  %v221_v2 = vmax.f32 %v191_v36, %v208_v59  ;;  %5306 = vmatprep.subr.bf16.mxu0 %v10443_v29  ;;  %v536_v59 = vld [vmem:[%s10428_s5 + $0x70] sm:$0xff]  ;;  %v537_v60 = vld [vmem:[%s10428_s5 + $0x78] sm:$0xff] }
 0x178   :  { %4868 = vmatprep.mubr.msk.f32.mxu0 %vm73_vm0, %v267_v61 }
 0x179   :  { %v234_v63 = vpop.permute.xlu1 %233  ;;  %4869 = vmatmul.mubr.msk.f32.gmra.mrb[8].mxu0 %vm73_vm0, %v268_v62  ;;  %v232_v0 = vpop.permute.xlu0 %231  ;;  %v5322_v62 = vpack.c.bf16 %v537_v60, %v536_v59  ;;  %v641_v59 = vld [vmem:[%s10429_s7 + $0x18] sm:$0xff] }
 0x17a   :  { %v246_v3 = vmax.f32 %v222_v1, %v234_v63  ;;  %v245_v4 = vmax.f32 %v221_v2, %v232_v0  ;;  %5308 = vmatpush3.bf16.msra.mxu0 %v5307_v39 }
 0x17b   :  { %5309 = vmatprep.subr.bf16.mxu0 %v10443_v29 }
 0x17d   :  { %v258_v5 = vpop.permute.xlu1 %257  ;;  %v256_v6 = vpop.permute.xlu0 %255 }
 0x17e   :  { %v270_v7 = vmax.f32 %v246_v3, %v258_v5  ;;  %v269_v8 = vmax.f32 %v245_v4, %v256_v6  ;;  %5311 = vmatpush3.bf16.msra.mxu0 %v5310_v42 }
 0x17f   :  { %5312 = vmatprep.subr.bf16.mxu0 %v10443_v29 }
 0x180   :  { %4871 = vmatprep.mubr.msk.f32.mxu0 %vm73_vm0, %v269_v8 }
 0x181   :  { %4872 = vmatmul.mubr.msk.f32.gmra.mrb[10].mxu0 %vm73_vm0, %v270_v7 }
 0x182   :  { %5314 = vmatpush3.bf16.msra.mxu0 %v5313_v45 }
 0x183   :  { %5315 = vmatprep.subr.bf16.mxu0 %v10443_v29 }
 0x186   :  { %5317 = vmatpush3.bf16.msra.mxu0 %v5316_v48 }
 0x187   :  { %5318 = vmatprep.subr.bf16.mxu0 %v10443_v29 }
 0x18a   :  { %5320 = vmatpush3.bf16.msra.mxu0 %v5319_v53 }
 0x18b   :  { %5321 = vmatprep.subr.bf16.mxu0 %v10443_v29 }
 0x18e   :  { %5323 = vmatpush3.bf16.msra.mxu0 %v5322_v62  ;;  %v643_v62 = vld [vmem:[%s10429_s7 + $0x28] sm:$0xff] }
 0x18f   :  { %5372 = vmatprep.subr.bf16.mxu0 %v10443_v29 }
 0x240   :  { %v4867_v9 = vpop.f32.mrb[6].mxu0 }
 0x241   :  { %v366_v10 = vpop.f32.mrb[7].mxu0  ;;  %v7714_v12 = vadd.f32 %v4867_v9, %v4609_v11 }
 0x242   :  { %v367_v28 = vadd.f32 %v4609_v11, %v366_v10 }
 0x243   :  { %v396_v18 = vmax.f32 %v7714_v12, 0.0 }
 0x244   :  { %v7763_v36 = vmax.f32 %v367_v28, 0.0 }
 0x24c   :  { %v4870_v13 = vpop.f32.mrb[8].mxu0 }
 0x24d   :  { %v382_v14 = vadd.f32 %v4870_v13, %v4609_v11  ;;  %v376_v15 = vpop.f32.mrb[9].mxu0 }
 0x24e   :  { %v7716_v16 = vadd.f32 %v4609_v11, %v376_v15 }
 0x24f   :  { %v7718_v17 = vmax.f32 %v382_v14, 0.0 }
 0x250   :  { %v397_v19 = vmax.f32 %v7716_v16, 0.0 }
 0x251   :  { %437 = vrot.lane.b32.xlu1 %v7718_v17, %s7540_s2 }
 0x252   :  { %v7410_v20 = vpack.i.bf16 %v397_v19, %v396_v18 }
 0x254   :  { %7411 = vrot.lane.b32.xlu0 %v7410_v20, %s7541_s26  ;;  %v4873_v21 = vpop.f32.mrb[10].mxu0 }
 0x255   :  { %v386_v22 = vpop.f32.mrb[11].mxu0  ;;  %v392_v26 = vadd.f32 %v4873_v21, %v4609_v11 }
 0x256   :  { %v387_v23 = vadd.f32 %v4609_v11, %v386_v22  ;;  %v10445_v11 = vmov 0.0  }
 0x257   :  { %v7740_v27 = vmax.f32 %v392_v26, 0.0  ;;  %4906 = vmatprep.mubr.msk.f32.mxu0 %vm7544_vm1, %v10445_v11 }
 0x258   :  { %v7729_v24 = vmax.f32 %v387_v23, 0.0  ;;  %7416 = vrot.lane.b32.xlu0 %v7410_v20, %s7540_s2 }
 0x25a   :  { %v7425_v25 = vpack.i.bf16 %v7729_v24, %v7718_v17 }
 0x25c   :  { %7421 = vrot.lane.b32.xlu0 %v7410_v20, %s7542_s3  ;;  %7426 = vrot.lane.b32.xlu1 %v7425_v25, %s7541_s26 }
 0x260   :  { %439 = vrot.lane.b32.xlu0 %v7729_v24, %s7540_s2  ;;  %461 = vrot.lane.b32.xlu1 %v7718_v17, %s7542_s3 }
 0x264   :  { %463 = vrot.lane.b32.xlu0 %v7729_v24, %s7542_s3  ;;  %417 = vrot.lane.b32.xlu1 %v7740_v27, %s7541_s26 }
 0x268   :  { %465 = vrot.lane.b32.xlu0 %v7740_v27, %s7542_s3  ;;  %441 = vrot.lane.b32.xlu1 %v7740_v27, %s7540_s2 }
 0x26c   :  { %407 = vrot.lane.b32.xlu1 %v7763_v36, %s7541_s26 }
 0x2c3   :  { %v438_v55 = vpop.permute.xlu1 %437 }
 0x2c6   :  { %v7412_v49 = vpop.permute.xlu0 %7411 }
 0x2c7   :  { %v7413_v52 = vunpack.i.l.bf16 %v7412_v49  ;;  %v7414_v54 = vunpack.i.h.bf16 %v7412_v49 }
 0x2c9   :  { %v426_v61 = vmax.f32 %v396_v18, %v7413_v52  ;;  %v427_v63 = vmax.f32 %v397_v19, %v7414_v54 }
 0x2ca   :  { %v7417_v56 = vpop.permute.xlu0 %7416 }
 0x2cb   :  { %v7419_v57 = vunpack.i.h.bf16 %v7417_v56  ;;  %v7418_v58 = vunpack.i.l.bf16 %v7417_v56  ;;  %v639_v56 = vld [vmem:[%s10429_s7 + $0x8] sm:$0xff] }
 0x2cd   :  { %v450_v0 = vmax.f32 %v426_v61, %v7418_v58  ;;  %v451_v3 = vmax.f32 %v427_v63, %v7419_v57  ;;  %v640_v57 = vld [vmem:[%s10429_s7 + $0x10] sm:$0xff]  ;;  %v642_v61 = vld [vmem:[%s10429_s7 + $0x20] sm:$0xff] }
 0x2ce   :  { %v7427_v1 = vpop.permute.xlu1 %7426  ;;  %v7422_v2 = vpop.permute.xlu0 %7421  ;;  %v5328_v60 = vpack.c.bf16 %v641_v59, %v640_v57  ;;  %v5332_v63 = vpack.c.bf16 %v643_v62, %v642_v61  ;;  %v769_v57 = vld [vmem:[%s10431_s9 + $0xe0] sm:$0xff]  ;;  %v768_v62 = vld [vmem:[%s10431_s9 + $0xd8] sm:$0xff] }
 0x2cf   :  { %v7428_v4 = vunpack.i.l.bf16 %v7427_v1  ;;  %v7424_v5 = vunpack.i.h.bf16 %v7422_v2  ;;  %v7423_v6 = vunpack.i.l.bf16 %v7422_v2  ;;  %v7429_v7 = vunpack.i.h.bf16 %v7427_v1  ;;  %v645_v1 = vld [vmem:[%s10429_s7 + $0x38] sm:$0xff] }
 0x2d1   :  { %v428_v8 = vmax.f32 %v7718_v17, %v7428_v4  ;;  %v474_v9 = vmax.f32 %v450_v0, %v7423_v6  ;;  %v475_v10 = vmax.f32 %v451_v3, %v7424_v5  ;;  %v429_v18 = vmax.f32 %v7729_v24, %v7429_v7  ;;  %v644_v0 = vld [vmem:[%s10429_s7 + $0x30] sm:$0xff]  ;;  %v4616_v3 = vld [vmem:[%s10430_s6] ss:$0 sm:$0xff] }
 0x2d2   :  { %v462_v12 = vpop.permute.xlu1 %461  ;;  %v440_v13 = vpop.permute.xlu0 %439  ;;  %v5336_v2 = vpack.c.bf16 %v645_v1, %v644_v0  ;;  %v770_v0 = vld [vmem:[%s10431_s9 + $0xe8] sm:$0xff]  ;;  %v772_v1 = vld [vmem:[%s10431_s9 + $0xf8] sm:$0xff] }
 0x2d3   :  { %v452_v14 = vmax.f32 %v428_v8, %v438_v55  ;;  %v7435_v15 = vpack.i.bf16 %v475_v10, %v7763_v36  ;;  %v7430_v16 = vpack.i.bf16 %v474_v9, %v7763_v36  ;;  %v453_v21 = vmax.f32 %v429_v18, %v440_v13  ;;  %v638_v55 = vld [vmem:[%s10429_s7] sm:$0xff] }
 0x2d4   :  { %v5324_v58 = vpack.c.bf16 %v639_v56, %v638_v55  ;;  %v764_v55 = vld [vmem:[%s10431_s9 + $0xb8] sm:$0xff]  ;;  %v766_v56 = vld [vmem:[%s10431_s9 + $0xc8] sm:$0xff] }
 0x2d5   :  { %7436 = vrot.lane.b32.xlu0 %v7435_v15, %s7540_s2  ;;  %7431 = vrot.lane.b32.xlu1 %v7430_v16, %s7542_s3  ;;  %v476_v19 = vmax.f32 %v452_v14, %v462_v12  ;;  %v5356_v61 = vpack.c.bf16 %v769_v57, %v766_v56 }
 0x2d6   :  { %v418_v17 = vpop.permute.xlu1 %417  ;;  %v464_v20 = vpop.permute.xlu0 %463  ;;  %5325 = vmatprep.subr.bf16.mxu1 %v5324_v58 }
 0x2d7   :  { %v477_v22 = vmax.f32 %v453_v21, %v464_v20  ;;  %v430_v25 = vmax.f32 %v7740_v27, %v418_v17  ;;  %5327 = vmatpush3.bf16.msra.mxu1 %v5324_v58  ;;  %v742_v21 = vld [vmem:[%s10431_s9 + $0x8] sm:$0xff] }
 0x2d8   :  { %5329 = vmatprep.subr.bf16.mxu1 %v5328_v60 }
 0x2d9   :  { %502 = vrot.lane.b32.xlu0 %v476_v19, %s7541_s26  ;;  %484 = vrot.lane.b32.xlu1 %v475_v10, %s7542_s3 }
 0x2da   :  { %v442_v23 = vpop.permute.xlu1 %441  ;;  %v466_v26 = vpop.permute.xlu0 %465 }
 0x2db   :  { %v454_v24 = vmax.f32 %v430_v25, %v442_v23  ;;  %5331 = vmatpush3.bf16.msra.mxu1 %v5328_v60  ;;  %v741_v23 = vld [vmem:[%s10431_s9] sm:$0xff] }
 0x2dc   :  { %5333 = vmatprep.subr.bf16.mxu1 %v5332_v63  ;;  %v765_v60 = vld [vmem:[%s10431_s9 + $0xc0] sm:$0xff] }
 0x2dd   :  { %494 = vrot.lane.b32.xlu0 %v476_v19, %s7540_s2  ;;  %504 = vrot.lane.b32.xlu1 %v477_v22, %s7541_s26  ;;  %v478_v28 = vmax.f32 %v454_v24, %v466_v26  ;;  %v744_v24 = vld [vmem:[%s10431_s9 + $0x18] sm:$0xff]  ;;  %v743_v26 = vld [vmem:[%s10431_s9 + $0x10] sm:$0xff] }
 0x2de   :  { %v408_v30 = vpop.permute.xlu1 %407 }
 0x2df   :  { %v425_v33 = vmax.f32 %v7763_v36, %v408_v30  ;;  %5335 = vmatpush3.bf16.msra.mxu1 %v5332_v63  ;;  %v5342_v30 = vpack.c.bf16 %v744_v24, %v741_v23  ;;  %v767_v63 = vld [vmem:[%s10431_s9 + $0xd0] sm:$0xff] }
 0x2e0   :  { %5337 = vmatprep.subr.bf16.mxu1 %v5336_v2 }
 0x2e1   :  { %486 = vrot.lane.b32.xlu0 %v476_v19, %s7542_s3  ;;  %496 = vrot.lane.b32.xlu1 %v477_v22, %s7540_s2  ;;  %v745_v22 = vld [vmem:[%s10431_s9 + $0x20] sm:$0xff] }
 0x2e2   :  { %v5340_v25 = vpack.c.bf16 %v745_v22, %v742_v21  ;;  %v787_v21 = vld [vmem:[%s10431_s9 + $0x170] sm:$0xff] }
 0x2e3   :  { %5339 = vmatpush3.bf16.msra.mxu1 %v5336_v2  ;;  %v775_v2 = vld [vmem:[%s10431_s9 + $0x110] sm:$0xff] }
 0x2e4   :  { %5341 = vmatprep.subr.bf16.mxu1 %v5340_v25  ;;  %v783_v25 = vld [vmem:[%s10431_s9 + $0x150] sm:$0xff] }
 0x2e5   :  { %506 = vrot.lane.b32.xlu0 %v478_v28, %s7541_s26  ;;  %v746_v28 = vld [vmem:[%s10431_s9 + $0x28] sm:$0xff] }
 0x347   :  { %v7437_v31 = vpop.permute.xlu0 %7436  ;;  %v7432_v32 = vpop.permute.xlu1 %7431 }
 0x348   :  { %v7438_v34 = vunpack.i.l.bf16 %v7437_v31  ;;  %v7433_v35 = vunpack.i.l.bf16 %v7432_v32  ;;  %v7434_v39 = vunpack.i.h.bf16 %v7432_v32  ;;  %v7439_v41 = vunpack.i.h.bf16 %v7437_v31  ;;  %v748_v32 = vld [vmem:[%s10431_s9 + $0x38] sm:$0xff] }
 0x349   :  { %v5373_v31 = vpack.c.bf16 %v746_v28, %v743_v26  ;;  %v786_v26 = vld [vmem:[%s10431_s9 + $0x168] sm:$0xff]  ;;  %v785_v28 = vld [vmem:[%s10431_s9 + $0x160] sm:$0xff] }
 0x34a   :  { %v449_v27 = vmax.f32 %v425_v33, %v7438_v34  ;;  %v751_v33 = vld [vmem:[%s10431_s9 + $0x50] sm:$0xff] }
 0x34b   :  { %v503_v37 = vpop.permute.xlu0 %502  ;;  %v485_v38 = vpop.permute.xlu1 %484  ;;  %v747_v34 = vld [vmem:[%s10431_s9 + $0x30] sm:$0xff] }
 0x34c   :  { %v473_v40 = vmax.f32 %v449_v27, %v7433_v35  ;;  %v512_v36 = vsel %vm73_vm0, %v474_v9, %v485_v38  ;;  %v5344_v27 = vpack.c.bf16 %v751_v33, %v748_v32  ;;  %v750_v35 = vld [vmem:[%s10431_s9 + $0x48] sm:$0xff]  ;;  %v752_v38 = vld [vmem:[%s10431_s9 + $0x58] sm:$0xff] }
 0x34d   :  { %v956_v33 = vld [vmem:[%s10432_s11 + $0x8] sm:$0xff] }
 0x34e   :  { %v511_v42 = vsel %vm73_vm0, %v473_v40, %v7434_v39  ;;  %v5346_v39 = vpack.c.bf16 %v750_v35, %v747_v34  ;;  %v962_v34 = vld [vmem:[%s10432_s11 + $0x38] sm:$0xff]  ;;  %v4617_v35 = vld [vmem:[%s10433_s8] ss:$0 sm:$0xff] }
 0x34f   :  { %v515_v43 = vsel %vm514_vm2, %v511_v42, %v7439_v41  ;;  %v495_v44 = vpop.permute.xlu0 %494  ;;  %v505_v45 = vpop.permute.xlu1 %504  ;;  %v754_v41 = vld [vmem:[%s10431_s9 + $0x68] sm:$0xff]  ;;  %v757_v42 = vld [vmem:[%s10431_s9 + $0x80] sm:$0xff] }
 0x350   :  { %v519_v46 = vsel %vm518_vm3, %v515_v43, %v503_v37  ;;  %v516_v47 = vsel %vm514_vm2, %v512_v36, %v495_v44  ;;  %v749_v37 = vld [vmem:[%s10431_s9 + $0x40] sm:$0xff]  ;;  %v5348_v44 = vpack.c.bf16 %v757_v42, %v754_v41  ;;  %v758_v36 = vld [vmem:[%s10431_s9 + $0x88] sm:$0xff]  ;;  %v958_v42 = vld [vmem:[%s10432_s11 + $0x18] sm:$0xff] }
 0x351   :  { %4907 = vmatmul.mubr.f32.vlgmr.msra.gmra.mrb[12].mxu0 %v519_v46  ;;  %v520_v51 = vsel %vm518_vm3, %v516_v47, %v505_v45  ;;  %v5376_v40 = vpack.c.bf16 %v752_v38, %v749_v37  ;;  %v753_v43 = vld [vmem:[%s10431_s9 + $0x60] sm:$0xff]  ;;  %v756_v45 = vld [vmem:[%s10431_s9 + $0x78] sm:$0xff]  ;;  %v755_v46 = vld [vmem:[%s10431_s9 + $0x70] sm:$0xff] }
 0x352   :  { %4909 = vmatprep.mubr.msk.f32.mxu0 %vm7544_vm1, %v10445_v11  ;;  %5374 = vmatpush3.bf16.msra.mxu0 %v5373_v31  ;;  %v760_v47 = vld [vmem:[%s10431_s9 + $0x98] sm:$0xff]  ;;  %v5370_v31 = vpack.c.bf16 %v786_v26, %v783_v25  ;;  %v999_v25 = vld [vmem:[%s10432_s11 + $0x160] sm:$0xff] }
 0x353   :  { %v487_v48 = vpop.permute.xlu0 %486  ;;  %v497_v50 = vpop.permute.xlu1 %496  ;;  %5375 = vmatprep.subr.bf16.mxu0 %v10443_v29  ;;  %v1006_v26 = vld [vmem:[%s10432_s11 + $0x198] sm:$0xff] }
 0x354   :  { %v513_v49 = vsel %vm73_vm0, %v475_v10, %v487_v48  ;;  %v763_v48 = vld [vmem:[%s10431_s9 + $0xb0] sm:$0xff] }
 0x355   :  { %4910 = vmatmul.mubr.f32.gmra.mrb[14].mxu0 %v520_v51  ;;  %v517_v52 = vsel %vm514_vm2, %v513_v49, %v497_v50  ;;  %v5350_v49 = vpack.c.bf16 %v756_v45, %v753_v43  ;;  %v5379_v50 = vpack.c.bf16 %v758_v36, %v755_v46  ;;  %v759_v51 = vld [vmem:[%s10431_s9 + $0x90] sm:$0xff]  ;;  %v964_v43 = vld [vmem:[%s10432_s11 + $0x48] sm:$0xff]  ;;  %v955_v45 = vld [vmem:[%s10432_s11] sm:$0xff] }
 0x356   :  { %4912 = vmatprep.mubr.msk.f32.mxu0 %vm7544_vm1, %v10445_v11  ;;  %5377 = vmatpush3.bf16.msra.mxu0 %v5376_v40  ;;  %v961_v46 = vld [vmem:[%s10432_s11 + $0x30] sm:$0xff]  ;;  %v968_v36 = vld [vmem:[%s10432_s11 + $0x68] sm:$0xff] }
 0x357   :  { %v507_v53 = vpop.permute.xlu0 %506  ;;  %5378 = vmatprep.subr.bf16.mxu0 %v10443_v29 }
 0x358   :  { %v521_v54 = vsel %vm518_vm3, %v517_v52, %v507_v53  ;;  %v5352_v52 = vpack.c.bf16 %v763_v48, %v760_v47  ;;  %v762_v53 = vld [vmem:[%s10431_s9 + $0xa8] sm:$0xff]  ;;  %v957_v47 = vld [vmem:[%s10432_s11 + $0x10] sm:$0xff]  ;;  %v963_v48 = vld [vmem:[%s10432_s11 + $0x40] sm:$0xff] }
 0x359   :  { %4913 = vmatmul.mubr.f32.gmra.mrb[16].mxu0 %v521_v54  ;;  %v761_v54 = vld [vmem:[%s10431_s9 + $0xa0] sm:$0xff]  ;;  %v5354_v58 = vpack.c.bf16 %v762_v53, %v759_v51  ;;  %v976_v51 = vld [vmem:[%s10432_s11 + $0xa8] sm:$0xff]  ;;  %v8078_v53 = vpack.c.bf16 %v961_v46, %v955_v45  ;;  %v8086_v56 = vpack.c.bf16 %v963_v48, %v957_v47  ;;  %v1021_v46 = vld [vmem:[%s10432_s11 + $0x210] sm:$0xff] }
 0x35a   :  { %4966 = vmatprep.mubr.msk.f32.mxu0 %vm7544_vm1, %v10445_v11  ;;  %5380 = vmatpush3.bf16.msra.mxu0 %v5379_v50  ;;  %v5382_v59 = vpack.c.bf16 %v764_v55, %v761_v54  ;;  %v970_v50 = vld [vmem:[%s10432_s11 + $0x78] sm:$0xff]  ;;  %v967_v54 = vld [vmem:[%s10432_s11 + $0x60] sm:$0xff]  ;;  %v973_v55 = vld [vmem:[%s10432_s11 + $0x90] sm:$0xff] }
 0x35b   :  { %5381 = vmatprep.subr.bf16.mxu0 %v10443_v29  ;;  %10703 = vst [vmem:[#allocation6_spill] sm:$0xff] %v8078_v53  ;;  %10704 = vst [vmem:[#allocation7_spill] sm:$0xff] %v8086_v56  ;;  %v1015_v45 = vld [vmem:[%s10432_s11 + $0x1e0] sm:$0xff]  ;;  %v1028_v48 = vld [vmem:[%s10432_s11 + $0x248] sm:$0xff] }
 0x35e   :  { %5383 = vmatpush3.bf16.msra.mxu0 %v5382_v59  ;;  %v980_v59 = vld [vmem:[%s10432_s11 + $0xc8] sm:$0xff] }
 0x35f   :  { %5384 = vmatprep.subr.bf16.mxu0 %v10443_v29 }
 0x424   :  { %v611_v4 = vpop.f32.mrb[12].mxu0 }
 0x425   :  { %v612_v5 = vadd.f32 %v4616_v3, %v611_v4  ;;  %v4908_v6 = vpop.f32.mrb[13].mxu0  ;;  %v5385_v4 = vpack.c.bf16 %v770_v0, %v767_v63  ;;  %v986_v0 = vld [vmem:[%s10432_s11 + $0xf8] sm:$0xff] }
 0x426   :  { %v5360_v6 = vpack.c.bf16 %v775_v2, %v772_v1  ;;  %v982_v1 = vld [vmem:[%s10432_s11 + $0xd8] sm:$0xff]  ;;  %v988_v2 = vld [vmem:[%s10432_s11 + $0x108] sm:$0xff] }
 0x427   :  { %v625_v16 = vmax.f32 %v612_v5, 0.0  ;;  %v771_v5 = vld [vmem:[%s10431_s9 + $0xf0] sm:$0xff]  ;;  %5386 = vmatpush3.bf16.msra.mxu0 %v5385_v4  ;;  %v979_v4 = vld [vmem:[%s10432_s11 + $0xc0] sm:$0xff] }
 0x428   :  { %v616_v7 = vpop.f32.mrb[14].mxu0  ;;  %5387 = vmatprep.subr.bf16.mxu0 %v10443_v29 }
 0x429   :  { %v617_v8 = vadd.f32 %v4616_v3, %v616_v7  ;;  %v4911_v9 = vpop.f32.mrb[15].mxu0  ;;  %v774_v7 = vld [vmem:[%s10431_s9 + $0x108] sm:$0xff] }
 0x42a   :  { %v776_v9 = vld [vmem:[%s10431_s9 + $0x118] sm:$0xff] }
 0x42b   :  { %v626_v10 = vmax.f32 %v617_v8, 0.0  ;;  %v773_v8 = vld [vmem:[%s10431_s9 + $0x100] sm:$0xff] }
 0x42c   :  { %v621_v12 = vpop.f32.mrb[16].mxu0 }
 0x42d   :  { %v622_v13 = vadd.f32 %v4616_v3, %v621_v12  ;;  %630 = vrot.lane.b32.xlu1 %v626_v10, %s7542_s3  ;;  %v4914_v14 = vpop.f32.mrb[17].mxu0  ;;  %v5358_v3 = vpack.c.bf16 %v768_v62, %v765_v60  ;;  %v781_v12 = vld [vmem:[%s10431_s9 + $0x140] sm:$0xff]  ;;  %v8093_v60 = vpack.c.bf16 %v976_v51, %v970_v50  ;;  %v1017_v50 = vld [vmem:[%s10432_s11 + $0x1f0] sm:$0xff] }
 0x42e   :  { %v5388_v14 = vpack.c.bf16 %v776_v9, %v773_v8  ;;  %v975_v62 = vld [vmem:[%s10432_s11 + $0xa0] sm:$0xff]  ;;  %v992_v8 = vld [vmem:[%s10432_s11 + $0x128] sm:$0xff]  ;;  %v8130_v9 = vpack.c.bf16 %v988_v2, %v982_v1  ;;  %v1029_v2 = vld [vmem:[%s10432_s11 + $0x250] sm:$0xff] }
 0x42f   :  { %v627_v15 = vmax.f32 %v622_v13, 0.0  ;;  %v5362_v13 = vpack.c.bf16 %v774_v7, %v771_v5  ;;  %10706 = vst [vmem:[#allocation9_spill] sm:$0xff] %v8093_v60  ;;  %v985_v5 = vld [vmem:[%s10432_s11 + $0xf0] sm:$0xff]  ;;  %v8124_v7 = vpack.c.bf16 %v986_v0, %v980_v59  ;;  %v1023_v51 = vld [vmem:[%s10432_s11 + $0x220] sm:$0xff]  ;;  %v1040_v0 = vld [vmem:[%s10432_s11 + $0x2a8] sm:$0xff] }
 0x430   :  { %5389 = vmatpush3.bf16.msra.mxu0 %v5388_v14  ;;  %10710 = vst [vmem:[#allocation13_spill] sm:$0xff] %v8130_v9  ;;  %v994_v14 = vld [vmem:[%s10432_s11 + $0x138] sm:$0xff]  ;;  %v1027_v59 = vld [vmem:[%s10432_s11 + $0x240] sm:$0xff] }
 0x431   :  { %632 = vrot.lane.b32.xlu0 %v627_v15, %s7542_s3  ;;  %v777_v15 = vld [vmem:[%s10431_s9 + $0x120] sm:$0xff]  ;;  %5390 = vmatprep.subr.bf16.mxu0 %v10443_v29  ;;  %10709 = vst [vmem:[#allocation12_spill] sm:$0xff] %v8124_v7 }
 0x49f   :  { %v631_v18 = vpop.permute.xlu1 %630 }
 0x4a0   :  { %v636_v17 = vsel %vm73_vm0, %v625_v16, %v631_v18  ;;  %v780_v18 = vld [vmem:[%s10431_s9 + $0x138] sm:$0xff] }
 0x4a1   :  { %4931 = vmatprep.mubr.msk.f32.mxu1 %vm514_vm2, %v636_v17  ;;  %v779_v17 = vld [vmem:[%s10431_s9 + $0x130] sm:$0xff]  ;;  %v5366_v22 = vpack.c.bf16 %v780_v18, %v777_v15  ;;  %v1000_v15 = vld [vmem:[%s10432_s11 + $0x168] sm:$0xff]  ;;  %v991_v18 = vld [vmem:[%s10432_s11 + $0x120] sm:$0xff] }
 0x4a3   :  { %v633_v19 = vpop.permute.xlu0 %632 }
 0x4a4   :  { %v637_v20 = vsel %vm73_vm0, %v626_v10, %v633_v19  ;;  %v778_v10 = vld [vmem:[%s10431_s9 + $0x128] sm:$0xff] }
 0x4a5   :  { %4932 = vmatmul.mubr.msk.f32.vlgmr.msra.gmra.mrb[0].mxu1 %vm514_vm2, %v637_v20  ;;  %v5364_v16 = vpack.c.bf16 %v781_v12, %v778_v10  ;;  %v782_v19 = vld [vmem:[%s10431_s9 + $0x148] sm:$0xff]  ;;  %v784_v20 = vld [vmem:[%s10431_s9 + $0x158] sm:$0xff]  ;;  %v981_v10 = vld [vmem:[%s10432_s11 + $0xd0] sm:$0xff] }
 0x4a6   :  { %870 = vmatprep.mubr.f32.mxu1 %v10445_v11  ;;  %5343 = vmatpush1.bf16.msra.mxu1 %v5342_v30  ;;  %v5391_v23 = vpack.c.bf16 %v782_v19, %v779_v17  ;;  %v5368_v24 = vpack.c.bf16 %v787_v21, %v784_v20  ;;  %v788_v30 = vld [vmem:[%s10431_s9 + $0x178] sm:$0xff]  ;;  %v987_v12 = vld [vmem:[%s10432_s11 + $0x100] sm:$0xff]  ;;  %v997_v17 = vld [vmem:[%s10432_s11 + $0x150] sm:$0xff] }
 0x4a7   :  { %5345 = vmatprep.subr.bf16.mxu1 %v5344_v27  ;;  %v5394_v32 = vpack.c.bf16 %v788_v30, %v785_v28  ;;  %v8038_v27 = vpack.c.bf16 %v962_v34, %v956_v33  ;;  %v8159_v19 = vpack.c.bf16 %v987_v12, %v981_v10  ;;  %v1004_v21 = vld [vmem:[%s10432_s11 + $0x188] sm:$0xff]  ;;  %v8186_v30 = vpack.c.bf16 %v997_v17, %v991_v18 }
 0x4a8   :  { %5392 = vmatpush3.bf16.msra.mxu0 %v5391_v23  ;;  %v993_v23 = vld [vmem:[%s10432_s11 + $0x130] sm:$0xff]  ;;  %v1012_v28 = vld [vmem:[%s10432_s11 + $0x1c8] sm:$0xff] }
 0x4a9   :  { %5393 = vmatprep.subr.bf16.mxu0 %v10443_v29  ;;  %10701 = vst [vmem:[#allocation4_spill] sm:$0xff] %v8038_v27  ;;  %10712 = vst [vmem:[#allocation15_spill] sm:$0xff] %v8159_v19  ;;  %v8195_v33 = vpack.c.bf16 %v999_v25, %v993_v23  ;;  %v1048_v10 = vld [vmem:[%s10432_s11 + $0x2e8] sm:$0xff]  ;;  %v1041_v23 = vld [vmem:[%s10432_s11 + $0x2b0] sm:$0xff] }
 0x4aa   :  { %5347 = vmatpush1.bf16.msra.mxu1 %v5346_v39  ;;  %10715 = vst [vmem:[#allocation18_spill] sm:$0xff] %v8186_v30  ;;  %v1052_v17 = vld [vmem:[%s10432_s11 + $0x308] sm:$0xff]  ;;  %v1047_v25 = vld [vmem:[%s10432_s11 + $0x2e0] sm:$0xff] }
 0x4ab   :  { %5349 = vmatprep.subr.bf16.mxu1 %v5348_v44  ;;  %v8051_v44 = vpack.c.bf16 %v964_v43, %v958_v42  ;;  %10716 = vst [vmem:[#allocation19_spill] sm:$0xff] %v8195_v33  ;;  %v1024_v42 = vld [vmem:[%s10432_s11 + $0x228] sm:$0xff] }
 0x4ac   :  { %5395 = vmatpush3.bf16.msra.mxu0 %v5394_v32  ;;  %v1009_v32 = vld [vmem:[%s10432_s11 + $0x1b0] sm:$0xff] }
 0x4ad   :  { %10702 = vst [vmem:[#allocation5_spill] sm:$0xff] %v8051_v44  ;;  %5461 = vmatprep.subr.bf16.mxu0 %v8051_v44 }
 0x4ae   :  { %5351 = vmatpush1.bf16.msra.mxu1 %v5350_v49  ;;  %v974_v49 = vld [vmem:[%s10432_s11 + $0x98] sm:$0xff] }
 0x4af   :  { %5353 = vmatprep.subr.bf16.mxu1 %v5352_v52 }
 0x4b2   :  { %5355 = vmatpush1.bf16.msra.mxu1 %v5354_v58  ;;  %v8088_v58 = vpack.c.bf16 %v974_v49, %v968_v36 }
 0x4b3   :  { %5357 = vmatprep.subr.bf16.mxu1 %v5356_v61  ;;  %v969_v61 = vld [vmem:[%s10432_s11 + $0x70] sm:$0xff] }
 0x4b4   :  { %10705 = vst [vmem:[#allocation8_spill] sm:$0xff] %v8088_v58 }
 0x4b6   :  { %5359 = vmatpush1.bf16.msra.mxu1 %v5358_v3  ;;  %v8112_v3 = vpack.c.bf16 %v973_v55, %v967_v54  ;;  %v1030_v54 = vld [vmem:[%s10432_s11 + $0x258] sm:$0xff]  ;;  %v1036_v55 = vld [vmem:[%s10432_s11 + $0x288] sm:$0xff] }
 0x4b7   :  { %5361 = vmatprep.subr.bf16.mxu1 %v5360_v6  ;;  %v8121_v6 = vpack.c.bf16 %v975_v62, %v969_v61  ;;  %v1033_v61 = vld [vmem:[%s10432_s11 + $0x270] sm:$0xff]  ;;  %v8267_v62 = vpack.c.bf16 %v1023_v51, %v1017_v50  ;;  %v8276_v1 = vpack.c.bf16 %v1036_v55, %v1030_v54  ;;  %v1072_v50 = vld [vmem:[%s10432_s11 + $0x3a8] sm:$0xff] }
 0x4b8   :  { %10707 = vst [vmem:[#allocation10_spill] sm:$0xff] %v8112_v3  ;;  %v8294_v12 = vpack.c.bf16 %v1033_v61, %v1027_v59  ;;  %v1069_v54 = vld [vmem:[%s10432_s11 + $0x390] sm:$0xff]  ;;  %v1076_v61 = vld [vmem:[%s10432_s11 + $0x3c8] sm:$0xff] }
 0x4b9   :  { %10708 = vst [vmem:[#allocation11_spill] sm:$0xff] %v8121_v6  ;;  %10724 = vst [vmem:[#allocation27_spill] sm:$0xff] %v8267_v62 }
 0x4ba   :  { %5363 = vmatpush1.bf16.msra.mxu1 %v5362_v13  ;;  %v998_v13 = vld [vmem:[%s10432_s11 + $0x158] sm:$0xff]  ;;  %10726 = vst [vmem:[#allocation29_spill] sm:$0xff] %v8276_v1  ;;  %10727 = vst [vmem:[#allocation30_spill] sm:$0xff] %v8294_v12 }
 0x4bb   :  { %5365 = vmatprep.subr.bf16.mxu1 %v5364_v16  ;;  %v8150_v16 = vpack.c.bf16 %v985_v5, %v979_v4  ;;  %v8162_v20 = vpack.c.bf16 %v998_v13, %v992_v8  ;;  %v1035_v4 = vld [vmem:[%s10432_s11 + $0x280] sm:$0xff]  ;;  %v1046_v5 = vld [vmem:[%s10432_s11 + $0x2d8] sm:$0xff] }
 0x4bc   :  { %v1042_v8 = vld [vmem:[%s10432_s11 + $0x2b8] sm:$0xff]  ;;  %v1039_v13 = vld [vmem:[%s10432_s11 + $0x2a0] sm:$0xff]  ;;  %v8306_v18 = vpack.c.bf16 %v1046_v5, %v1040_v0 }
 0x4bd   :  { %10711 = vst [vmem:[#allocation14_spill] sm:$0xff] %v8150_v16  ;;  %10713 = vst [vmem:[#allocation16_spill] sm:$0xff] %v8162_v20  ;;  %v1082_v5 = vld [vmem:[%s10432_s11 + $0x3f8] sm:$0xff] }
 0x4be   :  { %5367 = vmatpush1.bf16.msra.mxu1 %v5366_v22  ;;  %v8168_v22 = vpack.c.bf16 %v1000_v15, %v994_v14  ;;  %v1045_v14 = vld [vmem:[%s10432_s11 + $0x2d0] sm:$0xff]  ;;  %v8303_v15 = vpack.c.bf16 %v1035_v4, %v1029_v2  ;;  %10729 = vst [vmem:[#allocation32_spill] sm:$0xff] %v8306_v18  ;;  %v1071_v4 = vld [vmem:[%s10432_s11 + $0x3a0] sm:$0xff] }
 0x4bf   :  { %5369 = vmatprep.subr.bf16.mxu1 %v5368_v24  ;;  %v1010_v24 = vld [vmem:[%s10432_s11 + $0x1b8] sm:$0xff]  ;;  %v1065_v2 = vld [vmem:[%s10432_s11 + $0x370] sm:$0xff] }
 0x4c0   :  { %10714 = vst [vmem:[#allocation17_spill] sm:$0xff] %v8168_v22  ;;  %v8198_v34 = vpack.c.bf16 %v1010_v24, %v1004_v21  ;;  %10728 = vst [vmem:[#allocation31_spill] sm:$0xff] %v8303_v15  ;;  %v8312_v21 = vpack.c.bf16 %v1048_v10, %v1042_v8  ;;  %v1058_v24 = vld [vmem:[%s10432_s11 + $0x338] sm:$0xff]  ;;  %v1084_v10 = vld [vmem:[%s10432_s11 + $0x408] sm:$0xff] }
 0x4c1   :  { %v1078_v8 = vld [vmem:[%s10432_s11 + $0x3d8] sm:$0xff] }
 0x4c2   :  { %5371 = vmatpush1.bf16.msra.mxu1 %v5370_v31  ;;  %v1003_v31 = vld [vmem:[%s10432_s11 + $0x180] sm:$0xff]  ;;  %10717 = vst [vmem:[#allocation20_spill] sm:$0xff] %v8198_v34  ;;  %10730 = vst [vmem:[#allocation33_spill] sm:$0xff] %v8312_v21 }
 0x4c3   :  { %5397 = vmatprep.subr.bf16.mxu1 %v8038_v27  ;;  %v8222_v43 = vpack.c.bf16 %v1009_v32, %v1003_v31  ;;  %v8330_v31 = vpack.c.bf16 %v1045_v14, %v1039_v13  ;;  %v1051_v32 = vld [vmem:[%s10432_s11 + $0x300] sm:$0xff] }
 0x4c4   :  { %v1075_v14 = vld [vmem:[%s10432_s11 + $0x3c0] sm:$0xff] }
 0x4c5   :  { %10719 = vst [vmem:[#allocation22_spill] sm:$0xff] %v8222_v43  ;;  %10731 = vst [vmem:[#allocation34_spill] sm:$0xff] %v8330_v31 }
 0x578   :  { %v4933_v37 = vpop.f32.mrb[0].mxu1 }
 0x579   :  { %v731_v38 = vadd.f32 %v4933_v37, %v4617_v35  ;;  %v725_v39 = vpop.f32.mrb[1].mxu1  ;;  %v8204_v37 = vpack.c.bf16 %v1012_v28, %v1006_v26  ;;  %v1054_v26 = vld [vmem:[%s10432_s11 + $0x318] sm:$0xff]  ;;  %v1060_v28 = vld [vmem:[%s10432_s11 + $0x348] sm:$0xff] }
 0x57a   :  { %v726_v40 = vadd.f32 %v4617_v35, %v725_v39  ;;  %v1016_v35 = vld [vmem:[%s10432_s11 + $0x1e8] sm:$0xff]  ;;  %v1011_v39 = vld [vmem:[%s10432_s11 + $0x1c0] sm:$0xff] }
 0x57b   :  { %v735_v41 = vmax.f32 %v731_v38, 0.0  ;;  %10718 = vst [vmem:[#allocation21_spill] sm:$0xff] %v8204_v37  ;;  %v1005_v38 = vld [vmem:[%s10432_s11 + $0x190] sm:$0xff] }
 0x57c   :  { %v734_v52 = vmax.f32 %v726_v40, 0.0  ;;  %v1022_v40 = vld [vmem:[%s10432_s11 + $0x218] sm:$0xff]  ;;  %v8231_v36 = vpack.c.bf16 %v1011_v39, %v1005_v38  ;;  %v8339_v38 = vpack.c.bf16 %v1047_v25, %v1041_v23  ;;  %v8342_v39 = vpack.c.bf16 %v1058_v24, %v1052_v17  ;;  %v1081_v17 = vld [vmem:[%s10432_s11 + $0x3f0] sm:$0xff]  ;;  %v1088_v24 = vld [vmem:[%s10432_s11 + $0x428] sm:$0xff] }
 0x57d   :  { %737 = vrot.lane.b32.xlu1 %v735_v41, %s7540_s2  ;;  %v1018_v41 = vld [vmem:[%s10432_s11 + $0x1f8] sm:$0xff]  ;;  %v8234_v47 = vpack.c.bf16 %v1022_v40, %v1016_v35  ;;  %v1057_v35 = vld [vmem:[%s10432_s11 + $0x330] sm:$0xff]  ;;  %v1064_v40 = vld [vmem:[%s10432_s11 + $0x368] sm:$0xff]  ;;  %v8411_v23 = vpack.c.bf16 %v1071_v4, %v1065_v2  ;;  %v8414_v25 = vpack.c.bf16 %v1082_v5, %v1076_v61 }
 0x57e   :  { %10720 = vst [vmem:[#allocation23_spill] sm:$0xff] %v8231_v36  ;;  %v8240_v49 = vpack.c.bf16 %v1024_v42, %v1018_v41  ;;  %10732 = vst [vmem:[#allocation35_spill] sm:$0xff] %v8339_v38  ;;  %v8348_v41 = vpack.c.bf16 %v1060_v28, %v1054_v26  ;;  %v1053_v42 = vld [vmem:[%s10432_s11 + $0x310] sm:$0xff]  ;;  %v8366_v51 = vpack.c.bf16 %v1057_v35, %v1051_v32  ;;  %v1083_v32 = vld [vmem:[%s10432_s11 + $0x400] sm:$0xff] }
 0x57f   :  { %10721 = vst [vmem:[#allocation24_spill] sm:$0xff] %v8234_v47  ;;  %10733 = vst [vmem:[#allocation36_spill] sm:$0xff] %v8342_v39  ;;  %v8420_v26 = vpack.c.bf16 %v1084_v10, %v1078_v8  ;;  %v1077_v28 = vld [vmem:[%s10432_s11 + $0x3d0] sm:$0xff]  ;;  %v1094_v35 = vld [vmem:[%s10432_s11 + $0x458] sm:$0xff] }
 0x580   :  { %10722 = vst [vmem:[#allocation25_spill] sm:$0xff] %v8240_v49  ;;  %10734 = vst [vmem:[#allocation37_spill] sm:$0xff] %v8348_v41  ;;  %v1089_v2 = vld [vmem:[%s10432_s11 + $0x430] sm:$0xff]  ;;  %v1095_v4 = vld [vmem:[%s10432_s11 + $0x460] sm:$0xff] }
 0x581   :  { %10735 = vst [vmem:[#allocation38_spill] sm:$0xff] %v8366_v51  ;;  %10740 = vst [vmem:[#allocation43_spill] sm:$0xff] %v8411_v23  ;;  %v1106_v5 = vld [vmem:[%s10432_s11 + $0x4b8] sm:$0xff]  ;;  %v1108_v10 = vld [vmem:[%s10432_s11 + $0x4c8] sm:$0xff] }
 0x582   :  { %10741 = vst [vmem:[#allocation44_spill] sm:$0xff] %v8414_v25  ;;  %10742 = vst [vmem:[#allocation45_spill] sm:$0xff] %v8420_v26  ;;  %v1102_v8 = vld [vmem:[%s10432_s11 + $0x498] sm:$0xff] }
 0x5ef   :  { %v738_v57 = vpop.permute.xlu1 %737 }
 0x5f0   :  { %v740_v63 = vsel %vm514_vm2, %v734_v52, %v738_v57  ;;  %v1034_v52 = vld [vmem:[%s10432_s11 + $0x278] sm:$0xff]  ;;  %v8258_v57 = vpack.c.bf16 %v1021_v46, %v1015_v45  ;;  %v1059_v45 = vld [vmem:[%s10432_s11 + $0x340] sm:$0xff] }
 0x5f1   :  { %871 = vmatmul.mubr.f32.vlgmr.msra.gmra.mrb[2].mxu1 %v740_v63  ;;  %4967 = vmatmul.mubr.f32.vlgmr.msra.gmra.mrb[18].mxu0 %v740_v63  ;;  %v8270_v63 = vpack.c.bf16 %v1034_v52, %v1028_v48  ;;  %v1070_v46 = vld [vmem:[%s10432_s11 + $0x398] sm:$0xff]  ;;  %v1063_v52 = vld [vmem:[%s10432_s11 + $0x360] sm:$0xff]  ;;  %v8375_v55 = vpack.c.bf16 %v1059_v45, %v1053_v42  ;;  %v1096_v42 = vld [vmem:[%s10432_s11 + $0x468] sm:$0xff]  ;;  %v8438_v45 = vpack.c.bf16 %v1081_v17, %v1075_v14 }
 0x5f2   :  { %5399 = vmatpush1.bf16.msra.mxu1 %v8078_v53  ;;  %5463 = vmatpush1.bf16.msra.mxu0 %v8086_v56  ;;  %10723 = vst [vmem:[#allocation26_spill] sm:$0xff] %v8258_v57  ;;  %v1066_v48 = vld [vmem:[%s10432_s11 + $0x378] sm:$0xff]  ;;  %v8378_v59 = vpack.c.bf16 %v1070_v46, %v1064_v40  ;;  %v8402_v13 = vpack.c.bf16 %v1069_v54, %v1063_v52  ;;  %v1087_v46 = vld [vmem:[%s10432_s11 + $0x420] sm:$0xff]  ;;  %v1100_v54 = vld [vmem:[%s10432_s11 + $0x488] sm:$0xff] }
 0x5f3   :  { %5401 = vmatprep.subr.bf16.mxu1 %v8088_v58  ;;  %5465 = vmatprep.subr.bf16.mxu0 %v8093_v60  ;;  %10725 = vst [vmem:[#allocation28_spill] sm:$0xff] %v8270_v63  ;;  %10736 = vst [vmem:[#allocation39_spill] sm:$0xff] %v8375_v55  ;;  %v8384_v0 = vpack.c.bf16 %v1072_v50, %v1066_v48  ;;  %v1090_v40 = vld [vmem:[%s10432_s11 + $0x438] sm:$0xff]  ;;  %v1093_v48 = vld [vmem:[%s10432_s11 + $0x450] sm:$0xff]  ;;  %v8447_v50 = vpack.c.bf16 %v1083_v32, %v1077_v28 }
 0x5f4   :  { %1242 = vmatprep.mubr.f32.mxu1 %v10445_v11  ;;  %1313 = vmatprep.mubr.f32.mxu0 %v10445_v11  ;;  %10737 = vst [vmem:[#allocation40_spill] sm:$0xff] %v8378_v59  ;;  %10739 = vst [vmem:[#allocation42_spill] sm:$0xff] %v8402_v13  ;;  %v8450_v52 = vpack.c.bf16 %v1094_v35, %v1088_v24  ;;  %v8456_v61 = vpack.c.bf16 %v1096_v42, %v1090_v40  ;;  %v1099_v17 = vld [vmem:[%s10432_s11 + $0x480] sm:$0xff]  ;;  %v1105_v24 = vld [vmem:[%s10432_s11 + $0x4b0] sm:$0xff] }
 0x5f5   :  { %10738 = vst [vmem:[#allocation41_spill] sm:$0xff] %v8384_v0  ;;  %10743 = vst [vmem:[#allocation46_spill] sm:$0xff] %v8438_v45  ;;  %v8474_v14 = vpack.c.bf16 %v1093_v48, %v1087_v46  ;;  %v8483_v28 = vpack.c.bf16 %v1095_v4, %v1089_v2  ;;  %v8486_v32 = vpack.c.bf16 %v1106_v5, %v1100_v54  ;;  %v1112_v35 = vld [vmem:[%s10432_s11 + $0x4e8] sm:$0xff]  ;;  %v1101_v42 = vld [vmem:[%s10432_s11 + $0x490] sm:$0xff] }
 0x5f6   :  { %5403 = vmatpush1.bf16.msra.mxu1 %v8112_v3  ;;  %5467 = vmatpush1.bf16.msra.mxu0 %v8121_v6  ;;  %10744 = vst [vmem:[#allocation47_spill] sm:$0xff] %v8447_v50  ;;  %10745 = vst [vmem:[#allocation48_spill] sm:$0xff] %v8450_v52  ;;  %v8492_v40 = vpack.c.bf16 %v1108_v10, %v1102_v8  ;;  %v1107_v46 = vld [vmem:[%s10432_s11 + $0x4c0] sm:$0xff]  ;;  %v1118_v48 = vld [vmem:[%s10432_s11 + $0x518] sm:$0xff]  ;;  %v8510_v4 = vpack.c.bf16 %v1105_v24, %v1099_v17 }
 0x5f7   :  { %5405 = vmatprep.subr.bf16.mxu1 %v8124_v7  ;;  %5469 = vmatprep.subr.bf16.mxu0 %v8130_v9  ;;  %10746 = vst [vmem:[#allocation49_spill] sm:$0xff] %v8456_v61  ;;  %10747 = vst [vmem:[#allocation50_spill] sm:$0xff] %v8474_v14  ;;  %v1114_v54 = vld [vmem:[%s10432_s11 + $0x4f8] sm:$0xff]  ;;  %v1120_v2 = vld [vmem:[%s10432_s11 + $0x528] sm:$0xff]  ;;  %v8519_v10 = vpack.c.bf16 %v1107_v46, %v1101_v42  ;;  %v8522_v29 = vpack.c.bf16 %v1118_v48, %v1112_v35 }
 0x5f8   :  { %10748 = vst [vmem:[#allocation51_spill] sm:$0xff] %v8483_v28  ;;  %10749 = vst [vmem:[#allocation52_spill] sm:$0xff] %v8486_v32  ;;  %v1111_v5 = vld [vmem:[%s10432_s11 + $0x4e0] sm:$0xff]  ;;  %v1117_v8 = vld [vmem:[%s10432_s11 + $0x510] sm:$0xff]  ;;  %v8528_v24 = vpack.c.bf16 %v1120_v2, %v1114_v54 }
 0x5f9   :  { %10750 = vst [vmem:[#allocation53_spill] sm:$0xff] %v8492_v40  ;;  %10751 = vst [vmem:[#allocation54_spill] sm:$0xff] %v8510_v4  ;;  %v1124_v17 = vld [vmem:[%s10432_s11 + $0x548] sm:$0xff]  ;;  %v1113_v11 = vld [vmem:[%s10432_s11 + $0x4f0] sm:$0xff]  ;;  %v8546_v54 = vpack.c.bf16 %v1117_v8, %v1111_v5 }
 0x5fa   :  { %5407 = vmatpush1.bf16.msra.mxu1 %v8150_v16  ;;  %5471 = vmatpush1.bf16.msra.mxu0 %v8159_v19  ;;  %10752 = vst [vmem:[#allocation55_spill] sm:$0xff] %v8519_v10  ;;  %10753 = vst [vmem:[#allocation56_spill] sm:$0xff] %v8522_v29  ;;  %v1119_v42 = vld [vmem:[%s10432_s11 + $0x520] sm:$0xff]  ;;  %v1130_v35 = vld [vmem:[%s10432_s11 + $0x578] sm:$0xff] }
 0x5fb   :  { %5409 = vmatprep.subr.bf16.mxu1 %v8162_v20  ;;  %5473 = vmatprep.subr.bf16.mxu0 %v8168_v22  ;;  %10754 = vst [vmem:[#allocation57_spill] sm:$0xff] %v8528_v24  ;;  %v1126_v46 = vld [vmem:[%s10432_s11 + $0x558] sm:$0xff]  ;;  %v1132_v48 = vld [vmem:[%s10432_s11 + $0x588] sm:$0xff]  ;;  %10755 = vst [vmem:[#allocation58_spill] sm:$0xff] %v8546_v54 }
 0x5fc   :  { %v1123_v2 = vld [vmem:[%s10432_s11 + $0x540] sm:$0xff]  ;;  %v1136_v5 = vld [vmem:[%s10432_s11 + $0x5a8] sm:$0xff]  ;;  %v8564_v8 = vpack.c.bf16 %v1132_v48, %v1126_v46 }
 0x5fd   :  { %v1135_v48 = vld [vmem:[%s10432_s11 + $0x5a0] sm:$0xff] }
 0x5fe   :  { %5411 = vmatpush1.bf16.msra.mxu1 %v8186_v30  ;;  %5475 = vmatpush1.bf16.msra.mxu0 %v8195_v33  ;;  %10758 = vst [vmem:[#allocation61_spill] sm:$0xff] %v8564_v8 }
 0x5ff   :  { %5413 = vmatprep.subr.bf16.mxu1 %v8198_v34  ;;  %5477 = vmatprep.subr.bf16.mxu0 %v8204_v37 }
 0x602   :  { %5415 = vmatpush1.bf16.msra.mxu1 %v8222_v43  ;;  %5479 = vmatpush1.bf16.msra.mxu0 %v8231_v36 }
 0x603   :  { %5417 = vmatprep.subr.bf16.mxu1 %v8234_v47  ;;  %5481 = vmatprep.subr.bf16.mxu0 %v8240_v49 }
 0x606   :  { %5419 = vmatpush1.bf16.msra.mxu1 %v8258_v57  ;;  %5483 = vmatpush1.bf16.msra.mxu0 %v8267_v62 }
 0x607   :  { %5421 = vmatprep.subr.bf16.mxu1 %v8270_v63  ;;  %5485 = vmatprep.subr.bf16.mxu0 %v8276_v1 }
 0x60a   :  { %5423 = vmatpush1.bf16.msra.mxu1 %v8294_v12  ;;  %5487 = vmatpush1.bf16.msra.mxu0 %v8303_v15 }
 0x60b   :  { %5425 = vmatprep.subr.bf16.mxu1 %v8306_v18  ;;  %5489 = vmatprep.subr.bf16.mxu0 %v8312_v21 }
 0x60e   :  { %5427 = vmatpush1.bf16.msra.mxu1 %v8330_v31  ;;  %5491 = vmatpush1.bf16.msra.mxu0 %v8339_v38 }
 0x60f   :  { %5429 = vmatprep.subr.bf16.mxu1 %v8342_v39  ;;  %5493 = vmatprep.subr.bf16.mxu0 %v8348_v41 }
 0x612   :  { %5431 = vmatpush1.bf16.msra.mxu1 %v8366_v51  ;;  %5495 = vmatpush1.bf16.msra.mxu0 %v8375_v55 }
 0x613   :  { %5433 = vmatprep.subr.bf16.mxu1 %v8378_v59  ;;  %5497 = vmatprep.subr.bf16.mxu0 %v8384_v0 }
 0x616   :  { %5435 = vmatpush1.bf16.msra.mxu1 %v8402_v13  ;;  %5499 = vmatpush1.bf16.msra.mxu0 %v8411_v23  ;;  %v984_v23 = vld [vmem:[%s10432_s11 + $0xe8] sm:$0xff] }
 0x617   :  { %5437 = vmatprep.subr.bf16.mxu1 %v8414_v25  ;;  %5501 = vmatprep.subr.bf16.mxu0 %v8420_v26  ;;  %v1141_v26 = vld [vmem:[%s10432_s11 + $0x5d0] sm:$0xff] }
 0x61a   :  { %5439 = vmatpush1.bf16.msra.mxu1 %v8438_v45  ;;  %5503 = vmatpush1.bf16.msra.mxu0 %v8447_v50  ;;  %v1125_v50 = vld [vmem:[%s10432_s11 + $0x550] sm:$0xff] }
 0x61b   :  { %5441 = vmatprep.subr.bf16.mxu1 %v8450_v52  ;;  %5505 = vmatprep.subr.bf16.mxu0 %v8456_v61  ;;  %v8558_v61 = vpack.c.bf16 %v1130_v35, %v1124_v17  ;;  %v1142_v17 = vld [vmem:[%s10432_s11 + $0x5d8] sm:$0xff]  ;;  %v1144_v35 = vld [vmem:[%s10432_s11 + $0x5e8] sm:$0xff] }
 0x61d   :  { %10757 = vst [vmem:[#allocation60_spill] sm:$0xff] %v8558_v61 }
 0x61e   :  { %5443 = vmatpush1.bf16.msra.mxu1 %v8474_v14  ;;  %5507 = vmatpush1.bf16.msra.mxu0 %v8483_v28  ;;  %v8555_v28 = vpack.c.bf16 %v1119_v42, %v1113_v11  ;;  %v1131_v11 = vld [vmem:[%s10432_s11 + $0x580] sm:$0xff]  ;;  %v1138_v42 = vld [vmem:[%s10432_s11 + $0x5b8] sm:$0xff] }
 0x61f   :  { %5445 = vmatprep.subr.bf16.mxu1 %v8486_v32  ;;  %5509 = vmatprep.subr.bf16.mxu0 %v8492_v40  ;;  %v1129_v40 = vld [vmem:[%s10432_s11 + $0x570] sm:$0xff] }
 0x620   :  { %10756 = vst [vmem:[#allocation59_spill] sm:$0xff] %v8555_v28  ;;  %v8582_v46 = vpack.c.bf16 %v1129_v40, %v1123_v2  ;;  %v8597_v40 = vpack.c.bf16 %v1144_v35, %v1138_v42  ;;  %v1137_v2 = vld [vmem:[%s10432_s11 + $0x5b0] sm:$0xff]  ;;  %v966_v42 = vld [vmem:[%s10432_s11 + $0x58] sm:$0xff]  ;;  %v959_v35 = vld [vmem:[%s10432_s11 + $0x20] sm:$0xff] }
 0x622   :  { %5447 = vmatpush1.bf16.msra.mxu1 %v8510_v4  ;;  %5511 = vmatpush1.bf16.msra.mxu0 %v8519_v10  ;;  %10759 = vst [vmem:[#allocation62_spill] sm:$0xff] %v8582_v46  ;;  %v8591_v10 = vpack.c.bf16 %v1142_v17, %v1136_v5  ;;  %10762 = vst [vmem:[#allocation65_spill] sm:$0xff] %v8597_v40  ;;  %v8606_v5 = vpack.c.bf16 %v1141_v26, %v1135_v48  ;;  %v10765_v17 = vmov 0.0   ;;  %v960_v26 = vld [vmem:[%s10432_s11 + $0x28] sm:$0xff]  ;;  %v965_v48 = vld [vmem:[%s10432_s11 + $0x50] sm:$0xff] }
 0x623   :  { %5449 = vmatprep.subr.bf16.mxu1 %v8522_v29  ;;  %5513 = vmatprep.subr.bf16.mxu0 %v8528_v24  ;;  %v8588_v24 = vpack.c.bf16 %v1131_v11, %v1125_v50  ;;  %v1143_v50 = vld [vmem:[%s10432_s11 + $0x5e0] sm:$0xff] }
 0x624   :  { %10761 = vst [vmem:[#allocation64_spill] sm:$0xff] %v8591_v10  ;;  %10763 = vst [vmem:[#allocation66_spill] sm:$0xff] %v8606_v5  ;;  %v8609_v11 = vpack.c.bf16 %v1143_v50, %v1137_v2  ;;  %v972_v2 = vld [vmem:[%s10432_s11 + $0x88] sm:$0xff]  ;;  %v978_v50 = vld [vmem:[%s10432_s11 + $0xb8] sm:$0xff] }
 0x625   :  { %10760 = vst [vmem:[#allocation63_spill] sm:$0xff] %v8588_v24 }
 0x626   :  { %5451 = vmatpush1.bf16.msra.mxu1 %v8546_v54  ;;  %5515 = vmatpush1.bf16.msra.mxu0 %v8555_v28  ;;  %10764 = vst [vmem:[#allocation67_spill] sm:$0xff] %v8609_v11  ;;  %v8647_v28 = vpack.c.bf16 %v978_v50, %v972_v2  ;;  %v989_v2 = vld [vmem:[%s10432_s11 + $0x110] sm:$0xff]  ;;  %v996_v50 = vld [vmem:[%s10432_s11 + $0x148] sm:$0xff] }
 0x627   :  { %5453 = vmatprep.subr.bf16.mxu1 %v8558_v61  ;;  %5517 = vmatprep.subr.bf16.mxu0 %v8564_v8  ;;  %v977_v8 = vld [vmem:[%s10432_s11 + $0xb0] sm:$0xff] }
 0x628   :  { %10768 = vst [vmem:[#allocation70_spill] sm:$0xff] %v8647_v28 }
 0x62a   :  { %5455 = vmatpush1.bf16.msra.mxu1 %v8582_v46  ;;  %5519 = vmatpush1.bf16.msra.mxu0 %v8588_v24  ;;  %v971_v24 = vld [vmem:[%s10432_s11 + $0x80] sm:$0xff] }
 0x62b   :  { %5457 = vmatprep.subr.bf16.mxu1 %v8591_v10  ;;  %5521 = vmatprep.subr.bf16.mxu0 %v8597_v40  ;;  %v8639_v40 = vpack.c.bf16 %v965_v48, %v959_v35  ;;  %v983_v48 = vld [vmem:[%s10432_s11 + $0xe0] sm:$0xff] }
 0x62d   :  { %10767 = vst [vmem:[#allocation69_spill] sm:$0xff] %v8639_v40 }
 0x62e   :  { %5459 = vmatpush1.bf16.msra.mxu1 %v8606_v5  ;;  %5523 = vmatpush1.bf16.msra.mxu0 %v8609_v11  ;;  %v8637_v11 = vpack.c.bf16 %v966_v42, %v960_v26  ;;  %v990_v26 = vld [vmem:[%s10432_s11 + $0x118] sm:$0xff]  ;;  %v8657_v42 = vpack.c.bf16 %v977_v8, %v971_v24 }
 0x62f   :  { %v8660_v35 = vpack.c.bf16 %v990_v26, %v984_v23  ;;  %v1002_v24 = vld [vmem:[%s10432_s11 + $0x178] sm:$0xff]  ;;  %v8675_v23 = vpack.c.bf16 %v989_v2, %v983_v48  ;;  %v995_v26 = vld [vmem:[%s10432_s11 + $0x140] sm:$0xff] }
 0x630   :  { %10766 = vst [vmem:[#allocation68_spill] sm:$0xff] %v8637_v11  ;;  %5525 = vmatprep.subr.bf16.mxu1 %v8637_v11  ;;  %10769 = vst [vmem:[#allocation71_spill] sm:$0xff] %v8657_v42  ;;  %v8678_v8 = vpack.c.bf16 %v1002_v24, %v996_v50  ;;  %v1014_v48 = vld [vmem:[%s10432_s11 + $0x1d8] sm:$0xff]  ;;  %v1007_v24 = vld [vmem:[%s10432_s11 + $0x1a0] sm:$0xff] }
 0x631   :  { %1243 = vmatmul.mubr.f32.vlgmr.msra.gmra.mrb[4].mxu1 %v10765_v17  ;;  %1314 = vmatmul.mubr.f32.vlgmr.msra.gmra.mrb[20].mxu0 %v10765_v17  ;;  %10770 = vst [vmem:[#allocation72_spill] sm:$0xff] %v8660_v35  ;;  %10771 = vst [vmem:[#allocation73_spill] sm:$0xff] %v8675_v23 }
 0x632   :  { %1536 = vmatprep.mubr.f32.mxu0 %v10765_v17  ;;  %1384 = vmatprep.mubr.f32.mxu1 %v10765_v17  ;;  %10772 = vst [vmem:[#allocation74_spill] sm:$0xff] %v8678_v8 }
 0x633   :  { %5527 = vmatpush1.bf16.msra.mxu1 %v8639_v40  ;;  %v1008_v40 = vld [vmem:[%s10432_s11 + $0x1a8] sm:$0xff] }
 0x634   :  { %5529 = vmatprep.subr.bf16.mxu1 %v8647_v28  ;;  %v1001_v28 = vld [vmem:[%s10432_s11 + $0x170] sm:$0xff]  ;;  %v8696_v50 = vpack.c.bf16 %v1014_v48, %v1008_v40  ;;  %v1019_v48 = vld [vmem:[%s10432_s11 + $0x200] sm:$0xff] }
 0x635   :  { %v8693_v2 = vpack.c.bf16 %v1001_v28, %v995_v26  ;;  %v1026_v28 = vld [vmem:[%s10432_s11 + $0x238] sm:$0xff] }
 0x636   :  { %10774 = vst [vmem:[#allocation76_spill] sm:$0xff] %v8696_v50 }
 0x637   :  { %5531 = vmatpush1.bf16.msra.mxu1 %v8657_v42  ;;  %10773 = vst [vmem:[#allocation75_spill] sm:$0xff] %v8693_v2  ;;  %v1020_v42 = vld [vmem:[%s10432_s11 + $0x208] sm:$0xff] }
 0x638   :  { %5533 = vmatprep.subr.bf16.mxu1 %v8660_v35  ;;  %v1013_v35 = vld [vmem:[%s10432_s11 + $0x1d0] sm:$0xff]  ;;  %v8714_v26 = vpack.c.bf16 %v1026_v28, %v1020_v42  ;;  %v1032_v42 = vld [vmem:[%s10432_s11 + $0x268] sm:$0xff]  ;;  %v1031_v28 = vld [vmem:[%s10432_s11 + $0x260] sm:$0xff] }
 0x639   :  { %v8711_v40 = vpack.c.bf16 %v1013_v35, %v1007_v24  ;;  %v1038_v35 = vld [vmem:[%s10432_s11 + $0x298] sm:$0xff] }
 0x63a   :  { %10776 = vst [vmem:[#allocation78_spill] sm:$0xff] %v8714_v26  ;;  %v8733_v24 = vpack.c.bf16 %v1038_v35, %v1032_v42  ;;  %v1050_v42 = vld [vmem:[%s10432_s11 + $0x2f8] sm:$0xff] }
 0x63b   :  { %5535 = vmatpush1.bf16.msra.mxu1 %v8675_v23  ;;  %10775 = vst [vmem:[#allocation77_spill] sm:$0xff] %v8711_v40 }
 0x63c   :  { %5537 = vmatprep.subr.bf16.mxu1 %v8678_v8  ;;  %v1025_v8 = vld [vmem:[%s10432_s11 + $0x230] sm:$0xff]  ;;  %10778 = vst [vmem:[#allocation80_spill] sm:$0xff] %v8733_v24 }
 0x63d   :  { %v8723_v23 = vpack.c.bf16 %v1025_v8, %v1019_v48  ;;  %v1037_v8 = vld [vmem:[%s10432_s11 + $0x290] sm:$0xff] }
 0x63e   :  { %v8741_v48 = vpack.c.bf16 %v1037_v8, %v1031_v28  ;;  %v1049_v28 = vld [vmem:[%s10432_s11 + $0x2f0] sm:$0xff] }
 0x63f   :  { %5539 = vmatpush1.bf16.msra.mxu1 %v8693_v2  ;;  %10777 = vst [vmem:[#allocation79_spill] sm:$0xff] %v8723_v23  ;;  %v1068_v2 = vld [vmem:[%s10432_s11 + $0x388] sm:$0xff] }
 0x640   :  { %5541 = vmatprep.subr.bf16.mxu1 %v8696_v50  ;;  %10779 = vst [vmem:[#allocation81_spill] sm:$0xff] %v8741_v48  ;;  %v1414_v50 = vld [vmem:[%s10434_s13 + $0x30] sm:$0xff] }
 0x643   :  { %5543 = vmatpush1.bf16.msra.mxu1 %v8711_v40  ;;  %v1056_v40 = vld [vmem:[%s10432_s11 + $0x328] sm:$0xff] }
 0x644   :  { %5545 = vmatprep.subr.bf16.mxu1 %v8714_v26  ;;  %v1043_v26 = vld [vmem:[%s10432_s11 + $0x2c0] sm:$0xff] }
 0x645   :  { %v8759_v8 = vpack.c.bf16 %v1049_v28, %v1043_v26  ;;  %v1411_v26 = vld [vmem:[%s10434_s13 + $0x18] sm:$0xff] }
 0x647   :  { %5547 = vmatpush1.bf16.msra.mxu1 %v8723_v23  ;;  %v1044_v23 = vld [vmem:[%s10432_s11 + $0x2c8] sm:$0xff]  ;;  %10781 = vst [vmem:[#allocation83_spill] sm:$0xff] %v8759_v8 }
 0x648   :  { %5549 = vmatprep.subr.bf16.mxu1 %v8733_v24  ;;  %v8751_v35 = vpack.c.bf16 %v1050_v42, %v1044_v23  ;;  %v1412_v24 = vld [vmem:[%s10434_s13 + $0x20] sm:$0xff] }
 0x649   :  { %v1408_v42 = vld [vmem:[%s10434_s13] sm:$0xff] }
 0x64a   :  { %10780 = vst [vmem:[#allocation82_spill] sm:$0xff] %v8751_v35  ;;  %v8777_v28 = vpack.c.bf16 %v1411_v26, %v1408_v42  ;;  %v1061_v42 = vld [vmem:[%s10432_s11 + $0x350] sm:$0xff] }
 0x64b   :  { %5551 = vmatpush1.bf16.msra.mxu1 %v8741_v48  ;;  %v1409_v48 = vld [vmem:[%s10434_s13 + $0x8] sm:$0xff] }
 0x64c   :  { %5553 = vmatprep.subr.bf16.mxu1 %v8751_v35  ;;  %v8768_v23 = vpack.c.bf16 %v1412_v24, %v1409_v48  ;;  %v1062_v24 = vld [vmem:[%s10432_s11 + $0x358] sm:$0xff]  ;;  %v1055_v35 = vld [vmem:[%s10432_s11 + $0x320] sm:$0xff] }
 0x64d   :  { %v8786_v48 = vpack.c.bf16 %v1062_v24, %v1056_v40  ;;  %v8795_v26 = vpack.c.bf16 %v1061_v42, %v1055_v35  ;;  %v1418_v40 = vld [vmem:[%s10434_s13 + $0x50] sm:$0xff]  ;;  %v1417_v35 = vld [vmem:[%s10434_s13 + $0x48] sm:$0xff] }
 0x64e   :  { %10782 = vst [vmem:[#allocation84_spill] sm:$0xff] %v8768_v23  ;;  %5589 = vmatprep.subr.bf16.mxu0 %v8768_v23  ;;  %v8813_v42 = vpack.c.bf16 %v1417_v35, %v1414_v50  ;;  %v1073_v50 = vld [vmem:[%s10432_s11 + $0x3b0] sm:$0xff] }
 0x64f   :  { %5555 = vmatpush1.bf16.msra.mxu1 %v8759_v8  ;;  %10783 = vst [vmem:[#allocation85_spill] sm:$0xff] %v8786_v48  ;;  %5591 = vmatpush1.bf16.msra.mxu0 %v8777_v28  ;;  %10784 = vst [vmem:[#allocation86_spill] sm:$0xff] %v8795_v26  ;;  %v1415_v8 = vld [vmem:[%s10434_s13 + $0x38] sm:$0xff] }
 0x650   :  { %5557 = vmatprep.subr.bf16.mxu1 %v8786_v48  ;;  %v8804_v24 = vpack.c.bf16 %v1418_v40, %v1415_v8  ;;  %10786 = vst [vmem:[#allocation88_spill] sm:$0xff] %v8813_v42  ;;  %v1074_v8 = vld [vmem:[%s10432_s11 + $0x3b8] sm:$0xff]  ;;  %v1067_v48 = vld [vmem:[%s10432_s11 + $0x380] sm:$0xff] }
 0x651   :  { %v8822_v40 = vpack.c.bf16 %v1074_v8, %v1068_v2  ;;  %v8831_v35 = vpack.c.bf16 %v1073_v50, %v1067_v48  ;;  %v1424_v2 = vld [vmem:[%s10434_s13 + $0x80] sm:$0xff]  ;;  %v1423_v48 = vld [vmem:[%s10434_s13 + $0x78] sm:$0xff] }
 0x652   :  { %10785 = vst [vmem:[#allocation87_spill] sm:$0xff] %v8804_v24  ;;  %5593 = vmatprep.subr.bf16.mxu0 %v8804_v24  ;;  %v1420_v24 = vld [vmem:[%s10434_s13 + $0x60] sm:$0xff] }
 0x653   :  { %5559 = vmatpush1.bf16.msra.mxu1 %v8795_v26  ;;  %10787 = vst [vmem:[#allocation89_spill] sm:$0xff] %v8822_v40  ;;  %5595 = vmatpush1.bf16.msra.mxu0 %v8813_v42  ;;  %10788 = vst [vmem:[#allocation90_spill] sm:$0xff] %v8831_v35  ;;  %v1421_v26 = vld [vmem:[%s10434_s13 + $0x68] sm:$0xff]  ;;  %v8849_v50 = vpack.c.bf16 %v1423_v48, %v1420_v24  ;;  %v1085_v24 = vld [vmem:[%s10432_s11 + $0x410] sm:$0xff] }
 0x654   :  { %5561 = vmatprep.subr.bf16.mxu1 %v8822_v40  ;;  %v8840_v8 = vpack.c.bf16 %v1424_v2, %v1421_v26  ;;  %v1080_v42 = vld [vmem:[%s10432_s11 + $0x3e8] sm:$0xff]  ;;  %v1086_v26 = vld [vmem:[%s10432_s11 + $0x418] sm:$0xff]  ;;  %v1079_v40 = vld [vmem:[%s10432_s11 + $0x3e0] sm:$0xff] }
 0x655   :  { %10790 = vst [vmem:[#allocation92_spill] sm:$0xff] %v8849_v50  ;;  %v8858_v2 = vpack.c.bf16 %v1086_v26, %v1080_v42  ;;  %v8867_v48 = vpack.c.bf16 %v1085_v24, %v1079_v40  ;;  %v1430_v42 = vld [vmem:[%s10434_s13 + $0xb0] sm:$0xff]  ;;  %v1429_v40 = vld [vmem:[%s10434_s13 + $0xa8] sm:$0xff] }
 0x656   :  { %10789 = vst [vmem:[#allocation91_spill] sm:$0xff] %v8840_v8  ;;  %5597 = vmatprep.subr.bf16.mxu0 %v8840_v8  ;;  %v1426_v8 = vld [vmem:[%s10434_s13 + $0x90] sm:$0xff] }
 0x657   :  { %5563 = vmatpush1.bf16.msra.mxu1 %v8831_v35  ;;  %10791 = vst [vmem:[#allocation93_spill] sm:$0xff] %v8858_v2  ;;  %5599 = vmatpush1.bf16.msra.mxu0 %v8849_v50  ;;  %10792 = vst [vmem:[#allocation94_spill] sm:$0xff] %v8867_v48  ;;  %v1427_v35 = vld [vmem:[%s10434_s13 + $0x98] sm:$0xff]  ;;  %v8885_v24 = vpack.c.bf16 %v1429_v40, %v1426_v8  ;;  %v1092_v50 = vld [vmem:[%s10432_s11 + $0x448] sm:$0xff] }
 0x658   :  { %5565 = vmatprep.subr.bf16.mxu1 %v8858_v2  ;;  %v8876_v26 = vpack.c.bf16 %v1430_v42, %v1427_v35  ;;  %v1098_v35 = vld [vmem:[%s10432_s11 + $0x478] sm:$0xff]  ;;  %v1091_v2 = vld [vmem:[%s10432_s11 + $0x440] sm:$0xff]  ;;  %v1097_v8 = vld [vmem:[%s10432_s11 + $0x470] sm:$0xff] }
 0x659   :  { %10794 = vst [vmem:[#allocation96_spill] sm:$0xff] %v8885_v24  ;;  %v8894_v42 = vpack.c.bf16 %v1098_v35, %v1092_v50  ;;  %v8903_v40 = vpack.c.bf16 %v1097_v8, %v1091_v2  ;;  %v1436_v50 = vld [vmem:[%s10434_s13 + $0xe0] sm:$0xff]  ;;  %v1435_v2 = vld [vmem:[%s10434_s13 + $0xd8] sm:$0xff] }
 0x65a   :  { %10793 = vst [vmem:[#allocation95_spill] sm:$0xff] %v8876_v26  ;;  %5601 = vmatprep.subr.bf16.mxu0 %v8876_v26  ;;  %v1432_v26 = vld [vmem:[%s10434_s13 + $0xc0] sm:$0xff] }
 0x65b   :  { %5567 = vmatpush1.bf16.msra.mxu1 %v8867_v48  ;;  %10795 = vst [vmem:[#allocation97_spill] sm:$0xff] %v8894_v42  ;;  %5603 = vmatpush1.bf16.msra.mxu0 %v8885_v24  ;;  %10796 = vst [vmem:[#allocation98_spill] sm:$0xff] %v8903_v40  ;;  %v1433_v48 = vld [vmem:[%s10434_s13 + $0xc8] sm:$0xff]  ;;  %v8921_v8 = vpack.c.bf16 %v1435_v2, %v1432_v26  ;;  %v1109_v26 = vld [vmem:[%s10432_s11 + $0x4d0] sm:$0xff] }
 0x65c   :  { %5569 = vmatprep.subr.bf16.mxu1 %v8894_v42  ;;  %v8912_v35 = vpack.c.bf16 %v1436_v50, %v1433_v48  ;;  %v1104_v24 = vld [vmem:[%s10432_s11 + $0x4a8] sm:$0xff]  ;;  %v1110_v48 = vld [vmem:[%s10432_s11 + $0x4d8] sm:$0xff]  ;;  %v1103_v42 = vld [vmem:[%s10432_s11 + $0x4a0] sm:$0xff] }
 0x65d   :  { %10798 = vst [vmem:[#allocation100_spill] sm:$0xff] %v8921_v8  ;;  %v8930_v50 = vpack.c.bf16 %v1110_v48, %v1104_v24  ;;  %v8939_v2 = vpack.c.bf16 %v1109_v26, %v1103_v42  ;;  %v1442_v24 = vld [vmem:[%s10434_s13 + $0x110] sm:$0xff]  ;;  %v1441_v42 = vld [vmem:[%s10434_s13 + $0x108] sm:$0xff] }
 0x65e   :  { %10797 = vst [vmem:[#allocation99_spill] sm:$0xff] %v8912_v35  ;;  %5605 = vmatprep.subr.bf16.mxu0 %v8912_v35  ;;  %v1438_v35 = vld [vmem:[%s10434_s13 + $0xf0] sm:$0xff] }
 0x65f   :  { %5571 = vmatpush1.bf16.msra.mxu1 %v8903_v40  ;;  %10799 = vst [vmem:[#allocation101_spill] sm:$0xff] %v8930_v50  ;;  %5607 = vmatpush1.bf16.msra.mxu0 %v8921_v8  ;;  %10800 = vst [vmem:[#allocation102_spill] sm:$0xff] %v8939_v2  ;;  %v1439_v40 = vld [vmem:[%s10434_s13 + $0xf8] sm:$0xff]  ;;  %v8957_v26 = vpack.c.bf16 %v1441_v42, %v1438_v35  ;;  %v1116_v8 = vld [vmem:[%s10432_s11 + $0x508] sm:$0xff] }
 0x660   :  { %5573 = vmatprep.subr.bf16.mxu1 %v8930_v50  ;;  %v8948_v48 = vpack.c.bf16 %v1442_v24, %v1439_v40  ;;  %v1122_v40 = vld [vmem:[%s10432_s11 + $0x538] sm:$0xff]  ;;  %v1115_v50 = vld [vmem:[%s10432_s11 + $0x500] sm:$0xff]  ;;  %v1121_v35 = vld [vmem:[%s10432_s11 + $0x530] sm:$0xff] }
 0x661   :  { %10802 = vst [vmem:[#allocation104_spill] sm:$0xff] %v8957_v26  ;;  %v8966_v24 = vpack.c.bf16 %v1122_v40, %v1116_v8  ;;  %v8975_v42 = vpack.c.bf16 %v1121_v35, %v1115_v50  ;;  %v1448_v8 = vld [vmem:[%s10434_s13 + $0x140] sm:$0xff]  ;;  %v1447_v50 = vld [vmem:[%s10434_s13 + $0x138] sm:$0xff] }
 0x662   :  { %10801 = vst [vmem:[#allocation103_spill] sm:$0xff] %v8948_v48  ;;  %5609 = vmatprep.subr.bf16.mxu0 %v8948_v48  ;;  %v1444_v48 = vld [vmem:[%s10434_s13 + $0x120] sm:$0xff] }
 0x663   :  { %5575 = vmatpush1.bf16.msra.mxu1 %v8939_v2  ;;  %10803 = vst [vmem:[#allocation105_spill] sm:$0xff] %v8966_v24  ;;  %5611 = vmatpush1.bf16.msra.mxu0 %v8957_v26  ;;  %10804 = vst [vmem:[#allocation106_spill] sm:$0xff] %v8975_v42  ;;  %v1445_v2 = vld [vmem:[%s10434_s13 + $0x128] sm:$0xff]  ;;  %v8993_v35 = vpack.c.bf16 %v1447_v50, %v1444_v48  ;;  %v1133_v48 = vld [vmem:[%s10432_s11 + $0x590] sm:$0xff] }
 0x664   :  { %5577 = vmatprep.subr.bf16.mxu1 %v8966_v24  ;;  %v8984_v40 = vpack.c.bf16 %v1448_v8, %v1445_v2  ;;  %v1128_v26 = vld [vmem:[%s10432_s11 + $0x568] sm:$0xff]  ;;  %v1134_v2 = vld [vmem:[%s10432_s11 + $0x598] sm:$0xff]  ;;  %v1127_v24 = vld [vmem:[%s10432_s11 + $0x560] sm:$0xff] }
 0x665   :  { %10806 = vst [vmem:[#allocation108_spill] sm:$0xff] %v8993_v35  ;;  %v9002_v8 = vpack.c.bf16 %v1134_v2, %v1128_v26  ;;  %v9011_v50 = vpack.c.bf16 %v1133_v48, %v1127_v24  ;;  %v1454_v26 = vld [vmem:[%s10434_s13 + $0x170] sm:$0xff]  ;;  %v1453_v24 = vld [vmem:[%s10434_s13 + $0x168] sm:$0xff] }
 0x666   :  { %10805 = vst [vmem:[#allocation107_spill] sm:$0xff] %v8984_v40  ;;  %5613 = vmatprep.subr.bf16.mxu0 %v8984_v40  ;;  %v1450_v40 = vld [vmem:[%s10434_s13 + $0x150] sm:$0xff] }
 0x667   :  { %5579 = vmatpush1.bf16.msra.mxu1 %v8975_v42  ;;  %10807 = vst [vmem:[#allocation109_spill] sm:$0xff] %v9002_v8  ;;  %5615 = vmatpush1.bf16.msra.mxu0 %v8993_v35  ;;  %10808 = vst [vmem:[#allocation110_spill] sm:$0xff] %v9011_v50  ;;  %v1451_v42 = vld [vmem:[%s10434_s13 + $0x158] sm:$0xff]  ;;  %v9029_v48 = vpack.c.bf16 %v1453_v24, %v1450_v40  ;;  %v1140_v35 = vld [vmem:[%s10432_s11 + $0x5c8] sm:$0xff] }
 0x668   :  { %5581 = vmatprep.subr.bf16.mxu1 %v9002_v8  ;;  %v9020_v2 = vpack.c.bf16 %v1454_v26, %v1451_v42  ;;  %v1146_v42 = vld [vmem:[%s10432_s11 + $0x5f8] sm:$0xff]  ;;  %v1139_v8 = vld [vmem:[%s10432_s11 + $0x5c0] sm:$0xff]  ;;  %v1145_v40 = vld [vmem:[%s10432_s11 + $0x5f0] sm:$0xff] }
 0x669   :  { %10810 = vst [vmem:[#allocation112_spill] sm:$0xff] %v9029_v48  ;;  %v9038_v26 = vpack.c.bf16 %v1146_v42, %v1140_v35  ;;  %v9047_v24 = vpack.c.bf16 %v1145_v40, %v1139_v8 }
 0x66a   :  { %10809 = vst [vmem:[#allocation111_spill] sm:$0xff] %v9020_v2  ;;  %5617 = vmatprep.subr.bf16.mxu0 %v9020_v2 }
 0x66b   :  { %5583 = vmatpush1.bf16.msra.mxu1 %v9011_v50  ;;  %10811 = vst [vmem:[#allocation113_spill] sm:$0xff] %v9038_v26  ;;  %5619 = vmatpush1.bf16.msra.mxu0 %v9029_v48  ;;  %10812 = vst [vmem:[#allocation114_spill] sm:$0xff] %v9047_v24  ;;  %v10813_v50 = vmov 0.0|0.0  }
 0x66c   :  { %5585 = vmatprep.subr.bf16.mxu1 %v9038_v26  ;;  %5620 = vmatprep.subr.bf16.mxu0 %v10813_v50 }
 0x66f   :  { %5587 = vmatpush1.bf16.msra.mxu1 %v9047_v24 }
 0x670   :  { %5645 = vmatprep.subr.bf16.mxu1 %v8038_v27 }
 0x672   :  { %1385 = vmatmul.mubr.f32.vlgmr.msra.gmra.mrb[6].mxu1 %v10765_v17 }
 0x673   :  { %5647 = vmatpush1.bf16.msra.mxu1 %v8078_v53 }
 0x674   :  { %5649 = vmatprep.subr.bf16.mxu1 %v8088_v58 }
 0x677   :  { %5651 = vmatpush1.bf16.msra.mxu1 %v8112_v3 }
 0x678   :  { %5653 = vmatprep.subr.bf16.mxu1 %v8124_v7 }
 0x67b   :  { %5655 = vmatpush1.bf16.msra.mxu1 %v8150_v16 }
 0x67c   :  { %5657 = vmatprep.subr.bf16.mxu1 %v8162_v20 }
 0x67f   :  { %5659 = vmatpush1.bf16.msra.mxu1 %v8186_v30 }
 0x680   :  { %5661 = vmatprep.subr.bf16.mxu1 %v8198_v34 }
 0x683   :  { %5663 = vmatpush1.bf16.msra.mxu1 %v8222_v43 }
 0x684   :  { %5665 = vmatprep.subr.bf16.mxu1 %v8234_v47 }
 0x687   :  { %5667 = vmatpush1.bf16.msra.mxu1 %v8258_v57 }
 0x688   :  { %5669 = vmatprep.subr.bf16.mxu1 %v8270_v63 }
 0x68b   :  { %5671 = vmatpush1.bf16.msra.mxu1 %v8294_v12 }
 0x68c   :  { %5673 = vmatprep.subr.bf16.mxu1 %v8306_v18 }
 0x68f   :  { %5675 = vmatpush1.bf16.msra.mxu1 %v8330_v31 }
 0x690   :  { %5677 = vmatprep.subr.bf16.mxu1 %v8342_v39 }
 0x693   :  { %5679 = vmatpush1.bf16.msra.mxu1 %v8366_v51 }
 0x694   :  { %5681 = vmatprep.subr.bf16.mxu1 %v8378_v59 }
 0x697   :  { %5683 = vmatpush1.bf16.msra.mxu1 %v8402_v13 }
 0x698   :  { %5685 = vmatprep.subr.bf16.mxu1 %v8414_v25 }
 0x69b   :  { %5687 = vmatpush1.bf16.msra.mxu1 %v8438_v45 }
 0x69c   :  { %5689 = vmatprep.subr.bf16.mxu1 %v8450_v52 }
 0x69f   :  { %5691 = vmatpush1.bf16.msra.mxu1 %v8474_v14 }
 0x6a0   :  { %5693 = vmatprep.subr.bf16.mxu1 %v8486_v32 }
 0x6a3   :  { %5695 = vmatpush1.bf16.msra.mxu1 %v8510_v4 }
 0x6a4   :  { %5697 = vmatprep.subr.bf16.mxu1 %v8522_v29 }
 0x6a7   :  { %5699 = vmatpush1.bf16.msra.mxu1 %v8546_v54  ;;  %v789_v54 = vld [vmem:[%s10435_s10] sm:$0x7] }
 0x6a8   :  { %5701 = vmatprep.subr.bf16.mxu1 %v8558_v61 }
 0x6ab   :  { %5703 = vmatpush1.bf16.msra.mxu1 %v8582_v46  ;;  %v9097_v46 = vld [vmem:[%s10436_s12] sm:$0x3f] }
 0x6ac   :  { %5705 = vmatprep.subr.bf16.mxu1 %v8591_v10 }
 0x6af   :  { %5707 = vmatpush1.bf16.msra.mxu1 %v8606_v5 }
 0x6b0   :  { %5773 = vmatprep.subr.bf16.mxu1 %v8637_v11 }
 0x6c4   :  { %v872_v35 = vpop.f32.mrb[2].mxu1  ;;  %v943_v8 = vpop.f32.mrb[18].mxu0 }
 0x6c5   :  { %v874_v42 = vpop.f32.mrb[3].mxu1  ;;  %v4968_v40 = vpop.f32.mrb[19].mxu0 }
 0x6c6   :  { %v791_v40 = vlaneseq }
 0x6c8   :  { %v9086_v14 = vshrl.u32 %v791_v40, 7 }
 0x6ca   :  { %v9089_v32 = vsub.s32 0, %v9086_v14  ;;  %v9100_v10 = vsub.s32 1, %v9086_v14  ;;  %v9123_v63 = vsub.s32 2, %v9086_v14 }
 0x6cc   :  { %v794_v11 = vrot.slane %v789_v54, %v9089_v32  ;;  %v9105_v40 = vrot.slane %v9097_v46, %v9089_v32  ;;  %v9109_v5 = vrot.slane %v9097_v46, %v9100_v10  ;;  %v798_v61 = vrot.slane %v789_v54, %v9100_v10 }
 0x6ce   :  { %10814 = vst [vmem:[#allocation115_spill] sm:$0xff] %v9105_v40  ;;  %v9112_v52 = vadd.f32 %v872_v35, %v794_v11  ;;  %v9119_v39 = vadd.f32 %v874_v42, %v798_v61 }
 0x6d0   :  { %10815 = vst [vmem:[#allocation116_spill] sm:$0xff] %v9112_v52  ;;  %10816 = vst [vmem:[#allocation117_spill] sm:$0xff] %v9119_v39 }
 0x704   :  { %v1244_v29 = vpop.f32.mrb[4].mxu1  ;;  %v1315_v4 = vpop.f32.mrb[20].mxu0 }
 0x705   :  { %v1245_v45 = vadd.f32 %v1244_v29, %v9105_v40  ;;  %v1246_v25 = vpop.f32.mrb[5].mxu1  ;;  %v9115_v13 = vpop.f32.mrb[21].mxu0  ;;  %v9127_v29 = vrot.slane %v9097_v46, %v9123_v63 }
 0x706   :  { %v1247_v59 = vadd.f32 %v1246_v25, %v9109_v5  ;;  %v802_v25 = vrot.slane %v789_v54, %v9123_v63 }
 0x707   :  { %v1391_v51 = vadd.f32 %v1245_v45, %v9112_v52  ;;  %v1316_v45 = vadd.f32 %v1315_v4, %v9127_v29  ;;  %v1413_v4 = vld [vmem:[%s10434_s13 + $0x28] sm:$0xff] }
 0x708   :  { %v1396_v18 = vadd.f32 %v1247_v59, %v9119_v39 }
 0x709   :  { %v1392_v31 = vmul.f32 0.5, %v1391_v51  ;;  %v9131_v51 = vadd.f32 %v943_v8, %v802_v25 }
 0x70a   :  { %v1397_v12 = vmul.f32 0.5, %v1396_v18 }
 0x70b   :  { %7440 = vtanh.f32 %v1392_v31 }
 0x70c   :  { %7442 = vtanh.f32 %v1397_v12  ;;  %v1410_v12 = vld [vmem:[%s10434_s13 + $0x10] sm:$0xff] }
 0x70d   :  { %v9140_v25 = vpack.c.bf16 %v1413_v4, %v1410_v12  ;;  %v1434_v4 = vld [vmem:[%s10434_s13 + $0xd0] sm:$0xff] }
 0x715   :  { %v7441_v11 = vpop.eup %7440 }
 0x716   :  { %v1394_v61 = vmul.f32 0.5, %v7441_v11  ;;  %v7443_v31 = vpop.eup %7442 }
 0x717   :  { %v1399_v42 = vmul.f32 0.5, %v7443_v31 }
 0x718   :  { %v1395_v35 = vadd.f32 0.5, %v1394_v61  ;;  %v1416_v61 = vld [vmem:[%s10434_s13 + $0x40] sm:$0xff] }
 0x719   :  { %v1400_v39 = vadd.f32 0.5, %v1399_v42  ;;  %v1431_v42 = vld [vmem:[%s10434_s13 + $0xb8] sm:$0xff] }
 0x71a   :  { %v1401_v59 = vmul.f32 %v1395_v35, %v1316_v45  ;;  %v1419_v35 = vld [vmem:[%s10434_s13 + $0x58] sm:$0xff] }
 0x71b   :  { %v1404_v52 = vsub.f32 1.0, %v1400_v39  ;;  %v1406_v11 = vmul.f32 0.0, %v1400_v39  ;;  %v1422_v39 = vld [vmem:[%s10434_s13 + $0x70] sm:$0xff] }
 0x71c   :  { %v1402_v18 = vadd.f32 %v1401_v59, %v9131_v51  ;;  %v9152_v59 = vpack.c.bf16 %v1419_v35, %v1416_v61  ;;  %v1443_v61 = vld [vmem:[%s10434_s13 + $0x118] sm:$0xff] }
 0x71e   :  { %7444 = vtanh.f32 %v1402_v18  ;;  %v1428_v18 = vld [vmem:[%s10434_s13 + $0xa0] sm:$0xff] }
 0x71f   :  { %v9174_v12 = vpack.c.bf16 %v1431_v42, %v1428_v18  ;;  %v1452_v42 = vld [vmem:[%s10434_s13 + $0x160] sm:$0xff] }
 0x721   :  { %10817 = vst [vmem:[#allocation118_spill] sm:$0xff] %v9174_v12 }
 0x728   :  { %v7445_v54 = vpop.eup %7444 }
 0x729   :  { %v1405_v8 = vmul.f32 %v7445_v54, %v1404_v52  ;;  %v1425_v52 = vld [vmem:[%s10434_s13 + $0x88] sm:$0xff] }
 0x72a   :  { %v9164_v31 = vpack.c.bf16 %v1425_v52, %v1422_v39  ;;  %v1437_v54 = vld [vmem:[%s10434_s13 + $0xe8] sm:$0xff]  ;;  %v1446_v39 = vld [vmem:[%s10434_s13 + $0x130] sm:$0xff] }
 0x72b   :  { %v9142_v45 = vadd.f32 %v1406_v11, %v1405_v8  ;;  %v9184_v11 = vpack.c.bf16 %v1437_v54, %v1434_v4  ;;  %v1440_v8 = vld [vmem:[%s10434_s13 + $0x100] sm:$0xff]  ;;  %v1449_v52 = vld [vmem:[%s10434_s13 + $0x148] sm:$0xff]  ;;  %v1455_v4 = vld [vmem:[%s10434_s13 + $0x178] sm:$0xff] }
 0x72c   :  { %v9194_v35 = vpack.c.bf16 %v1443_v61, %v1440_v8  ;;  %v9204_v18 = vpack.c.bf16 %v1449_v52, %v1446_v39  ;;  %v9214_v54 = vpack.c.bf16 %v1455_v4, %v1452_v42  ;;  %v10822_v8 = vld [vmem:[#allocation43_spill] sm:$0xff]  ;;  %v10823_v61 = vld [vmem:[#allocation45_spill] sm:$0xff] }
 0x72d   :  { %1537 = vmatmul.mubr.f32.vlgmr.msra.gmra.mrb[22].mxu0 %v9142_v45  ;;  %10818 = vst [vmem:[#allocation119_spill] sm:$0xff] %v9184_v11  ;;  %v10824_v39 = vld [vmem:[#allocation47_spill] sm:$0xff]  ;;  %v10825_v52 = vld [vmem:[#allocation49_spill] sm:$0xff] }
 0x72e   :  { %5622 = vmatpush3.bf16.msra.mxu0 %v9140_v25  ;;  %5001 = vmatprep.mubr.msk.f32.mxu0 %vm7544_vm1, %v10765_v17  ;;  %10819 = vst [vmem:[#allocation120_spill] sm:$0xff] %v9194_v35  ;;  %10820 = vst [vmem:[#allocation121_spill] sm:$0xff] %v9204_v18  ;;  %v10826_v42 = vld [vmem:[#allocation51_spill] sm:$0xff]  ;;  %v10827_v4 = vld [vmem:[#allocation53_spill] sm:$0xff] }
 0x72f   :  { %5623 = vmatprep.subr.bf16.mxu0 %v10813_v50  ;;  %10821 = vst [vmem:[#allocation122_spill] sm:$0xff] %v9214_v54 }
 0x732   :  { %5625 = vmatpush3.bf16.msra.mxu0 %v9152_v59 }
 0x733   :  { %5626 = vmatprep.subr.bf16.mxu0 %v10813_v50 }
 0x736   :  { %5628 = vmatpush3.bf16.msra.mxu0 %v9164_v31 }
 0x737   :  { %5629 = vmatprep.subr.bf16.mxu0 %v10813_v50 }
 0x73a   :  { %5631 = vmatpush3.bf16.msra.mxu0 %v9174_v12 }
 0x73b   :  { %5632 = vmatprep.subr.bf16.mxu0 %v10813_v50 }
 0x73e   :  { %5634 = vmatpush3.bf16.msra.mxu0 %v9184_v11 }
 0x73f   :  { %5635 = vmatprep.subr.bf16.mxu0 %v10813_v50 }
 0x742   :  { %5637 = vmatpush3.bf16.msra.mxu0 %v9194_v35 }
 0x743   :  { %5638 = vmatprep.subr.bf16.mxu0 %v10813_v50 }
 0x746   :  { %5640 = vmatpush3.bf16.msra.mxu0 %v9204_v18 }
 0x747   :  { %5641 = vmatprep.subr.bf16.mxu0 %v10813_v50 }
 0x74a   :  { %5643 = vmatpush3.bf16.msra.mxu0 %v9214_v54 }
 0x74b   :  { %5709 = vmatprep.subr.bf16.mxu0 %v8051_v44 }
 0x74d   :  { %5002 = vmatmul.mubr.f32.vlgmr.msra.gmra.mrb[24].mxu0 %v9142_v45 }
 0x74e   :  { %5711 = vmatpush1.bf16.msra.mxu0 %v8086_v56 }
 0x74f   :  { %5713 = vmatprep.subr.bf16.mxu0 %v8093_v60 }
 0x752   :  { %5715 = vmatpush1.bf16.msra.mxu0 %v8121_v6 }
 0x753   :  { %5717 = vmatprep.subr.bf16.mxu0 %v8130_v9 }
 0x756   :  { %5719 = vmatpush1.bf16.msra.mxu0 %v8159_v19 }
 0x757   :  { %5721 = vmatprep.subr.bf16.mxu0 %v8168_v22 }
 0x75a   :  { %5723 = vmatpush1.bf16.msra.mxu0 %v8195_v33 }
 0x75b   :  { %5725 = vmatprep.subr.bf16.mxu0 %v8204_v37 }
 0x75e   :  { %5727 = vmatpush1.bf16.msra.mxu0 %v8231_v36 }
 0x75f   :  { %5729 = vmatprep.subr.bf16.mxu0 %v8240_v49 }
 0x762   :  { %5731 = vmatpush1.bf16.msra.mxu0 %v8267_v62 }
 0x763   :  { %5733 = vmatprep.subr.bf16.mxu0 %v8276_v1 }
 0x766   :  { %5735 = vmatpush1.bf16.msra.mxu0 %v8303_v15 }
 0x767   :  { %5737 = vmatprep.subr.bf16.mxu0 %v8312_v21  ;;  %v10828_v21 = vld [vmem:[#allocation55_spill] sm:$0xff] }
 0x76a   :  { %5739 = vmatpush1.bf16.msra.mxu0 %v8339_v38  ;;  %v10829_v38 = vld [vmem:[#allocation57_spill] sm:$0xff] }
 0x76b   :  { %5741 = vmatprep.subr.bf16.mxu0 %v8348_v41  ;;  %v1386_v41 = vpop.f32.mrb[6].mxu1 }
 0x76e   :  { %5743 = vmatpush1.bf16.msra.mxu0 %v8375_v55  ;;  %v10830_v55 = vld [vmem:[#allocation59_spill] sm:$0xff] }
 0x76f   :  { %5745 = vmatprep.subr.bf16.mxu0 %v8384_v0  ;;  %v10831_v0 = vld [vmem:[#allocation61_spill] sm:$0xff] }
 0x772   :  { %5747 = vmatpush1.bf16.msra.mxu0 %v10822_v8  ;;  %v10832_v8 = vld [vmem:[#allocation63_spill] sm:$0xff] }
 0x773   :  { %5749 = vmatprep.subr.bf16.mxu0 %v10823_v61  ;;  %v10833_v61 = vld [vmem:[#allocation65_spill] sm:$0xff] }
 0x776   :  { %5751 = vmatpush1.bf16.msra.mxu0 %v10824_v39  ;;  %v10834_v39 = vld [vmem:[#allocation67_spill] sm:$0xff] }
 0x777   :  { %5753 = vmatprep.subr.bf16.mxu0 %v10825_v52 }
 0x77a   :  { %5755 = vmatpush1.bf16.msra.mxu0 %v10826_v42  ;;  %v1388_v42 = vpop.f32.mrb[7].mxu1 }
 0x77b   :  { %5757 = vmatprep.subr.bf16.mxu0 %v10827_v4  ;;  %v1166_v4 = vsub.s32 4, %v9086_v14 }
 0x77e   :  { %5759 = vmatpush1.bf16.msra.mxu0 %v10828_v21  ;;  %v1162_v21 = vsub.s32 3, %v9086_v14 }
 0x77f   :  { %5761 = vmatprep.subr.bf16.mxu0 %v10829_v38  ;;  %v951_v38 = vld [vmem:[%s10437_s14] sm:$0x7] }
 0x782   :  { %5763 = vmatpush1.bf16.msra.mxu0 %v10830_v55  ;;  %v9258_v55 = vrot.slane %v9097_v46, %v1166_v4 }
 0x783   :  { %5765 = vmatprep.subr.bf16.mxu0 %v10831_v0 }
 0x784   :  { %10835 = vst [vmem:[#allocation123_spill] sm:$0xff] %v9258_v55  ;;  %v1387_v0 = vadd.f32 %v1386_v41, %v9258_v55 }
 0x786   :  { %5767 = vmatpush1.bf16.msra.mxu0 %v10832_v8  ;;  %v9261_v8 = vrot.slane %v9097_v46, %v1162_v21 }
 0x787   :  { %5769 = vmatprep.subr.bf16.mxu0 %v10833_v61  ;;  %v9264_v61 = vrot.slane %v951_v38, %v9089_v32  ;;  %v1170_v32 = vsub.s32 5, %v9086_v14 }
 0x788   :  { %10836 = vst [vmem:[#allocation124_spill] sm:$0xff] %v9261_v8  ;;  %v1318_v52 = vadd.f32 %v9115_v13, %v9261_v8 }
 0x789   :  { %10837 = vst [vmem:[#allocation125_spill] sm:$0xff] %v9264_v61 }
 0x78a   :  { %5771 = vmatpush1.bf16.msra.mxu0 %v10834_v39 }
 0x78b   :  { %5837 = vmatprep.subr.bf16.mxu0 %v8768_v23  ;;  %v9267_v23 = vrot.slane %v951_v38, %v9100_v10  ;;  %v9276_v10 = vrot.slane %v9097_v46, %v1170_v32  ;;  %v10843_v32 = vld [vmem:[#allocation88_spill] sm:$0xff] }
 0x78d   :  { %v1389_v41 = vadd.f32 %v1388_v42, %v9276_v10 }
 0x800   :  { %v1538_v39 = vpop.f32.mrb[22].mxu0 }
 0x801   :  { %v1539_v15 = vadd.f32 %v1538_v39, %v9264_v61  ;;  %v1540_v1 = vpop.f32.mrb[23].mxu0  ;;  %v9280_v39 = vrot.slane %v951_v38, %v9123_v63  ;;  %v10839_v63 = vld [vmem:[#allocation70_spill] sm:$0xff]  ;;  %v10840_v38 = vld [vmem:[#allocation87_spill] sm:$0xff] }
 0x802   :  { %v1541_v4 = vadd.f32 %v1540_v1, %v9267_v23 }
 0x803   :  { %v1613_v62 = vadd.f32 %v1539_v15, %v1318_v52 }
 0x804   :  { %v1618_v21 = vadd.f32 %v1541_v4, %v1387_v0 }
 0x805   :  { %v1614_v49 = vmul.f32 0.5, %v1613_v62 }
 0x806   :  { %v1619_v13 = vmul.f32 0.5, %v1618_v21  ;;  %v10842_v21 = vld [vmem:[#allocation72_spill] sm:$0xff] }
 0x807   :  { %7446 = vtanh.f32 %v1614_v49 }
 0x808   :  { %7448 = vtanh.f32 %v1619_v13  ;;  %v10845_v13 = vld [vmem:[#allocation73_spill] sm:$0xff] }
 0x811   :  { %v7447_v36 = vpop.eup %7446 }
 0x812   :  { %v1616_v55 = vmul.f32 0.5, %v7447_v36  ;;  %v7449_v15 = vpop.eup %7448 }
 0x813   :  { %v1621_v14 = vmul.f32 0.5, %v7449_v15  ;;  %v10849_v15 = vld [vmem:[#allocation75_spill] sm:$0xff] }
 0x814   :  { %v1617_v37 = vadd.f32 0.5, %v1616_v55 }
 0x815   :  { %v1622_v46 = vadd.f32 0.5, %v1621_v14  ;;  %v10851_v14 = vld [vmem:[#allocation96_spill] sm:$0xff] }
 0x816   :  { %v1623_v8 = vmul.f32 %v1617_v37, %v1389_v41  ;;  %v10838_v37 = vld [vmem:[#allocation69_spill] sm:$0xff]  ;;  %v10844_v41 = vld [vmem:[#allocation91_spill] sm:$0xff] }
 0x817   :  { %v1626_v52 = vsub.f32 1.0, %v1622_v46  ;;  %v1628_v42 = vmul.f32 0.0, %v1622_v46  ;;  %v10852_v46 = vld [vmem:[#allocation99_spill] sm:$0xff] }
 0x820   :  { %v1609_v1 = vpop.f32.mrb[24].mxu0 }
 0x821   :  { %v1610_v62 = vadd.f32 %v1609_v1, %v9280_v39  ;;  %v5003_v49 = vpop.f32.mrb[25].mxu0  ;;  %v10846_v1 = vld [vmem:[#allocation74_spill] sm:$0xff] }
 0x822   :  { %v10848_v49 = vld [vmem:[#allocation95_spill] sm:$0xff] }
 0x823   :  { %v1624_v0 = vadd.f32 %v1623_v8, %v1610_v62  ;;  %v10841_v8 = vld [vmem:[#allocation71_spill] sm:$0xff]  ;;  %v10847_v62 = vld [vmem:[#allocation92_spill] sm:$0xff] }
 0x825   :  { %7450 = vtanh.f32 %v1624_v0  ;;  %v10850_v0 = vld [vmem:[#allocation76_spill] sm:$0xff] }
 0x82f   :  { %v7451_v4 = vpop.eup %7450 }
 0x830   :  { %v1627_v36 = vmul.f32 %v7451_v4, %v1626_v52  ;;  %v10853_v52 = vld [vmem:[#allocation77_spill] sm:$0xff]  ;;  %v10854_v4 = vld [vmem:[#allocation78_spill] sm:$0xff] }
 0x832   :  { %v9283_v55 = vadd.f32 %v1628_v42, %v1627_v36  ;;  %v10855_v42 = vld [vmem:[#allocation100_spill] sm:$0xff]  ;;  %v10856_v36 = vld [vmem:[#allocation103_spill] sm:$0xff] }
 0x834   :  { %1694 = vmatprep.mubr.f32.mxu1 %v9283_v55  ;;  %1765 = vmatprep.mubr.f32.mxu0 %v9283_v55 }
 0x835   :  { %1695 = vmatmul.mubr.f32.vlgmr.msra.gmra.mrb[8].mxu1 %v9142_v45  ;;  %1766 = vmatmul.mubr.f32.vlgmr.msra.gmra.mrb[26].mxu0 %v9142_v45 }
 0x836   :  { %5775 = vmatpush1.bf16.msra.mxu1 %v10838_v37  ;;  %1836 = vmatprep.mubr.f32.mxu1 %v9283_v55 }
 0x837   :  { %5777 = vmatprep.subr.bf16.mxu1 %v10839_v63  ;;  %5839 = vmatpush1.bf16.msra.mxu0 %v8777_v28 }
 0x838   :  { %5841 = vmatprep.subr.bf16.mxu0 %v10840_v38  ;;  %1939 = vmatprep.mubr.f32.mxu0 %v10765_v17 }
 0x83a   :  { %5779 = vmatpush1.bf16.msra.mxu1 %v10841_v8 }
 0x83b   :  { %5781 = vmatprep.subr.bf16.mxu1 %v10842_v21  ;;  %5843 = vmatpush1.bf16.msra.mxu0 %v10843_v32 }
 0x83c   :  { %5845 = vmatprep.subr.bf16.mxu0 %v10844_v41 }
 0x83e   :  { %5783 = vmatpush1.bf16.msra.mxu1 %v10845_v13 }
 0x83f   :  { %5785 = vmatprep.subr.bf16.mxu1 %v10846_v1  ;;  %5847 = vmatpush1.bf16.msra.mxu0 %v10847_v62  ;;  %v10857_v1 = vld [vmem:[#allocation79_spill] sm:$0xff]  ;;  %v10858_v62 = vld [vmem:[#allocation80_spill] sm:$0xff] }
 0x840   :  { %5849 = vmatprep.subr.bf16.mxu0 %v10848_v49  ;;  %v10859_v49 = vld [vmem:[#allocation104_spill] sm:$0xff] }
 0x842   :  { %5787 = vmatpush1.bf16.msra.mxu1 %v10849_v15  ;;  %v10860_v15 = vld [vmem:[#allocation107_spill] sm:$0xff] }
 0x843   :  { %5789 = vmatprep.subr.bf16.mxu1 %v10850_v0  ;;  %5851 = vmatpush1.bf16.msra.mxu0 %v10851_v14  ;;  %v10861_v0 = vld [vmem:[#allocation81_spill] sm:$0xff]  ;;  %v10862_v14 = vld [vmem:[#allocation82_spill] sm:$0xff] }
 0x844   :  { %5853 = vmatprep.subr.bf16.mxu0 %v10852_v46  ;;  %v10863_v46 = vld [vmem:[#allocation108_spill] sm:$0xff] }
 0x846   :  { %5791 = vmatpush1.bf16.msra.mxu1 %v10853_v52 }
 0x847   :  { %5793 = vmatprep.subr.bf16.mxu1 %v10854_v4  ;;  %5855 = vmatpush1.bf16.msra.mxu0 %v10855_v42  ;;  %v10864_v4 = vld [vmem:[#allocation83_spill] sm:$0xff]  ;;  %v10865_v42 = vld [vmem:[#allocation85_spill] sm:$0xff] }
 0x848   :  { %5857 = vmatprep.subr.bf16.mxu0 %v10856_v36 }
 0x84a   :  { %5795 = vmatpush1.bf16.msra.mxu1 %v10857_v1  ;;  %v10876_v1 = vld [vmem:[#allocation106_spill] sm:$0xff] }
 0x84b   :  { %5797 = vmatprep.subr.bf16.mxu1 %v10858_v62  ;;  %5859 = vmatpush1.bf16.msra.mxu0 %v10859_v49  ;;  %v10866_v62 = vld [vmem:[#allocation86_spill] sm:$0xff]  ;;  %v10867_v49 = vld [vmem:[#allocation89_spill] sm:$0xff] }
 0x84c   :  { %5861 = vmatprep.subr.bf16.mxu0 %v10860_v15  ;;  %v10868_v15 = vld [vmem:[#allocation90_spill] sm:$0xff] }
 0x84e   :  { %5799 = vmatpush1.bf16.msra.mxu1 %v10861_v0  ;;  %v10869_v0 = vld [vmem:[#allocation93_spill] sm:$0xff] }
 0x84f   :  { %5801 = vmatprep.subr.bf16.mxu1 %v10862_v14  ;;  %5863 = vmatpush1.bf16.msra.mxu0 %v10863_v46  ;;  %v10870_v14 = vld [vmem:[#allocation94_spill] sm:$0xff]  ;;  %v10871_v46 = vld [vmem:[#allocation97_spill] sm:$0xff] }
 0x850   :  { %5865 = vmatprep.subr.bf16.mxu0 %v9020_v2  ;;  %v10872_v2 = vld [vmem:[#allocation98_spill] sm:$0xff] }
 0x852   :  { %5803 = vmatpush1.bf16.msra.mxu1 %v10864_v4  ;;  %v10873_v4 = vld [vmem:[#allocation101_spill] sm:$0xff] }
 0x853   :  { %5805 = vmatprep.subr.bf16.mxu1 %v10865_v42  ;;  %5867 = vmatpush1.bf16.msra.mxu0 %v9029_v48  ;;  %v10874_v42 = vld [vmem:[#allocation102_spill] sm:$0xff]  ;;  %v10875_v48 = vld [vmem:[#allocation105_spill] sm:$0xff] }
 0x854   :  { %5868 = vmatprep.subr.bf16.mxu0 %v10813_v50 }
 0x856   :  { %5807 = vmatpush1.bf16.msra.mxu1 %v10866_v62  ;;  %v10877_v62 = vld [vmem:[#allocation109_spill] sm:$0xff] }
 0x857   :  { %5809 = vmatprep.subr.bf16.mxu1 %v10867_v49  ;;  %v10878_v49 = vld [vmem:[#allocation110_spill] sm:$0xff] }
 0x85a   :  { %5811 = vmatpush1.bf16.msra.mxu1 %v10868_v15 }
 0x85b   :  { %5813 = vmatprep.subr.bf16.mxu1 %v10869_v0 }
 0x85e   :  { %5815 = vmatpush1.bf16.msra.mxu1 %v10870_v14 }
 0x85f   :  { %5817 = vmatprep.subr.bf16.mxu1 %v10871_v46 }
 0x862   :  { %5819 = vmatpush1.bf16.msra.mxu1 %v10872_v2 }
 0x863   :  { %5821 = vmatprep.subr.bf16.mxu1 %v10873_v4 }
 0x866   :  { %5823 = vmatpush1.bf16.msra.mxu1 %v10874_v42 }
 0x867   :  { %5825 = vmatprep.subr.bf16.mxu1 %v10875_v48 }
 0x86a   :  { %5827 = vmatpush1.bf16.msra.mxu1 %v10876_v1 }
 0x86b   :  { %5829 = vmatprep.subr.bf16.mxu1 %v10877_v62 }
 0x86e   :  { %5831 = vmatpush1.bf16.msra.mxu1 %v10878_v49  ;;  %v10901_v49 = vld [vmem:[#allocation117_spill] sm:$0xff] }
 0x86f   :  { %5833 = vmatprep.subr.bf16.mxu1 %v9038_v26 }
 0x872   :  { %5835 = vmatpush1.bf16.msra.mxu1 %v9047_v24 }
 0x873   :  { %5893 = vmatprep.subr.bf16.mxu1 %v8038_v27 }
 0x875   :  { %1837 = vmatmul.mubr.f32.vlgmr.msra.gmra.mrb[10].mxu1 %v9142_v45 }
 0x876   :  { %5895 = vmatpush1.bf16.msra.mxu1 %v8078_v53  ;;  %v10879_v53 = vld [vmem:[#allocation28_spill] sm:$0xff] }
 0x877   :  { %5897 = vmatprep.subr.bf16.mxu1 %v8088_v58  ;;  %v10880_v58 = vld [vmem:[#allocation30_spill] sm:$0xff] }
 0x87a   :  { %5899 = vmatpush1.bf16.msra.mxu1 %v8112_v3  ;;  %v10881_v3 = vld [vmem:[#allocation32_spill] sm:$0xff] }
 0x87b   :  { %5901 = vmatprep.subr.bf16.mxu1 %v8124_v7  ;;  %v10882_v7 = vld [vmem:[#allocation34_spill] sm:$0xff] }
 0x87e   :  { %5903 = vmatpush1.bf16.msra.mxu1 %v8150_v16  ;;  %v10883_v16 = vld [vmem:[#allocation36_spill] sm:$0xff] }
 0x87f   :  { %5905 = vmatprep.subr.bf16.mxu1 %v8162_v20  ;;  %v10884_v20 = vld [vmem:[#allocation38_spill] sm:$0xff] }
 0x882   :  { %5907 = vmatpush1.bf16.msra.mxu1 %v8186_v30  ;;  %v10885_v30 = vld [vmem:[#allocation40_spill] sm:$0xff] }
 0x883   :  { %5909 = vmatprep.subr.bf16.mxu1 %v8198_v34  ;;  %v10886_v34 = vld [vmem:[#allocation42_spill] sm:$0xff] }
 0x886   :  { %5911 = vmatpush1.bf16.msra.mxu1 %v8222_v43  ;;  %v10887_v43 = vld [vmem:[#allocation44_spill] sm:$0xff] }
 0x887   :  { %5913 = vmatprep.subr.bf16.mxu1 %v8234_v47  ;;  %v10888_v47 = vld [vmem:[#allocation46_spill] sm:$0xff] }
 0x88a   :  { %5915 = vmatpush1.bf16.msra.mxu1 %v8258_v57  ;;  %v10889_v57 = vld [vmem:[#allocation48_spill] sm:$0xff] }
 0x88b   :  { %5917 = vmatprep.subr.bf16.mxu1 %v10879_v53  ;;  %v10890_v53 = vld [vmem:[#allocation50_spill] sm:$0xff] }
 0x88e   :  { %5919 = vmatpush1.bf16.msra.mxu1 %v10880_v58  ;;  %v10891_v58 = vld [vmem:[#allocation52_spill] sm:$0xff] }
 0x88f   :  { %5921 = vmatprep.subr.bf16.mxu1 %v10881_v3  ;;  %v10892_v3 = vld [vmem:[#allocation54_spill] sm:$0xff] }
 0x892   :  { %5923 = vmatpush1.bf16.msra.mxu1 %v10882_v7  ;;  %v10893_v7 = vld [vmem:[#allocation56_spill] sm:$0xff] }
 0x893   :  { %5925 = vmatprep.subr.bf16.mxu1 %v10883_v16  ;;  %v10894_v16 = vld [vmem:[#allocation58_spill] sm:$0xff] }
 0x896   :  { %5927 = vmatpush1.bf16.msra.mxu1 %v10884_v20  ;;  %v10895_v20 = vld [vmem:[#allocation60_spill] sm:$0xff] }
 0x897   :  { %5929 = vmatprep.subr.bf16.mxu1 %v10885_v30  ;;  %v10896_v30 = vld [vmem:[#allocation62_spill] sm:$0xff] }
 0x89a   :  { %5931 = vmatpush1.bf16.msra.mxu1 %v10886_v34  ;;  %v10897_v34 = vld [vmem:[#allocation64_spill] sm:$0xff] }
 0x89b   :  { %5933 = vmatprep.subr.bf16.mxu1 %v10887_v43  ;;  %v10898_v43 = vld [vmem:[#allocation66_spill] sm:$0xff] }
 0x89e   :  { %5935 = vmatpush1.bf16.msra.mxu1 %v10888_v47  ;;  %v10899_v47 = vld [vmem:[#allocation68_spill] sm:$0xff] }
 0x89f   :  { %5937 = vmatprep.subr.bf16.mxu1 %v10889_v57 }
 0x8a2   :  { %5939 = vmatpush1.bf16.msra.mxu1 %v10890_v53 }
 0x8a3   :  { %5941 = vmatprep.subr.bf16.mxu1 %v10891_v58 }
 0x8a6   :  { %5943 = vmatpush1.bf16.msra.mxu1 %v10892_v3 }
 0x8a7   :  { %5945 = vmatprep.subr.bf16.mxu1 %v10893_v7 }
 0x8aa   :  { %5947 = vmatpush1.bf16.msra.mxu1 %v10894_v16 }
 0x8ab   :  { %5949 = vmatprep.subr.bf16.mxu1 %v10895_v20  ;;  %v10900_v20 = vld [vmem:[#allocation116_spill] sm:$0xff] }
 0x8ae   :  { %5951 = vmatpush1.bf16.msra.mxu1 %v10896_v30 }
 0x8af   :  { %5953 = vmatprep.subr.bf16.mxu1 %v10897_v34 }
 0x8b2   :  { %5955 = vmatpush1.bf16.msra.mxu1 %v10898_v43 }
 0x8b3   :  { %6021 = vmatprep.subr.bf16.mxu1 %v10899_v47 }
 0x908   :  { %v1696_v57 = vpop.f32.mrb[8].mxu1  ;;  %v1767_v53 = vpop.f32.mrb[26].mxu0 }
 0x909   :  { %v1697_v58 = vadd.f32 %v1696_v57, %v9105_v40  ;;  %v1698_v27 = vpop.f32.mrb[9].mxu1  ;;  %v9373_v3 = vpop.f32.mrb[27].mxu0  ;;  %v1768_v47 = vadd.f32 %v1767_v53, %v9127_v29 }
 0x90a   :  { %v1699_v7 = vadd.f32 %v1698_v27, %v9109_v5 }
 0x90b   :  { %v1844_v16 = vrot.slane %v1697_v58, 7  ;;  %v1860_v40 = vrot.slane %v1768_v47, 7 }
 0x90c   :  { %v1852_v24 = vrot.slane %v1699_v7, 7 }
 0x90d   :  { %v1846_v26 = vadd.f32 %v1844_v16, %v10900_v20 }
 0x90e   :  { %v1854_v34 = vadd.f32 %v1852_v24, %v10901_v49 }
 0x90f   :  { %v1847_v30 = vmul.f32 0.5, %v1846_v26  ;;  %v1868_v26 = vrot.slane %v9142_v45, 7  ;;  %v10903_v45 = vld [vmem:[#allocation23_spill] sm:$0xff] }
 0x910   :  { %v1855_v43 = vmul.f32 0.5, %v1854_v34 }
 0x911   :  { %7452 = vtanh.f32 %v1847_v30 }
 0x912   :  { %7454 = vtanh.f32 %v1855_v43 }
 0x91b   :  { %v7453_v62 = vpop.eup %7452 }
 0x91c   :  { %v1849_v1 = vmul.f32 0.5, %v7453_v62  ;;  %v7455_v42 = vpop.eup %7454  ;;  %v10905_v62 = vld [vmem:[#allocation27_spill] sm:$0xff] }
 0x91d   :  { %v1857_v58 = vmul.f32 0.5, %v7455_v42  ;;  %v10906_v42 = vld [vmem:[#allocation29_spill] sm:$0xff] }
 0x91e   :  { %v1850_v57 = vadd.f32 0.5, %v1849_v1  ;;  %v10904_v1 = vld [vmem:[#allocation25_spill] sm:$0xff] }
 0x91f   :  { %v1858_v7 = vadd.f32 0.5, %v1857_v58  ;;  %v10909_v58 = vld [vmem:[#allocation35_spill] sm:$0xff] }
 0x920   :  { %v1862_v48 = vmul.f32 %v1860_v40, %v1850_v57  ;;  %v10902_v40 = vld [vmem:[#allocation21_spill] sm:$0xff]  ;;  %v10907_v57 = vld [vmem:[#allocation31_spill] sm:$0xff] }
 0x921   :  { %v1865_v16 = vsub.f32 1.0, %v1858_v7  ;;  %v1870_v34 = vmul.f32 %v1868_v26, %v1858_v7  ;;  %v10910_v7 = vld [vmem:[#allocation37_spill] sm:$0xff] }
 0x922   :  { %v1863_v27 = vadd.f32 %v1862_v48, %v9131_v51  ;;  %v10912_v26 = vld [vmem:[#allocation41_spill] sm:$0xff] }
 0x924   :  { %7456 = vtanh.f32 %v1863_v27  ;;  %v10908_v27 = vld [vmem:[#allocation33_spill] sm:$0xff] }
 0x92e   :  { %v7457_v24 = vpop.eup %7456 }
 0x92f   :  { %v1866_v30 = vmul.f32 %v7457_v24, %v1865_v16  ;;  %v10911_v16 = vld [vmem:[#allocation39_spill] sm:$0xff] }
 0x930   :  { %v10913_v24 = vld [vmem:[#allocation43_spill] sm:$0xff] }
 0x931   :  { %v9381_v43 = vadd.f32 %v1870_v34, %v1866_v30  ;;  %v10914_v30 = vld [vmem:[#allocation45_spill] sm:$0xff]  ;;  %v10915_v34 = vld [vmem:[#allocation47_spill] sm:$0xff] }
 0x933   :  { %v9384_v53 = vrot.slane %v9381_v43, 1 }
 0x935   :  { %1940 = vmatmul.mubr.f32.vlgmr.msra.gmra.mrb[28].mxu0 %v9384_v53 }
 0x936   :  { %5870 = vmatpush3.bf16.msra.mxu0 %v9140_v25  ;;  %5036 = vmatprep.mubr.msk.f32.mxu0 %vm7544_vm1, %v10765_v17 }
 0x937   :  { %5871 = vmatprep.subr.bf16.mxu0 %v10813_v50 }
 0x93a   :  { %5873 = vmatpush3.bf16.msra.mxu0 %v9152_v59 }
 0x93b   :  { %5874 = vmatprep.subr.bf16.mxu0 %v10813_v50 }
 0x93e   :  { %5876 = vmatpush3.bf16.msra.mxu0 %v9164_v31 }
 0x93f   :  { %5877 = vmatprep.subr.bf16.mxu0 %v10813_v50 }
 0x942   :  { %5879 = vmatpush3.bf16.msra.mxu0 %v9174_v12 }
 0x943   :  { %5880 = vmatprep.subr.bf16.mxu0 %v10813_v50 }
 0x946   :  { %5882 = vmatpush3.bf16.msra.mxu0 %v9184_v11 }
 0x947   :  { %5883 = vmatprep.subr.bf16.mxu0 %v10813_v50 }
 0x948   :  { %v1838_v47 = vpop.f32.mrb[10].mxu1 }
 0x949   :  { %v1840_v48 = vpop.f32.mrb[11].mxu1 }
 0x94a   :  { %5885 = vmatpush3.bf16.msra.mxu0 %v9194_v35 }
 0x94b   :  { %5886 = vmatprep.subr.bf16.mxu0 %v10813_v50 }
 0x94e   :  { %5888 = vmatpush3.bf16.msra.mxu0 %v9204_v18 }
 0x94f   :  { %5889 = vmatprep.subr.bf16.mxu0 %v10813_v50 }
 0x952   :  { %5891 = vmatpush3.bf16.msra.mxu0 %v9214_v54 }
 0x953   :  { %5957 = vmatprep.subr.bf16.mxu0 %v8051_v44 }
 0x955   :  { %5037 = vmatmul.mubr.f32.vlgmr.msra.gmra.mrb[30].mxu0 %v9384_v53 }
 0x956   :  { %5959 = vmatpush1.bf16.msra.mxu0 %v8086_v56 }
 0x957   :  { %5961 = vmatprep.subr.bf16.mxu0 %v8093_v60 }
 0x95a   :  { %5963 = vmatpush1.bf16.msra.mxu0 %v8121_v6 }
 0x95b   :  { %5965 = vmatprep.subr.bf16.mxu0 %v8130_v9 }
 0x95e   :  { %5967 = vmatpush1.bf16.msra.mxu0 %v8159_v19 }
 0x95f   :  { %5969 = vmatprep.subr.bf16.mxu0 %v8168_v22 }
 0x962   :  { %5971 = vmatpush1.bf16.msra.mxu0 %v8195_v33 }
 0x963   :  { %5973 = vmatprep.subr.bf16.mxu0 %v10902_v40 }
 0x966   :  { %5975 = vmatpush1.bf16.msra.mxu0 %v10903_v45 }
 0x967   :  { %5977 = vmatprep.subr.bf16.mxu0 %v10904_v1 }
 0x96a   :  { %5979 = vmatpush1.bf16.msra.mxu0 %v10905_v62  ;;  %v10916_v62 = vld [vmem:[#allocation49_spill] sm:$0xff] }
 0x96b   :  { %5981 = vmatprep.subr.bf16.mxu0 %v10906_v42  ;;  %v10917_v42 = vld [vmem:[#allocation51_spill] sm:$0xff] }
 0x96e   :  { %5983 = vmatpush1.bf16.msra.mxu0 %v10907_v57  ;;  %v10918_v57 = vld [vmem:[#allocation53_spill] sm:$0xff] }
 0x96f   :  { %5985 = vmatprep.subr.bf16.mxu0 %v10908_v27  ;;  %v10919_v27 = vld [vmem:[#allocation55_spill] sm:$0xff] }
 0x972   :  { %5987 = vmatpush1.bf16.msra.mxu0 %v10909_v58  ;;  %v10920_v58 = vld [vmem:[#allocation57_spill] sm:$0xff] }
 0x973   :  { %5989 = vmatprep.subr.bf16.mxu0 %v10910_v7  ;;  %v10921_v7 = vld [vmem:[#allocation59_spill] sm:$0xff] }
 0x976   :  { %5991 = vmatpush1.bf16.msra.mxu0 %v10911_v16  ;;  %v10922_v16 = vld [vmem:[#allocation61_spill] sm:$0xff] }
 0x977   :  { %5993 = vmatprep.subr.bf16.mxu0 %v10912_v26  ;;  %v10923_v26 = vld [vmem:[#allocation63_spill] sm:$0xff] }
 0x97a   :  { %5995 = vmatpush1.bf16.msra.mxu0 %v10913_v24  ;;  %v10924_v24 = vld [vmem:[#allocation65_spill] sm:$0xff] }
 0x97b   :  { %5997 = vmatprep.subr.bf16.mxu0 %v10914_v30  ;;  %v10925_v30 = vld [vmem:[#allocation67_spill] sm:$0xff] }
 0x97e   :  { %5999 = vmatpush1.bf16.msra.mxu0 %v10915_v34  ;;  %v10926_v34 = vld [vmem:[#allocation84_spill] sm:$0xff] }
 0x97f   :  { %6001 = vmatprep.subr.bf16.mxu0 %v10916_v62 }
 0x982   :  { %6003 = vmatpush1.bf16.msra.mxu0 %v10917_v42  ;;  %v10927_v42 = vld [vmem:[#allocation124_spill] sm:$0xff] }
 0x983   :  { %6005 = vmatprep.subr.bf16.mxu0 %v10918_v57  ;;  %v1770_v57 = vadd.f32 %v9373_v3, %v10927_v42 }
 0x986   :  { %6007 = vmatpush1.bf16.msra.mxu0 %v10919_v27 }
 0x987   :  { %6009 = vmatprep.subr.bf16.mxu0 %v10920_v58  ;;  %v10928_v58 = vld [vmem:[#allocation123_spill] sm:$0xff] }
 0x988   :  { %v1839_v45 = vadd.f32 %v1838_v47, %v10928_v58 }
 0x98a   :  { %6011 = vmatpush1.bf16.msra.mxu0 %v10921_v7 }
 0x98b   :  { %6013 = vmatprep.subr.bf16.mxu0 %v10922_v16 }
 0x98e   :  { %6015 = vmatpush1.bf16.msra.mxu0 %v10923_v26 }
 0x98f   :  { %6017 = vmatprep.subr.bf16.mxu0 %v10924_v24 }
 0x992   :  { %6019 = vmatpush1.bf16.msra.mxu0 %v10925_v30  ;;  %v1841_v30 = vadd.f32 %v1840_v48, %v9276_v10  ;;  %v10931_v48 = vld [vmem:[#allocation95_spill] sm:$0xff] }
 0x993   :  { %6085 = vmatprep.subr.bf16.mxu0 %v10926_v34 }
 0xa08   :  { %v1941_v62 = vpop.f32.mrb[28].mxu0 }
 0xa09   :  { %v1942_v27 = vadd.f32 %v1941_v62, %v9264_v61  ;;  %v1943_v1 = vpop.f32.mrb[29].mxu0 }
 0xa0a   :  { %v1944_v7 = vadd.f32 %v1943_v1, %v9267_v23 }
 0xa0b   :  { %v2016_v16 = vadd.f32 %v1942_v27, %v1770_v57 }
 0xa0c   :  { %v2021_v40 = vadd.f32 %v1944_v7, %v1839_v45 }
 0xa0d   :  { %v2017_v26 = vmul.f32 0.5, %v2016_v16 }
 0xa0e   :  { %v2022_v22 = vmul.f32 0.5, %v2021_v40  ;;  %v10932_v40 = vld [vmem:[#allocation75_spill] sm:$0xff] }
 0xa0f   :  { %7458 = vtanh.f32 %v2017_v26 }
 0xa10   :  { %7460 = vtanh.f32 %v2022_v22 }
 0xa19   :  { %v7459_v24 = vpop.eup %7458 }
 0xa1a   :  { %v2019_v33 = vmul.f32 0.5, %v7459_v24  ;;  %v7461_v42 = vpop.eup %7460  ;;  %v10934_v24 = vld [vmem:[#allocation96_spill] sm:$0xff] }
 0xa1b   :  { %v2024_v1 = vmul.f32 0.5, %v7461_v42  ;;  %v10933_v42 = vld [vmem:[#allocation76_spill] sm:$0xff] }
 0xa1c   :  { %v2020_v34 = vadd.f32 0.5, %v2019_v33 }
 0xa1d   :  { %v2025_v57 = vadd.f32 0.5, %v2024_v1  ;;  %v10940_v1 = vld [vmem:[#allocation104_spill] sm:$0xff] }
 0xa1e   :  { %v2026_v19 = vmul.f32 %v2020_v34, %v1841_v30  ;;  %v10935_v30 = vld [vmem:[#allocation99_spill] sm:$0xff]  ;;  %v10936_v34 = vld [vmem:[#allocation78_spill] sm:$0xff] }
 0xa1f   :  { %v2029_v45 = vsub.f32 1.0, %v2025_v57  ;;  %v2031_v7 = vmul.f32 %v2025_v57, %v9283_v55  ;;  %v10941_v57 = vld [vmem:[#allocation107_spill] sm:$0xff] }
 0xa28   :  { %v2012_v3 = vpop.f32.mrb[30].mxu0 }
 0xa29   :  { %v2013_v62 = vadd.f32 %v2012_v3, %v9280_v39  ;;  %v5038_v61 = vpop.f32.mrb[31].mxu0  ;;  %v10937_v3 = vld [vmem:[#allocation100_spill] sm:$0xff] }
 0xa2a   :  { %v10930_v61 = vld [vmem:[#allocation92_spill] sm:$0xff] }
 0xa2b   :  { %v2027_v47 = vadd.f32 %v2026_v19, %v2013_v62  ;;  %v10929_v19 = vld [vmem:[#allocation74_spill] sm:$0xff]  ;;  %v10938_v62 = vld [vmem:[#allocation79_spill] sm:$0xff] }
 0xa2d   :  { %7462 = vtanh.f32 %v2027_v47  ;;  %v10939_v47 = vld [vmem:[#allocation80_spill] sm:$0xff] }
 0xa37   :  { %v7463_v27 = vpop.eup %7462 }
 0xa38   :  { %v2030_v16 = vmul.f32 %v7463_v27, %v2029_v45  ;;  %v10942_v45 = vld [vmem:[#allocation81_spill] sm:$0xff]  ;;  %v10943_v27 = vld [vmem:[#allocation82_spill] sm:$0xff] }
 0xa3a   :  { %v9446_v26 = vadd.f32 %v2031_v7, %v2030_v16  ;;  %v10944_v7 = vld [vmem:[#allocation108_spill] sm:$0xff]  ;;  %v10945_v16 = vld [vmem:[#allocation111_spill] sm:$0xff] }
 0xa3c   :  { %v10671_v33 = vrot.slane %v9446_v26, 7 }
 0xa3e   :  { %v2035_v22 = vrot.slane %v10671_v33, 1  ;;  %v10947_v33 = vld [vmem:[#allocation85_spill] sm:$0xff] }
 0xa40   :  { %2101 = vmatprep.mubr.f32.mxu1 %v2035_v22  ;;  %2172 = vmatprep.mubr.f32.mxu0 %v2035_v22 }
 0xa41   :  { %2102 = vmatmul.mubr.f32.vlgmr.msra.gmra.mrb[12].mxu1 %v9384_v53  ;;  %2173 = vmatmul.mubr.f32.vlgmr.msra.gmra.mrb[32].mxu0 %v9384_v53 }
 0xa42   :  { %6023 = vmatpush1.bf16.msra.mxu1 %v10838_v37  ;;  %2243 = vmatprep.mubr.f32.mxu1 %v2035_v22  ;;  %v10946_v22 = vld [vmem:[#allocation83_spill] sm:$0xff] }
 0xa43   :  { %6025 = vmatprep.subr.bf16.mxu1 %v10839_v63  ;;  %6087 = vmatpush1.bf16.msra.mxu0 %v8777_v28 }
 0xa44   :  { %6089 = vmatprep.subr.bf16.mxu0 %v10840_v38  ;;  %2345 = vmatprep.mubr.f32.mxu0 %v10765_v17 }
 0xa46   :  { %6027 = vmatpush1.bf16.msra.mxu1 %v10841_v8 }
 0xa47   :  { %6029 = vmatprep.subr.bf16.mxu1 %v10842_v21  ;;  %6091 = vmatpush1.bf16.msra.mxu0 %v10843_v32 }
 0xa48   :  { %6093 = vmatprep.subr.bf16.mxu0 %v10844_v41 }
 0xa4a   :  { %6031 = vmatpush1.bf16.msra.mxu1 %v10845_v13 }
 0xa4b   :  { %6033 = vmatprep.subr.bf16.mxu1 %v10929_v19  ;;  %6095 = vmatpush1.bf16.msra.mxu0 %v10930_v61 }
 0xa4c   :  { %6097 = vmatprep.subr.bf16.mxu0 %v10931_v48 }
 0xa4e   :  { %6035 = vmatpush1.bf16.msra.mxu1 %v10932_v40 }
 0xa4f   :  { %6037 = vmatprep.subr.bf16.mxu1 %v10933_v42  ;;  %6099 = vmatpush1.bf16.msra.mxu0 %v10934_v24 }
 0xa50   :  { %6101 = vmatprep.subr.bf16.mxu0 %v10935_v30 }
 0xa52   :  { %6039 = vmatpush1.bf16.msra.mxu1 %v10853_v52 }
 0xa53   :  { %6041 = vmatprep.subr.bf16.mxu1 %v10936_v34  ;;  %6103 = vmatpush1.bf16.msra.mxu0 %v10937_v3 }
 0xa54   :  { %6105 = vmatprep.subr.bf16.mxu0 %v10856_v36  ;;  %v10948_v36 = vld [vmem:[#allocation112_spill] sm:$0xff] }
 0xa56   :  { %6043 = vmatpush1.bf16.msra.mxu1 %v10938_v62 }
 0xa57   :  { %6045 = vmatprep.subr.bf16.mxu1 %v10939_v47  ;;  %6107 = vmatpush1.bf16.msra.mxu0 %v10940_v1  ;;  %v10949_v47 = vld [vmem:[#allocation86_spill] sm:$0xff]  ;;  %v10950_v1 = vld [vmem:[#allocation89_spill] sm:$0xff] }
 0xa58   :  { %6109 = vmatprep.subr.bf16.mxu0 %v10941_v57 }
 0xa5a   :  { %6047 = vmatpush1.bf16.msra.mxu1 %v10942_v45 }
 0xa5b   :  { %6049 = vmatprep.subr.bf16.mxu1 %v10943_v27  ;;  %6111 = vmatpush1.bf16.msra.mxu0 %v10944_v7 }
 0xa5c   :  { %6113 = vmatprep.subr.bf16.mxu0 %v10945_v16 }
 0xa5e   :  { %6051 = vmatpush1.bf16.msra.mxu1 %v10946_v22  ;;  %v10953_v22 = vld [vmem:[#allocation106_spill] sm:$0xff] }
 0xa5f   :  { %6053 = vmatprep.subr.bf16.mxu1 %v10947_v33  ;;  %6115 = vmatpush1.bf16.msra.mxu0 %v10948_v36  ;;  %v10951_v33 = vld [vmem:[#allocation102_spill] sm:$0xff]  ;;  %v10952_v36 = vld [vmem:[#allocation105_spill] sm:$0xff] }
 0xa60   :  { %6116 = vmatprep.subr.bf16.mxu0 %v10813_v50 }
 0xa62   :  { %6055 = vmatpush1.bf16.msra.mxu1 %v10949_v47  ;;  %v10954_v47 = vld [vmem:[#allocation109_spill] sm:$0xff] }
 0xa63   :  { %6057 = vmatprep.subr.bf16.mxu1 %v10950_v1  ;;  %v10955_v1 = vld [vmem:[#allocation110_spill] sm:$0xff] }
 0xa66   :  { %6059 = vmatpush1.bf16.msra.mxu1 %v10868_v15  ;;  %v10956_v15 = vld [vmem:[#allocation113_spill] sm:$0xff] }
 0xa67   :  { %6061 = vmatprep.subr.bf16.mxu1 %v10869_v0  ;;  %v10957_v0 = vld [vmem:[#allocation114_spill] sm:$0xff] }
 0xa6a   :  { %6063 = vmatpush1.bf16.msra.mxu1 %v10870_v14  ;;  %v10958_v14 = vld [vmem:[#allocation4_spill] sm:$0xff] }
 0xa6b   :  { %6065 = vmatprep.subr.bf16.mxu1 %v10871_v46  ;;  %v10991_v46 = vld [vmem:[#allocation115_spill] sm:$0xff] }
 0xa6e   :  { %6067 = vmatpush1.bf16.msra.mxu1 %v10872_v2  ;;  %v10959_v2 = vld [vmem:[#allocation6_spill] sm:$0xff] }
 0xa6f   :  { %6069 = vmatprep.subr.bf16.mxu1 %v10873_v4  ;;  %v10960_v4 = vld [vmem:[#allocation8_spill] sm:$0xff] }
 0xa72   :  { %6071 = vmatpush1.bf16.msra.mxu1 %v10951_v33  ;;  %v10961_v33 = vld [vmem:[#allocation10_spill] sm:$0xff] }
 0xa73   :  { %6073 = vmatprep.subr.bf16.mxu1 %v10952_v36  ;;  %v10962_v36 = vld [vmem:[#allocation12_spill] sm:$0xff] }
 0xa76   :  { %6075 = vmatpush1.bf16.msra.mxu1 %v10953_v22  ;;  %v10963_v22 = vld [vmem:[#allocation14_spill] sm:$0xff] }
 0xa77   :  { %6077 = vmatprep.subr.bf16.mxu1 %v10954_v47  ;;  %v10964_v47 = vld [vmem:[#allocation16_spill] sm:$0xff] }
 0xa7a   :  { %6079 = vmatpush1.bf16.msra.mxu1 %v10955_v1  ;;  %v10965_v1 = vld [vmem:[#allocation18_spill] sm:$0xff] }
 0xa7b   :  { %6081 = vmatprep.subr.bf16.mxu1 %v10956_v15  ;;  %v10966_v15 = vld [vmem:[#allocation20_spill] sm:$0xff] }
 0xa7e   :  { %6083 = vmatpush1.bf16.msra.mxu1 %v10957_v0  ;;  %v10967_v0 = vld [vmem:[#allocation22_spill] sm:$0xff] }
 0xa7f   :  { %6141 = vmatprep.subr.bf16.mxu1 %v10958_v14  ;;  %v10968_v14 = vld [vmem:[#allocation24_spill] sm:$0xff] }
 0xa81   :  { %2244 = vmatmul.mubr.f32.vlgmr.msra.gmra.mrb[14].mxu1 %v9384_v53  ;;  %v10969_v53 = vld [vmem:[#allocation26_spill] sm:$0xff] }
 0xa82   :  { %6143 = vmatpush1.bf16.msra.mxu1 %v10959_v2  ;;  %v10970_v2 = vld [vmem:[#allocation28_spill] sm:$0xff] }
 0xa83   :  { %6145 = vmatprep.subr.bf16.mxu1 %v10960_v4  ;;  %v10971_v4 = vld [vmem:[#allocation30_spill] sm:$0xff] }
 0xa86   :  { %6147 = vmatpush1.bf16.msra.mxu1 %v10961_v33  ;;  %v10972_v33 = vld [vmem:[#allocation32_spill] sm:$0xff] }
 0xa87   :  { %6149 = vmatprep.subr.bf16.mxu1 %v10962_v36  ;;  %v10973_v36 = vld [vmem:[#allocation34_spill] sm:$0xff] }
 0xa8a   :  { %6151 = vmatpush1.bf16.msra.mxu1 %v10963_v22  ;;  %v10974_v22 = vld [vmem:[#allocation36_spill] sm:$0xff] }
 0xa8b   :  { %6153 = vmatprep.subr.bf16.mxu1 %v10964_v47  ;;  %v10975_v47 = vld [vmem:[#allocation38_spill] sm:$0xff] }
 0xa8e   :  { %6155 = vmatpush1.bf16.msra.mxu1 %v10965_v1  ;;  %v10976_v1 = vld [vmem:[#allocation40_spill] sm:$0xff] }
 0xa8f   :  { %6157 = vmatprep.subr.bf16.mxu1 %v10966_v15  ;;  %v10977_v15 = vld [vmem:[#allocation42_spill] sm:$0xff] }
 0xa92   :  { %6159 = vmatpush1.bf16.msra.mxu1 %v10967_v0  ;;  %v10978_v0 = vld [vmem:[#allocation44_spill] sm:$0xff] }
 0xa93   :  { %6161 = vmatprep.subr.bf16.mxu1 %v10968_v14  ;;  %v10979_v14 = vld [vmem:[#allocation46_spill] sm:$0xff] }
 0xa96   :  { %6163 = vmatpush1.bf16.msra.mxu1 %v10969_v53  ;;  %v10980_v53 = vld [vmem:[#allocation48_spill] sm:$0xff] }
 0xa97   :  { %6165 = vmatprep.subr.bf16.mxu1 %v10970_v2  ;;  %v10981_v2 = vld [vmem:[#allocation50_spill] sm:$0xff] }
 0xa9a   :  { %6167 = vmatpush1.bf16.msra.mxu1 %v10971_v4  ;;  %v10982_v4 = vld [vmem:[#allocation52_spill] sm:$0xff] }
 0xa9b   :  { %6169 = vmatprep.subr.bf16.mxu1 %v10972_v33  ;;  %v10983_v33 = vld [vmem:[#allocation54_spill] sm:$0xff] }
 0xa9e   :  { %6171 = vmatpush1.bf16.msra.mxu1 %v10973_v36  ;;  %v10984_v36 = vld [vmem:[#allocation56_spill] sm:$0xff] }
 0xa9f   :  { %6173 = vmatprep.subr.bf16.mxu1 %v10974_v22  ;;  %v10985_v22 = vld [vmem:[#allocation58_spill] sm:$0xff] }
 0xaa2   :  { %6175 = vmatpush1.bf16.msra.mxu1 %v10975_v47  ;;  %v10986_v47 = vld [vmem:[#allocation60_spill] sm:$0xff] }
 0xaa3   :  { %6177 = vmatprep.subr.bf16.mxu1 %v10976_v1  ;;  %v10987_v1 = vld [vmem:[#allocation62_spill] sm:$0xff] }
 0xaa6   :  { %6179 = vmatpush1.bf16.msra.mxu1 %v10977_v15  ;;  %v10988_v15 = vld [vmem:[#allocation64_spill] sm:$0xff] }
 0xaa7   :  { %6181 = vmatprep.subr.bf16.mxu1 %v10978_v0  ;;  %v10989_v0 = vld [vmem:[#allocation66_spill] sm:$0xff] }
 0xaaa   :  { %6183 = vmatpush1.bf16.msra.mxu1 %v10979_v14  ;;  %v10990_v14 = vld [vmem:[#allocation68_spill] sm:$0xff] }
 0xaab   :  { %6185 = vmatprep.subr.bf16.mxu1 %v10980_v53 }
 0xaae   :  { %6187 = vmatpush1.bf16.msra.mxu1 %v10981_v2 }
 0xaaf   :  { %6189 = vmatprep.subr.bf16.mxu1 %v10982_v4 }
 0xab2   :  { %6191 = vmatpush1.bf16.msra.mxu1 %v10983_v33 }
 0xab3   :  { %6193 = vmatprep.subr.bf16.mxu1 %v10984_v36 }
 0xab6   :  { %6195 = vmatpush1.bf16.msra.mxu1 %v10985_v22 }
 0xab7   :  { %6197 = vmatprep.subr.bf16.mxu1 %v10986_v47 }
 0xaba   :  { %6199 = vmatpush1.bf16.msra.mxu1 %v10987_v1 }
 0xabb   :  { %6201 = vmatprep.subr.bf16.mxu1 %v10988_v15 }
 0xabe   :  { %6203 = vmatpush1.bf16.msra.mxu1 %v10989_v0 }
 0xabf   :  { %6269 = vmatprep.subr.bf16.mxu1 %v10990_v14 }
 0xb14   :  { %v2103_v53 = vpop.f32.mrb[12].mxu1  ;;  %v2174_v2 = vpop.f32.mrb[32].mxu0 }
 0xb15   :  { %v2104_v4 = vadd.f32 %v2103_v53, %v10991_v46  ;;  %v2105_v16 = vpop.f32.mrb[13].mxu1  ;;  %v9536_v33 = vpop.f32.mrb[33].mxu0  ;;  %v2175_v14 = vadd.f32 %v2174_v2, %v9127_v29 }
 0xb16   :  { %v2106_v36 = vadd.f32 %v2105_v16, %v9109_v5 }
 0xb17   :  { %v2251_v22 = vrot.slane %v2104_v4, 6  ;;  %v2267_v62 = vrot.slane %v2175_v14, 6  ;;  %v2274_v4 = vrot.slane %v9381_v43, 7  ;;  %v10993_v43 = vld [vmem:[#allocation17_spill] sm:$0xff] }
 0xb18   :  { %v2259_v7 = vrot.slane %v2106_v36, 6 }
 0xb19   :  { %v2253_v47 = vadd.f32 %v2251_v22, %v10900_v20 }
 0xb1a   :  { %v2261_v1 = vadd.f32 %v2259_v7, %v10901_v49  ;;  %v10998_v7 = vld [vmem:[#allocation27_spill] sm:$0xff] }
 0xb1b   :  { %v2254_v15 = vmul.f32 0.5, %v2253_v47 }
 0xb1c   :  { %v2262_v27 = vmul.f32 0.5, %v2261_v1 }
 0xb1d   :  { %7464 = vtanh.f32 %v2254_v15 }
 0xb1e   :  { %7466 = vtanh.f32 %v2262_v27 }
 0xb27   :  { %v7465_v0 = vpop.eup %7464 }
 0xb28   :  { %v7467_v45 = vpop.eup %7466  ;;  %v2256_v53 = vmul.f32 0.5, %v7465_v0 }
 0xb29   :  { %v2264_v46 = vmul.f32 0.5, %v7467_v45  ;;  %v10997_v45 = vld [vmem:[#allocation25_spill] sm:$0xff] }
 0xb2a   :  { %v2257_v57 = vadd.f32 0.5, %v2256_v53  ;;  %v10999_v53 = vld [vmem:[#allocation29_spill] sm:$0xff] }
 0xb2b   :  { %v2265_v3 = vadd.f32 0.5, %v2264_v46  ;;  %v10992_v46 = vld [vmem:[#allocation15_spill] sm:$0xff] }
 0xb2c   :  { %v2269_v36 = vmul.f32 %v2267_v62, %v2257_v57  ;;  %v10995_v62 = vld [vmem:[#allocation21_spill] sm:$0xff]  ;;  %v10996_v57 = vld [vmem:[#allocation23_spill] sm:$0xff] }
 0xb2d   :  { %v2276_v16 = vmul.f32 %v2274_v4, %v2265_v3  ;;  %v2272_v47 = vsub.f32 1.0, %v2265_v3  ;;  %v10994_v3 = vld [vmem:[#allocation19_spill] sm:$0xff] }
 0xb2e   :  { %v2270_v22 = vadd.f32 %v2269_v36, %v9131_v51  ;;  %v11000_v4 = vld [vmem:[#allocation31_spill] sm:$0xff]  ;;  %v11001_v36 = vld [vmem:[#allocation33_spill] sm:$0xff] }
 0xb30   :  { %7468 = vtanh.f32 %v2270_v22  ;;  %v11003_v22 = vld [vmem:[#allocation37_spill] sm:$0xff] }
 0xb3a   :  { %v7469_v1 = vpop.eup %7468 }
 0xb3b   :  { %v2273_v15 = vmul.f32 %v7469_v1, %v2272_v47  ;;  %v11004_v47 = vld [vmem:[#allocation39_spill] sm:$0xff]  ;;  %v11005_v1 = vld [vmem:[#allocation41_spill] sm:$0xff] }
 0xb3d   :  { %v9544_v27 = vadd.f32 %v2276_v16, %v2273_v15  ;;  %v11002_v16 = vld [vmem:[#allocation35_spill] sm:$0xff] }
 0xb3e   :  { %v11006_v15 = vld [vmem:[#allocation43_spill] sm:$0xff] }
 0xb3f   :  { %v9547_v2 = vrot.slane %v9544_v27, 2 }
 0xb41   :  { %2346 = vmatmul.mubr.f32.vlgmr.msra.gmra.mrb[34].mxu0 %v9547_v2 }
 0xb42   :  { %6118 = vmatpush3.bf16.msra.mxu0 %v9140_v25  ;;  %5071 = vmatprep.mubr.msk.f32.mxu0 %vm7544_vm1, %v10765_v17 }
 0xb43   :  { %6119 = vmatprep.subr.bf16.mxu0 %v10813_v50 }
 0xb46   :  { %6121 = vmatpush3.bf16.msra.mxu0 %v9152_v59 }
 0xb47   :  { %6122 = vmatprep.subr.bf16.mxu0 %v10813_v50 }
 0xb4a   :  { %6124 = vmatpush3.bf16.msra.mxu0 %v9164_v31 }
 0xb4b   :  { %6125 = vmatprep.subr.bf16.mxu0 %v10813_v50 }
 0xb4e   :  { %6127 = vmatpush3.bf16.msra.mxu0 %v9174_v12 }
 0xb4f   :  { %6128 = vmatprep.subr.bf16.mxu0 %v10813_v50 }
 0xb52   :  { %6130 = vmatpush3.bf16.msra.mxu0 %v9184_v11 }
 0xb53   :  { %6131 = vmatprep.subr.bf16.mxu0 %v10813_v50 }
 0xb54   :  { %v2245_v0 = vpop.f32.mrb[14].mxu1 }
 0xb55   :  { %v2247_v14 = vpop.f32.mrb[15].mxu1 }
 0xb56   :  { %6133 = vmatpush3.bf16.msra.mxu0 %v9194_v35 }
 0xb57   :  { %6134 = vmatprep.subr.bf16.mxu0 %v10813_v50 }
 0xb5a   :  { %6136 = vmatpush3.bf16.msra.mxu0 %v9204_v18 }
 0xb5b   :  { %6137 = vmatprep.subr.bf16.mxu0 %v10813_v50 }
 0xb5e   :  { %6139 = vmatpush3.bf16.msra.mxu0 %v9214_v54 }
 0xb5f   :  { %6205 = vmatprep.subr.bf16.mxu0 %v8051_v44 }
 0xb61   :  { %5072 = vmatmul.mubr.f32.vlgmr.msra.gmra.mrb[36].mxu0 %v9547_v2 }
 0xb62   :  { %6207 = vmatpush1.bf16.msra.mxu0 %v8086_v56 }
 0xb63   :  { %6209 = vmatprep.subr.bf16.mxu0 %v8093_v60 }
 0xb66   :  { %6211 = vmatpush1.bf16.msra.mxu0 %v8121_v6 }
 0xb67   :  { %6213 = vmatprep.subr.bf16.mxu0 %v8130_v9 }
 0xb6a   :  { %6215 = vmatpush1.bf16.msra.mxu0 %v10992_v46 }
 0xb6b   :  { %6217 = vmatprep.subr.bf16.mxu0 %v10993_v43 }
 0xb6e   :  { %6219 = vmatpush1.bf16.msra.mxu0 %v10994_v3 }
 0xb6f   :  { %6221 = vmatprep.subr.bf16.mxu0 %v10995_v62  ;;  %v11021_v62 = vld [vmem:[#allocation125_spill] sm:$0xff] }
 0xb72   :  { %6223 = vmatpush1.bf16.msra.mxu0 %v10996_v57  ;;  %v11007_v57 = vld [vmem:[#allocation45_spill] sm:$0xff] }
 0xb73   :  { %6225 = vmatprep.subr.bf16.mxu0 %v10997_v45  ;;  %v11008_v45 = vld [vmem:[#allocation47_spill] sm:$0xff] }
 0xb76   :  { %6227 = vmatpush1.bf16.msra.mxu0 %v10998_v7  ;;  %v11009_v7 = vld [vmem:[#allocation49_spill] sm:$0xff] }
 0xb77   :  { %6229 = vmatprep.subr.bf16.mxu0 %v10999_v53  ;;  %v11010_v53 = vld [vmem:[#allocation51_spill] sm:$0xff] }
 0xb7a   :  { %6231 = vmatpush1.bf16.msra.mxu0 %v11000_v4  ;;  %v11011_v4 = vld [vmem:[#allocation53_spill] sm:$0xff] }
 0xb7b   :  { %6233 = vmatprep.subr.bf16.mxu0 %v11001_v36  ;;  %v11012_v36 = vld [vmem:[#allocation55_spill] sm:$0xff] }
 0xb7e   :  { %6235 = vmatpush1.bf16.msra.mxu0 %v11002_v16  ;;  %v11013_v16 = vld [vmem:[#allocation57_spill] sm:$0xff] }
 0xb7f   :  { %6237 = vmatprep.subr.bf16.mxu0 %v11003_v22  ;;  %v11014_v22 = vld [vmem:[#allocation59_spill] sm:$0xff] }
 0xb82   :  { %6239 = vmatpush1.bf16.msra.mxu0 %v11004_v47  ;;  %v11015_v47 = vld [vmem:[#allocation61_spill] sm:$0xff] }
 0xb83   :  { %6241 = vmatprep.subr.bf16.mxu0 %v11005_v1  ;;  %v11016_v1 = vld [vmem:[#allocation63_spill] sm:$0xff] }
 0xb86   :  { %6243 = vmatpush1.bf16.msra.mxu0 %v11006_v15  ;;  %v11017_v15 = vld [vmem:[#allocation65_spill] sm:$0xff] }
 0xb87   :  { %6245 = vmatprep.subr.bf16.mxu0 %v11007_v57  ;;  %v11018_v57 = vld [vmem:[#allocation67_spill] sm:$0xff] }
 0xb8a   :  { %6247 = vmatpush1.bf16.msra.mxu0 %v11008_v45  ;;  %v11019_v45 = vld [vmem:[#allocation84_spill] sm:$0xff] }
 0xb8b   :  { %6249 = vmatprep.subr.bf16.mxu0 %v11009_v7 }
 0xb8e   :  { %6251 = vmatpush1.bf16.msra.mxu0 %v11010_v53  ;;  %v11020_v53 = vld [vmem:[#allocation124_spill] sm:$0xff] }
 0xb8f   :  { %6253 = vmatprep.subr.bf16.mxu0 %v11011_v4  ;;  %v2177_v4 = vadd.f32 %v9536_v33, %v11020_v53 }
 0xb92   :  { %6255 = vmatpush1.bf16.msra.mxu0 %v11012_v36 }
 0xb93   :  { %6257 = vmatprep.subr.bf16.mxu0 %v11013_v16  ;;  %v2246_v16 = vadd.f32 %v2245_v0, %v10928_v58 }
 0xb96   :  { %6259 = vmatpush1.bf16.msra.mxu0 %v11014_v22 }
 0xb97   :  { %6261 = vmatprep.subr.bf16.mxu0 %v11015_v47 }
 0xb9a   :  { %6263 = vmatpush1.bf16.msra.mxu0 %v11016_v1 }
 0xb9b   :  { %6265 = vmatprep.subr.bf16.mxu0 %v11017_v15 }
 0xb9e   :  { %6267 = vmatpush1.bf16.msra.mxu0 %v11018_v57  ;;  %v2248_v57 = vadd.f32 %v2247_v14, %v9276_v10 }
 0xb9f   :  { %6333 = vmatprep.subr.bf16.mxu0 %v11019_v45 }
 0xc14   :  { %v2347_v7 = vpop.f32.mrb[34].mxu0 }
 0xc15   :  { %v2348_v36 = vadd.f32 %v2347_v7, %v11021_v62  ;;  %v2349_v3 = vpop.f32.mrb[35].mxu0 }
 0xc16   :  { %v2350_v22 = vadd.f32 %v2349_v3, %v9267_v23 }
 0xc17   :  { %v2422_v47 = vadd.f32 %v2348_v36, %v2177_v4 }
 0xc18   :  { %v2427_v43 = vadd.f32 %v2350_v22, %v2246_v16 }
 0xc19   :  { %v2423_v1 = vmul.f32 0.5, %v2422_v47 }
 0xc1a   :  { %v2428_v9 = vmul.f32 0.5, %v2427_v43 }
 0xc1b   :  { %7470 = vtanh.f32 %v2423_v1  ;;  %v11028_v1 = vld [vmem:[#allocation107_spill] sm:$0xff] }
 0xc1c   :  { %7472 = vtanh.f32 %v2428_v9 }
 0xc25   :  { %v7471_v15 = vpop.eup %7470 }
 0xc26   :  { %v2425_v46 = vmul.f32 0.5, %v7471_v15  ;;  %v7473_v53 = vpop.eup %7472  ;;  %v11029_v15 = vld [vmem:[#allocation81_spill] sm:$0xff] }
 0xc27   :  { %v2430_v3 = vmul.f32 0.5, %v7473_v53  ;;  %v11027_v53 = vld [vmem:[#allocation104_spill] sm:$0xff] }
 0xc28   :  { %v2426_v45 = vadd.f32 0.5, %v2425_v46  ;;  %v11022_v46 = vrot.slane %v9446_v26, 7 }
 0xc29   :  { %v2431_v4 = vadd.f32 0.5, %v2430_v3  ;;  %v11033_v3 = vld [vmem:[#allocation83_spill] sm:$0xff] }
 0xc2a   :  { %v2432_v6 = vmul.f32 %v2426_v45, %v2248_v57  ;;  %v4479_v43 = vsel %vm4478_vm4, %v9283_v55, %v11022_v46  ;;  %v11023_v55 = vld [vmem:[#allocation100_spill] sm:$0xff]  ;;  %v11025_v57 = vld [vmem:[#allocation79_spill] sm:$0xff]  ;;  %v11040_v46 = vld [vmem:[#allocation94_spill] sm:$0xff] }
 0xc2b   :  { %v2435_v36 = vsub.f32 1.0, %v2431_v4  ;;  %v2437_v22 = vmul.f32 %v2431_v4, %v9446_v26  ;;  %v11024_v26 = vld [vmem:[#allocation103_spill] sm:$0xff]  ;;  %v11026_v45 = vld [vmem:[#allocation80_spill] sm:$0xff]  ;;  %v11034_v4 = vld [vmem:[#allocation85_spill] sm:$0xff] }
 0xc34   :  { %v2418_v33 = vpop.f32.mrb[36].mxu0 }
 0xc35   :  { %v2419_v7 = vadd.f32 %v2418_v33, %v9280_v39  ;;  %v5073_v62 = vpop.f32.mrb[37].mxu0  ;;  %v11030_v33 = vld [vmem:[#allocation82_spill] sm:$0xff] }
 0xc37   :  { %v2433_v0 = vadd.f32 %v2432_v6, %v2419_v7  ;;  %v11031_v7 = vld [vmem:[#allocation108_spill] sm:$0xff] }
 0xc39   :  { %7474 = vtanh.f32 %v2433_v0  ;;  %v11032_v0 = vld [vmem:[#allocation111_spill] sm:$0xff] }
 0xc43   :  { %v7475_v16 = vpop.eup %7474 }
 0xc44   :  { %v2436_v47 = vmul.f32 %v7475_v16, %v2435_v36  ;;  %v11035_v36 = vld [vmem:[#allocation112_spill] sm:$0xff]  ;;  %v11036_v16 = vld [vmem:[#allocation86_spill] sm:$0xff] }
 0xc46   :  { %v9609_v14 = vadd.f32 %v2437_v22, %v2436_v47  ;;  %v11037_v22 = vld [vmem:[#allocation89_spill] sm:$0xff]  ;;  %v11038_v47 = vld [vmem:[#allocation90_spill] sm:$0xff] }
 0xc48   :  { %v2440_v9 = vrot.slane %v9609_v14, 6 }
 0xc4a   :  { %v2441_v62 = vrot.slane %v2440_v9, 2  ;;  %v9615_v6 = vsel %vm4480_vm5, %v4479_v43, %v2440_v9  ;;  %v11039_v9 = vld [vmem:[#allocation93_spill] sm:$0xff] }
 0xc4b   :  { %v11041_v43 = vld [vmem:[#allocation97_spill] sm:$0xff] }
 0xc4c   :  { %2507 = vmatprep.mubr.f32.mxu1 %v2441_v62  ;;  %2578 = vmatprep.mubr.f32.mxu0 %v2441_v62 }
 0xc4d   :  { %2508 = vmatmul.mubr.f32.vlgmr.msra.gmra.mrb[16].mxu1 %v9547_v2  ;;  %2579 = vmatmul.mubr.f32.vlgmr.msra.gmra.mrb[38].mxu0 %v9547_v2 }
 0xc4e   :  { %6271 = vmatpush1.bf16.msra.mxu1 %v10838_v37  ;;  %2649 = vmatprep.mubr.f32.mxu1 %v2441_v62  ;;  %v11042_v62 = vld [vmem:[#allocation98_spill] sm:$0xff] }
 0xc4f   :  { %6273 = vmatprep.subr.bf16.mxu1 %v10839_v63  ;;  %6335 = vmatpush1.bf16.msra.mxu0 %v8777_v28 }
 0xc50   :  { %6337 = vmatprep.subr.bf16.mxu0 %v10840_v38  ;;  %2751 = vmatprep.mubr.f32.mxu0 %v10765_v17 }
 0xc52   :  { %6275 = vmatpush1.bf16.msra.mxu1 %v10841_v8 }
 0xc53   :  { %6277 = vmatprep.subr.bf16.mxu1 %v10842_v21  ;;  %6339 = vmatpush1.bf16.msra.mxu0 %v10843_v32 }
 0xc54   :  { %6341 = vmatprep.subr.bf16.mxu0 %v10844_v41 }
 0xc56   :  { %6279 = vmatpush1.bf16.msra.mxu1 %v10845_v13 }
 0xc57   :  { %6281 = vmatprep.subr.bf16.mxu1 %v10929_v19  ;;  %6343 = vmatpush1.bf16.msra.mxu0 %v10930_v61 }
 0xc58   :  { %6345 = vmatprep.subr.bf16.mxu0 %v10931_v48 }
 0xc5a   :  { %6283 = vmatpush1.bf16.msra.mxu1 %v10932_v40 }
 0xc5b   :  { %6285 = vmatprep.subr.bf16.mxu1 %v10933_v42  ;;  %6347 = vmatpush1.bf16.msra.mxu0 %v10934_v24 }
 0xc5c   :  { %6349 = vmatprep.subr.bf16.mxu0 %v10935_v30 }
 0xc5e   :  { %6287 = vmatpush1.bf16.msra.mxu1 %v10853_v52 }
 0xc5f   :  { %6289 = vmatprep.subr.bf16.mxu1 %v10936_v34  ;;  %6351 = vmatpush1.bf16.msra.mxu0 %v11023_v55 }
 0xc60   :  { %6353 = vmatprep.subr.bf16.mxu0 %v11024_v26 }
 0xc62   :  { %6291 = vmatpush1.bf16.msra.mxu1 %v11025_v57 }
 0xc63   :  { %6293 = vmatprep.subr.bf16.mxu1 %v11026_v45  ;;  %6355 = vmatpush1.bf16.msra.mxu0 %v11027_v53 }
 0xc64   :  { %6357 = vmatprep.subr.bf16.mxu0 %v11028_v1 }
 0xc66   :  { %6295 = vmatpush1.bf16.msra.mxu1 %v11029_v15 }
 0xc67   :  { %6297 = vmatprep.subr.bf16.mxu1 %v11030_v33  ;;  %6359 = vmatpush1.bf16.msra.mxu0 %v11031_v7 }
 0xc68   :  { %6361 = vmatprep.subr.bf16.mxu0 %v11032_v0  ;;  %v11046_v0 = vld [vmem:[#allocation106_spill] sm:$0xff] }
 0xc6a   :  { %6299 = vmatpush1.bf16.msra.mxu1 %v11033_v3  ;;  %v11043_v3 = vld [vmem:[#allocation101_spill] sm:$0xff] }
 0xc6b   :  { %6301 = vmatprep.subr.bf16.mxu1 %v11034_v4  ;;  %6363 = vmatpush1.bf16.msra.mxu0 %v11035_v36  ;;  %v11044_v4 = vld [vmem:[#allocation102_spill] sm:$0xff]  ;;  %v11045_v36 = vld [vmem:[#allocation105_spill] sm:$0xff] }
 0xc6c   :  { %6364 = vmatprep.subr.bf16.mxu0 %v10813_v50 }
 0xc6e   :  { %6303 = vmatpush1.bf16.msra.mxu1 %v11036_v16  ;;  %v11047_v16 = vld [vmem:[#allocation109_spill] sm:$0xff] }
 0xc6f   :  { %6305 = vmatprep.subr.bf16.mxu1 %v11037_v22  ;;  %v11048_v22 = vld [vmem:[#allocation110_spill] sm:$0xff] }
 0xc72   :  { %6307 = vmatpush1.bf16.msra.mxu1 %v11038_v47  ;;  %v11049_v47 = vld [vmem:[#allocation113_spill] sm:$0xff] }
 0xc73   :  { %6309 = vmatprep.subr.bf16.mxu1 %v11039_v9  ;;  %v11050_v9 = vld [vmem:[#allocation114_spill] sm:$0xff] }
 0xc76   :  { %6311 = vmatpush1.bf16.msra.mxu1 %v11040_v46  ;;  %v11051_v46 = vld [vmem:[#allocation4_spill] sm:$0xff] }
 0xc77   :  { %6313 = vmatprep.subr.bf16.mxu1 %v11041_v43  ;;  %v11084_v43 = vld [vmem:[#allocation115_spill] sm:$0xff] }
 0xc7a   :  { %6315 = vmatpush1.bf16.msra.mxu1 %v11042_v62  ;;  %v11052_v62 = vld [vmem:[#allocation6_spill] sm:$0xff] }
 0xc7b   :  { %6317 = vmatprep.subr.bf16.mxu1 %v11043_v3  ;;  %v11053_v3 = vld [vmem:[#allocation8_spill] sm:$0xff] }
 0xc7e   :  { %6319 = vmatpush1.bf16.msra.mxu1 %v11044_v4  ;;  %v11054_v4 = vld [vmem:[#allocation10_spill] sm:$0xff] }
 0xc7f   :  { %6321 = vmatprep.subr.bf16.mxu1 %v11045_v36  ;;  %v11055_v36 = vld [vmem:[#allocation12_spill] sm:$0xff] }
 0xc82   :  { %6323 = vmatpush1.bf16.msra.mxu1 %v11046_v0  ;;  %v11056_v0 = vld [vmem:[#allocation14_spill] sm:$0xff] }
 0xc83   :  { %6325 = vmatprep.subr.bf16.mxu1 %v11047_v16  ;;  %v11057_v16 = vld [vmem:[#allocation16_spill] sm:$0xff] }
 0xc86   :  { %6327 = vmatpush1.bf16.msra.mxu1 %v11048_v22  ;;  %v11058_v22 = vld [vmem:[#allocation18_spill] sm:$0xff] }
 0xc87   :  { %6329 = vmatprep.subr.bf16.mxu1 %v11049_v47  ;;  %v11059_v47 = vld [vmem:[#allocation20_spill] sm:$0xff] }
 0xc8a   :  { %6331 = vmatpush1.bf16.msra.mxu1 %v11050_v9  ;;  %v11060_v9 = vld [vmem:[#allocation22_spill] sm:$0xff] }
 0xc8b   :  { %6389 = vmatprep.subr.bf16.mxu1 %v11051_v46  ;;  %v11061_v46 = vld [vmem:[#allocation24_spill] sm:$0xff] }
 0xc8d   :  { %2650 = vmatmul.mubr.f32.vlgmr.msra.gmra.mrb[18].mxu1 %v9547_v2  ;;  %v11062_v2 = vld [vmem:[#allocation26_spill] sm:$0xff] }
 0xc8e   :  { %6391 = vmatpush1.bf16.msra.mxu1 %v11052_v62  ;;  %v11063_v62 = vld [vmem:[#allocation28_spill] sm:$0xff] }
 0xc8f   :  { %6393 = vmatprep.subr.bf16.mxu1 %v11053_v3  ;;  %v11064_v3 = vld [vmem:[#allocation30_spill] sm:$0xff] }
 0xc92   :  { %6395 = vmatpush1.bf16.msra.mxu1 %v11054_v4  ;;  %v11065_v4 = vld [vmem:[#allocation32_spill] sm:$0xff] }
 0xc93   :  { %6397 = vmatprep.subr.bf16.mxu1 %v11055_v36  ;;  %v11066_v36 = vld [vmem:[#allocation34_spill] sm:$0xff] }
 0xc96   :  { %6399 = vmatpush1.bf16.msra.mxu1 %v11056_v0  ;;  %v11067_v0 = vld [vmem:[#allocation36_spill] sm:$0xff] }
 0xc97   :  { %6401 = vmatprep.subr.bf16.mxu1 %v11057_v16  ;;  %v11068_v16 = vld [vmem:[#allocation38_spill] sm:$0xff] }
 0xc9a   :  { %6403 = vmatpush1.bf16.msra.mxu1 %v11058_v22  ;;  %v11069_v22 = vld [vmem:[#allocation40_spill] sm:$0xff] }
 0xc9b   :  { %6405 = vmatprep.subr.bf16.mxu1 %v11059_v47  ;;  %v11070_v47 = vld [vmem:[#allocation42_spill] sm:$0xff] }
 0xc9e   :  { %6407 = vmatpush1.bf16.msra.mxu1 %v11060_v9  ;;  %v11071_v9 = vld [vmem:[#allocation44_spill] sm:$0xff] }
 0xc9f   :  { %6409 = vmatprep.subr.bf16.mxu1 %v11061_v46  ;;  %v11072_v46 = vld [vmem:[#allocation46_spill] sm:$0xff] }
 0xca2   :  { %6411 = vmatpush1.bf16.msra.mxu1 %v11062_v2  ;;  %v11073_v2 = vld [vmem:[#allocation48_spill] sm:$0xff] }
 0xca3   :  { %6413 = vmatprep.subr.bf16.mxu1 %v11063_v62  ;;  %v11074_v62 = vld [vmem:[#allocation50_spill] sm:$0xff] }
 0xca6   :  { %6415 = vmatpush1.bf16.msra.mxu1 %v11064_v3  ;;  %v11075_v3 = vld [vmem:[#allocation52_spill] sm:$0xff] }
 0xca7   :  { %6417 = vmatprep.subr.bf16.mxu1 %v11065_v4  ;;  %v11076_v4 = vld [vmem:[#allocation54_spill] sm:$0xff] }
 0xcaa   :  { %6419 = vmatpush1.bf16.msra.mxu1 %v11066_v36  ;;  %v11077_v36 = vld [vmem:[#allocation56_spill] sm:$0xff] }
 0xcab   :  { %6421 = vmatprep.subr.bf16.mxu1 %v11067_v0  ;;  %v11078_v0 = vld [vmem:[#allocation58_spill] sm:$0xff] }
 0xcae   :  { %6423 = vmatpush1.bf16.msra.mxu1 %v11068_v16  ;;  %v11079_v16 = vld [vmem:[#allocation60_spill] sm:$0xff] }
 0xcaf   :  { %6425 = vmatprep.subr.bf16.mxu1 %v11069_v22  ;;  %v11080_v22 = vld [vmem:[#allocation62_spill] sm:$0xff] }
 0xcb2   :  { %6427 = vmatpush1.bf16.msra.mxu1 %v11070_v47  ;;  %v11081_v47 = vld [vmem:[#allocation64_spill] sm:$0xff] }
 0xcb3   :  { %6429 = vmatprep.subr.bf16.mxu1 %v11071_v9  ;;  %v11082_v9 = vld [vmem:[#allocation66_spill] sm:$0xff] }
 0xcb6   :  { %6431 = vmatpush1.bf16.msra.mxu1 %v11072_v46  ;;  %v11083_v46 = vld [vmem:[#allocation68_spill] sm:$0xff] }
 0xcb7   :  { %6433 = vmatprep.subr.bf16.mxu1 %v11073_v2 }
 0xcba   :  { %6435 = vmatpush1.bf16.msra.mxu1 %v11074_v62 }
 0xcbb   :  { %6437 = vmatprep.subr.bf16.mxu1 %v11075_v3 }
 0xcbe   :  { %6439 = vmatpush1.bf16.msra.mxu1 %v11076_v4 }
 0xcbf   :  { %6441 = vmatprep.subr.bf16.mxu1 %v11077_v36 }
 0xcc2   :  { %6443 = vmatpush1.bf16.msra.mxu1 %v11078_v0 }
 0xcc3   :  { %6445 = vmatprep.subr.bf16.mxu1 %v11079_v16 }
 0xcc6   :  { %6447 = vmatpush1.bf16.msra.mxu1 %v11080_v22 }
 0xcc7   :  { %6449 = vmatprep.subr.bf16.mxu1 %v11081_v47 }
 0xcca   :  { %6451 = vmatpush1.bf16.msra.mxu1 %v11082_v9 }
 0xccb   :  { %6517 = vmatprep.subr.bf16.mxu1 %v11083_v46 }
 0xd20   :  { %v2509_v2 = vpop.f32.mrb[16].mxu1  ;;  %v2580_v62 = vpop.f32.mrb[38].mxu0 }
 0xd21   :  { %v2510_v3 = vadd.f32 %v2509_v2, %v11084_v43  ;;  %v2511_v7 = vpop.f32.mrb[17].mxu1  ;;  %v9702_v4 = vpop.f32.mrb[39].mxu0  ;;  %v2581_v46 = vadd.f32 %v2580_v62, %v9127_v29  ;;  %v11091_v62 = vld [vmem:[#allocation23_spill] sm:$0xff] }
 0xd22   :  { %v2512_v36 = vadd.f32 %v2511_v7, %v9109_v5  ;;  %v2680_v7 = vrot.slane %v9544_v27, 7 }
 0xd23   :  { %v2657_v0 = vrot.slane %v2510_v3, 5  ;;  %v2673_v45 = vrot.slane %v2581_v46, 5  ;;  %v11089_v46 = vld [vmem:[#allocation19_spill] sm:$0xff] }
 0xd24   :  { %v2665_v33 = vrot.slane %v2512_v36, 5 }
 0xd25   :  { %v2659_v16 = vadd.f32 %v2657_v0, %v10900_v20 }
 0xd26   :  { %v2667_v22 = vadd.f32 %v2665_v33, %v10901_v49 }
 0xd27   :  { %v2660_v47 = vmul.f32 0.5, %v2659_v16 }
 0xd28   :  { %v2668_v15 = vmul.f32 0.5, %v2667_v22 }
 0xd29   :  { %7476 = vtanh.f32 %v2660_v47 }
 0xd2a   :  { %7478 = vtanh.f32 %v2668_v15 }
 0xd33   :  { %v7477_v9 = vpop.eup %7476 }
 0xd34   :  { %v7479_v1 = vpop.eup %7478  ;;  %v2662_v2 = vmul.f32 0.5, %v7477_v9  ;;  %v11088_v9 = vld [vmem:[#allocation17_spill] sm:$0xff] }
 0xd35   :  { %v2670_v43 = vmul.f32 0.5, %v7479_v1  ;;  %v11087_v1 = vld [vmem:[#allocation15_spill] sm:$0xff] }
 0xd36   :  { %v2663_v53 = vadd.f32 0.5, %v2662_v2  ;;  %v11092_v2 = vld [vmem:[#allocation25_spill] sm:$0xff] }
 0xd37   :  { %v2671_v57 = vadd.f32 0.5, %v2670_v43  ;;  %v11090_v43 = vld [vmem:[#allocation21_spill] sm:$0xff] }
 0xd38   :  { %v2675_v3 = vmul.f32 %v2673_v45, %v2663_v53  ;;  %v11085_v45 = vld [vmem:[#allocation11_spill] sm:$0xff]  ;;  %v11086_v53 = vld [vmem:[#allocation13_spill] sm:$0xff] }
 0xd39   :  { %v2682_v36 = vmul.f32 %v2680_v7, %v2671_v57  ;;  %v2678_v33 = vsub.f32 1.0, %v2671_v57  ;;  %v11093_v7 = vld [vmem:[#allocation27_spill] sm:$0xff] }
 0xd3a   :  { %v2676_v0 = vadd.f32 %v2675_v3, %v9131_v51  ;;  %v11094_v3 = vld [vmem:[#allocation29_spill] sm:$0xff] }
 0xd3c   :  { %7480 = vtanh.f32 %v2676_v0  ;;  %v11096_v0 = vld [vmem:[#allocation33_spill] sm:$0xff] }
 0xd46   :  { %v7481_v16 = vpop.eup %7480 }
 0xd47   :  { %v2679_v22 = vmul.f32 %v7481_v16, %v2678_v33  ;;  %v11097_v33 = vld [vmem:[#allocation35_spill] sm:$0xff]  ;;  %v11098_v16 = vld [vmem:[#allocation37_spill] sm:$0xff] }
 0xd49   :  { %v9710_v15 = vadd.f32 %v2682_v36, %v2679_v22  ;;  %v11095_v36 = vld [vmem:[#allocation31_spill] sm:$0xff] }
 0xd4a   :  { %v11099_v22 = vld [vmem:[#allocation39_spill] sm:$0xff] }
 0xd4b   :  { %v9713_v47 = vrot.slane %v9710_v15, 3 }
 0xd4d   :  { %2752 = vmatmul.mubr.f32.vlgmr.msra.gmra.mrb[40].mxu0 %v9713_v47 }
 0xd4e   :  { %6366 = vmatpush3.bf16.msra.mxu0 %v9140_v25  ;;  %5106 = vmatprep.mubr.msk.f32.mxu0 %vm7544_vm1, %v10765_v17 }
 0xd4f   :  { %6367 = vmatprep.subr.bf16.mxu0 %v10813_v50 }
 0xd52   :  { %6369 = vmatpush3.bf16.msra.mxu0 %v9152_v59 }
 0xd53   :  { %6370 = vmatprep.subr.bf16.mxu0 %v10813_v50 }
 0xd56   :  { %6372 = vmatpush3.bf16.msra.mxu0 %v9164_v31 }
 0xd57   :  { %6373 = vmatprep.subr.bf16.mxu0 %v10813_v50 }
 0xd5a   :  { %6375 = vmatpush3.bf16.msra.mxu0 %v9174_v12 }
 0xd5b   :  { %6376 = vmatprep.subr.bf16.mxu0 %v10813_v50 }
 0xd5e   :  { %6378 = vmatpush3.bf16.msra.mxu0 %v9184_v11 }
 0xd5f   :  { %6379 = vmatprep.subr.bf16.mxu0 %v10813_v50 }
 0xd60   :  { %v2651_v27 = vpop.f32.mrb[18].mxu1 }
 0xd61   :  { %v2653_v57 = vpop.f32.mrb[19].mxu1 }
 0xd62   :  { %6381 = vmatpush3.bf16.msra.mxu0 %v9194_v35 }
 0xd63   :  { %6382 = vmatprep.subr.bf16.mxu0 %v10813_v50 }
 0xd66   :  { %6384 = vmatpush3.bf16.msra.mxu0 %v9204_v18 }
 0xd67   :  { %6385 = vmatprep.subr.bf16.mxu0 %v10813_v50 }
 0xd6a   :  { %6387 = vmatpush3.bf16.msra.mxu0 %v9214_v54 }
 0xd6b   :  { %6453 = vmatprep.subr.bf16.mxu0 %v8051_v44 }
 0xd6d   :  { %5107 = vmatmul.mubr.f32.vlgmr.msra.gmra.mrb[42].mxu0 %v9713_v47 }
 0xd6e   :  { %6455 = vmatpush1.bf16.msra.mxu0 %v8086_v56 }
 0xd6f   :  { %6457 = vmatprep.subr.bf16.mxu0 %v8093_v60 }
 0xd72   :  { %6459 = vmatpush1.bf16.msra.mxu0 %v11085_v45 }
 0xd73   :  { %6461 = vmatprep.subr.bf16.mxu0 %v11086_v53 }
 0xd76   :  { %6463 = vmatpush1.bf16.msra.mxu0 %v11087_v1 }
 0xd77   :  { %6465 = vmatprep.subr.bf16.mxu0 %v11088_v9  ;;  %v11116_v9 = vld [vmem:[#allocation125_spill] sm:$0xff] }
 0xd7a   :  { %6467 = vmatpush1.bf16.msra.mxu0 %v11089_v46  ;;  %v11100_v46 = vld [vmem:[#allocation41_spill] sm:$0xff] }
 0xd7b   :  { %6469 = vmatprep.subr.bf16.mxu0 %v11090_v43  ;;  %v11101_v43 = vld [vmem:[#allocation43_spill] sm:$0xff] }
 0xd7e   :  { %6471 = vmatpush1.bf16.msra.mxu0 %v11091_v62  ;;  %v11102_v62 = vld [vmem:[#allocation45_spill] sm:$0xff] }
 0xd7f   :  { %6473 = vmatprep.subr.bf16.mxu0 %v11092_v2  ;;  %v11103_v2 = vld [vmem:[#allocation47_spill] sm:$0xff] }
 0xd82   :  { %6475 = vmatpush1.bf16.msra.mxu0 %v11093_v7  ;;  %v11104_v7 = vld [vmem:[#allocation49_spill] sm:$0xff] }
 0xd83   :  { %6477 = vmatprep.subr.bf16.mxu0 %v11094_v3  ;;  %v11105_v3 = vld [vmem:[#allocation51_spill] sm:$0xff] }
 0xd86   :  { %6479 = vmatpush1.bf16.msra.mxu0 %v11095_v36  ;;  %v11106_v36 = vld [vmem:[#allocation53_spill] sm:$0xff] }
 0xd87   :  { %6481 = vmatprep.subr.bf16.mxu0 %v11096_v0  ;;  %v11107_v0 = vld [vmem:[#allocation55_spill] sm:$0xff] }
 0xd8a   :  { %6483 = vmatpush1.bf16.msra.mxu0 %v11097_v33  ;;  %v11108_v33 = vld [vmem:[#allocation57_spill] sm:$0xff] }
 0xd8b   :  { %6485 = vmatprep.subr.bf16.mxu0 %v11098_v16  ;;  %v11109_v16 = vld [vmem:[#allocation59_spill] sm:$0xff] }
 0xd8e   :  { %6487 = vmatpush1.bf16.msra.mxu0 %v11099_v22  ;;  %v11110_v22 = vld [vmem:[#allocation61_spill] sm:$0xff] }
 0xd8f   :  { %6489 = vmatprep.subr.bf16.mxu0 %v11100_v46  ;;  %v11111_v46 = vld [vmem:[#allocation63_spill] sm:$0xff] }
 0xd92   :  { %6491 = vmatpush1.bf16.msra.mxu0 %v11101_v43  ;;  %v11112_v43 = vld [vmem:[#allocation65_spill] sm:$0xff] }
 0xd93   :  { %6493 = vmatprep.subr.bf16.mxu0 %v11102_v62  ;;  %v11113_v62 = vld [vmem:[#allocation67_spill] sm:$0xff] }
 0xd96   :  { %6495 = vmatpush1.bf16.msra.mxu0 %v11103_v2  ;;  %v11114_v2 = vld [vmem:[#allocation84_spill] sm:$0xff] }
 0xd97   :  { %6497 = vmatprep.subr.bf16.mxu0 %v11104_v7 }
 0xd9a   :  { %6499 = vmatpush1.bf16.msra.mxu0 %v11105_v3  ;;  %v11115_v3 = vld [vmem:[#allocation124_spill] sm:$0xff] }
 0xd9b   :  { %6501 = vmatprep.subr.bf16.mxu0 %v11106_v36  ;;  %v2583_v36 = vadd.f32 %v9702_v4, %v11115_v3 }
 0xd9e   :  { %6503 = vmatpush1.bf16.msra.mxu0 %v11107_v0 }
 0xd9f   :  { %6505 = vmatprep.subr.bf16.mxu0 %v11108_v33  ;;  %v2652_v33 = vadd.f32 %v2651_v27, %v10928_v58 }
 0xda2   :  { %6507 = vmatpush1.bf16.msra.mxu0 %v11109_v16 }
 0xda3   :  { %6509 = vmatprep.subr.bf16.mxu0 %v11110_v22 }
 0xda6   :  { %6511 = vmatpush1.bf16.msra.mxu0 %v11111_v46 }
 0xda7   :  { %6513 = vmatprep.subr.bf16.mxu0 %v11112_v43 }
 0xdaa   :  { %6515 = vmatpush1.bf16.msra.mxu0 %v11113_v62  ;;  %v2654_v62 = vadd.f32 %v2653_v57, %v9276_v10 }
 0xdab   :  { %6581 = vmatprep.subr.bf16.mxu0 %v11114_v2 }
 0xe20   :  { %v2753_v7 = vpop.f32.mrb[40].mxu0 }
 0xe21   :  { %v2754_v0 = vadd.f32 %v2753_v7, %v11116_v9  ;;  %v2755_v1 = vpop.f32.mrb[41].mxu0 }
 0xe22   :  { %v2756_v16 = vadd.f32 %v2755_v1, %v9267_v23 }
 0xe23   :  { %v2828_v22 = vadd.f32 %v2754_v0, %v2583_v36 }
 0xe24   :  { %v2833_v53 = vadd.f32 %v2756_v16, %v2652_v33 }
 0xe25   :  { %v2829_v46 = vmul.f32 0.5, %v2828_v22  ;;  %v11125_v22 = vld [vmem:[#allocation83_spill] sm:$0xff] }
 0xe26   :  { %v2834_v60 = vmul.f32 0.5, %v2833_v53  ;;  %v11120_v53 = vld [vmem:[#allocation107_spill] sm:$0xff] }
 0xe27   :  { %7482 = vtanh.f32 %v2829_v46 }
 0xe28   :  { %7484 = vtanh.f32 %v2834_v60 }
 0xe31   :  { %v7483_v43 = vpop.eup %7482 }
 0xe32   :  { %v2831_v45 = vmul.f32 0.5, %v7483_v43  ;;  %v7485_v3 = vpop.eup %7484 }
 0xe33   :  { %v2836_v1 = vmul.f32 0.5, %v7485_v3  ;;  %v11124_v3 = vld [vmem:[#allocation111_spill] sm:$0xff] }
 0xe34   :  { %v2832_v2 = vadd.f32 0.5, %v2831_v45 }
 0xe35   :  { %v2837_v36 = vadd.f32 0.5, %v2836_v1  ;;  %v11129_v1 = vld [vmem:[#allocation89_spill] sm:$0xff] }
 0xe36   :  { %v2838_v56 = vmul.f32 %v2832_v2, %v2654_v62  ;;  %v11122_v62 = vld [vmem:[#allocation82_spill] sm:$0xff]  ;;  %v11123_v2 = vld [vmem:[#allocation108_spill] sm:$0xff] }
 0xe37   :  { %v2841_v0 = vsub.f32 1.0, %v2837_v36  ;;  %v2843_v46 = vmul.f32 %v2837_v36, %v9609_v14  ;;  %v11118_v14 = vld [vmem:[#allocation80_spill] sm:$0xff]  ;;  %v11130_v36 = vld [vmem:[#allocation90_spill] sm:$0xff] }
 0xe40   :  { %v2824_v4 = vpop.f32.mrb[42].mxu0 }
 0xe41   :  { %v2825_v7 = vadd.f32 %v2824_v4, %v9280_v39  ;;  %v5108_v9 = vpop.f32.mrb[43].mxu0  ;;  %v11126_v4 = vld [vmem:[#allocation85_spill] sm:$0xff] }
 0xe42   :  { %v11121_v9 = vld [vmem:[#allocation81_spill] sm:$0xff] }
 0xe43   :  { %v2839_v27 = vadd.f32 %v2838_v56, %v2825_v7  ;;  %v11117_v56 = vld [vmem:[#allocation79_spill] sm:$0xff]  ;;  %v11127_v7 = vld [vmem:[#allocation112_spill] sm:$0xff] }
 0xe45   :  { %7486 = vtanh.f32 %v2839_v27  ;;  %v11128_v27 = vld [vmem:[#allocation86_spill] sm:$0xff] }
 0xe4f   :  { %v7487_v33 = vpop.eup %7486 }
 0xe50   :  { %v2842_v43 = vmul.f32 %v7487_v33, %v2841_v0  ;;  %v11131_v0 = vld [vmem:[#allocation93_spill] sm:$0xff]  ;;  %v11132_v33 = vld [vmem:[#allocation94_spill] sm:$0xff] }
 0xe52   :  { %v9775_v16 = vadd.f32 %v2843_v46, %v2842_v43  ;;  %v11133_v46 = vld [vmem:[#allocation97_spill] sm:$0xff]  ;;  %v11134_v43 = vld [vmem:[#allocation98_spill] sm:$0xff] }
 0xe54   :  { %v2846_v57 = vrot.slane %v9775_v16, 5 }
 0xe56   :  { %v2847_v60 = vrot.slane %v2846_v57, 3  ;;  %v9779_v45 = vsel %vm4482_vm6, %v9615_v6, %v2846_v57  ;;  %v11119_v6 = vld [vmem:[#allocation104_spill] sm:$0xff]  ;;  %v11135_v57 = vld [vmem:[#allocation101_spill] sm:$0xff] }
 0xe58   :  { %2913 = vmatprep.mubr.f32.mxu1 %v2847_v60  ;;  %2984 = vmatprep.mubr.f32.mxu0 %v2847_v60 }
 0xe59   :  { %2914 = vmatmul.mubr.f32.vlgmr.msra.gmra.mrb[20].mxu1 %v9713_v47  ;;  %2985 = vmatmul.mubr.f32.vlgmr.msra.gmra.mrb[44].mxu0 %v9713_v47 }
 0xe5a   :  { %6519 = vmatpush1.bf16.msra.mxu1 %v10838_v37  ;;  %3055 = vmatprep.mubr.f32.mxu1 %v2847_v60  ;;  %v11136_v60 = vld [vmem:[#allocation102_spill] sm:$0xff] }
 0xe5b   :  { %6521 = vmatprep.subr.bf16.mxu1 %v10839_v63  ;;  %6583 = vmatpush1.bf16.msra.mxu0 %v8777_v28 }
 0xe5c   :  { %6585 = vmatprep.subr.bf16.mxu0 %v10840_v38  ;;  %3157 = vmatprep.mubr.f32.mxu0 %v10765_v17 }
 0xe5e   :  { %6523 = vmatpush1.bf16.msra.mxu1 %v10841_v8 }
 0xe5f   :  { %6525 = vmatprep.subr.bf16.mxu1 %v10842_v21  ;;  %6587 = vmatpush1.bf16.msra.mxu0 %v10843_v32 }
 0xe60   :  { %6589 = vmatprep.subr.bf16.mxu0 %v10844_v41 }
 0xe62   :  { %6527 = vmatpush1.bf16.msra.mxu1 %v10845_v13 }
 0xe63   :  { %6529 = vmatprep.subr.bf16.mxu1 %v10929_v19  ;;  %6591 = vmatpush1.bf16.msra.mxu0 %v10930_v61 }
 0xe64   :  { %6593 = vmatprep.subr.bf16.mxu0 %v10931_v48 }
 0xe66   :  { %6531 = vmatpush1.bf16.msra.mxu1 %v10932_v40 }
 0xe67   :  { %6533 = vmatprep.subr.bf16.mxu1 %v10933_v42  ;;  %6595 = vmatpush1.bf16.msra.mxu0 %v10934_v24 }
 0xe68   :  { %6597 = vmatprep.subr.bf16.mxu0 %v10935_v30 }
 0xe6a   :  { %6535 = vmatpush1.bf16.msra.mxu1 %v10853_v52 }
 0xe6b   :  { %6537 = vmatprep.subr.bf16.mxu1 %v10936_v34  ;;  %6599 = vmatpush1.bf16.msra.mxu0 %v11023_v55 }
 0xe6c   :  { %6601 = vmatprep.subr.bf16.mxu0 %v11024_v26 }
 0xe6e   :  { %6539 = vmatpush1.bf16.msra.mxu1 %v11117_v56 }
 0xe6f   :  { %6541 = vmatprep.subr.bf16.mxu1 %v11118_v14  ;;  %6603 = vmatpush1.bf16.msra.mxu0 %v11119_v6 }
 0xe70   :  { %6605 = vmatprep.subr.bf16.mxu0 %v11120_v53 }
 0xe72   :  { %6543 = vmatpush1.bf16.msra.mxu1 %v11121_v9 }
 0xe73   :  { %6545 = vmatprep.subr.bf16.mxu1 %v11122_v62  ;;  %6607 = vmatpush1.bf16.msra.mxu0 %v11123_v2 }
 0xe74   :  { %6609 = vmatprep.subr.bf16.mxu0 %v11124_v3 }
 0xe76   :  { %6547 = vmatpush1.bf16.msra.mxu1 %v11125_v22 }
 0xe77   :  { %6549 = vmatprep.subr.bf16.mxu1 %v11126_v4  ;;  %6611 = vmatpush1.bf16.msra.mxu0 %v11127_v7  ;;  %v11137_v7 = vld [vmem:[#allocation105_spill] sm:$0xff]  ;;  %v11138_v4 = vld [vmem:[#allocation106_spill] sm:$0xff] }
 0xe78   :  { %6612 = vmatprep.subr.bf16.mxu0 %v10813_v50 }
 0xe7a   :  { %6551 = vmatpush1.bf16.msra.mxu1 %v11128_v27  ;;  %v11139_v27 = vld [vmem:[#allocation109_spill] sm:$0xff] }
 0xe7b   :  { %6553 = vmatprep.subr.bf16.mxu1 %v11129_v1  ;;  %v11140_v1 = vld [vmem:[#allocation110_spill] sm:$0xff] }
 0xe7e   :  { %6555 = vmatpush1.bf16.msra.mxu1 %v11130_v36  ;;  %v11141_v36 = vld [vmem:[#allocation113_spill] sm:$0xff] }
 0xe7f   :  { %6557 = vmatprep.subr.bf16.mxu1 %v11131_v0  ;;  %v11142_v0 = vld [vmem:[#allocation114_spill] sm:$0xff] }
 0xe82   :  { %6559 = vmatpush1.bf16.msra.mxu1 %v11132_v33  ;;  %v11143_v33 = vld [vmem:[#allocation4_spill] sm:$0xff] }
 0xe83   :  { %6561 = vmatprep.subr.bf16.mxu1 %v11133_v46  ;;  %v11176_v46 = vld [vmem:[#allocation115_spill] sm:$0xff] }
 0xe86   :  { %6563 = vmatpush1.bf16.msra.mxu1 %v11134_v43  ;;  %v11144_v43 = vld [vmem:[#allocation6_spill] sm:$0xff] }
 0xe87   :  { %6565 = vmatprep.subr.bf16.mxu1 %v11135_v57  ;;  %v11145_v57 = vld [vmem:[#allocation8_spill] sm:$0xff] }
 0xe8a   :  { %6567 = vmatpush1.bf16.msra.mxu1 %v11136_v60  ;;  %v11146_v60 = vld [vmem:[#allocation10_spill] sm:$0xff] }
 0xe8b   :  { %6569 = vmatprep.subr.bf16.mxu1 %v11137_v7  ;;  %v11147_v7 = vld [vmem:[#allocation12_spill] sm:$0xff] }
 0xe8e   :  { %6571 = vmatpush1.bf16.msra.mxu1 %v11138_v4  ;;  %v11148_v4 = vld [vmem:[#allocation14_spill] sm:$0xff] }
 0xe8f   :  { %6573 = vmatprep.subr.bf16.mxu1 %v11139_v27  ;;  %v11149_v27 = vld [vmem:[#allocation16_spill] sm:$0xff] }
 0xe92   :  { %6575 = vmatpush1.bf16.msra.mxu1 %v11140_v1  ;;  %v11150_v1 = vld [vmem:[#allocation18_spill] sm:$0xff] }
 0xe93   :  { %6577 = vmatprep.subr.bf16.mxu1 %v11141_v36  ;;  %v11151_v36 = vld [vmem:[#allocation20_spill] sm:$0xff] }
 0xe96   :  { %6579 = vmatpush1.bf16.msra.mxu1 %v11142_v0  ;;  %v11152_v0 = vld [vmem:[#allocation22_spill] sm:$0xff] }
 0xe97   :  { %6637 = vmatprep.subr.bf16.mxu1 %v11143_v33  ;;  %v11153_v33 = vld [vmem:[#allocation24_spill] sm:$0xff] }
 0xe99   :  { %3056 = vmatmul.mubr.f32.vlgmr.msra.gmra.mrb[22].mxu1 %v9713_v47  ;;  %v11154_v47 = vld [vmem:[#allocation26_spill] sm:$0xff] }
 0xe9a   :  { %6639 = vmatpush1.bf16.msra.mxu1 %v11144_v43  ;;  %v11155_v43 = vld [vmem:[#allocation28_spill] sm:$0xff] }
 0xe9b   :  { %6641 = vmatprep.subr.bf16.mxu1 %v11145_v57  ;;  %v11156_v57 = vld [vmem:[#allocation30_spill] sm:$0xff] }
 0xe9e   :  { %6643 = vmatpush1.bf16.msra.mxu1 %v11146_v60  ;;  %v11157_v60 = vld [vmem:[#allocation32_spill] sm:$0xff] }
 0xe9f   :  { %6645 = vmatprep.subr.bf16.mxu1 %v11147_v7  ;;  %v11158_v7 = vld [vmem:[#allocation34_spill] sm:$0xff] }
 0xea2   :  { %6647 = vmatpush1.bf16.msra.mxu1 %v11148_v4  ;;  %v11159_v4 = vld [vmem:[#allocation36_spill] sm:$0xff] }
 0xea3   :  { %6649 = vmatprep.subr.bf16.mxu1 %v11149_v27  ;;  %v11160_v27 = vld [vmem:[#allocation38_spill] sm:$0xff] }
 0xea6   :  { %6651 = vmatpush1.bf16.msra.mxu1 %v11150_v1  ;;  %v11161_v1 = vld [vmem:[#allocation40_spill] sm:$0xff] }
 0xea7   :  { %6653 = vmatprep.subr.bf16.mxu1 %v11151_v36  ;;  %v11162_v36 = vld [vmem:[#allocation42_spill] sm:$0xff] }
 0xeaa   :  { %6655 = vmatpush1.bf16.msra.mxu1 %v11152_v0  ;;  %v11163_v0 = vld [vmem:[#allocation44_spill] sm:$0xff] }
 0xeab   :  { %6657 = vmatprep.subr.bf16.mxu1 %v11153_v33  ;;  %v11164_v33 = vld [vmem:[#allocation46_spill] sm:$0xff] }
 0xeae   :  { %6659 = vmatpush1.bf16.msra.mxu1 %v11154_v47  ;;  %v11165_v47 = vld [vmem:[#allocation48_spill] sm:$0xff] }
 0xeaf   :  { %6661 = vmatprep.subr.bf16.mxu1 %v11155_v43  ;;  %v11166_v43 = vld [vmem:[#allocation50_spill] sm:$0xff] }
 0xeb2   :  { %6663 = vmatpush1.bf16.msra.mxu1 %v11156_v57  ;;  %v11167_v57 = vld [vmem:[#allocation52_spill] sm:$0xff] }
 0xeb3   :  { %6665 = vmatprep.subr.bf16.mxu1 %v11157_v60  ;;  %v11168_v60 = vld [vmem:[#allocation54_spill] sm:$0xff] }
 0xeb6   :  { %6667 = vmatpush1.bf16.msra.mxu1 %v11158_v7  ;;  %v11169_v7 = vld [vmem:[#allocation56_spill] sm:$0xff] }
 0xeb7   :  { %6669 = vmatprep.subr.bf16.mxu1 %v11159_v4  ;;  %v11170_v4 = vld [vmem:[#allocation58_spill] sm:$0xff] }
 0xeba   :  { %6671 = vmatpush1.bf16.msra.mxu1 %v11160_v27  ;;  %v11171_v27 = vld [vmem:[#allocation60_spill] sm:$0xff] }
 0xebb   :  { %6673 = vmatprep.subr.bf16.mxu1 %v11161_v1  ;;  %v11172_v1 = vld [vmem:[#allocation62_spill] sm:$0xff] }
 0xebe   :  { %6675 = vmatpush1.bf16.msra.mxu1 %v11162_v36  ;;  %v11173_v36 = vld [vmem:[#allocation64_spill] sm:$0xff] }
 0xebf   :  { %6677 = vmatprep.subr.bf16.mxu1 %v11163_v0  ;;  %v11174_v0 = vld [vmem:[#allocation66_spill] sm:$0xff] }
 0xec2   :  { %6679 = vmatpush1.bf16.msra.mxu1 %v11164_v33  ;;  %v11175_v33 = vld [vmem:[#allocation68_spill] sm:$0xff] }
 0xec3   :  { %6681 = vmatprep.subr.bf16.mxu1 %v11165_v47 }
 0xec6   :  { %6683 = vmatpush1.bf16.msra.mxu1 %v11166_v43 }
 0xec7   :  { %6685 = vmatprep.subr.bf16.mxu1 %v11167_v57 }
 0xeca   :  { %6687 = vmatpush1.bf16.msra.mxu1 %v11168_v60 }
 0xecb   :  { %6689 = vmatprep.subr.bf16.mxu1 %v11169_v7 }
 0xece   :  { %6691 = vmatpush1.bf16.msra.mxu1 %v11170_v4 }
 0xecf   :  { %6693 = vmatprep.subr.bf16.mxu1 %v11171_v27 }
 0xed2   :  { %6695 = vmatpush1.bf16.msra.mxu1 %v11172_v1 }
 0xed3   :  { %6697 = vmatprep.subr.bf16.mxu1 %v11173_v36 }
 0xed6   :  { %6699 = vmatpush1.bf16.msra.mxu1 %v11174_v0 }
 0xed7   :  { %6765 = vmatprep.subr.bf16.mxu1 %v11175_v33 }
 0xf2c   :  { %v2915_v47 = vpop.f32.mrb[20].mxu1  ;;  %v2986_v43 = vpop.f32.mrb[44].mxu0 }
 0xf2d   :  { %v2916_v57 = vadd.f32 %v2915_v47, %v11176_v46  ;;  %v2917_v22 = vpop.f32.mrb[21].mxu1  ;;  %v9866_v60 = vpop.f32.mrb[45].mxu0  ;;  %v2987_v33 = vadd.f32 %v2986_v43, %v9127_v29  ;;  %v11183_v43 = vld [vmem:[#allocation19_spill] sm:$0xff] }
 0xf2e   :  { %v2918_v7 = vadd.f32 %v2917_v22, %v9109_v5  ;;  %v3086_v22 = vrot.slane %v9710_v15, 7 }
 0xf2f   :  { %v3063_v4 = vrot.slane %v2916_v57, 4  ;;  %v3079_v53 = vrot.slane %v2987_v33, 4  ;;  %v11181_v33 = vld [vmem:[#allocation15_spill] sm:$0xff] }
 0xf30   :  { %v3071_v3 = vrot.slane %v2918_v7, 4 }
 0xf31   :  { %v3065_v27 = vadd.f32 %v3063_v4, %v10900_v20 }
 0xf32   :  { %v3073_v1 = vadd.f32 %v3071_v3, %v10901_v49 }
 0xf33   :  { %v3066_v36 = vmul.f32 0.5, %v3065_v27 }
 0xf34   :  { %v3074_v2 = vmul.f32 0.5, %v3073_v1 }
 0xf35   :  { %7488 = vtanh.f32 %v3066_v36 }
 0xf36   :  { %7490 = vtanh.f32 %v3074_v2 }
 0xf3f   :  { %v7489_v0 = vpop.eup %7488 }
 0xf40   :  { %v7491_v62 = vpop.eup %7490  ;;  %v3068_v47 = vmul.f32 0.5, %v7489_v0  ;;  %v11180_v0 = vld [vmem:[#allocation13_spill] sm:$0xff] }
 0xf41   :  { %v3076_v46 = vmul.f32 0.5, %v7491_v62  ;;  %v11179_v62 = vld [vmem:[#allocation11_spill] sm:$0xff] }
 0xf42   :  { %v3069_v9 = vadd.f32 0.5, %v3068_v47  ;;  %v11184_v47 = vld [vmem:[#allocation21_spill] sm:$0xff] }
 0xf43   :  { %v3077_v6 = vadd.f32 0.5, %v3076_v46  ;;  %v11182_v46 = vld [vmem:[#allocation17_spill] sm:$0xff] }
 0xf44   :  { %v3081_v7 = vmul.f32 %v3079_v53, %v3069_v9  ;;  %v11177_v53 = vld [vmem:[#allocation7_spill] sm:$0xff]  ;;  %v11178_v9 = vld [vmem:[#allocation9_spill] sm:$0xff] }
 0xf45   :  { %v3088_v57 = vmul.f32 %v3086_v22, %v3077_v6  ;;  %v3084_v3 = vsub.f32 1.0, %v3077_v6  ;;  %v11185_v22 = vld [vmem:[#allocation23_spill] sm:$0xff] }
 0xf46   :  { %v3082_v4 = vadd.f32 %v3081_v7, %v9131_v51  ;;  %v11186_v7 = vld [vmem:[#allocation25_spill] sm:$0xff] }
 0xf48   :  { %7492 = vtanh.f32 %v3082_v4  ;;  %v11188_v4 = vld [vmem:[#allocation29_spill] sm:$0xff] }
 0xf52   :  { %v7493_v27 = vpop.eup %7492 }
 0xf53   :  { %v3085_v1 = vmul.f32 %v7493_v27, %v3084_v3  ;;  %v11189_v3 = vld [vmem:[#allocation31_spill] sm:$0xff]  ;;  %v11190_v27 = vld [vmem:[#allocation33_spill] sm:$0xff] }
 0xf55   :  { %v9874_v2 = vadd.f32 %v3088_v57, %v3085_v1  ;;  %v11187_v57 = vld [vmem:[#allocation27_spill] sm:$0xff] }
 0xf56   :  { %v11191_v1 = vld [vmem:[#allocation35_spill] sm:$0xff] }
 0xf57   :  { %v9877_v36 = vrot.slane %v9874_v2, 4 }
 0xf59   :  { %3158 = vmatmul.mubr.f32.vlgmr.msra.gmra.mrb[46].mxu0 %v9877_v36 }
 0xf5a   :  { %6614 = vmatpush3.bf16.msra.mxu0 %v9140_v25  ;;  %5141 = vmatprep.mubr.msk.f32.mxu0 %vm7544_vm1, %v10765_v17 }
 0xf5b   :  { %6615 = vmatprep.subr.bf16.mxu0 %v10813_v50 }
 0xf5e   :  { %6617 = vmatpush3.bf16.msra.mxu0 %v9152_v59 }
 0xf5f   :  { %6618 = vmatprep.subr.bf16.mxu0 %v10813_v50 }
 0xf62   :  { %6620 = vmatpush3.bf16.msra.mxu0 %v9164_v31 }
 0xf63   :  { %6621 = vmatprep.subr.bf16.mxu0 %v10813_v50 }
 0xf66   :  { %6623 = vmatpush3.bf16.msra.mxu0 %v9174_v12 }
 0xf67   :  { %6624 = vmatprep.subr.bf16.mxu0 %v10813_v50 }
 0xf6a   :  { %6626 = vmatpush3.bf16.msra.mxu0 %v9184_v11 }
 0xf6b   :  { %6627 = vmatprep.subr.bf16.mxu0 %v10813_v50 }
 0xf6c   :  { %v3057_v15 = vpop.f32.mrb[22].mxu1 }
 0xf6d   :  { %v3059_v6 = vpop.f32.mrb[23].mxu1 }
 0xf6e   :  { %6629 = vmatpush3.bf16.msra.mxu0 %v9194_v35 }
 0xf6f   :  { %6630 = vmatprep.subr.bf16.mxu0 %v10813_v50 }
 0xf72   :  { %6632 = vmatpush3.bf16.msra.mxu0 %v9204_v18 }
 0xf73   :  { %6633 = vmatprep.subr.bf16.mxu0 %v10813_v50 }
 0xf76   :  { %6635 = vmatpush3.bf16.msra.mxu0 %v9214_v54 }
 0xf77   :  { %6701 = vmatprep.subr.bf16.mxu0 %v8051_v44 }
 0xf79   :  { %5142 = vmatmul.mubr.f32.vlgmr.msra.gmra.mrb[48].mxu0 %v9877_v36 }
 0xf7a   :  { %6703 = vmatpush1.bf16.msra.mxu0 %v11177_v53 }
 0xf7b   :  { %6705 = vmatprep.subr.bf16.mxu0 %v11178_v9 }
 0xf7e   :  { %6707 = vmatpush1.bf16.msra.mxu0 %v11179_v62 }
 0xf7f   :  { %6709 = vmatprep.subr.bf16.mxu0 %v11180_v0  ;;  %v11210_v0 = vld [vmem:[#allocation125_spill] sm:$0xff] }
 0xf82   :  { %6711 = vmatpush1.bf16.msra.mxu0 %v11181_v33  ;;  %v11192_v33 = vld [vmem:[#allocation37_spill] sm:$0xff] }
 0xf83   :  { %6713 = vmatprep.subr.bf16.mxu0 %v11182_v46  ;;  %v11193_v46 = vld [vmem:[#allocation39_spill] sm:$0xff] }
 0xf86   :  { %6715 = vmatpush1.bf16.msra.mxu0 %v11183_v43  ;;  %v11194_v43 = vld [vmem:[#allocation41_spill] sm:$0xff] }
 0xf87   :  { %6717 = vmatprep.subr.bf16.mxu0 %v11184_v47  ;;  %v11195_v47 = vld [vmem:[#allocation43_spill] sm:$0xff] }
 0xf8a   :  { %6719 = vmatpush1.bf16.msra.mxu0 %v11185_v22  ;;  %v11196_v22 = vld [vmem:[#allocation45_spill] sm:$0xff] }
 0xf8b   :  { %6721 = vmatprep.subr.bf16.mxu0 %v11186_v7  ;;  %v11197_v7 = vld [vmem:[#allocation47_spill] sm:$0xff] }
 0xf8e   :  { %6723 = vmatpush1.bf16.msra.mxu0 %v11187_v57  ;;  %v11198_v57 = vld [vmem:[#allocation49_spill] sm:$0xff] }
 0xf8f   :  { %6725 = vmatprep.subr.bf16.mxu0 %v11188_v4  ;;  %v11199_v4 = vld [vmem:[#allocation51_spill] sm:$0xff] }
 0xf92   :  { %6727 = vmatpush1.bf16.msra.mxu0 %v11189_v3  ;;  %v11200_v3 = vld [vmem:[#allocation53_spill] sm:$0xff] }
 0xf93   :  { %6729 = vmatprep.subr.bf16.mxu0 %v11190_v27  ;;  %v11201_v27 = vld [vmem:[#allocation55_spill] sm:$0xff] }
 0xf96   :  { %6731 = vmatpush1.bf16.msra.mxu0 %v11191_v1  ;;  %v11202_v1 = vld [vmem:[#allocation57_spill] sm:$0xff] }
 0xf97   :  { %6733 = vmatprep.subr.bf16.mxu0 %v11192_v33  ;;  %v11203_v33 = vld [vmem:[#allocation59_spill] sm:$0xff] }
 0xf9a   :  { %6735 = vmatpush1.bf16.msra.mxu0 %v11193_v46  ;;  %v11204_v46 = vld [vmem:[#allocation61_spill] sm:$0xff] }
 0xf9b   :  { %6737 = vmatprep.subr.bf16.mxu0 %v11194_v43  ;;  %v11205_v43 = vld [vmem:[#allocation63_spill] sm:$0xff] }
 0xf9e   :  { %6739 = vmatpush1.bf16.msra.mxu0 %v11195_v47  ;;  %v11206_v47 = vld [vmem:[#allocation65_spill] sm:$0xff] }
 0xf9f   :  { %6741 = vmatprep.subr.bf16.mxu0 %v11196_v22  ;;  %v11207_v22 = vld [vmem:[#allocation67_spill] sm:$0xff] }
 0xfa2   :  { %6743 = vmatpush1.bf16.msra.mxu0 %v11197_v7  ;;  %v11208_v7 = vld [vmem:[#allocation84_spill] sm:$0xff] }
 0xfa3   :  { %6745 = vmatprep.subr.bf16.mxu0 %v11198_v57 }
 0xfa6   :  { %6747 = vmatpush1.bf16.msra.mxu0 %v11199_v4  ;;  %v11209_v4 = vld [vmem:[#allocation124_spill] sm:$0xff] }
 0xfa7   :  { %6749 = vmatprep.subr.bf16.mxu0 %v11200_v3  ;;  %v2989_v3 = vadd.f32 %v9866_v60, %v11209_v4 }
 0xfaa   :  { %6751 = vmatpush1.bf16.msra.mxu0 %v11201_v27 }
 0xfab   :  { %6753 = vmatprep.subr.bf16.mxu0 %v11202_v1  ;;  %v3058_v1 = vadd.f32 %v3057_v15, %v10928_v58 }
 0xfae   :  { %6755 = vmatpush1.bf16.msra.mxu0 %v11203_v33 }
 0xfaf   :  { %6757 = vmatprep.subr.bf16.mxu0 %v11204_v46 }
 0xfb2   :  { %6759 = vmatpush1.bf16.msra.mxu0 %v11205_v43 }
 0xfb3   :  { %6761 = vmatprep.subr.bf16.mxu0 %v11206_v47 }
 0xfb6   :  { %6763 = vmatpush1.bf16.msra.mxu0 %v11207_v22  ;;  %v3060_v22 = vadd.f32 %v3059_v6, %v9276_v10 }
 0xfb7   :  { %6829 = vmatprep.subr.bf16.mxu0 %v11208_v7 }
0x102c   :  { %v3159_v57 = vpop.f32.mrb[46].mxu0 }
0x102d   :  { %v3160_v27 = vadd.f32 %v3159_v57, %v11210_v0  ;;  %v3161_v62 = vpop.f32.mrb[47].mxu0 }
0x102e   :  { %v3162_v33 = vadd.f32 %v3161_v62, %v9267_v23 }
0x102f   :  { %v3234_v46 = vadd.f32 %v3160_v27, %v2989_v3 }
0x1030   :  { %v3239_v9 = vadd.f32 %v3162_v33, %v3058_v1  ;;  %v11219_v1 = vld [vmem:[#allocation112_spill] sm:$0xff] }
0x1031   :  { %v3235_v43 = vmul.f32 0.5, %v3234_v46 }
0x1032   :  { %v3240_v44 = vmul.f32 0.5, %v3239_v9  ;;  %v11214_v9 = vld [vmem:[#allocation82_spill] sm:$0xff] }
0x1033   :  { %7494 = vtanh.f32 %v3235_v43 }
0x1034   :  { %7496 = vtanh.f32 %v3240_v44 }
0x103d   :  { %v7495_v47 = vpop.eup %7494 }
0x103e   :  { %v3237_v53 = vmul.f32 0.5, %v7495_v47  ;;  %v7497_v4 = vpop.eup %7496 }
0x103f   :  { %v3242_v62 = vmul.f32 0.5, %v7497_v4  ;;  %v11218_v4 = vld [vmem:[#allocation85_spill] sm:$0xff] }
0x1040   :  { %v3238_v7 = vadd.f32 0.5, %v3237_v53 }
0x1041   :  { %v3243_v3 = vadd.f32 0.5, %v3242_v62  ;;  %v11223_v62 = vld [vmem:[#allocation93_spill] sm:$0xff] }
0x1042   :  { %v3244_v54 = vmul.f32 %v3238_v7, %v3060_v22  ;;  %v11216_v22 = vld [vmem:[#allocation111_spill] sm:$0xff] }
0x1043   :  { %v3247_v33 = vsub.f32 1.0, %v3243_v3  ;;  %v3249_v43 = vmul.f32 %v3243_v3, %v9775_v16  ;;  %v11212_v16 = vld [vmem:[#allocation107_spill] sm:$0xff]  ;;  %v11224_v3 = vld [vmem:[#allocation94_spill] sm:$0xff] }
0x1044   :  { %v11217_v7 = vld [vmem:[#allocation83_spill] sm:$0xff] }
0x104c   :  { %v3230_v60 = vpop.f32.mrb[48].mxu0 }
0x104d   :  { %v3231_v57 = vadd.f32 %v3230_v60, %v9280_v39  ;;  %v5143_v0 = vpop.f32.mrb[49].mxu0  ;;  %v11220_v60 = vld [vmem:[#allocation86_spill] sm:$0xff] }
0x104e   :  { %v11215_v0 = vld [vmem:[#allocation108_spill] sm:$0xff] }
0x104f   :  { %v3245_v15 = vadd.f32 %v3244_v54, %v3231_v57  ;;  %v11211_v54 = vld [vmem:[#allocation104_spill] sm:$0xff]  ;;  %v11221_v57 = vld [vmem:[#allocation89_spill] sm:$0xff] }
0x1051   :  { %7498 = vtanh.f32 %v3245_v15  ;;  %v11222_v15 = vld [vmem:[#allocation90_spill] sm:$0xff] }
0x105b   :  { %v7499_v46 = vpop.eup %7498 }
0x105c   :  { %v3248_v47 = vmul.f32 %v7499_v46, %v3247_v33  ;;  %v11225_v33 = vld [vmem:[#allocation97_spill] sm:$0xff]  ;;  %v11226_v46 = vld [vmem:[#allocation98_spill] sm:$0xff] }
0x105e   :  { %v9939_v27 = vadd.f32 %v3249_v43, %v3248_v47  ;;  %v11227_v43 = vld [vmem:[#allocation101_spill] sm:$0xff]  ;;  %v11228_v47 = vld [vmem:[#allocation102_spill] sm:$0xff] }
0x1060   :  { %v3252_v6 = vrot.slane %v9939_v27, 4 }
0x1062   :  { %v3253_v44 = vrot.slane %v3252_v6, 4  ;;  %v9943_v53 = vsel %vm4484_vm7, %v9779_v45, %v3252_v6  ;;  %v11213_v45 = vld [vmem:[#allocation81_spill] sm:$0xff] }
0x1063   :  { %v11229_v6 = vld [vmem:[#allocation105_spill] sm:$0xff] }
0x1064   :  { %3319 = vmatprep.mubr.f32.mxu1 %v3253_v44  ;;  %3390 = vmatprep.mubr.f32.mxu0 %v3253_v44 }
0x1065   :  { %3320 = vmatmul.mubr.f32.vlgmr.msra.gmra.mrb[24].mxu1 %v9877_v36  ;;  %3391 = vmatmul.mubr.f32.vlgmr.msra.gmra.mrb[50].mxu0 %v9877_v36 }
0x1066   :  { %6767 = vmatpush1.bf16.msra.mxu1 %v10838_v37  ;;  %3461 = vmatprep.mubr.f32.mxu1 %v3253_v44  ;;  %v11230_v44 = vld [vmem:[#allocation106_spill] sm:$0xff] }
0x1067   :  { %6769 = vmatprep.subr.bf16.mxu1 %v10839_v63  ;;  %6831 = vmatpush1.bf16.msra.mxu0 %v8777_v28 }
0x1068   :  { %6833 = vmatprep.subr.bf16.mxu0 %v10840_v38  ;;  %3563 = vmatprep.mubr.f32.mxu0 %v10765_v17 }
0x106a   :  { %6771 = vmatpush1.bf16.msra.mxu1 %v10841_v8 }
0x106b   :  { %6773 = vmatprep.subr.bf16.mxu1 %v10842_v21  ;;  %6835 = vmatpush1.bf16.msra.mxu0 %v10843_v32 }
0x106c   :  { %6837 = vmatprep.subr.bf16.mxu0 %v10844_v41 }
0x106e   :  { %6775 = vmatpush1.bf16.msra.mxu1 %v10845_v13 }
0x106f   :  { %6777 = vmatprep.subr.bf16.mxu1 %v10929_v19  ;;  %6839 = vmatpush1.bf16.msra.mxu0 %v10930_v61 }
0x1070   :  { %6841 = vmatprep.subr.bf16.mxu0 %v10931_v48 }
0x1072   :  { %6779 = vmatpush1.bf16.msra.mxu1 %v10932_v40 }
0x1073   :  { %6781 = vmatprep.subr.bf16.mxu1 %v10933_v42  ;;  %6843 = vmatpush1.bf16.msra.mxu0 %v10934_v24 }
0x1074   :  { %6845 = vmatprep.subr.bf16.mxu0 %v10935_v30 }
0x1076   :  { %6783 = vmatpush1.bf16.msra.mxu1 %v10853_v52 }
0x1077   :  { %6785 = vmatprep.subr.bf16.mxu1 %v10936_v34  ;;  %6847 = vmatpush1.bf16.msra.mxu0 %v11023_v55 }
0x1078   :  { %6849 = vmatprep.subr.bf16.mxu0 %v11024_v26 }
0x107a   :  { %6787 = vmatpush1.bf16.msra.mxu1 %v11117_v56 }
0x107b   :  { %6789 = vmatprep.subr.bf16.mxu1 %v11118_v14  ;;  %6851 = vmatpush1.bf16.msra.mxu0 %v11211_v54 }
0x107c   :  { %6853 = vmatprep.subr.bf16.mxu0 %v11212_v16 }
0x107e   :  { %6791 = vmatpush1.bf16.msra.mxu1 %v11213_v45 }
0x107f   :  { %6793 = vmatprep.subr.bf16.mxu1 %v11214_v9  ;;  %6855 = vmatpush1.bf16.msra.mxu0 %v11215_v0 }
0x1080   :  { %6857 = vmatprep.subr.bf16.mxu0 %v11216_v22 }
0x1082   :  { %6795 = vmatpush1.bf16.msra.mxu1 %v11217_v7 }
0x1083   :  { %6797 = vmatprep.subr.bf16.mxu1 %v11218_v4  ;;  %6859 = vmatpush1.bf16.msra.mxu0 %v11219_v1 }
0x1084   :  { %6860 = vmatprep.subr.bf16.mxu0 %v10813_v50 }
0x1086   :  { %6799 = vmatpush1.bf16.msra.mxu1 %v11220_v60  ;;  %v11231_v60 = vld [vmem:[#allocation109_spill] sm:$0xff] }
0x1087   :  { %6801 = vmatprep.subr.bf16.mxu1 %v11221_v57  ;;  %v11232_v57 = vld [vmem:[#allocation110_spill] sm:$0xff] }
0x108a   :  { %6803 = vmatpush1.bf16.msra.mxu1 %v11222_v15  ;;  %v11233_v15 = vld [vmem:[#allocation113_spill] sm:$0xff] }
0x108b   :  { %6805 = vmatprep.subr.bf16.mxu1 %v11223_v62  ;;  %v11234_v62 = vld [vmem:[#allocation114_spill] sm:$0xff] }
0x108e   :  { %6807 = vmatpush1.bf16.msra.mxu1 %v11224_v3  ;;  %v11235_v3 = vld [vmem:[#allocation4_spill] sm:$0xff] }
0x108f   :  { %6809 = vmatprep.subr.bf16.mxu1 %v11225_v33  ;;  %v11268_v33 = vld [vmem:[#allocation115_spill] sm:$0xff] }
0x1092   :  { %6811 = vmatpush1.bf16.msra.mxu1 %v11226_v46  ;;  %v11236_v46 = vld [vmem:[#allocation6_spill] sm:$0xff] }
0x1093   :  { %6813 = vmatprep.subr.bf16.mxu1 %v11227_v43  ;;  %v11237_v43 = vld [vmem:[#allocation8_spill] sm:$0xff] }
0x1096   :  { %6815 = vmatpush1.bf16.msra.mxu1 %v11228_v47  ;;  %v11238_v47 = vld [vmem:[#allocation10_spill] sm:$0xff] }
0x1097   :  { %6817 = vmatprep.subr.bf16.mxu1 %v11229_v6  ;;  %v11239_v6 = vld [vmem:[#allocation12_spill] sm:$0xff] }
0x109a   :  { %6819 = vmatpush1.bf16.msra.mxu1 %v11230_v44  ;;  %v11240_v44 = vld [vmem:[#allocation14_spill] sm:$0xff] }
0x109b   :  { %6821 = vmatprep.subr.bf16.mxu1 %v11231_v60  ;;  %v11241_v60 = vld [vmem:[#allocation16_spill] sm:$0xff] }
0x109e   :  { %6823 = vmatpush1.bf16.msra.mxu1 %v11232_v57  ;;  %v11242_v57 = vld [vmem:[#allocation18_spill] sm:$0xff] }
0x109f   :  { %6825 = vmatprep.subr.bf16.mxu1 %v11233_v15  ;;  %v11243_v15 = vld [vmem:[#allocation20_spill] sm:$0xff] }
0x10a2   :  { %6827 = vmatpush1.bf16.msra.mxu1 %v11234_v62  ;;  %v11244_v62 = vld [vmem:[#allocation22_spill] sm:$0xff] }
0x10a3   :  { %6885 = vmatprep.subr.bf16.mxu1 %v11235_v3  ;;  %v11245_v3 = vld [vmem:[#allocation24_spill] sm:$0xff] }
0x10a5   :  { %3462 = vmatmul.mubr.f32.vlgmr.msra.gmra.mrb[26].mxu1 %v9877_v36  ;;  %v11246_v36 = vld [vmem:[#allocation26_spill] sm:$0xff] }
0x10a6   :  { %6887 = vmatpush1.bf16.msra.mxu1 %v11236_v46  ;;  %v11247_v46 = vld [vmem:[#allocation28_spill] sm:$0xff] }
0x10a7   :  { %6889 = vmatprep.subr.bf16.mxu1 %v11237_v43  ;;  %v11248_v43 = vld [vmem:[#allocation30_spill] sm:$0xff] }
0x10aa   :  { %6891 = vmatpush1.bf16.msra.mxu1 %v11238_v47  ;;  %v11249_v47 = vld [vmem:[#allocation32_spill] sm:$0xff] }
0x10ab   :  { %6893 = vmatprep.subr.bf16.mxu1 %v11239_v6  ;;  %v11250_v6 = vld [vmem:[#allocation34_spill] sm:$0xff] }
0x10ae   :  { %6895 = vmatpush1.bf16.msra.mxu1 %v11240_v44  ;;  %v11251_v44 = vld [vmem:[#allocation36_spill] sm:$0xff] }
0x10af   :  { %6897 = vmatprep.subr.bf16.mxu1 %v11241_v60  ;;  %v11252_v60 = vld [vmem:[#allocation38_spill] sm:$0xff] }
0x10b2   :  { %6899 = vmatpush1.bf16.msra.mxu1 %v11242_v57  ;;  %v11253_v57 = vld [vmem:[#allocation40_spill] sm:$0xff] }
0x10b3   :  { %6901 = vmatprep.subr.bf16.mxu1 %v11243_v15  ;;  %v11254_v15 = vld [vmem:[#allocation42_spill] sm:$0xff] }
0x10b6   :  { %6903 = vmatpush1.bf16.msra.mxu1 %v11244_v62  ;;  %v11255_v62 = vld [vmem:[#allocation44_spill] sm:$0xff] }
0x10b7   :  { %6905 = vmatprep.subr.bf16.mxu1 %v11245_v3  ;;  %v11256_v3 = vld [vmem:[#allocation46_spill] sm:$0xff] }
0x10ba   :  { %6907 = vmatpush1.bf16.msra.mxu1 %v11246_v36  ;;  %v11257_v36 = vld [vmem:[#allocation48_spill] sm:$0xff] }
0x10bb   :  { %6909 = vmatprep.subr.bf16.mxu1 %v11247_v46  ;;  %v11258_v46 = vld [vmem:[#allocation50_spill] sm:$0xff] }
0x10be   :  { %6911 = vmatpush1.bf16.msra.mxu1 %v11248_v43  ;;  %v11259_v43 = vld [vmem:[#allocation52_spill] sm:$0xff] }
0x10bf   :  { %6913 = vmatprep.subr.bf16.mxu1 %v11249_v47  ;;  %v11260_v47 = vld [vmem:[#allocation54_spill] sm:$0xff] }
0x10c2   :  { %6915 = vmatpush1.bf16.msra.mxu1 %v11250_v6  ;;  %v11261_v6 = vld [vmem:[#allocation56_spill] sm:$0xff] }
0x10c3   :  { %6917 = vmatprep.subr.bf16.mxu1 %v11251_v44  ;;  %v11262_v44 = vld [vmem:[#allocation58_spill] sm:$0xff] }
0x10c6   :  { %6919 = vmatpush1.bf16.msra.mxu1 %v11252_v60  ;;  %v11263_v60 = vld [vmem:[#allocation60_spill] sm:$0xff] }
0x10c7   :  { %6921 = vmatprep.subr.bf16.mxu1 %v11253_v57  ;;  %v11264_v57 = vld [vmem:[#allocation62_spill] sm:$0xff] }
0x10ca   :  { %6923 = vmatpush1.bf16.msra.mxu1 %v11254_v15  ;;  %v11265_v15 = vld [vmem:[#allocation64_spill] sm:$0xff] }
0x10cb   :  { %6925 = vmatprep.subr.bf16.mxu1 %v11255_v62  ;;  %v11266_v62 = vld [vmem:[#allocation66_spill] sm:$0xff] }
0x10ce   :  { %6927 = vmatpush1.bf16.msra.mxu1 %v11256_v3  ;;  %v11267_v3 = vld [vmem:[#allocation68_spill] sm:$0xff] }
0x10cf   :  { %6929 = vmatprep.subr.bf16.mxu1 %v11257_v36 }
0x10d2   :  { %6931 = vmatpush1.bf16.msra.mxu1 %v11258_v46 }
0x10d3   :  { %6933 = vmatprep.subr.bf16.mxu1 %v11259_v43 }
0x10d6   :  { %6935 = vmatpush1.bf16.msra.mxu1 %v11260_v47 }
0x10d7   :  { %6937 = vmatprep.subr.bf16.mxu1 %v11261_v6 }
0x10da   :  { %6939 = vmatpush1.bf16.msra.mxu1 %v11262_v44 }
0x10db   :  { %6941 = vmatprep.subr.bf16.mxu1 %v11263_v60 }
0x10de   :  { %6943 = vmatpush1.bf16.msra.mxu1 %v11264_v57 }
0x10df   :  { %6945 = vmatprep.subr.bf16.mxu1 %v11265_v15 }
0x10e2   :  { %6947 = vmatpush1.bf16.msra.mxu1 %v11266_v62 }
0x10e3   :  { %7013 = vmatprep.subr.bf16.mxu1 %v11267_v3 }
0x1138   :  { %v3321_v36 = vpop.f32.mrb[24].mxu1  ;;  %v3392_v46 = vpop.f32.mrb[50].mxu0 }
0x1139   :  { %v3322_v43 = vadd.f32 %v3321_v36, %v11268_v33  ;;  %v3323_v1 = vpop.f32.mrb[25].mxu1  ;;  %v10030_v47 = vpop.f32.mrb[51].mxu0  ;;  %v3393_v3 = vadd.f32 %v3392_v46, %v9127_v29  ;;  %v11275_v46 = vld [vmem:[#allocation15_spill] sm:$0xff] }
0x113a   :  { %v3324_v6 = vadd.f32 %v3323_v1, %v9109_v5  ;;  %v3492_v1 = vrot.slane %v9874_v2, 7 }
0x113b   :  { %v3469_v44 = vrot.slane %v3322_v43, 3  ;;  %v3485_v9 = vrot.slane %v3393_v3, 3  ;;  %v11273_v3 = vld [vmem:[#allocation11_spill] sm:$0xff] }
0x113c   :  { %v3477_v4 = vrot.slane %v3324_v6, 3 }
0x113d   :  { %v3471_v60 = vadd.f32 %v3469_v44, %v10900_v20 }
0x113e   :  { %v3479_v57 = vadd.f32 %v3477_v4, %v10901_v49 }
0x113f   :  { %v3472_v15 = vmul.f32 0.5, %v3471_v60 }
0x1140   :  { %v3480_v7 = vmul.f32 0.5, %v3479_v57 }
0x1141   :  { %7500 = vtanh.f32 %v3472_v15 }
0x1142   :  { %7502 = vtanh.f32 %v3480_v7 }
0x114b   :  { %v7501_v62 = vpop.eup %7500 }
0x114c   :  { %v7503_v22 = vpop.eup %7502  ;;  %v3474_v36 = vmul.f32 0.5, %v7501_v62  ;;  %v11272_v62 = vld [vmem:[#allocation9_spill] sm:$0xff] }
0x114d   :  { %v3482_v33 = vmul.f32 0.5, %v7503_v22  ;;  %v11271_v22 = vld [vmem:[#allocation7_spill] sm:$0xff] }
0x114e   :  { %v3475_v0 = vadd.f32 0.5, %v3474_v36  ;;  %v11276_v36 = vld [vmem:[#allocation17_spill] sm:$0xff] }
0x114f   :  { %v3483_v45 = vadd.f32 0.5, %v3482_v33  ;;  %v11274_v33 = vld [vmem:[#allocation13_spill] sm:$0xff] }
0x1150   :  { %v3487_v43 = vmul.f32 %v3485_v9, %v3475_v0  ;;  %v11269_v9 = vld [vmem:[#allocation122_spill] sm:$0xff]  ;;  %v11270_v0 = vld [vmem:[#allocation5_spill] sm:$0xff] }
0x1151   :  { %v3494_v6 = vmul.f32 %v3492_v1, %v3483_v45  ;;  %v3490_v4 = vsub.f32 1.0, %v3483_v45  ;;  %v11277_v1 = vld [vmem:[#allocation19_spill] sm:$0xff] }
0x1152   :  { %v3488_v44 = vadd.f32 %v3487_v43, %v9131_v51  ;;  %v11278_v43 = vld [vmem:[#allocation21_spill] sm:$0xff] }
0x1154   :  { %7504 = vtanh.f32 %v3488_v44  ;;  %v11280_v44 = vld [vmem:[#allocation25_spill] sm:$0xff] }
0x115e   :  { %v7505_v60 = vpop.eup %7504 }
0x115f   :  { %v3491_v57 = vmul.f32 %v7505_v60, %v3490_v4  ;;  %v11281_v4 = vld [vmem:[#allocation27_spill] sm:$0xff]  ;;  %v11282_v60 = vld [vmem:[#allocation29_spill] sm:$0xff] }
0x1161   :  { %v10038_v7 = vadd.f32 %v3494_v6, %v3491_v57  ;;  %v11279_v6 = vld [vmem:[#allocation23_spill] sm:$0xff] }
0x1162   :  { %v11283_v57 = vld [vmem:[#allocation31_spill] sm:$0xff] }
0x1163   :  { %v10041_v15 = vrot.slane %v10038_v7, 5 }
0x1165   :  { %3564 = vmatmul.mubr.f32.vlgmr.msra.gmra.mrb[52].mxu0 %v10041_v15 }
0x1166   :  { %6862 = vmatpush3.bf16.msra.mxu0 %v9140_v25  ;;  %5176 = vmatprep.mubr.msk.f32.mxu0 %vm7544_vm1, %v10765_v17 }
0x1167   :  { %6863 = vmatprep.subr.bf16.mxu0 %v10813_v50 }
0x116a   :  { %6865 = vmatpush3.bf16.msra.mxu0 %v9152_v59 }
0x116b   :  { %6866 = vmatprep.subr.bf16.mxu0 %v10813_v50 }
0x116e   :  { %6868 = vmatpush3.bf16.msra.mxu0 %v9164_v31 }
0x116f   :  { %6869 = vmatprep.subr.bf16.mxu0 %v10813_v50 }
0x1172   :  { %6871 = vmatpush3.bf16.msra.mxu0 %v9174_v12 }
0x1173   :  { %6872 = vmatprep.subr.bf16.mxu0 %v10813_v50 }
0x1176   :  { %6874 = vmatpush3.bf16.msra.mxu0 %v9184_v11 }
0x1177   :  { %6875 = vmatprep.subr.bf16.mxu0 %v10813_v50 }
0x1178   :  { %v3463_v2 = vpop.f32.mrb[26].mxu1 }
0x1179   :  { %v3465_v45 = vpop.f32.mrb[27].mxu1 }
0x117a   :  { %6877 = vmatpush3.bf16.msra.mxu0 %v9194_v35 }
0x117b   :  { %6878 = vmatprep.subr.bf16.mxu0 %v10813_v50 }
0x117e   :  { %6880 = vmatpush3.bf16.msra.mxu0 %v9204_v18 }
0x117f   :  { %6881 = vmatprep.subr.bf16.mxu0 %v10813_v50 }
0x1182   :  { %6883 = vmatpush3.bf16.msra.mxu0 %v11269_v9 }
0x1183   :  { %6949 = vmatprep.subr.bf16.mxu0 %v11270_v0 }
0x1185   :  { %5177 = vmatmul.mubr.f32.vlgmr.msra.gmra.mrb[54].mxu0 %v10041_v15 }
0x1186   :  { %6951 = vmatpush1.bf16.msra.mxu0 %v11271_v22 }
0x1187   :  { %6953 = vmatprep.subr.bf16.mxu0 %v11272_v62  ;;  %v11304_v62 = vld [vmem:[#allocation125_spill] sm:$0xff] }
0x118a   :  { %6955 = vmatpush1.bf16.msra.mxu0 %v11273_v3  ;;  %v11284_v3 = vld [vmem:[#allocation33_spill] sm:$0xff] }
0x118b   :  { %6957 = vmatprep.subr.bf16.mxu0 %v11274_v33  ;;  %v11285_v33 = vld [vmem:[#allocation35_spill] sm:$0xff] }
0x118e   :  { %6959 = vmatpush1.bf16.msra.mxu0 %v11275_v46  ;;  %v11286_v46 = vld [vmem:[#allocation37_spill] sm:$0xff] }
0x118f   :  { %6961 = vmatprep.subr.bf16.mxu0 %v11276_v36  ;;  %v11287_v36 = vld [vmem:[#allocation39_spill] sm:$0xff] }
0x1192   :  { %6963 = vmatpush1.bf16.msra.mxu0 %v11277_v1  ;;  %v11288_v1 = vld [vmem:[#allocation41_spill] sm:$0xff] }
0x1193   :  { %6965 = vmatprep.subr.bf16.mxu0 %v11278_v43  ;;  %v11289_v43 = vld [vmem:[#allocation43_spill] sm:$0xff] }
0x1196   :  { %6967 = vmatpush1.bf16.msra.mxu0 %v11279_v6  ;;  %v11290_v6 = vld [vmem:[#allocation45_spill] sm:$0xff] }
0x1197   :  { %6969 = vmatprep.subr.bf16.mxu0 %v11280_v44  ;;  %v11291_v44 = vld [vmem:[#allocation47_spill] sm:$0xff] }
0x119a   :  { %6971 = vmatpush1.bf16.msra.mxu0 %v11281_v4  ;;  %v11292_v4 = vld [vmem:[#allocation49_spill] sm:$0xff] }
0x119b   :  { %6973 = vmatprep.subr.bf16.mxu0 %v11282_v60  ;;  %v11293_v60 = vld [vmem:[#allocation51_spill] sm:$0xff] }
0x119e   :  { %6975 = vmatpush1.bf16.msra.mxu0 %v11283_v57  ;;  %v11294_v57 = vld [vmem:[#allocation53_spill] sm:$0xff] }
0x119f   :  { %6977 = vmatprep.subr.bf16.mxu0 %v11284_v3  ;;  %v11295_v3 = vld [vmem:[#allocation55_spill] sm:$0xff] }
0x11a2   :  { %6979 = vmatpush1.bf16.msra.mxu0 %v11285_v33  ;;  %v11296_v33 = vld [vmem:[#allocation57_spill] sm:$0xff] }
0x11a3   :  { %6981 = vmatprep.subr.bf16.mxu0 %v11286_v46  ;;  %v11297_v46 = vld [vmem:[#allocation59_spill] sm:$0xff] }
0x11a6   :  { %6983 = vmatpush1.bf16.msra.mxu0 %v11287_v36  ;;  %v11298_v36 = vld [vmem:[#allocation61_spill] sm:$0xff] }
0x11a7   :  { %6985 = vmatprep.subr.bf16.mxu0 %v11288_v1  ;;  %v11299_v1 = vld [vmem:[#allocation63_spill] sm:$0xff] }
0x11aa   :  { %6987 = vmatpush1.bf16.msra.mxu0 %v11289_v43  ;;  %v11300_v43 = vld [vmem:[#allocation65_spill] sm:$0xff] }
0x11ab   :  { %6989 = vmatprep.subr.bf16.mxu0 %v11290_v6  ;;  %v11301_v6 = vld [vmem:[#allocation67_spill] sm:$0xff] }
0x11ae   :  { %6991 = vmatpush1.bf16.msra.mxu0 %v11291_v44  ;;  %v11302_v44 = vld [vmem:[#allocation84_spill] sm:$0xff] }
0x11af   :  { %6993 = vmatprep.subr.bf16.mxu0 %v11292_v4 }
0x11b2   :  { %6995 = vmatpush1.bf16.msra.mxu0 %v11293_v60  ;;  %v11303_v60 = vld [vmem:[#allocation124_spill] sm:$0xff] }
0x11b3   :  { %6997 = vmatprep.subr.bf16.mxu0 %v11294_v57  ;;  %v3395_v57 = vadd.f32 %v10030_v47, %v11303_v60 }
0x11b6   :  { %6999 = vmatpush1.bf16.msra.mxu0 %v11295_v3 }
0x11b7   :  { %7001 = vmatprep.subr.bf16.mxu0 %v11296_v33  ;;  %v3464_v33 = vadd.f32 %v3463_v2, %v10928_v58 }
0x11ba   :  { %7003 = vmatpush1.bf16.msra.mxu0 %v11297_v46 }
0x11bb   :  { %7005 = vmatprep.subr.bf16.mxu0 %v11298_v36 }
0x11be   :  { %7007 = vmatpush1.bf16.msra.mxu0 %v11299_v1 }
0x11bf   :  { %7009 = vmatprep.subr.bf16.mxu0 %v11300_v43 }
0x11c2   :  { %7011 = vmatpush1.bf16.msra.mxu0 %v11301_v6  ;;  %v3466_v6 = vadd.f32 %v3465_v45, %v9276_v10 }
0x11c3   :  { %7077 = vmatprep.subr.bf16.mxu0 %v11302_v44 }
0x1238   :  { %v3565_v4 = vpop.f32.mrb[52].mxu0 }
0x1239   :  { %v3566_v3 = vadd.f32 %v3565_v4, %v11304_v62  ;;  %v3567_v22 = vpop.f32.mrb[53].mxu0 }
0x123a   :  { %v3568_v46 = vadd.f32 %v3567_v22, %v9267_v23 }
0x123b   :  { %v3640_v36 = vadd.f32 %v3566_v3, %v3395_v57  ;;  %v11313_v57 = vld [vmem:[#allocation89_spill] sm:$0xff] }
0x123c   :  { %v3645_v0 = vadd.f32 %v3568_v46, %v3464_v33 }
0x123d   :  { %v3641_v1 = vmul.f32 0.5, %v3640_v36 }
0x123e   :  { %v3646_v18 = vmul.f32 0.5, %v3645_v0  ;;  %v11308_v0 = vld [vmem:[#allocation111_spill] sm:$0xff] }
0x123f   :  { %7506 = vtanh.f32 %v3641_v1 }
0x1240   :  { %7508 = vtanh.f32 %v3646_v18 }
0x1249   :  { %v7507_v43 = vpop.eup %7506 }
0x124a   :  { %v3643_v9 = vmul.f32 0.5, %v7507_v43  ;;  %v7509_v60 = vpop.eup %7508 }
0x124b   :  { %v3648_v22 = vmul.f32 0.5, %v7509_v60  ;;  %v11312_v60 = vld [vmem:[#allocation86_spill] sm:$0xff] }
0x124c   :  { %v3644_v44 = vadd.f32 0.5, %v3643_v9 }
0x124d   :  { %v3649_v3 = vadd.f32 0.5, %v3648_v22  ;;  %v11317_v22 = vld [vmem:[#allocation97_spill] sm:$0xff] }
0x124e   :  { %v3650_v35 = vmul.f32 %v3644_v44, %v3466_v6  ;;  %v11310_v6 = vld [vmem:[#allocation85_spill] sm:$0xff]  ;;  %v11311_v44 = vld [vmem:[#allocation112_spill] sm:$0xff] }
0x124f   :  { %v3653_v33 = vsub.f32 1.0, %v3649_v3  ;;  %v3655_v36 = vmul.f32 %v3649_v3, %v9939_v27  ;;  %v11306_v27 = vld [vmem:[#allocation82_spill] sm:$0xff] }
0x1250   :  { %v11318_v3 = vld [vmem:[#allocation98_spill] sm:$0xff] }
0x1258   :  { %v3636_v47 = vpop.f32.mrb[54].mxu0 }
0x1259   :  { %v3637_v4 = vadd.f32 %v3636_v47, %v9280_v39  ;;  %v5178_v62 = vpop.f32.mrb[55].mxu0  ;;  %v11314_v47 = vld [vmem:[#allocation90_spill] sm:$0xff] }
0x125a   :  { %v11309_v62 = vld [vmem:[#allocation83_spill] sm:$0xff] }
0x125b   :  { %v3651_v2 = vadd.f32 %v3650_v35, %v3637_v4  ;;  %v11305_v35 = vld [vmem:[#allocation81_spill] sm:$0xff] }
0x125c   :  { %v11315_v4 = vld [vmem:[#allocation93_spill] sm:$0xff] }
0x125d   :  { %7510 = vtanh.f32 %v3651_v2  ;;  %v11316_v2 = vld [vmem:[#allocation94_spill] sm:$0xff] }
0x1267   :  { %v7511_v46 = vpop.eup %7510 }
0x1268   :  { %v3654_v1 = vmul.f32 %v7511_v46, %v3653_v33  ;;  %v11319_v33 = vld [vmem:[#allocation101_spill] sm:$0xff]  ;;  %v11320_v46 = vld [vmem:[#allocation102_spill] sm:$0xff] }
0x126a   :  { %v10103_v43 = vadd.f32 %v3655_v36, %v3654_v1  ;;  %v11321_v36 = vld [vmem:[#allocation105_spill] sm:$0xff]  ;;  %v11322_v1 = vld [vmem:[#allocation106_spill] sm:$0xff] }
0x126c   :  { %v3658_v45 = vrot.slane %v10103_v43, 3 }
0x126e   :  { %v3659_v18 = vrot.slane %v3658_v45, 5  ;;  %v10107_v9 = vsel %vm4486_vm8, %v9943_v53, %v3658_v45  ;;  %v11307_v53 = vld [vmem:[#allocation108_spill] sm:$0xff]  ;;  %v11323_v45 = vld [vmem:[#allocation109_spill] sm:$0xff] }
0x1270   :  { %3725 = vmatprep.mubr.f32.mxu1 %v3659_v18  ;;  %3796 = vmatprep.mubr.f32.mxu0 %v3659_v18 }
0x1271   :  { %3726 = vmatmul.mubr.f32.vlgmr.msra.gmra.mrb[28].mxu1 %v10041_v15  ;;  %3797 = vmatmul.mubr.f32.vlgmr.msra.gmra.mrb[56].mxu0 %v10041_v15 }
0x1272   :  { %7015 = vmatpush1.bf16.msra.mxu1 %v10838_v37  ;;  %3867 = vmatprep.mubr.f32.mxu1 %v3659_v18  ;;  %v11324_v18 = vld [vmem:[#allocation110_spill] sm:$0xff] }
0x1273   :  { %7017 = vmatprep.subr.bf16.mxu1 %v10839_v63  ;;  %7079 = vmatpush1.bf16.msra.mxu0 %v8777_v28 }
0x1274   :  { %7081 = vmatprep.subr.bf16.mxu0 %v10840_v38  ;;  %3969 = vmatprep.mubr.f32.mxu0 %v10765_v17 }
0x1276   :  { %7019 = vmatpush1.bf16.msra.mxu1 %v10841_v8 }
0x1277   :  { %7021 = vmatprep.subr.bf16.mxu1 %v10842_v21  ;;  %7083 = vmatpush1.bf16.msra.mxu0 %v10843_v32 }
0x1278   :  { %7085 = vmatprep.subr.bf16.mxu0 %v10844_v41 }
0x127a   :  { %7023 = vmatpush1.bf16.msra.mxu1 %v10845_v13 }
0x127b   :  { %7025 = vmatprep.subr.bf16.mxu1 %v10929_v19  ;;  %7087 = vmatpush1.bf16.msra.mxu0 %v10930_v61 }
0x127c   :  { %7089 = vmatprep.subr.bf16.mxu0 %v10931_v48 }
0x127e   :  { %7027 = vmatpush1.bf16.msra.mxu1 %v10932_v40 }
0x127f   :  { %7029 = vmatprep.subr.bf16.mxu1 %v10933_v42  ;;  %7091 = vmatpush1.bf16.msra.mxu0 %v10934_v24 }
0x1280   :  { %7093 = vmatprep.subr.bf16.mxu0 %v10935_v30 }
0x1282   :  { %7031 = vmatpush1.bf16.msra.mxu1 %v10853_v52 }
0x1283   :  { %7033 = vmatprep.subr.bf16.mxu1 %v10936_v34  ;;  %7095 = vmatpush1.bf16.msra.mxu0 %v11023_v55 }
0x1284   :  { %7097 = vmatprep.subr.bf16.mxu0 %v11024_v26 }
0x1286   :  { %7035 = vmatpush1.bf16.msra.mxu1 %v11117_v56 }
0x1287   :  { %7037 = vmatprep.subr.bf16.mxu1 %v11118_v14  ;;  %7099 = vmatpush1.bf16.msra.mxu0 %v11211_v54 }
0x1288   :  { %7101 = vmatprep.subr.bf16.mxu0 %v11212_v16 }
0x128a   :  { %7039 = vmatpush1.bf16.msra.mxu1 %v11305_v35 }
0x128b   :  { %7041 = vmatprep.subr.bf16.mxu1 %v11306_v27  ;;  %7103 = vmatpush1.bf16.msra.mxu0 %v11307_v53 }
0x128c   :  { %7105 = vmatprep.subr.bf16.mxu0 %v11308_v0 }
0x128e   :  { %7043 = vmatpush1.bf16.msra.mxu1 %v11309_v62 }
0x128f   :  { %7045 = vmatprep.subr.bf16.mxu1 %v11310_v6  ;;  %7107 = vmatpush1.bf16.msra.mxu0 %v11311_v44 }
0x1290   :  { %7108 = vmatprep.subr.bf16.mxu0 %v10813_v50 }
0x1292   :  { %7047 = vmatpush1.bf16.msra.mxu1 %v11312_v60 }
0x1293   :  { %7049 = vmatprep.subr.bf16.mxu1 %v11313_v57 }
0x1296   :  { %7051 = vmatpush1.bf16.msra.mxu1 %v11314_v47  ;;  %v11325_v47 = vld [vmem:[#allocation113_spill] sm:$0xff] }
0x1297   :  { %7053 = vmatprep.subr.bf16.mxu1 %v11315_v4  ;;  %v11326_v4 = vld [vmem:[#allocation114_spill] sm:$0xff] }
0x129a   :  { %7055 = vmatpush1.bf16.msra.mxu1 %v11316_v2  ;;  %v11327_v2 = vld [vmem:[#allocation4_spill] sm:$0xff] }
0x129b   :  { %7057 = vmatprep.subr.bf16.mxu1 %v11317_v22  ;;  %v11360_v22 = vld [vmem:[#allocation115_spill] sm:$0xff] }
0x129e   :  { %7059 = vmatpush1.bf16.msra.mxu1 %v11318_v3  ;;  %v11328_v3 = vld [vmem:[#allocation6_spill] sm:$0xff] }
0x129f   :  { %7061 = vmatprep.subr.bf16.mxu1 %v11319_v33  ;;  %v11329_v33 = vld [vmem:[#allocation8_spill] sm:$0xff] }
0x12a2   :  { %7063 = vmatpush1.bf16.msra.mxu1 %v11320_v46  ;;  %v11330_v46 = vld [vmem:[#allocation10_spill] sm:$0xff] }
0x12a3   :  { %7065 = vmatprep.subr.bf16.mxu1 %v11321_v36  ;;  %v11331_v36 = vld [vmem:[#allocation12_spill] sm:$0xff] }
0x12a6   :  { %7067 = vmatpush1.bf16.msra.mxu1 %v11322_v1  ;;  %v11332_v1 = vld [vmem:[#allocation14_spill] sm:$0xff] }
0x12a7   :  { %7069 = vmatprep.subr.bf16.mxu1 %v11323_v45  ;;  %v11333_v45 = vld [vmem:[#allocation16_spill] sm:$0xff] }
0x12aa   :  { %7071 = vmatpush1.bf16.msra.mxu1 %v11324_v18  ;;  %v11334_v18 = vld [vmem:[#allocation18_spill] sm:$0xff] }
0x12ab   :  { %7073 = vmatprep.subr.bf16.mxu1 %v11325_v47  ;;  %v11335_v47 = vld [vmem:[#allocation20_spill] sm:$0xff] }
0x12ae   :  { %7075 = vmatpush1.bf16.msra.mxu1 %v11326_v4  ;;  %v11336_v4 = vld [vmem:[#allocation22_spill] sm:$0xff] }
0x12af   :  { %7133 = vmatprep.subr.bf16.mxu1 %v11327_v2  ;;  %v11337_v2 = vld [vmem:[#allocation24_spill] sm:$0xff] }
0x12b1   :  { %3868 = vmatmul.mubr.f32.vlgmr.msra.gmra.mrb[30].mxu1 %v10041_v15  ;;  %v11338_v15 = vld [vmem:[#allocation26_spill] sm:$0xff] }
0x12b2   :  { %7135 = vmatpush1.bf16.msra.mxu1 %v11328_v3  ;;  %v11339_v3 = vld [vmem:[#allocation28_spill] sm:$0xff] }
0x12b3   :  { %7137 = vmatprep.subr.bf16.mxu1 %v11329_v33  ;;  %v11340_v33 = vld [vmem:[#allocation30_spill] sm:$0xff] }
0x12b6   :  { %7139 = vmatpush1.bf16.msra.mxu1 %v11330_v46  ;;  %v11341_v46 = vld [vmem:[#allocation32_spill] sm:$0xff] }
0x12b7   :  { %7141 = vmatprep.subr.bf16.mxu1 %v11331_v36  ;;  %v11342_v36 = vld [vmem:[#allocation34_spill] sm:$0xff] }
0x12ba   :  { %7143 = vmatpush1.bf16.msra.mxu1 %v11332_v1  ;;  %v11343_v1 = vld [vmem:[#allocation36_spill] sm:$0xff] }
0x12bb   :  { %7145 = vmatprep.subr.bf16.mxu1 %v11333_v45  ;;  %v11344_v45 = vld [vmem:[#allocation38_spill] sm:$0xff] }
0x12be   :  { %7147 = vmatpush1.bf16.msra.mxu1 %v11334_v18  ;;  %v11345_v18 = vld [vmem:[#allocation40_spill] sm:$0xff] }
0x12bf   :  { %7149 = vmatprep.subr.bf16.mxu1 %v11335_v47  ;;  %v11346_v47 = vld [vmem:[#allocation42_spill] sm:$0xff] }
0x12c2   :  { %7151 = vmatpush1.bf16.msra.mxu1 %v11336_v4  ;;  %v11347_v4 = vld [vmem:[#allocation44_spill] sm:$0xff] }
0x12c3   :  { %7153 = vmatprep.subr.bf16.mxu1 %v11337_v2  ;;  %v11348_v2 = vld [vmem:[#allocation46_spill] sm:$0xff] }
0x12c6   :  { %7155 = vmatpush1.bf16.msra.mxu1 %v11338_v15  ;;  %v11349_v15 = vld [vmem:[#allocation48_spill] sm:$0xff] }
0x12c7   :  { %7157 = vmatprep.subr.bf16.mxu1 %v11339_v3  ;;  %v11350_v3 = vld [vmem:[#allocation50_spill] sm:$0xff] }
0x12ca   :  { %7159 = vmatpush1.bf16.msra.mxu1 %v11340_v33  ;;  %v11351_v33 = vld [vmem:[#allocation52_spill] sm:$0xff] }
0x12cb   :  { %7161 = vmatprep.subr.bf16.mxu1 %v11341_v46  ;;  %v11352_v46 = vld [vmem:[#allocation54_spill] sm:$0xff] }
0x12ce   :  { %7163 = vmatpush1.bf16.msra.mxu1 %v11342_v36  ;;  %v11353_v36 = vld [vmem:[#allocation56_spill] sm:$0xff] }
0x12cf   :  { %7165 = vmatprep.subr.bf16.mxu1 %v11343_v1  ;;  %v11354_v1 = vld [vmem:[#allocation58_spill] sm:$0xff] }
0x12d2   :  { %7167 = vmatpush1.bf16.msra.mxu1 %v11344_v45  ;;  %v11355_v45 = vld [vmem:[#allocation60_spill] sm:$0xff] }
0x12d3   :  { %7169 = vmatprep.subr.bf16.mxu1 %v11345_v18  ;;  %v11356_v18 = vld [vmem:[#allocation62_spill] sm:$0xff] }
0x12d6   :  { %7171 = vmatpush1.bf16.msra.mxu1 %v11346_v47  ;;  %v11357_v47 = vld [vmem:[#allocation64_spill] sm:$0xff] }
0x12d7   :  { %7173 = vmatprep.subr.bf16.mxu1 %v11347_v4  ;;  %v11358_v4 = vld [vmem:[#allocation66_spill] sm:$0xff] }
0x12da   :  { %7175 = vmatpush1.bf16.msra.mxu1 %v11348_v2  ;;  %v11359_v2 = vld [vmem:[#allocation68_spill] sm:$0xff] }
0x12db   :  { %7177 = vmatprep.subr.bf16.mxu1 %v11349_v15 }
0x12de   :  { %7179 = vmatpush1.bf16.msra.mxu1 %v11350_v3 }
0x12df   :  { %7181 = vmatprep.subr.bf16.mxu1 %v11351_v33 }
0x12e2   :  { %7183 = vmatpush1.bf16.msra.mxu1 %v11352_v46 }
0x12e3   :  { %7185 = vmatprep.subr.bf16.mxu1 %v11353_v36 }
0x12e6   :  { %7187 = vmatpush1.bf16.msra.mxu1 %v11354_v1 }
0x12e7   :  { %7189 = vmatprep.subr.bf16.mxu1 %v11355_v45 }
0x12ea   :  { %7191 = vmatpush1.bf16.msra.mxu1 %v11356_v18 }
0x12eb   :  { %7193 = vmatprep.subr.bf16.mxu1 %v11357_v47 }
0x12ee   :  { %7195 = vmatpush1.bf16.msra.mxu1 %v11358_v4 }
0x12ef   :  { %7261 = vmatprep.subr.bf16.mxu1 %v11359_v2 }
0x1344   :  { %v3727_v15 = vpop.f32.mrb[28].mxu1  ;;  %v3798_v3 = vpop.f32.mrb[56].mxu0 }
0x1345   :  { %v3728_v33 = vadd.f32 %v3727_v15, %v11360_v22  ;;  %v3729_v57 = vpop.f32.mrb[29].mxu1  ;;  %v10194_v46 = vpop.f32.mrb[57].mxu0  ;;  %v3799_v4 = vadd.f32 %v3798_v3, %v9127_v29 }
0x1346   :  { %v3730_v36 = vadd.f32 %v3729_v57, %v9109_v5  ;;  %v3898_v57 = vrot.slane %v10038_v7, 7 }
0x1347   :  { %v3875_v1 = vrot.slane %v3728_v33, 2  ;;  %v3891_v0 = vrot.slane %v3799_v4, 2  ;;  %v11366_v4 = vld [vmem:[#allocation9_spill] sm:$0xff] }
0x1348   :  { %v3883_v60 = vrot.slane %v3730_v36, 2 }
0x1349   :  { %v3877_v45 = vadd.f32 %v3875_v1, %v10900_v20 }
0x134a   :  { %v3885_v18 = vadd.f32 %v3883_v60, %v10901_v49 }
0x134b   :  { %v3878_v47 = vmul.f32 0.5, %v3877_v45 }
0x134c   :  { %v3886_v44 = vmul.f32 0.5, %v3885_v18 }
0x134d   :  { %7512 = vtanh.f32 %v3878_v47  ;;  %v11365_v47 = vld [vmem:[#allocation7_spill] sm:$0xff] }
0x134e   :  { %7514 = vtanh.f32 %v3886_v44 }
0x1357   :  { %v7513_v2 = vpop.eup %7512 }
0x1358   :  { %v7515_v6 = vpop.eup %7514  ;;  %v3880_v15 = vmul.f32 0.5, %v7513_v2  ;;  %v11367_v2 = vld [vmem:[#allocation11_spill] sm:$0xff] }
0x1359   :  { %v3888_v22 = vmul.f32 0.5, %v7515_v6  ;;  %v11363_v6 = vld [vmem:[#allocation122_spill] sm:$0xff] }
0x135a   :  { %v3881_v62 = vadd.f32 0.5, %v3880_v15  ;;  %v11368_v15 = vld [vmem:[#allocation13_spill] sm:$0xff] }
0x135b   :  { %v3889_v53 = vadd.f32 0.5, %v3888_v22  ;;  %v11364_v22 = vld [vmem:[#allocation5_spill] sm:$0xff] }
0x135c   :  { %v3893_v33 = vmul.f32 %v3891_v0, %v3881_v62  ;;  %v11361_v0 = vld [vmem:[#allocation120_spill] sm:$0xff]  ;;  %v11362_v62 = vld [vmem:[#allocation121_spill] sm:$0xff] }
0x135d   :  { %v3900_v36 = vmul.f32 %v3898_v57, %v3889_v53  ;;  %v3896_v60 = vsub.f32 1.0, %v3889_v53  ;;  %v11369_v57 = vld [vmem:[#allocation15_spill] sm:$0xff] }
0x135e   :  { %v3894_v1 = vadd.f32 %v3893_v33, %v9131_v51  ;;  %v11370_v33 = vld [vmem:[#allocation17_spill] sm:$0xff] }
0x1360   :  { %7516 = vtanh.f32 %v3894_v1  ;;  %v11372_v1 = vld [vmem:[#allocation21_spill] sm:$0xff] }
0x136a   :  { %v7517_v45 = vpop.eup %7516 }
0x136b   :  { %v3897_v18 = vmul.f32 %v7517_v45, %v3896_v60  ;;  %v11373_v60 = vld [vmem:[#allocation23_spill] sm:$0xff]  ;;  %v11374_v45 = vld [vmem:[#allocation25_spill] sm:$0xff] }
0x136d   :  { %v10202_v44 = vadd.f32 %v3900_v36, %v3897_v18  ;;  %v11371_v36 = vld [vmem:[#allocation19_spill] sm:$0xff] }
0x136e   :  { %v11375_v18 = vld [vmem:[#allocation27_spill] sm:$0xff] }
0x136f   :  { %v10205_v3 = vrot.slane %v10202_v44, 6 }
0x1371   :  { %3970 = vmatmul.mubr.f32.vlgmr.msra.gmra.mrb[58].mxu0 %v10205_v3 }
0x1372   :  { %7110 = vmatpush3.bf16.msra.mxu0 %v9140_v25  ;;  %5211 = vmatprep.mubr.msk.f32.mxu0 %vm7544_vm1, %v10765_v17 }
0x1373   :  { %7111 = vmatprep.subr.bf16.mxu0 %v10813_v50 }
0x1376   :  { %7113 = vmatpush3.bf16.msra.mxu0 %v9152_v59 }
0x1377   :  { %7114 = vmatprep.subr.bf16.mxu0 %v10813_v50 }
0x137a   :  { %7116 = vmatpush3.bf16.msra.mxu0 %v9164_v31 }
0x137b   :  { %7117 = vmatprep.subr.bf16.mxu0 %v10813_v50 }
0x137e   :  { %7119 = vmatpush3.bf16.msra.mxu0 %v9174_v12 }
0x137f   :  { %7120 = vmatprep.subr.bf16.mxu0 %v10813_v50 }
0x1382   :  { %7122 = vmatpush3.bf16.msra.mxu0 %v9184_v11 }
0x1383   :  { %7123 = vmatprep.subr.bf16.mxu0 %v10813_v50 }
0x1384   :  { %v3869_v7 = vpop.f32.mrb[30].mxu1 }
0x1385   :  { %v3871_v53 = vpop.f32.mrb[31].mxu1 }
0x1386   :  { %7125 = vmatpush3.bf16.msra.mxu0 %v11361_v0 }
0x1387   :  { %7126 = vmatprep.subr.bf16.mxu0 %v10813_v50 }
0x138a   :  { %7128 = vmatpush3.bf16.msra.mxu0 %v11362_v62 }
0x138b   :  { %7129 = vmatprep.subr.bf16.mxu0 %v10813_v50 }
0x138e   :  { %7131 = vmatpush3.bf16.msra.mxu0 %v11363_v6 }
0x138f   :  { %7197 = vmatprep.subr.bf16.mxu0 %v11364_v22  ;;  %v11376_v22 = vld [vmem:[#allocation29_spill] sm:$0xff] }
0x1391   :  { %5212 = vmatmul.mubr.f32.vlgmr.msra.gmra.mrb[60].mxu0 %v10205_v3 }
0x1392   :  { %7199 = vmatpush1.bf16.msra.mxu0 %v11365_v47  ;;  %v11377_v47 = vld [vmem:[#allocation31_spill] sm:$0xff] }
0x1393   :  { %7201 = vmatprep.subr.bf16.mxu0 %v11366_v4  ;;  %v11378_v4 = vld [vmem:[#allocation33_spill] sm:$0xff] }
0x1396   :  { %7203 = vmatpush1.bf16.msra.mxu0 %v11367_v2  ;;  %v11379_v2 = vld [vmem:[#allocation35_spill] sm:$0xff] }
0x1397   :  { %7205 = vmatprep.subr.bf16.mxu0 %v11368_v15  ;;  %v11380_v15 = vld [vmem:[#allocation37_spill] sm:$0xff] }
0x139a   :  { %7207 = vmatpush1.bf16.msra.mxu0 %v11369_v57  ;;  %v11381_v57 = vld [vmem:[#allocation39_spill] sm:$0xff] }
0x139b   :  { %7209 = vmatprep.subr.bf16.mxu0 %v11370_v33  ;;  %v11382_v33 = vld [vmem:[#allocation41_spill] sm:$0xff] }
0x139e   :  { %7211 = vmatpush1.bf16.msra.mxu0 %v11371_v36  ;;  %v11383_v36 = vld [vmem:[#allocation43_spill] sm:$0xff] }
0x139f   :  { %7213 = vmatprep.subr.bf16.mxu0 %v11372_v1  ;;  %v11384_v1 = vld [vmem:[#allocation45_spill] sm:$0xff] }
0x13a2   :  { %7215 = vmatpush1.bf16.msra.mxu0 %v11373_v60  ;;  %v11385_v60 = vld [vmem:[#allocation47_spill] sm:$0xff] }
0x13a3   :  { %7217 = vmatprep.subr.bf16.mxu0 %v11374_v45  ;;  %v11386_v45 = vld [vmem:[#allocation49_spill] sm:$0xff] }
0x13a6   :  { %7219 = vmatpush1.bf16.msra.mxu0 %v11375_v18  ;;  %v11387_v18 = vld [vmem:[#allocation51_spill] sm:$0xff] }
0x13a7   :  { %7221 = vmatprep.subr.bf16.mxu0 %v11376_v22  ;;  %v11388_v22 = vld [vmem:[#allocation53_spill] sm:$0xff] }
0x13aa   :  { %7223 = vmatpush1.bf16.msra.mxu0 %v11377_v47  ;;  %v11389_v47 = vld [vmem:[#allocation55_spill] sm:$0xff] }
0x13ab   :  { %7225 = vmatprep.subr.bf16.mxu0 %v11378_v4  ;;  %v11390_v4 = vld [vmem:[#allocation57_spill] sm:$0xff] }
0x13ae   :  { %7227 = vmatpush1.bf16.msra.mxu0 %v11379_v2  ;;  %v11391_v2 = vld [vmem:[#allocation59_spill] sm:$0xff] }
0x13af   :  { %7229 = vmatprep.subr.bf16.mxu0 %v11380_v15  ;;  %v11392_v15 = vld [vmem:[#allocation61_spill] sm:$0xff] }
0x13b2   :  { %7231 = vmatpush1.bf16.msra.mxu0 %v11381_v57  ;;  %v11393_v57 = vld [vmem:[#allocation63_spill] sm:$0xff] }
0x13b3   :  { %7233 = vmatprep.subr.bf16.mxu0 %v11382_v33  ;;  %v11394_v33 = vld [vmem:[#allocation65_spill] sm:$0xff] }
0x13b6   :  { %7235 = vmatpush1.bf16.msra.mxu0 %v11383_v36  ;;  %v11395_v36 = vld [vmem:[#allocation67_spill] sm:$0xff] }
0x13b7   :  { %7237 = vmatprep.subr.bf16.mxu0 %v11384_v1  ;;  %v11396_v1 = vld [vmem:[#allocation84_spill] sm:$0xff] }
0x13ba   :  { %7239 = vmatpush1.bf16.msra.mxu0 %v11385_v60 }
0x13bb   :  { %7241 = vmatprep.subr.bf16.mxu0 %v11386_v45  ;;  %v11397_v45 = vld [vmem:[#allocation124_spill] sm:$0xff] }
0x13be   :  { %7243 = vmatpush1.bf16.msra.mxu0 %v11387_v18  ;;  %v3801_v18 = vadd.f32 %v10194_v46, %v11397_v45 }
0x13bf   :  { %7245 = vmatprep.subr.bf16.mxu0 %v11388_v22  ;;  %v11398_v22 = vld [vmem:[#allocation125_spill] sm:$0xff] }
0x13c2   :  { %7247 = vmatpush1.bf16.msra.mxu0 %v11389_v47 }
0x13c3   :  { %7249 = vmatprep.subr.bf16.mxu0 %v11390_v4  ;;  %v3870_v4 = vadd.f32 %v3869_v7, %v10928_v58 }
0x13c6   :  { %7251 = vmatpush1.bf16.msra.mxu0 %v11391_v2 }
0x13c7   :  { %7253 = vmatprep.subr.bf16.mxu0 %v11392_v15 }
0x13ca   :  { %7255 = vmatpush1.bf16.msra.mxu0 %v11393_v57 }
0x13cb   :  { %7257 = vmatprep.subr.bf16.mxu0 %v11394_v33 }
0x13ce   :  { %7259 = vmatpush1.bf16.msra.mxu0 %v11395_v36  ;;  %v3872_v36 = vadd.f32 %v3871_v53, %v9276_v10 }
0x13cf   :  { %7325 = vmatprep.subr.bf16.mxu0 %v11396_v1 }
0x1444   :  { %v3971_v60 = vpop.f32.mrb[58].mxu0 }
0x1445   :  { %v3972_v47 = vadd.f32 %v3971_v60, %v11398_v22  ;;  %v3973_v6 = vpop.f32.mrb[59].mxu0 }
0x1446   :  { %v3974_v2 = vadd.f32 %v3973_v6, %v9267_v23 }
0x1447   :  { %v4046_v15 = vadd.f32 %v3972_v47, %v3801_v18 }
0x1448   :  { %v4051_v62 = vadd.f32 %v3974_v2, %v3870_v4 }
0x1449   :  { %v4047_v57 = vmul.f32 0.5, %v4046_v15 }
0x144a   :  { %v4052_v11 = vmul.f32 0.5, %v4051_v62 }
0x144b   :  { %7518 = vtanh.f32 %v4047_v57 }
0x144c   :  { %7520 = vtanh.f32 %v4052_v11 }
0x1455   :  { %v7519_v33 = vpop.eup %7518 }
0x1456   :  { %v4049_v0 = vmul.f32 0.5, %v7519_v33  ;;  %v7521_v45 = vpop.eup %7520 }
0x1457   :  { %v4054_v6 = vmul.f32 0.5, %v7521_v45 }
0x1458   :  { %v4050_v1 = vadd.f32 0.5, %v4049_v0 }
0x1459   :  { %v4055_v18 = vadd.f32 0.5, %v4054_v6 }
0x145a   :  { %v4056_v12 = vmul.f32 %v4050_v1, %v3872_v36 }
0x145b   :  { %v4059_v47 = vsub.f32 1.0, %v4055_v18  ;;  %v4061_v2 = vmul.f32 %v4055_v18, %v10103_v43 }
0x1464   :  { %v4042_v46 = vpop.f32.mrb[60].mxu0 }
0x1465   :  { %v4043_v60 = vadd.f32 %v4042_v46, %v9280_v39  ;;  %v5213_v22 = vpop.f32.mrb[61].mxu0 }
0x1467   :  { %v4057_v7 = vadd.f32 %v4056_v12, %v4043_v60  ;;  %v11400_v12 = vld [vmem:[#allocation111_spill] sm:$0xff] }
0x1469   :  { %7522 = vtanh.f32 %v4057_v7 }
0x1473   :  { %v7523_v4 = vpop.eup %7522 }
0x1474   :  { %v4060_v15 = vmul.f32 %v7523_v4, %v4059_v47 }
0x1476   :  { %v10267_v57 = vadd.f32 %v4061_v2, %v4060_v15 }
0x1478   :  { %v4064_v53 = vrot.slane %v10267_v57, 2 }
0x147a   :  { %v4065_v11 = vrot.slane %v4064_v53, 6  ;;  %v10271_v0 = vsel %vm4488_vm9, %v10107_v9, %v4064_v53 }
0x147c   :  { %4131 = vmatprep.mubr.f32.mxu1 %v4065_v11  ;;  %4202 = vmatprep.mubr.f32.mxu0 %v4065_v11 }
0x147d   :  { %4132 = vmatmul.mubr.f32.vlgmr.msra.gmra.mrb[32].mxu1 %v10205_v3  ;;  %4203 = vmatmul.mubr.f32.vlgmr.msra.gmra.mrb[62].mxu0 %v10205_v3 }
0x147e   :  { %7263 = vmatpush1.bf16.msra.mxu1 %v10838_v37  ;;  %4273 = vmatprep.mubr.f32.mxu1 %v4065_v11  ;;  %v11401_v37 = vld [vmem:[#allocation83_spill] sm:$0xff] }
0x147f   :  { %7265 = vmatprep.subr.bf16.mxu1 %v10839_v63  ;;  %7327 = vmatpush1.bf16.msra.mxu0 %v8777_v28  ;;  %v11399_v28 = vld [vmem:[#allocation108_spill] sm:$0xff]  ;;  %v11402_v63 = vld [vmem:[#allocation85_spill] sm:$0xff] }
0x1480   :  { %7329 = vmatprep.subr.bf16.mxu0 %v10840_v38  ;;  %4375 = vmatprep.mubr.f32.mxu0 %v10765_v17  ;;  %v11403_v38 = vld [vmem:[#allocation112_spill] sm:$0xff] }
0x1482   :  { %7267 = vmatpush1.bf16.msra.mxu1 %v10841_v8  ;;  %v11404_v8 = vld [vmem:[#allocation86_spill] sm:$0xff] }
0x1483   :  { %7269 = vmatprep.subr.bf16.mxu1 %v10842_v21  ;;  %7331 = vmatpush1.bf16.msra.mxu0 %v10843_v32  ;;  %v11405_v21 = vld [vmem:[#allocation89_spill] sm:$0xff]  ;;  %v11406_v32 = vld [vmem:[#allocation90_spill] sm:$0xff] }
0x1484   :  { %7333 = vmatprep.subr.bf16.mxu0 %v10844_v41  ;;  %v11407_v41 = vld [vmem:[#allocation93_spill] sm:$0xff] }
0x1486   :  { %7271 = vmatpush1.bf16.msra.mxu1 %v10845_v13  ;;  %v11408_v13 = vld [vmem:[#allocation94_spill] sm:$0xff] }
0x1487   :  { %7273 = vmatprep.subr.bf16.mxu1 %v10929_v19  ;;  %7335 = vmatpush1.bf16.msra.mxu0 %v10930_v61  ;;  %v11410_v19 = vld [vmem:[#allocation98_spill] sm:$0xff]  ;;  %v11411_v61 = vld [vmem:[#allocation101_spill] sm:$0xff] }
0x1488   :  { %7337 = vmatprep.subr.bf16.mxu0 %v10931_v48  ;;  %v11412_v48 = vld [vmem:[#allocation102_spill] sm:$0xff] }
0x148a   :  { %7275 = vmatpush1.bf16.msra.mxu1 %v10932_v40  ;;  %v11413_v40 = vld [vmem:[#allocation105_spill] sm:$0xff] }
0x148b   :  { %7277 = vmatprep.subr.bf16.mxu1 %v10933_v42  ;;  %7339 = vmatpush1.bf16.msra.mxu0 %v10934_v24  ;;  %v11414_v42 = vld [vmem:[#allocation106_spill] sm:$0xff]  ;;  %v11415_v24 = vld [vmem:[#allocation109_spill] sm:$0xff] }
0x148c   :  { %7341 = vmatprep.subr.bf16.mxu0 %v10935_v30  ;;  %v11416_v30 = vld [vmem:[#allocation110_spill] sm:$0xff] }
0x148e   :  { %7279 = vmatpush1.bf16.msra.mxu1 %v10853_v52  ;;  %v11409_v52 = vld [vmem:[#allocation97_spill] sm:$0xff] }
0x148f   :  { %7281 = vmatprep.subr.bf16.mxu1 %v10936_v34  ;;  %7343 = vmatpush1.bf16.msra.mxu0 %v11023_v55  ;;  %v11417_v34 = vld [vmem:[#allocation113_spill] sm:$0xff]  ;;  %v11418_v55 = vld [vmem:[#allocation114_spill] sm:$0xff] }
0x1490   :  { %7345 = vmatprep.subr.bf16.mxu0 %v11024_v26 }
0x1492   :  { %7283 = vmatpush1.bf16.msra.mxu1 %v11117_v56 }
0x1493   :  { %7285 = vmatprep.subr.bf16.mxu1 %v11118_v14  ;;  %7347 = vmatpush1.bf16.msra.mxu0 %v11211_v54  ;;  %v11419_v14 = vld [vmem:[#allocation115_spill] sm:$0xff] }
0x1494   :  { %7349 = vmatprep.subr.bf16.mxu0 %v11212_v16 }
0x1496   :  { %7287 = vmatpush1.bf16.msra.mxu1 %v11305_v35 }
0x1497   :  { %7289 = vmatprep.subr.bf16.mxu1 %v11306_v27  ;;  %7351 = vmatpush1.bf16.msra.mxu0 %v11399_v28  ;;  %v4503_v28 = vld [vmem:[%s10438_s15] sm:$0xff] }
0x1498   :  { %7353 = vmatprep.subr.bf16.mxu0 %v11400_v12  ;;  %v4504_v12 = vld [vmem:[%s10438_s15 + $0x8] sm:$0xff] }
0x149a   :  { %7291 = vmatpush1.bf16.msra.mxu1 %v11401_v37  ;;  %v4505_v37 = vld [vmem:[%s10438_s15 + $0x10] sm:$0xff] }
0x149b   :  { %7293 = vmatprep.subr.bf16.mxu1 %v11402_v63  ;;  %7355 = vmatpush1.bf16.msra.mxu0 %v11403_v38  ;;  %v7381_v63 = vpack.c.bf16 %v4504_v12, %v4503_v28  ;;  %v4506_v38 = vld [vmem:[%s10438_s15 + $0x18] sm:$0xff] }
0x149c   :  { %7356 = vmatprep.subr.bf16.mxu0 %v10813_v50 }
0x149e   :  { %7295 = vmatpush1.bf16.msra.mxu1 %v11404_v8  ;;  %v7384_v8 = vpack.c.bf16 %v4506_v38, %v4505_v37 }
0x149f   :  { %7297 = vmatprep.subr.bf16.mxu1 %v11405_v21  ;;  %v4507_v21 = vld [vmem:[%s10438_s15 + $0x20] sm:$0xff] }
0x14a2   :  { %7299 = vmatpush1.bf16.msra.mxu1 %v11406_v32  ;;  %v4508_v32 = vld [vmem:[%s10438_s15 + $0x28] sm:$0xff] }
0x14a3   :  { %7301 = vmatprep.subr.bf16.mxu1 %v11407_v41  ;;  %v7387_v41 = vpack.c.bf16 %v4508_v32, %v4507_v21 }
0x14a6   :  { %7303 = vmatpush1.bf16.msra.mxu1 %v11408_v13  ;;  %v4509_v13 = vld [vmem:[%s10438_s15 + $0x30] sm:$0xff] }
0x14a7   :  { %7305 = vmatprep.subr.bf16.mxu1 %v11409_v52  ;;  %v4510_v52 = vld [vmem:[%s10438_s15 + $0x38] sm:$0xff] }
0x14aa   :  { %7307 = vmatpush1.bf16.msra.mxu1 %v11410_v19  ;;  %v7390_v19 = vpack.c.bf16 %v4510_v52, %v4509_v13 }
0x14ab   :  { %7309 = vmatprep.subr.bf16.mxu1 %v11411_v61  ;;  %v4511_v61 = vld [vmem:[%s10438_s15 + $0x40] sm:$0xff] }
0x14ae   :  { %7311 = vmatpush1.bf16.msra.mxu1 %v11412_v48  ;;  %v4512_v48 = vld [vmem:[%s10438_s15 + $0x48] sm:$0xff] }
0x14af   :  { %7313 = vmatprep.subr.bf16.mxu1 %v11413_v40  ;;  %v7393_v40 = vpack.c.bf16 %v4512_v48, %v4511_v61 }
0x14b2   :  { %7315 = vmatpush1.bf16.msra.mxu1 %v11414_v42  ;;  %v4513_v42 = vld [vmem:[%s10438_s15 + $0x50] sm:$0xff] }
0x14b3   :  { %7317 = vmatprep.subr.bf16.mxu1 %v11415_v24  ;;  %v4514_v24 = vld [vmem:[%s10438_s15 + $0x58] sm:$0xff] }
0x14b6   :  { %7319 = vmatpush1.bf16.msra.mxu1 %v11416_v30  ;;  %v7396_v30 = vpack.c.bf16 %v4514_v24, %v4513_v42 }
0x14b7   :  { %7321 = vmatprep.subr.bf16.mxu1 %v11417_v34  ;;  %v4515_v34 = vld [vmem:[%s10438_s15 + $0x60] sm:$0xff] }
0x14ba   :  { %7323 = vmatpush1.bf16.msra.mxu1 %v11418_v55  ;;  %v4516_v55 = vld [vmem:[%s10438_s15 + $0x68] sm:$0xff] }
0x14bb   :  { %7380 = vmatprep.subr.bf16.mxu1 %v10813_v50 }
0x14bd   :  { %4274 = vmatmul.mubr.f32.vlgmr.msra.gmra.mrb[34].mxu1 %v10205_v3 }
0x14be   :  { %5281 = vmatprep.mubr.msk.f32.mxu1 %vm7544_vm1, %v10765_v17  ;;  %7382 = vmatpush3.bf16.msra.mxu1 %v7381_v63 }
0x14bf   :  { %7383 = vmatprep.subr.bf16.mxu1 %v10813_v50 }
0x14c2   :  { %7385 = vmatpush3.bf16.msra.mxu1 %v7384_v8 }
0x14c3   :  { %7386 = vmatprep.subr.bf16.mxu1 %v10813_v50 }
0x14c6   :  { %7388 = vmatpush3.bf16.msra.mxu1 %v7387_v41 }
0x14c7   :  { %7389 = vmatprep.subr.bf16.mxu1 %v10813_v50 }
0x14ca   :  { %7391 = vmatpush3.bf16.msra.mxu1 %v7390_v19 }
0x14cb   :  { %7392 = vmatprep.subr.bf16.mxu1 %v10813_v50 }
0x14ce   :  { %7394 = vmatpush3.bf16.msra.mxu1 %v7393_v40 }
0x14cf   :  { %7395 = vmatprep.subr.bf16.mxu1 %v10813_v50 }
0x14d2   :  { %7397 = vmatpush3.bf16.msra.mxu1 %v7396_v30 }
0x14d3   :  { %7398 = vmatprep.subr.bf16.mxu1 %v10813_v50 }
0x1550   :  { %v4133_v26 = vpop.f32.mrb[32].mxu1  ;;  %v4204_v56 = vpop.f32.mrb[62].mxu0 }
0x1551   :  { %v4134_v54 = vadd.f32 %v4133_v26, %v11419_v14  ;;  %v4135_v16 = vpop.f32.mrb[33].mxu1  ;;  %v10328_v43 = vpop.f32.mrb[63].mxu0  ;;  %v4205_v33 = vadd.f32 %v4204_v56, %v9127_v29  ;;  %v11420_v29 = vld [vmem:[#allocation118_spill] sm:$0xff]  ;;  %v7399_v26 = vpack.c.bf16 %v4516_v55, %v4515_v34  ;;  %v4518_v14 = vld [vmem:[%s10438_s15 + $0x78] sm:$0xff] }
0x1552   :  { %v4136_v9 = vadd.f32 %v4135_v16, %v9109_v5  ;;  %v4304_v5 = vrot.slane %v10202_v44, 7  ;;  %v11422_v44 = vld [vmem:[#allocation120_spill] sm:$0xff]  ;;  %v4517_v56 = vld [vmem:[%s10438_s15 + $0x70] sm:$0xff] }
0x1553   :  { %v4281_v35 = vrot.slane %v4134_v54, 1  ;;  %v4297_v6 = vrot.slane %v4205_v33, 1  ;;  %7400 = vmatpush3.bf16.msra.mxu1 %v7399_v26  ;;  %v7402_v54 = vpack.c.bf16 %v4518_v14, %v4517_v56 }
0x1554   :  { %v4289_v27 = vrot.slane %v4136_v9, 1  ;;  %7401 = vmatprep.subr.bf16.mxu1 %v10813_v50  ;;  %v11425_v9 = vld [vmem:[#allocation124_spill] sm:$0xff] }
0x1555   :  { %v4283_v62 = vadd.f32 %v4281_v35, %v10900_v20  ;;  %v4207_v35 = vadd.f32 %v10328_v43, %v11425_v9 }
0x1556   :  { %v4291_v45 = vadd.f32 %v4289_v27, %v10901_v49  ;;  %v11426_v27 = vld [vmem:[#allocation125_spill] sm:$0xff] }
0x1557   :  { %v4284_v22 = vmul.f32 0.5, %v4283_v62  ;;  %7403 = vmatpush3.bf16.msra.mxu1 %v7402_v54 }
0x1558   :  { %v4292_v3 = vmul.f32 0.5, %v4291_v45 }
0x1559   :  { %7524 = vtanh.f32 %v4284_v22 }
0x155a   :  { %7526 = vtanh.f32 %v4292_v3 }
0x1563   :  { %v7525_v36 = vpop.eup %7524 }
0x1564   :  { %v7527_v1 = vpop.eup %7526  ;;  %v4286_v46 = vmul.f32 0.5, %v7525_v36 }
0x1565   :  { %v4294_v60 = vmul.f32 0.5, %v7527_v1 }
0x1566   :  { %v4287_v7 = vadd.f32 0.5, %v4286_v46 }
0x1567   :  { %v4295_v18 = vadd.f32 0.5, %v4294_v60 }
0x1568   :  { %v4299_v47 = vmul.f32 %v4297_v6, %v4287_v7 }
0x1569   :  { %v4306_v4 = vmul.f32 %v4304_v5, %v4295_v18  ;;  %v4302_v49 = vsub.f32 1.0, %v4295_v18 }
0x156a   :  { %v4300_v20 = vadd.f32 %v4299_v47, %v9131_v51  ;;  %v11421_v51 = vld [vmem:[#allocation119_spill] sm:$0xff] }
0x156c   :  { %7528 = vtanh.f32 %v4300_v20 }
0x1576   :  { %v7529_v2 = vpop.eup %7528 }
0x1577   :  { %v4303_v15 = vmul.f32 %v7529_v2, %v4302_v49 }
0x1579   :  { %v4307_v53 = vadd.f32 %v4306_v4, %v4303_v15 }
0x157b   :  { %v4309_v11 = vrot.slane %v4307_v53, 7 }
0x157d   :  { %4376 = vmatmul.mubr.f32.vlgmr.msra.gmra.mrb[64].mxu0 %v4309_v11 }
0x157e   :  { %7358 = vmatpush3.bf16.msra.mxu0 %v9140_v25  ;;  %5246 = vmatprep.mubr.msk.f32.mxu0 %vm7544_vm1, %v10765_v17 }
0x157f   :  { %7359 = vmatprep.subr.bf16.mxu0 %v10813_v50 }
0x1582   :  { %7361 = vmatpush3.bf16.msra.mxu0 %v9152_v59  ;;  %v11423_v59 = vld [vmem:[#allocation121_spill] sm:$0xff] }
0x1583   :  { %7362 = vmatprep.subr.bf16.mxu0 %v10813_v50 }
0x1586   :  { %7364 = vmatpush3.bf16.msra.mxu0 %v9164_v31  ;;  %v11424_v31 = vld [vmem:[#allocation122_spill] sm:$0xff] }
0x1587   :  { %7365 = vmatprep.subr.bf16.mxu0 %v10813_v50 }
0x158a   :  { %7367 = vmatpush3.bf16.msra.mxu0 %v11420_v29 }
0x158b   :  { %7368 = vmatprep.subr.bf16.mxu0 %v10813_v50 }
0x158e   :  { %7370 = vmatpush3.bf16.msra.mxu0 %v11421_v51 }
0x158f   :  { %7371 = vmatprep.subr.bf16.mxu0 %v10813_v50 }
0x1590   :  { %v4275_v25 = vpop.f32.mrb[34].mxu1 }
0x1591   :  { %v4277_v17 = vpop.f32.mrb[35].mxu1  ;;  %v4276_v22 = vadd.f32 %v4275_v25, %v10928_v58 }
0x1592   :  { %7373 = vmatpush3.bf16.msra.mxu0 %v11422_v44 }
0x1593   :  { %7374 = vmatprep.subr.bf16.mxu0 %v10813_v50 }
0x1596   :  { %7376 = vmatpush3.bf16.msra.mxu0 %v11423_v59 }
0x1597   :  { %7377 = vmatprep.subr.bf16.mxu0 %v10813_v50  ;;  %v4278_v50 = vadd.f32 %v4277_v17, %v9276_v10 }
0x159a   :  { %7379 = vmatpush3.bf16.msra.mxu0 %v11424_v31 }
0x159d   :  { %5247 = vmatmul.mubr.f32.vlgmr.msra.gmra.mrb[66].mxu0 %v4309_v11 }
0x1650   :  { %v4377_v16 = vpop.f32.mrb[64].mxu0 }
0x1651   :  { %v4378_v62 = vadd.f32 %v4377_v16, %v11426_v27  ;;  %v4379_v45 = vpop.f32.mrb[65].mxu0 }
0x1652   :  { %v4380_v3 = vadd.f32 %v4379_v45, %v9267_v23 }
0x1653   :  { %v4452_v33 = vadd.f32 %v4378_v62, %v4207_v35 }
0x1654   :  { %v4457_v36 = vadd.f32 %v4380_v3, %v4276_v22 }
0x1655   :  { %v4453_v1 = vmul.f32 0.5, %v4452_v33 }
0x1656   :  { %v4458_v6 = vmul.f32 0.5, %v4457_v36 }
0x1657   :  { %7530 = vtanh.f32 %v4453_v1 }
0x1658   :  { %7532 = vtanh.f32 %v4458_v6 }
0x1661   :  { %v7531_v46 = vpop.eup %7530 }
0x1662   :  { %v4455_v60 = vmul.f32 0.5, %v7531_v46  ;;  %v7533_v4 = vpop.eup %7532 }
0x1663   :  { %v4460_v23 = vmul.f32 0.5, %v7533_v4 }
0x1664   :  { %v4456_v7 = vadd.f32 0.5, %v4455_v60 }
0x1665   :  { %v4461_v20 = vadd.f32 0.5, %v4460_v23 }
0x1666   :  { %v4462_v18 = vmul.f32 %v4456_v7, %v4278_v50 }
0x1667   :  { %v4465_v49 = vsub.f32 1.0, %v4461_v20  ;;  %v4467_v15 = vmul.f32 %v4461_v20, %v10267_v57  ;;  %v4620_v57 = vld [vmem:[%s10439_s16] ss:$0 sm:$0xff] }
0x1670   :  { %v4448_v43 = vpop.f32.mrb[66].mxu0 }
0x1671   :  { %v4449_v5 = vadd.f32 %v4448_v43, %v9280_v39  ;;  %v5248_v47 = vpop.f32.mrb[67].mxu0 }
0x1673   :  { %v4463_v58 = vadd.f32 %v4462_v18, %v4449_v5 }
0x1675   :  { %7534 = vtanh.f32 %v4463_v58 }
0x167f   :  { %v7535_v2 = vpop.eup %7534 }
0x1680   :  { %v4466_v53 = vmul.f32 %v7535_v2, %v4465_v49 }
0x1682   :  { %v4468_v11 = vadd.f32 %v4467_v15, %v4466_v53 }
0x1684   :  { %v4476_v10 = vrot.slane %v4468_v11, 1 }
0x1686   :  { %v4491_v29 = vsel %vm4490_vm10, %v10271_v0, %v4476_v10 }
0x1687   :  { %v4495_v51 = vand.u32 2147483647, %v4491_v29  ;;  %v4494_v31 = vmin.f32 %v4491_v29, 0.0 }
0x1689   :  { %v4496_v25 = vsub.f32 0.0, %v4495_v51 }
0x168b   :  { %v4497_v17 = vmul.f32 1.442695, %v4496_v25 }
0x168d   :  { %7536 = vpow2.f32 %v4497_v17 }
0x1697   :  { %v7537_v39 = vpop.eup %7536 }
0x1698   :  { %v4499_v44 = vadd.f32 1.0, %v7537_v39 }
0x169a   :  { %7538 = vlog2.f32 %v4499_v44 }
0x16a4   :  { %v7539_v59 = vpop.eup %7538 }
0x16a5   :  { %v4501_v28 = vmul.f32 0.6931472, %v7539_v59 }
0x16a7   :  { %v4502_v12 = vsub.f32 %v4494_v31, %v4501_v28 }
0x16a9   :  { %5282 = vmatmul.mubr.f32.vlgmr.msra.gmra.mrb[36].mxu1 %v4502_v12 }
0x177c   :  { %v4592_v37 = vpop.f32.mrb[36].mxu1 }
0x177d   :  { %v4593_v63 = vadd.f32 %v4620_v57, %v4592_v37  ;;  %v5283_v0 = vpop.f32.mrb[37].mxu1 }
0x177f   :  { %4597 = vst.msk [vmem:[%s10440_s17] sm:$0xff] %vm4596_vm11, %v4593_v63 }

</bundles_post_ra>
